<compile_context>
chip_gen: v6e
topology: v6e:2x2x1
jax: 0.10.0
libtpu: 0.0.40
codegen_flags: <defaults>
</compile_context>

<pallas_src>
import math

import numpy as np
import jax
import jax.numpy as jnp
from jax.experimental import pallas as pl
from jax.experimental.pallas import tpu as pltpu

EPS = 1e-5          # PyTorch BatchNorm2d default eps
NEG_SLOPE = 0.01    # PyTorch LeakyReLU default negative_slope


# ---------------------------------------------------------------------------
# The single fused kernel
# ---------------------------------------------------------------------------
def _make_upblock_kernel(B, C2, CC, COUT, NPAD, NOUT, WP, count):
    shifts = [dy * WP + dx for dy in range(3) for dx in range(3)]
    inv_n = 1.0 / count

    def kernel(x1_ref, x2p_ref, w1x1_ref, b1x1_ref, k_ref,
               w1f_ref, w2f_ref, g1_ref, be1_ref, g2_ref, be2_ref, mask_ref,
               out_ref, p1_ref, a1_ref, p2_ref, a2_ref):
        mask = mask_ref[...]                                   # (1, B*NOUT)

        # ---- build padded concat input [x2 | up(conv1x1(x1))] --------------
        p1_ref[...] = jnp.zeros_like(p1_ref)
        for b in range(B):
            base = b * NPAD
            # x2 branch (host pre-padded to row stride WP): one shifted store.
            p1_ref[0:C2, base + WP:base + WP + NOUT] = x2p_ref[b]
            # x1 branch: 1x1 conv = one MXU dot; bilinear x2 upsample
            # (align_corners=True) + zero-pad embedding = one MXU dot against
            # the precomputed interp matrix (contraction dim = h1*w1).
            v = jnp.dot(w1x1_ref[...], x1_ref[b],
                        preferred_element_type=jnp.float32) + b1x1_ref[...]
            p1_ref[C2:CC, base + WP:base + WP + NOUT] = jnp.dot(
                v, k_ref[...], preferred_element_type=jnp.float32)

        # ---- conv1 (3x3, pad=1): tap-folded im2col + ONE dot (K = 9*CC) -----
        # (conv bias dropped: exactly cancelled by training-mode BN below)
        for b in range(B):
            for t, s in enumerate(shifts):
                a1_ref[t * CC:(t + 1) * CC, b * NOUT:(b + 1) * NOUT] = \
                    p1_ref[:, b * NPAD + s:b * NPAD + s + NOUT]
        z1 = jnp.dot(w1f_ref[...], a1_ref[...],
                     preferred_element_type=jnp.float32)       # (COUT, B*NOUT)

        # ---- BatchNorm1 (batch stats over all B*H*W valid pixels) + LeakyReLU
        z1m = z1 * mask
        mean1 = jnp.sum(z1m, axis=1, keepdims=True) * inv_n
        var1 = jnp.sum(z1m * z1, axis=1, keepdims=True) * inv_n - mean1 * mean1
        sc1 = g1_ref[...] * jax.lax.rsqrt(var1 + EPS)
        sh1 = be1_ref[...] - mean1 * sc1
        a = z1 * sc1 + sh1
        a = jnp.where(a > 0, a, NEG_SLOPE * a)
        a = a * mask                     # zero pad columns before re-embedding
        # nn.Dropout(dropout_p=0.0) is the identity here.
        # TODO(synk): nonzero dropout_p needs pltpu.prng_seed/prng_random_bits.

        # ---- re-embed into a zero-filled padded scratch (no concat shifts) --
        p2_ref[...] = jnp.zeros_like(p2_ref)
        for b in range(B):
            p2_ref[:, b * NPAD + WP + 1:b * NPAD + WP + 1 + NOUT] = \
                a[:, b * NOUT:(b + 1) * NOUT]

        # ---- conv2 (3x3, pad=1): tap-folded im2col + ONE dot (K = 9*COUT) ---
        for b in range(B):
            for t, s in enumerate(shifts):
                a2_ref[t * COUT:(t + 1) * COUT, b * NOUT:(b + 1) * NOUT] = \
                    p2_ref[:, b * NPAD + s:b * NPAD + s + NOUT]
        z2 = jnp.dot(w2f_ref[...], a2_ref[...],
                     preferred_element_type=jnp.float32)

        # ---- BatchNorm2 + LeakyReLU -----------------------------------------
        z2m = z2 * mask
        mean2 = jnp.sum(z2m, axis=1, keepdims=True) * inv_n
        var2 = jnp.sum(z2m * z2, axis=1, keepdims=True) * inv_n - mean2 * mean2
        sc2 = g2_ref[...] * jax.lax.rsqrt(var2 + EPS)
        sh2 = be2_ref[...] - mean2 * sc2
        y = z2 * sc2 + sh2
        y = jnp.where(y > 0, y, NEG_SLOPE * y)

        for b in range(B):
            out_ref[b] = y[:, b * NOUT:(b + 1) * NOUT]         # lane-dense store

    return kernel


# ---------------------------------------------------------------------------
# Host-side constants
# ---------------------------------------------------------------------------
def _interp_matrix(n_in, n_out):
    """Interpolation matrix for bilinear upsampling with align_corners=True."""
    A = np.zeros((n_out, n_in), np.float32)
    if n_in == 1:
        A[:, 0] = 1.0
        return A
    scale = (n_in - 1) / (n_out - 1)
    for i in range(n_out):
        src = i * scale
        lo = min(int(np.floor(src)), n_in - 1)
        hi = min(lo + 1, n_in - 1)
        f = src - lo
        A[i, lo] += 1.0 - f
        A[i, hi] += f
    return A


# ---------------------------------------------------------------------------
# UpBlock forward (NCHW in -> NCHW out)
# ---------------------------------------------------------------------------
def upblock_forward(params, x1_nchw, x2_nchw):
    x1 = x1_nchw.astype(jnp.float32)
    x2 = x2_nchw.astype(jnp.float32)
    B, C1, h1, w1 = x1.shape
    C2 = params["w_1x1"].shape[0]
    COUT = params["w_c1"].shape[0]
    CC = 2 * C2
    H, W = 2 * h1, 2 * w1

    # padded row stride: >= W+2 (conv halo) and H*WP a multiple of 128 so all
    # conv-output / final stores are unmasked lane-dense.
    align = 128 // math.gcd(H, 128)
    WP = ((W + 2 + align - 1) // align) * align
    NOUT = H * WP                    # flat pixels per batch in conv output rows
    NPAD = (H + 3) * WP              # + 1 top / 2 bottom pad rows
    NPIX1 = h1 * w1
    count = float(B * H * W)

    # trace-time numpy constants -------------------------------------------
    Ah = _interp_matrix(h1, H)       # (H, h1)
    Aw = _interp_matrix(w1, W)       # (W, w1)
    kr = np.einsum("rh,cw->hwrc", Ah, Aw).reshape(NPIX1, H, W)
    K = np.zeros((NPIX1, H, WP), np.float32)
    K[:, :, 1:W + 1] = kr            # left pad col / right pad cols stay zero
    K = jnp.asarray(K.reshape(NPIX1, NOUT))
    mask = jnp.asarray(
        (np.arange(B * NOUT) % WP < W).astype(np.float32).reshape(1, B * NOUT))

    # tiny host-side layout glue (fused by XLA around the single call) ------
    x1f = x1.reshape(B, C1, NPIX1)
    x2p = jnp.pad(x2, ((0, 0), (0, 0), (0, 0), (1, WP - 1 - W))
                  ).reshape(B, C2, NOUT)
    w1f = jnp.transpose(params["w_c1"], (0, 2, 3, 1)).reshape(COUT, 9 * CC)
    w2f = jnp.transpose(params["w_c2"], (0, 2, 3, 1)).reshape(COUT, 9 * COUT)

    out = pl.pallas_call(
        _make_upblock_kernel(B, C2, CC, COUT, NPAD, NOUT, WP, count),
        grid=(1,),
        in_specs=[
            pl.BlockSpec((B, C1, NPIX1), lambda i: (0, 0, 0)),   # x1 flat
            pl.BlockSpec((B, C2, NOUT), lambda i: (0, 0, 0)),    # x2 row-padded
            pl.BlockSpec((C2, C1), lambda i: (0, 0)),            # w_1x1
            pl.BlockSpec((C2, 1), lambda i: (0, 0)),             # b_1x1
            pl.BlockSpec((NPIX1, NOUT), lambda i: (0, 0)),       # interp+pad K
            pl.BlockSpec((COUT, 9 * CC), lambda i: (0, 0)),      # conv1 taps
            pl.BlockSpec((COUT, 9 * COUT), lambda i: (0, 0)),    # conv2 taps
            pl.BlockSpec((COUT, 1), lambda i: (0, 0)),           # gamma1
            pl.BlockSpec((COUT, 1), lambda i: (0, 0)),           # beta1
            pl.BlockSpec((COUT, 1), lambda i: (0, 0)),           # gamma2
            pl.BlockSpec((COUT, 1), lambda i: (0, 0)),           # beta2
            pl.BlockSpec((1, B * NOUT), lambda i: (0, 0)),       # valid mask
        ],
        out_specs=pl.BlockSpec((B, COUT, NOUT), lambda i: (0, 0, 0)),
        out_shape=jax.ShapeDtypeStruct((B, COUT, NOUT), jnp.float32),
        scratch_shapes=[
            pltpu.VMEM((CC, B * NPAD), jnp.float32),        # padded concat input
            pltpu.VMEM((9 * CC, B * NOUT), jnp.float32),    # conv1 im2col
            pltpu.VMEM((COUT, B * NPAD), jnp.float32),      # padded BN1 act
            pltpu.VMEM((9 * COUT, B * NOUT), jnp.float32),  # conv2 im2col
        ],
        compiler_params=pltpu.CompilerParams(
            dimension_semantics=("arbitrary",),
            vmem_limit_bytes=32 * 1024 * 1024,
        ),
    )(x1f, x2p, params["w_1x1"], params["b_1x1"].reshape(C2, 1), K, w1f, w2f,
      params["g_c1"].reshape(COUT, 1), params["be_c1"].reshape(COUT, 1),
      params["g_c2"].reshape(COUT, 1), params["be_c2"].reshape(COUT, 1), mask)

    # trim the padded columns -> NCHW output
    return out.reshape(B, COUT, H, WP)[..., :W]


# ---------------------------------------------------------------------------
# Pure-JAX reference (includes the conv biases; they cancel inside BN)
# ---------------------------------------------------------------------------
def ref_forward(params, x1_nchw, x2_nchw):
    x1 = x1_nchw.astype(jnp.float32)
    x2 = x2_nchw.astype(jnp.float32)
    _, _, h1, w1 = x1.shape
    y = (jnp.einsum("oc,bchw->bohw", params["w_1x1"], x1)
         + params["b_1x1"][None, :, None, None])
    ah = _interp_matrix(h1, 2 * h1)
    aw = _interp_matrix(w1, 2 * w1)
    y = jnp.einsum("ih,bchw->bciw", ah, y)
    y = jnp.einsum("jw,bciw->bcij", aw, y)
    x = jnp.concatenate([x2, y], axis=1)

    def cbl(xx, w, b, g, be):
        z = jax.lax.conv_general_dilated(
            xx, w, (1, 1), "SAME",
            dimension_numbers=("NCHW", "OIHW", "NCHW")) + b[None, :, None, None]
        mean = jnp.mean(z, axis=(0, 2, 3), keepdims=True)
        var = jnp.mean((z - mean) ** 2, axis=(0, 2, 3), keepdims=True)
        yy = ((z - mean) * jax.lax.rsqrt(var + EPS) * g[None, :, None, None]
              + be[None, :, None, None])
        return jnp.where(yy > 0, yy, NEG_SLOPE * yy)

    h = cbl(x, params["w_c1"], params["b_c1"], params["g_c1"], params["be_c1"])
    h = cbl(h, params["w_c2"], params["b_c2"], params["g_c2"], params["be_c2"])
    return h


# ---------------------------------------------------------------------------
# Deterministic parameter init (PyTorch OIHW layouts, shapes from UpBlock)
# ---------------------------------------------------------------------------
def init_params(key, c1, c2, cout):
    ks = jax.random.split(key, 12)
    return {
        "w_1x1": 0.2 * jax.random.normal(ks[0], (c2, c1), jnp.float32),
        "b_1x1": 0.1 * jax.random.normal(ks[1], (c2,), jnp.float32),
        "w_c1": 0.2 * jax.random.normal(ks[2], (cout, 2 * c2, 3, 3), jnp.float32),
        "b_c1": 0.1 * jax.random.normal(ks[3], (cout,), jnp.float32),
        "g_c1": 1.0 + 0.1 * jax.random.normal(ks[4], (cout,), jnp.float32),
        "be_c1": 0.1 * jax.random.normal(ks[5], (cout,), jnp.float32),
        "w_c2": 0.2 * jax.random.normal(ks[6], (cout, cout, 3, 3), jnp.float32),
        "b_c2": 0.1 * jax.random.normal(ks[7], (cout,), jnp.float32),
        "g_c2": 1.0 + 0.1 * jax.random.normal(ks[8], (cout,), jnp.float32),
        "be_c2": 0.1 * jax.random.normal(ks[9], (cout,), jnp.float32),
    }


if __name__ == "__main__":
    key = jax.random.PRNGKey(0)
    kx1, kx2, kp = jax.random.split(key, 3)

    B = 2
    C1, C2, COUT = 8, 4, 4       # in_channels1=8, in_channels2=4, out_channels=4
    H1 = W1 = 16                 # x1 spatial; x2 is 2x that (32x32)

    x1 = jax.random.normal(kx1, (B, C1, H1, W1), jnp.float32)           # NCHW
    x2 = jax.random.normal(kx2, (B, C2, 2 * H1, 2 * W1), jnp.float32)   # NCHW
    params = init_params(kp, C1, C2, COUT)

    out = jax.block_until_ready(jax.jit(upblock_forward)(params, x1, x2))
    ref = jax.block_until_ready(ref_forward(params, x1, x2))

    assert out.shape == (B, COUT, 2 * H1, 2 * W1), out.shape
    # default (non-HIGHEST) MXU precision on both paths -> loosened tolerance
    np.testing.assert_allclose(np.asarray(out), np.asarray(ref), rtol=2e-2, atol=3e-2)
    print("KERNEL_OK")
</pallas_src>

<mosaic_0001>
module attributes {stable_mosaic.version = 11 : i64} {
  func.func @kernel(%arg0: i32, %arg1: memref<2x8x256xf32, #tpu.memory_space<vmem>>, %arg2: memref<2x4x1152xf32, #tpu.memory_space<vmem>>, %arg3: memref<4x8xf32, #tpu.memory_space<vmem>>, %arg4: memref<4x1xf32, #tpu.memory_space<vmem>>, %arg5: memref<256x1152xf32, #tpu.memory_space<vmem>>, %arg6: memref<4x72xf32, #tpu.memory_space<vmem>>, %arg7: memref<4x36xf32, #tpu.memory_space<vmem>>, %arg8: memref<4x1xf32, #tpu.memory_space<vmem>>, %arg9: memref<4x1xf32, #tpu.memory_space<vmem>>, %arg10: memref<4x1xf32, #tpu.memory_space<vmem>>, %arg11: memref<4x1xf32, #tpu.memory_space<vmem>>, %arg12: memref<1x2304xf32, #tpu.memory_space<vmem>>, %arg13: memref<2x4x1152xf32, #tpu.memory_space<vmem>>, %arg14: memref<8x2520xf32, #tpu.memory_space<vmem>>, %arg15: memref<72x2304xf32, #tpu.memory_space<vmem>>, %arg16: memref<4x2520xf32, #tpu.memory_space<vmem>>, %arg17: memref<36x2304xf32, #tpu.memory_space<vmem>>) attributes {dimension_semantics = [#tpu.dimension_semantics<arbitrary>], iteration_bounds = array<i64: 1>, scalar_prefetch = 0 : i64, scratch_operands = 4 : i64, tpu.core_type = #tpu.core_type<tc>, window_params = [{pipeline_mode = #tpu.pipeline_mode<synchronous>, transform_indices = @transform_0, window_bounds = array<i64: 2, 8, 256>}, {pipeline_mode = #tpu.pipeline_mode<synchronous>, transform_indices = @transform_1, window_bounds = array<i64: 2, 4, 1152>}, {pipeline_mode = #tpu.pipeline_mode<synchronous>, transform_indices = @transform_2, window_bounds = array<i64: 4, 8>}, {pipeline_mode = #tpu.pipeline_mode<synchronous>, transform_indices = @transform_3, window_bounds = array<i64: 4, 1>}, {pipeline_mode = #tpu.pipeline_mode<synchronous>, transform_indices = @transform_4, window_bounds = array<i64: 256, 1152>}, {pipeline_mode = #tpu.pipeline_mode<synchronous>, transform_indices = @transform_5, window_bounds = array<i64: 4, 72>}, {pipeline_mode = #tpu.pipeline_mode<synchronous>, transform_indices = @transform_6, window_bounds = array<i64: 4, 36>}, {pipeline_mode = #tpu.pipeline_mode<synchronous>, transform_indices = @transform_7, window_bounds = array<i64: 4, 1>}, {pipeline_mode = #tpu.pipeline_mode<synchronous>, transform_indices = @transform_8, window_bounds = array<i64: 4, 1>}, {pipeline_mode = #tpu.pipeline_mode<synchronous>, transform_indices = @transform_9, window_bounds = array<i64: 4, 1>}, {pipeline_mode = #tpu.pipeline_mode<synchronous>, transform_indices = @transform_10, window_bounds = array<i64: 4, 1>}, {pipeline_mode = #tpu.pipeline_mode<synchronous>, transform_indices = @transform_11, window_bounds = array<i64: 1, 2304>}, {pipeline_mode = #tpu.pipeline_mode<synchronous>, transform_indices = @transform_12, window_bounds = array<i64: 2, 4, 1152>}]} {
    %c0 = arith.constant 0 : index
    %c0_0 = arith.constant 0 : index
    %0 = vector.load %arg12[%c0, %c0_0] : memref<1x2304xf32, #tpu.memory_space<vmem>>, vector<1x2304xf32>
    %cst = arith.constant 0.000000e+00 : f32
    %1 = vector.broadcast %cst : f32 to vector<8x2520xf32>
    %c0_1 = arith.constant 0 : index
    %c0_2 = arith.constant 0 : index
    %2 = vector.load %arg14[%c0_1, %c0_2] : memref<8x2520xf32, #tpu.memory_space<vmem>>, vector<8x2520xf32>
    tpu.vector_store %arg14[%c0_1, %c0_2], %1 {strides = array<i32>} : memref<8x2520xf32, #tpu.memory_space<vmem>>, vector<8x2520xf32>,
    %c0_3 = arith.constant 0 : index
    %c0_4 = arith.constant 0 : index
    %c0_5 = arith.constant 0 : index
    %3 = vector.load %arg2[%c0_3, %c0_4, %c0_5] : memref<2x4x1152xf32, #tpu.memory_space<vmem>>, vector<1x4x1152xf32>
    %4 = vector.shape_cast %3 : vector<1x4x1152xf32> to vector<4x1152xf32>
    %c0_6 = arith.constant 0 : index
    %c36 = arith.constant 36 : index
    %5 = vector.load %arg14[%c0_6, %c36] : memref<8x2520xf32, #tpu.memory_space<vmem>>, vector<4x1152xf32>
    tpu.vector_store %arg14[%c0_6, %c36], %4 {strides = array<i32>} : memref<8x2520xf32, #tpu.memory_space<vmem>>, vector<4x1152xf32>,
    %c0_7 = arith.constant 0 : index
    %c0_8 = arith.constant 0 : index
    %6 = vector.load %arg3[%c0_7, %c0_8] : memref<4x8xf32, #tpu.memory_space<vmem>>, vector<4x8xf32>
    %c0_9 = arith.constant 0 : index
    %c0_10 = arith.constant 0 : index
    %c0_11 = arith.constant 0 : index
    %7 = vector.load %arg1[%c0_9, %c0_10, %c0_11] : memref<2x8x256xf32, #tpu.memory_space<vmem>>, vector<1x8x256xf32>
    %8 = vector.shape_cast %7 : vector<1x8x256xf32> to vector<8x256xf32>
    %cst_12 = arith.constant dense<0.000000e+00> : vector<4x256xf32>
    %9 = tpu.matmul %6, %8, %cst_12 {dimension_numbers = #tpu.dot_dimension_numbers<[1], [0], [0], [1], [0, 0, 1, 1], [], []>} : vector<4x8xf32>, vector<8x256xf32>, vector<4x256xf32> -> vector<4x256xf32>
    %c0_13 = arith.constant 0 : index
    %c0_14 = arith.constant 0 : index
    %10 = vector.load %arg4[%c0_13, %c0_14] : memref<4x1xf32, #tpu.memory_space<vmem>>, vector<4x1xf32>
    %11 = vector.broadcast %10 : vector<4x1xf32> to vector<4x256xf32>
    %12 = arith.addf %9, %11 : vector<4x256xf32>
    %c0_15 = arith.constant 0 : index
    %c0_16 = arith.constant 0 : index
    %13 = vector.load %arg5[%c0_15, %c0_16] : memref<256x1152xf32, #tpu.memory_space<vmem>>, vector<256x1152xf32>
    %cst_17 = arith.constant dense<0.000000e+00> : vector<4x1152xf32>
    %14 = tpu.matmul %12, %13, %cst_17 {dimension_numbers = #tpu.dot_dimension_numbers<[1], [0], [0], [1], [0, 0, 1, 1], [], []>} : vector<4x256xf32>, vector<256x1152xf32>, vector<4x1152xf32> -> vector<4x1152xf32>
    %c4 = arith.constant 4 : index
    %c36_18 = arith.constant 36 : index
    %15 = vector.load %arg14[%c4, %c36_18] : memref<8x2520xf32, #tpu.memory_space<vmem>>, vector<4x1152xf32>
    tpu.vector_store %arg14[%c4, %c36_18], %14 {strides = array<i32>} : memref<8x2520xf32, #tpu.memory_space<vmem>>, vector<4x1152xf32>,
    %c1 = arith.constant 1 : index
    %c0_19 = arith.constant 0 : index
    %c0_20 = arith.constant 0 : index
    %16 = vector.load %arg2[%c1, %c0_19, %c0_20] : memref<2x4x1152xf32, #tpu.memory_space<vmem>>, vector<1x4x1152xf32>
    %17 = vector.shape_cast %16 : vector<1x4x1152xf32> to vector<4x1152xf32>
    %c0_21 = arith.constant 0 : index
    %c1296 = arith.constant 1296 : index
    %18 = vector.load %arg14[%c0_21, %c1296] : memref<8x2520xf32, #tpu.memory_space<vmem>>, vector<4x1152xf32>
    tpu.vector_store %arg14[%c0_21, %c1296], %17 {strides = array<i32>} : memref<8x2520xf32, #tpu.memory_space<vmem>>, vector<4x1152xf32>,
    %c0_22 = arith.constant 0 : index
    %c0_23 = arith.constant 0 : index
    %19 = vector.load %arg3[%c0_22, %c0_23] : memref<4x8xf32, #tpu.memory_space<vmem>>, vector<4x8xf32>
    %c1_24 = arith.constant 1 : index
    %c0_25 = arith.constant 0 : index
    %c0_26 = arith.constant 0 : index
    %20 = vector.load %arg1[%c1_24, %c0_25, %c0_26] : memref<2x8x256xf32, #tpu.memory_space<vmem>>, vector<1x8x256xf32>
    %21 = vector.shape_cast %20 : vector<1x8x256xf32> to vector<8x256xf32>
    %cst_27 = arith.constant dense<0.000000e+00> : vector<4x256xf32>
    %22 = tpu.matmul %19, %21, %cst_27 {dimension_numbers = #tpu.dot_dimension_numbers<[1], [0], [0], [1], [0, 0, 1, 1], [], []>} : vector<4x8xf32>, vector<8x256xf32>, vector<4x256xf32> -> vector<4x256xf32>
    %c0_28 = arith.constant 0 : index
    %c0_29 = arith.constant 0 : index
    %23 = vector.load %arg4[%c0_28, %c0_29] : memref<4x1xf32, #tpu.memory_space<vmem>>, vector<4x1xf32>
    %24 = vector.broadcast %23 : vector<4x1xf32> to vector<4x256xf32>
    %25 = arith.addf %22, %24 : vector<4x256xf32>
    %c0_30 = arith.constant 0 : index
    %c0_31 = arith.constant 0 : index
    %26 = vector.load %arg5[%c0_30, %c0_31] : memref<256x1152xf32, #tpu.memory_space<vmem>>, vector<256x1152xf32>
    %cst_32 = arith.constant dense<0.000000e+00> : vector<4x1152xf32>
    %27 = tpu.matmul %25, %26, %cst_32 {dimension_numbers = #tpu.dot_dimension_numbers<[1], [0], [0], [1], [0, 0, 1, 1], [], []>} : vector<4x256xf32>, vector<256x1152xf32>, vector<4x1152xf32> -> vector<4x1152xf32>
    %c4_33 = arith.constant 4 : index
    %c1296_34 = arith.constant 1296 : index
    %28 = vector.load %arg14[%c4_33, %c1296_34] : memref<8x2520xf32, #tpu.memory_space<vmem>>, vector<4x1152xf32>
    tpu.vector_store %arg14[%c4_33, %c1296_34], %27 {strides = array<i32>} : memref<8x2520xf32, #tpu.memory_space<vmem>>, vector<4x1152xf32>,
    %c0_35 = arith.constant 0 : index
    %c0_36 = arith.constant 0 : index
    %29 = vector.load %arg14[%c0_35, %c0_36] : memref<8x2520xf32, #tpu.memory_space<vmem>>, vector<8x1152xf32>
    %c0_37 = arith.constant 0 : index
    %c0_38 = arith.constant 0 : index
    %30 = vector.load %arg15[%c0_37, %c0_38] : memref<72x2304xf32, #tpu.memory_space<vmem>>, vector<8x1152xf32>
    tpu.vector_store %arg15[%c0_37, %c0_38], %29 {strides = array<i32>} : memref<72x2304xf32, #tpu.memory_space<vmem>>, vector<8x1152xf32>,
    %c0_39 = arith.constant 0 : index
    %c1_40 = arith.constant 1 : index
    %31 = vector.load %arg14[%c0_39, %c1_40] : memref<8x2520xf32, #tpu.memory_space<vmem>>, vector<8x1152xf32>
    %c8 = arith.constant 8 : index
    %c0_41 = arith.constant 0 : index
    %32 = vector.load %arg15[%c8, %c0_41] : memref<72x2304xf32, #tpu.memory_space<vmem>>, vector<8x1152xf32>
    tpu.vector_store %arg15[%c8, %c0_41], %31 {strides = array<i32>} : memref<72x2304xf32, #tpu.memory_space<vmem>>, vector<8x1152xf32>,
    %c0_42 = arith.constant 0 : index
    %c2 = arith.constant 2 : index
    %33 = vector.load %arg14[%c0_42, %c2] : memref<8x2520xf32, #tpu.memory_space<vmem>>, vector<8x1152xf32>
    %c16 = arith.constant 16 : index
    %c0_43 = arith.constant 0 : index
    %34 = vector.load %arg15[%c16, %c0_43] : memref<72x2304xf32, #tpu.memory_space<vmem>>, vector<8x1152xf32>
    tpu.vector_store %arg15[%c16, %c0_43], %33 {strides = array<i32>} : memref<72x2304xf32, #tpu.memory_space<vmem>>, vector<8x1152xf32>,
    %c0_44 = arith.constant 0 : index
    %c36_45 = arith.constant 36 : index
    %35 = vector.load %arg14[%c0_44, %c36_45] : memref<8x2520xf32, #tpu.memory_space<vmem>>, vector<8x1152xf32>
    %c24 = arith.constant 24 : index
    %c0_46 = arith.constant 0 : index
    %36 = vector.load %arg15[%c24, %c0_46] : memref<72x2304xf32, #tpu.memory_space<vmem>>, vector<8x1152xf32>
    tpu.vector_store %arg15[%c24, %c0_46], %35 {strides = array<i32>} : memref<72x2304xf32, #tpu.memory_space<vmem>>, vector<8x1152xf32>,
    %c0_47 = arith.constant 0 : index
    %c37 = arith.constant 37 : index
    %37 = vector.load %arg14[%c0_47, %c37] : memref<8x2520xf32, #tpu.memory_space<vmem>>, vector<8x1152xf32>
    %c32 = arith.constant 32 : index
    %c0_48 = arith.constant 0 : index
    %38 = vector.load %arg15[%c32, %c0_48] : memref<72x2304xf32, #tpu.memory_space<vmem>>, vector<8x1152xf32>
    tpu.vector_store %arg15[%c32, %c0_48], %37 {strides = array<i32>} : memref<72x2304xf32, #tpu.memory_space<vmem>>, vector<8x1152xf32>,
    %c0_49 = arith.constant 0 : index
    %c38 = arith.constant 38 : index
    %39 = vector.load %arg14[%c0_49, %c38] : memref<8x2520xf32, #tpu.memory_space<vmem>>, vector<8x1152xf32>
    %c40 = arith.constant 40 : index
    %c0_50 = arith.constant 0 : index
    %40 = vector.load %arg15[%c40, %c0_50] : memref<72x2304xf32, #tpu.memory_space<vmem>>, vector<8x1152xf32>
    tpu.vector_store %arg15[%c40, %c0_50], %39 {strides = array<i32>} : memref<72x2304xf32, #tpu.memory_space<vmem>>, vector<8x1152xf32>,
    %c0_51 = arith.constant 0 : index
    %c72 = arith.constant 72 : index
    %41 = vector.load %arg14[%c0_51, %c72] : memref<8x2520xf32, #tpu.memory_space<vmem>>, vector<8x1152xf32>
    %c48 = arith.constant 48 : index
    %c0_52 = arith.constant 0 : index
    %42 = vector.load %arg15[%c48, %c0_52] : memref<72x2304xf32, #tpu.memory_space<vmem>>, vector<8x1152xf32>
    tpu.vector_store %arg15[%c48, %c0_52], %41 {strides = array<i32>} : memref<72x2304xf32, #tpu.memory_space<vmem>>, vector<8x1152xf32>,
    %c0_53 = arith.constant 0 : index
    %c73 = arith.constant 73 : index
    %43 = vector.load %arg14[%c0_53, %c73] : memref<8x2520xf32, #tpu.memory_space<vmem>>, vector<8x1152xf32>
    %c56 = arith.constant 56 : index
    %c0_54 = arith.constant 0 : index
    %44 = vector.load %arg15[%c56, %c0_54] : memref<72x2304xf32, #tpu.memory_space<vmem>>, vector<8x1152xf32>
    tpu.vector_store %arg15[%c56, %c0_54], %43 {strides = array<i32>} : memref<72x2304xf32, #tpu.memory_space<vmem>>, vector<8x1152xf32>,
    %c0_55 = arith.constant 0 : index
    %c74 = arith.constant 74 : index
    %45 = vector.load %arg14[%c0_55, %c74] : memref<8x2520xf32, #tpu.memory_space<vmem>>, vector<8x1152xf32>
    %c64 = arith.constant 64 : index
    %c0_56 = arith.constant 0 : index
    %46 = vector.load %arg15[%c64, %c0_56] : memref<72x2304xf32, #tpu.memory_space<vmem>>, vector<8x1152xf32>
    tpu.vector_store %arg15[%c64, %c0_56], %45 {strides = array<i32>} : memref<72x2304xf32, #tpu.memory_space<vmem>>, vector<8x1152xf32>,
    %c0_57 = arith.constant 0 : index
    %c1260 = arith.constant 1260 : index
    %47 = vector.load %arg14[%c0_57, %c1260] : memref<8x2520xf32, #tpu.memory_space<vmem>>, vector<8x1152xf32>
    %c0_58 = arith.constant 0 : index
    %c1152 = arith.constant 1152 : index
    %48 = vector.load %arg15[%c0_58, %c1152] : memref<72x2304xf32, #tpu.memory_space<vmem>>, vector<8x1152xf32>
    tpu.vector_store %arg15[%c0_58, %c1152], %47 {strides = array<i32>} : memref<72x2304xf32, #tpu.memory_space<vmem>>, vector<8x1152xf32>,
    %c0_59 = arith.constant 0 : index
    %c1261 = arith.constant 1261 : index
    %49 = vector.load %arg14[%c0_59, %c1261] : memref<8x2520xf32, #tpu.memory_space<vmem>>, vector<8x1152xf32>
    %c8_60 = arith.constant 8 : index
    %c1152_61 = arith.constant 1152 : index
    %50 = vector.load %arg15[%c8_60, %c1152_61] : memref<72x2304xf32, #tpu.memory_space<vmem>>, vector<8x1152xf32>
    tpu.vector_store %arg15[%c8_60, %c1152_61], %49 {strides = array<i32>} : memref<72x2304xf32, #tpu.memory_space<vmem>>, vector<8x1152xf32>,
    %c0_62 = arith.constant 0 : index
    %c1262 = arith.constant 1262 : index
    %51 = vector.load %arg14[%c0_62, %c1262] : memref<8x2520xf32, #tpu.memory_space<vmem>>, vector<8x1152xf32>
    %c16_63 = arith.constant 16 : index
    %c1152_64 = arith.constant 1152 : index
    %52 = vector.load %arg15[%c16_63, %c1152_64] : memref<72x2304xf32, #tpu.memory_space<vmem>>, vector<8x1152xf32>
    tpu.vector_store %arg15[%c16_63, %c1152_64], %51 {strides = array<i32>} : memref<72x2304xf32, #tpu.memory_space<vmem>>, vector<8x1152xf32>,
    %c0_65 = arith.constant 0 : index
    %c1296_66 = arith.constant 1296 : index
    %53 = vector.load %arg14[%c0_65, %c1296_66] : memref<8x2520xf32, #tpu.memory_space<vmem>>, vector<8x1152xf32>
    %c24_67 = arith.constant 24 : index
    %c1152_68 = arith.constant 1152 : index
    %54 = vector.load %arg15[%c24_67, %c1152_68] : memref<72x2304xf32, #tpu.memory_space<vmem>>, vector<8x1152xf32>
    tpu.vector_store %arg15[%c24_67, %c1152_68], %53 {strides = array<i32>} : memref<72x2304xf32, #tpu.memory_space<vmem>>, vector<8x1152xf32>,
    %c0_69 = arith.constant 0 : index
    %c1297 = arith.constant 1297 : index
    %55 = vector.load %arg14[%c0_69, %c1297] : memref<8x2520xf32, #tpu.memory_space<vmem>>, vector<8x1152xf32>
    %c32_70 = arith.constant 32 : index
    %c1152_71 = arith.constant 1152 : index
    %56 = vector.load %arg15[%c32_70, %c1152_71] : memref<72x2304xf32, #tpu.memory_space<vmem>>, vector<8x1152xf32>
    tpu.vector_store %arg15[%c32_70, %c1152_71], %55 {strides = array<i32>} : memref<72x2304xf32, #tpu.memory_space<vmem>>, vector<8x1152xf32>,
    %c0_72 = arith.constant 0 : index
    %c1298 = arith.constant 1298 : index
    %57 = vector.load %arg14[%c0_72, %c1298] : memref<8x2520xf32, #tpu.memory_space<vmem>>, vector<8x1152xf32>
    %c40_73 = arith.constant 40 : index
    %c1152_74 = arith.constant 1152 : index
    %58 = vector.load %arg15[%c40_73, %c1152_74] : memref<72x2304xf32, #tpu.memory_space<vmem>>, vector<8x1152xf32>
    tpu.vector_store %arg15[%c40_73, %c1152_74], %57 {strides = array<i32>} : memref<72x2304xf32, #tpu.memory_space<vmem>>, vector<8x1152xf32>,
    %c0_75 = arith.constant 0 : index
    %c1332 = arith.constant 1332 : index
    %59 = vector.load %arg14[%c0_75, %c1332] : memref<8x2520xf32, #tpu.memory_space<vmem>>, vector<8x1152xf32>
    %c48_76 = arith.constant 48 : index
    %c1152_77 = arith.constant 1152 : index
    %60 = vector.load %arg15[%c48_76, %c1152_77] : memref<72x2304xf32, #tpu.memory_space<vmem>>, vector<8x1152xf32>
    tpu.vector_store %arg15[%c48_76, %c1152_77], %59 {strides = array<i32>} : memref<72x2304xf32, #tpu.memory_space<vmem>>, vector<8x1152xf32>,
    %c0_78 = arith.constant 0 : index
    %c1333 = arith.constant 1333 : index
    %61 = vector.load %arg14[%c0_78, %c1333] : memref<8x2520xf32, #tpu.memory_space<vmem>>, vector<8x1152xf32>
    %c56_79 = arith.constant 56 : index
    %c1152_80 = arith.constant 1152 : index
    %62 = vector.load %arg15[%c56_79, %c1152_80] : memref<72x2304xf32, #tpu.memory_space<vmem>>, vector<8x1152xf32>
    tpu.vector_store %arg15[%c56_79, %c1152_80], %61 {strides = array<i32>} : memref<72x2304xf32, #tpu.memory_space<vmem>>, vector<8x1152xf32>,
    %c0_81 = arith.constant 0 : index
    %c1334 = arith.constant 1334 : index
    %63 = vector.load %arg14[%c0_81, %c1334] : memref<8x2520xf32, #tpu.memory_space<vmem>>, vector<8x1152xf32>
    %c64_82 = arith.constant 64 : index
    %c1152_83 = arith.constant 1152 : index
    %64 = vector.load %arg15[%c64_82, %c1152_83] : memref<72x2304xf32, #tpu.memory_space<vmem>>, vector<8x1152xf32>
    tpu.vector_store %arg15[%c64_82, %c1152_83], %63 {strides = array<i32>} : memref<72x2304xf32, #tpu.memory_space<vmem>>, vector<8x1152xf32>,
    %c0_84 = arith.constant 0 : index
    %c0_85 = arith.constant 0 : index
    %65 = vector.load %arg6[%c0_84, %c0_85] : memref<4x72xf32, #tpu.memory_space<vmem>>, vector<4x72xf32>
    %c0_86 = arith.constant 0 : index
    %c0_87 = arith.constant 0 : index
    %66 = vector.load %arg15[%c0_86, %c0_87] : memref<72x2304xf32, #tpu.memory_space<vmem>>, vector<72x2304xf32>
    %cst_88 = arith.constant dense<0.000000e+00> : vector<4x2304xf32>
    %67 = tpu.matmul %65, %66, %cst_88 {dimension_numbers = #tpu.dot_dimension_numbers<[1], [0], [0], [1], [0, 0, 1, 1], [], []>} : vector<4x72xf32>, vector<72x2304xf32>, vector<4x2304xf32> -> vector<4x2304xf32>
    %68 = vector.broadcast %0 : vector<1x2304xf32> to vector<4x2304xf32>
    %69 = arith.mulf %67, %68 : vector<4x2304xf32>
    %cst_89 = arith.constant dense<0.000000e+00> : vector<4xf32>
    %70 = vector.multi_reduction <add>, %69, %cst_89 [1] : vector<4x2304xf32> to vector<4xf32>
    %71 = vector.shape_cast %70 : vector<4xf32> to vector<4x1xf32>
    %cst_90 = arith.constant 4.8828125E-4 : f32
    %72 = vector.broadcast %cst_90 : f32 to vector<4x1xf32>
    %73 = arith.mulf %71, %72 : vector<4x1xf32>
    %74 = arith.mulf %69, %67 : vector<4x2304xf32>
    %cst_91 = arith.constant dense<0.000000e+00> : vector<4xf32>
    %75 = vector.multi_reduction <add>, %74, %cst_91 [1] : vector<4x2304xf32> to vector<4xf32>
    %76 = vector.shape_cast %75 : vector<4xf32> to vector<4x1xf32>
    %cst_92 = arith.constant 4.8828125E-4 : f32
    %77 = vector.broadcast %cst_92 : f32 to vector<4x1xf32>
    %78 = arith.mulf %76, %77 : vector<4x1xf32>
    %79 = arith.mulf %73, %73 : vector<4x1xf32>
    %80 = arith.subf %78, %79 : vector<4x1xf32>
    %c0_93 = arith.constant 0 : index
    %c0_94 = arith.constant 0 : index
    %81 = vector.load %arg8[%c0_93, %c0_94] : memref<4x1xf32, #tpu.memory_space<vmem>>, vector<4x1xf32>
    %cst_95 = arith.constant 9.99999974E-6 : f32
    %82 = vector.broadcast %cst_95 : f32 to vector<4x1xf32>
    %83 = arith.addf %80, %82 : vector<4x1xf32>
    %84 = math.rsqrt %83 : vector<4x1xf32>
    %85 = arith.mulf %81, %84 : vector<4x1xf32>
    %c0_96 = arith.constant 0 : index
    %c0_97 = arith.constant 0 : index
    %86 = vector.load %arg9[%c0_96, %c0_97] : memref<4x1xf32, #tpu.memory_space<vmem>>, vector<4x1xf32>
    %87 = arith.mulf %73, %85 : vector<4x1xf32>
    %88 = arith.subf %86, %87 : vector<4x1xf32>
    %89 = vector.broadcast %85 : vector<4x1xf32> to vector<4x2304xf32>
    %90 = arith.mulf %67, %89 : vector<4x2304xf32>
    %91 = vector.broadcast %88 : vector<4x1xf32> to vector<4x2304xf32>
    %92 = arith.addf %90, %91 : vector<4x2304xf32>
    %cst_98 = arith.constant 0.000000e+00 : f32
    %93 = vector.broadcast %cst_98 : f32 to vector<4x2304xf32>
    %94 = arith.cmpf ogt, %92, %93 : vector<4x2304xf32>
    %cst_99 = arith.constant 0.00999999977 : f32
    %95 = vector.broadcast %cst_99 : f32 to vector<4x2304xf32>
    %96 = arith.mulf %95, %92 : vector<4x2304xf32>
    %97 = arith.select %94, %92, %96 : vector<4x2304xi1>, vector<4x2304xf32>
    %98 = vector.broadcast %0 : vector<1x2304xf32> to vector<4x2304xf32>
    %99 = arith.mulf %97, %98 : vector<4x2304xf32>
    %cst_100 = arith.constant 0.000000e+00 : f32
    %100 = vector.broadcast %cst_100 : f32 to vector<4x2520xf32>
    %c0_101 = arith.constant 0 : index
    %c0_102 = arith.constant 0 : index
    %101 = vector.load %arg16[%c0_101, %c0_102] : memref<4x2520xf32, #tpu.memory_space<vmem>>, vector<4x2520xf32>
    tpu.vector_store %arg16[%c0_101, %c0_102], %100 {strides = array<i32>} : memref<4x2520xf32, #tpu.memory_space<vmem>>, vector<4x2520xf32>,
    %102 = vector.extract_strided_slice %99 {offsets = [0, 0], sizes = [4, 1152], strides = [1, 1]} : vector<4x2304xf32> to vector<4x1152xf32>
    %c0_103 = arith.constant 0 : index
    %c37_104 = arith.constant 37 : index
    %103 = vector.load %arg16[%c0_103, %c37_104] : memref<4x2520xf32, #tpu.memory_space<vmem>>, vector<4x1152xf32>
    tpu.vector_store %arg16[%c0_103, %c37_104], %102 {strides = array<i32>} : memref<4x2520xf32, #tpu.memory_space<vmem>>, vector<4x1152xf32>,
    %104 = vector.extract_strided_slice %99 {offsets = [0, 1152], sizes = [4, 1152], strides = [1, 1]} : vector<4x2304xf32> to vector<4x1152xf32>
    %c0_105 = arith.constant 0 : index
    %c1297_106 = arith.constant 1297 : index
    %105 = vector.load %arg16[%c0_105, %c1297_106] : memref<4x2520xf32, #tpu.memory_space<vmem>>, vector<4x1152xf32>
    tpu.vector_store %arg16[%c0_105, %c1297_106], %104 {strides = array<i32>} : memref<4x2520xf32, #tpu.memory_space<vmem>>, vector<4x1152xf32>,
    %c0_107 = arith.constant 0 : index
    %c0_108 = arith.constant 0 : index
    %106 = vector.load %arg16[%c0_107, %c0_108] : memref<4x2520xf32, #tpu.memory_space<vmem>>, vector<4x1152xf32>
    %c0_109 = arith.constant 0 : index
    %c0_110 = arith.constant 0 : index
    %107 = vector.load %arg17[%c0_109, %c0_110] : memref<36x2304xf32, #tpu.memory_space<vmem>>, vector<4x1152xf32>
    tpu.vector_store %arg17[%c0_109, %c0_110], %106 {strides = array<i32>} : memref<36x2304xf32, #tpu.memory_space<vmem>>, vector<4x1152xf32>,
    %c0_111 = arith.constant 0 : index
    %c1_112 = arith.constant 1 : index
    %108 = vector.load %arg16[%c0_111, %c1_112] : memref<4x2520xf32, #tpu.memory_space<vmem>>, vector<4x1152xf32>
    %c4_113 = arith.constant 4 : index
    %c0_114 = arith.constant 0 : index
    %109 = vector.load %arg17[%c4_113, %c0_114] : memref<36x2304xf32, #tpu.memory_space<vmem>>, vector<4x1152xf32>
    tpu.vector_store %arg17[%c4_113, %c0_114], %108 {strides = array<i32>} : memref<36x2304xf32, #tpu.memory_space<vmem>>, vector<4x1152xf32>,
    %c0_115 = arith.constant 0 : index
    %c2_116 = arith.constant 2 : index
    %110 = vector.load %arg16[%c0_115, %c2_116] : memref<4x2520xf32, #tpu.memory_space<vmem>>, vector<4x1152xf32>
    %c8_117 = arith.constant 8 : index
    %c0_118 = arith.constant 0 : index
    %111 = vector.load %arg17[%c8_117, %c0_118] : memref<36x2304xf32, #tpu.memory_space<vmem>>, vector<4x1152xf32>
    tpu.vector_store %arg17[%c8_117, %c0_118], %110 {strides = array<i32>} : memref<36x2304xf32, #tpu.memory_space<vmem>>, vector<4x1152xf32>,
    %c0_119 = arith.constant 0 : index
    %c36_120 = arith.constant 36 : index
    %112 = vector.load %arg16[%c0_119, %c36_120] : memref<4x2520xf32, #tpu.memory_space<vmem>>, vector<4x1152xf32>
    %c12 = arith.constant 12 : index
    %c0_121 = arith.constant 0 : index
    %113 = vector.load %arg17[%c12, %c0_121] : memref<36x2304xf32, #tpu.memory_space<vmem>>, vector<4x1152xf32>
    tpu.vector_store %arg17[%c12, %c0_121], %112 {strides = array<i32>} : memref<36x2304xf32, #tpu.memory_space<vmem>>, vector<4x1152xf32>,
    %c0_122 = arith.constant 0 : index
    %c37_123 = arith.constant 37 : index
    %114 = vector.load %arg16[%c0_122, %c37_123] : memref<4x2520xf32, #tpu.memory_space<vmem>>, vector<4x1152xf32>
    %c16_124 = arith.constant 16 : index
    %c0_125 = arith.constant 0 : index
    %115 = vector.load %arg17[%c16_124, %c0_125] : memref<36x2304xf32, #tpu.memory_space<vmem>>, vector<4x1152xf32>
    tpu.vector_store %arg17[%c16_124, %c0_125], %114 {strides = array<i32>} : memref<36x2304xf32, #tpu.memory_space<vmem>>, vector<4x1152xf32>,
    %c0_126 = arith.constant 0 : index
    %c38_127 = arith.constant 38 : index
    %116 = vector.load %arg16[%c0_126, %c38_127] : memref<4x2520xf32, #tpu.memory_space<vmem>>, vector<4x1152xf32>
    %c20 = arith.constant 20 : index
    %c0_128 = arith.constant 0 : index
    %117 = vector.load %arg17[%c20, %c0_128] : memref<36x2304xf32, #tpu.memory_space<vmem>>, vector<4x1152xf32>
    tpu.vector_store %arg17[%c20, %c0_128], %116 {strides = array<i32>} : memref<36x2304xf32, #tpu.memory_space<vmem>>, vector<4x1152xf32>,
    %c0_129 = arith.constant 0 : index
    %c72_130 = arith.constant 72 : index
    %118 = vector.load %arg16[%c0_129, %c72_130] : memref<4x2520xf32, #tpu.memory_space<vmem>>, vector<4x1152xf32>
    %c24_131 = arith.constant 24 : index
    %c0_132 = arith.constant 0 : index
    %119 = vector.load %arg17[%c24_131, %c0_132] : memref<36x2304xf32, #tpu.memory_space<vmem>>, vector<4x1152xf32>
    tpu.vector_store %arg17[%c24_131, %c0_132], %118 {strides = array<i32>} : memref<36x2304xf32, #tpu.memory_space<vmem>>, vector<4x1152xf32>,
    %c0_133 = arith.constant 0 : index
    %c73_134 = arith.constant 73 : index
    %120 = vector.load %arg16[%c0_133, %c73_134] : memref<4x2520xf32, #tpu.memory_space<vmem>>, vector<4x1152xf32>
    %c28 = arith.constant 28 : index
    %c0_135 = arith.constant 0 : index
    %121 = vector.load %arg17[%c28, %c0_135] : memref<36x2304xf32, #tpu.memory_space<vmem>>, vector<4x1152xf32>
    tpu.vector_store %arg17[%c28, %c0_135], %120 {strides = array<i32>} : memref<36x2304xf32, #tpu.memory_space<vmem>>, vector<4x1152xf32>,
    %c0_136 = arith.constant 0 : index
    %c74_137 = arith.constant 74 : index
    %122 = vector.load %arg16[%c0_136, %c74_137] : memref<4x2520xf32, #tpu.memory_space<vmem>>, vector<4x1152xf32>
    %c32_138 = arith.constant 32 : index
    %c0_139 = arith.constant 0 : index
    %123 = vector.load %arg17[%c32_138, %c0_139] : memref<36x2304xf32, #tpu.memory_space<vmem>>, vector<4x1152xf32>
    tpu.vector_store %arg17[%c32_138, %c0_139], %122 {strides = array<i32>} : memref<36x2304xf32, #tpu.memory_space<vmem>>, vector<4x1152xf32>,
    %c0_140 = arith.constant 0 : index
    %c1260_141 = arith.constant 1260 : index
    %124 = vector.load %arg16[%c0_140, %c1260_141] : memref<4x2520xf32, #tpu.memory_space<vmem>>, vector<4x1152xf32>
    %c0_142 = arith.constant 0 : index
    %c1152_143 = arith.constant 1152 : index
    %125 = vector.load %arg17[%c0_142, %c1152_143] : memref<36x2304xf32, #tpu.memory_space<vmem>>, vector<4x1152xf32>
    tpu.vector_store %arg17[%c0_142, %c1152_143], %124 {strides = array<i32>} : memref<36x2304xf32, #tpu.memory_space<vmem>>, vector<4x1152xf32>,
    %c0_144 = arith.constant 0 : index
    %c1261_145 = arith.constant 1261 : index
    %126 = vector.load %arg16[%c0_144, %c1261_145] : memref<4x2520xf32, #tpu.memory_space<vmem>>, vector<4x1152xf32>
    %c4_146 = arith.constant 4 : index
    %c1152_147 = arith.constant 1152 : index
    %127 = vector.load %arg17[%c4_146, %c1152_147] : memref<36x2304xf32, #tpu.memory_space<vmem>>, vector<4x1152xf32>
    tpu.vector_store %arg17[%c4_146, %c1152_147], %126 {strides = array<i32>} : memref<36x2304xf32, #tpu.memory_space<vmem>>, vector<4x1152xf32>,
    %c0_148 = arith.constant 0 : index
    %c1262_149 = arith.constant 1262 : index
    %128 = vector.load %arg16[%c0_148, %c1262_149] : memref<4x2520xf32, #tpu.memory_space<vmem>>, vector<4x1152xf32>
    %c8_150 = arith.constant 8 : index
    %c1152_151 = arith.constant 1152 : index
    %129 = vector.load %arg17[%c8_150, %c1152_151] : memref<36x2304xf32, #tpu.memory_space<vmem>>, vector<4x1152xf32>
    tpu.vector_store %arg17[%c8_150, %c1152_151], %128 {strides = array<i32>} : memref<36x2304xf32, #tpu.memory_space<vmem>>, vector<4x1152xf32>,
    %c0_152 = arith.constant 0 : index
    %c1296_153 = arith.constant 1296 : index
    %130 = vector.load %arg16[%c0_152, %c1296_153] : memref<4x2520xf32, #tpu.memory_space<vmem>>, vector<4x1152xf32>
    %c12_154 = arith.constant 12 : index
    %c1152_155 = arith.constant 1152 : index
    %131 = vector.load %arg17[%c12_154, %c1152_155] : memref<36x2304xf32, #tpu.memory_space<vmem>>, vector<4x1152xf32>
    tpu.vector_store %arg17[%c12_154, %c1152_155], %130 {strides = array<i32>} : memref<36x2304xf32, #tpu.memory_space<vmem>>, vector<4x1152xf32>,
    %c0_156 = arith.constant 0 : index
    %c1297_157 = arith.constant 1297 : index
    %132 = vector.load %arg16[%c0_156, %c1297_157] : memref<4x2520xf32, #tpu.memory_space<vmem>>, vector<4x1152xf32>
    %c16_158 = arith.constant 16 : index
    %c1152_159 = arith.constant 1152 : index
    %133 = vector.load %arg17[%c16_158, %c1152_159] : memref<36x2304xf32, #tpu.memory_space<vmem>>, vector<4x1152xf32>
    tpu.vector_store %arg17[%c16_158, %c1152_159], %132 {strides = array<i32>} : memref<36x2304xf32, #tpu.memory_space<vmem>>, vector<4x1152xf32>,
    %c0_160 = arith.constant 0 : index
    %c1298_161 = arith.constant 1298 : index
    %134 = vector.load %arg16[%c0_160, %c1298_161] : memref<4x2520xf32, #tpu.memory_space<vmem>>, vector<4x1152xf32>
    %c20_162 = arith.constant 20 : index
    %c1152_163 = arith.constant 1152 : index
    %135 = vector.load %arg17[%c20_162, %c1152_163] : memref<36x2304xf32, #tpu.memory_space<vmem>>, vector<4x1152xf32>
    tpu.vector_store %arg17[%c20_162, %c1152_163], %134 {strides = array<i32>} : memref<36x2304xf32, #tpu.memory_space<vmem>>, vector<4x1152xf32>,
    %c0_164 = arith.constant 0 : index
    %c1332_165 = arith.constant 1332 : index
    %136 = vector.load %arg16[%c0_164, %c1332_165] : memref<4x2520xf32, #tpu.memory_space<vmem>>, vector<4x1152xf32>
    %c24_166 = arith.constant 24 : index
    %c1152_167 = arith.constant 1152 : index
    %137 = vector.load %arg17[%c24_166, %c1152_167] : memref<36x2304xf32, #tpu.memory_space<vmem>>, vector<4x1152xf32>
    tpu.vector_store %arg17[%c24_166, %c1152_167], %136 {strides = array<i32>} : memref<36x2304xf32, #tpu.memory_space<vmem>>, vector<4x1152xf32>,
    %c0_168 = arith.constant 0 : index
    %c1333_169 = arith.constant 1333 : index
    %138 = vector.load %arg16[%c0_168, %c1333_169] : memref<4x2520xf32, #tpu.memory_space<vmem>>, vector<4x1152xf32>
    %c28_170 = arith.constant 28 : index
    %c1152_171 = arith.constant 1152 : index
    %139 = vector.load %arg17[%c28_170, %c1152_171] : memref<36x2304xf32, #tpu.memory_space<vmem>>, vector<4x1152xf32>
    tpu.vector_store %arg17[%c28_170, %c1152_171], %138 {strides = array<i32>} : memref<36x2304xf32, #tpu.memory_space<vmem>>, vector<4x1152xf32>,
    %c0_172 = arith.constant 0 : index
    %c1334_173 = arith.constant 1334 : index
    %140 = vector.load %arg16[%c0_172, %c1334_173] : memref<4x2520xf32, #tpu.memory_space<vmem>>, vector<4x1152xf32>
    %c32_174 = arith.constant 32 : index
    %c1152_175 = arith.constant 1152 : index
    %141 = vector.load %arg17[%c32_174, %c1152_175] : memref<36x2304xf32, #tpu.memory_space<vmem>>, vector<4x1152xf32>
    tpu.vector_store %arg17[%c32_174, %c1152_175], %140 {strides = array<i32>} : memref<36x2304xf32, #tpu.memory_space<vmem>>, vector<4x1152xf32>,
    %c0_176 = arith.constant 0 : index
    %c0_177 = arith.constant 0 : index
    %142 = vector.load %arg7[%c0_176, %c0_177] : memref<4x36xf32, #tpu.memory_space<vmem>>, vector<4x36xf32>
    %c0_178 = arith.constant 0 : index
    %c0_179 = arith.constant 0 : index
    %143 = vector.load %arg17[%c0_178, %c0_179] : memref<36x2304xf32, #tpu.memory_space<vmem>>, vector<36x2304xf32>
    %cst_180 = arith.constant dense<0.000000e+00> : vector<4x2304xf32>
    %144 = tpu.matmul %142, %143, %cst_180 {dimension_numbers = #tpu.dot_dimension_numbers<[1], [0], [0], [1], [0, 0, 1, 1], [], []>} : vector<4x36xf32>, vector<36x2304xf32>, vector<4x2304xf32> -> vector<4x2304xf32>
    %145 = vector.broadcast %0 : vector<1x2304xf32> to vector<4x2304xf32>
    %146 = arith.mulf %144, %145 : vector<4x2304xf32>
    %cst_181 = arith.constant dense<0.000000e+00> : vector<4xf32>
    %147 = vector.multi_reduction <add>, %146, %cst_181 [1] : vector<4x2304xf32> to vector<4xf32>
    %148 = vector.shape_cast %147 : vector<4xf32> to vector<4x1xf32>
    %cst_182 = arith.constant 4.8828125E-4 : f32
    %149 = vector.broadcast %cst_182 : f32 to vector<4x1xf32>
    %150 = arith.mulf %148, %149 : vector<4x1xf32>
    %151 = arith.mulf %146, %144 : vector<4x2304xf32>
    %cst_183 = arith.constant dense<0.000000e+00> : vector<4xf32>
    %152 = vector.multi_reduction <add>, %151, %cst_183 [1] : vector<4x2304xf32> to vector<4xf32>
    %153 = vector.shape_cast %152 : vector<4xf32> to vector<4x1xf32>
    %cst_184 = arith.constant 4.8828125E-4 : f32
    %154 = vector.broadcast %cst_184 : f32 to vector<4x1xf32>
    %155 = arith.mulf %153, %154 : vector<4x1xf32>
    %156 = arith.mulf %150, %150 : vector<4x1xf32>
    %157 = arith.subf %155, %156 : vector<4x1xf32>
    %c0_185 = arith.constant 0 : index
    %c0_186 = arith.constant 0 : index
    %158 = vector.load %arg10[%c0_185, %c0_186] : memref<4x1xf32, #tpu.memory_space<vmem>>, vector<4x1xf32>
    %cst_187 = arith.constant 9.99999974E-6 : f32
    %159 = vector.broadcast %cst_187 : f32 to vector<4x1xf32>
    %160 = arith.addf %157, %159 : vector<4x1xf32>
    %161 = math.rsqrt %160 : vector<4x1xf32>
    %162 = arith.mulf %158, %161 : vector<4x1xf32>
    %c0_188 = arith.constant 0 : index
    %c0_189 = arith.constant 0 : index
    %163 = vector.load %arg11[%c0_188, %c0_189] : memref<4x1xf32, #tpu.memory_space<vmem>>, vector<4x1xf32>
    %164 = arith.mulf %150, %162 : vector<4x1xf32>
    %165 = arith.subf %163, %164 : vector<4x1xf32>
    %166 = vector.broadcast %162 : vector<4x1xf32> to vector<4x2304xf32>
    %167 = arith.mulf %144, %166 : vector<4x2304xf32>
    %168 = vector.broadcast %165 : vector<4x1xf32> to vector<4x2304xf32>
    %169 = arith.addf %167, %168 : vector<4x2304xf32>
    %cst_190 = arith.constant 0.000000e+00 : f32
    %170 = vector.broadcast %cst_190 : f32 to vector<4x2304xf32>
    %171 = arith.cmpf ogt, %169, %170 : vector<4x2304xf32>
    %cst_191 = arith.constant 0.00999999977 : f32
    %172 = vector.broadcast %cst_191 : f32 to vector<4x2304xf32>
    %173 = arith.mulf %172, %169 : vector<4x2304xf32>
    %174 = arith.select %171, %169, %173 : vector<4x2304xi1>, vector<4x2304xf32>
    %175 = vector.extract_strided_slice %174 {offsets = [0, 0], sizes = [4, 1152], strides = [1, 1]} : vector<4x2304xf32> to vector<4x1152xf32>
    %c0_192 = arith.constant 0 : index
    %c0_193 = arith.constant 0 : index
    %c0_194 = arith.constant 0 : index
    %176 = vector.load %arg13[%c0_192, %c0_193, %c0_194] : memref<2x4x1152xf32, #tpu.memory_space<vmem>>, vector<1x4x1152xf32>
    %177 = vector.shape_cast %176 : vector<1x4x1152xf32> to vector<4x1152xf32>
    %178 = vector.shape_cast %175 : vector<4x1152xf32> to vector<1x4x1152xf32>
    tpu.vector_store %arg13[%c0_192, %c0_193, %c0_194], %178 {strides = array<i32>} : memref<2x4x1152xf32, #tpu.memory_space<vmem>>, vector<1x4x1152xf32>,
    %179 = vector.extract_strided_slice %174 {offsets = [0, 1152], sizes = [4, 1152], strides = [1, 1]} : vector<4x2304xf32> to vector<4x1152xf32>
    %c1_195 = arith.constant 1 : index
    %c0_196 = arith.constant 0 : index
    %c0_197 = arith.constant 0 : index
    %180 = vector.load %arg13[%c1_195, %c0_196, %c0_197] : memref<2x4x1152xf32, #tpu.memory_space<vmem>>, vector<1x4x1152xf32>
    %181 = vector.shape_cast %180 : vector<1x4x1152xf32> to vector<4x1152xf32>
    %182 = vector.shape_cast %179 : vector<4x1152xf32> to vector<1x4x1152xf32>
    tpu.vector_store %arg13[%c1_195, %c0_196, %c0_197], %182 {strides = array<i32>} : memref<2x4x1152xf32, #tpu.memory_space<vmem>>, vector<1x4x1152xf32>,
    return
  }
  func.func @transform_0(%arg0: i32) -> (i32, i32, i32) {
    %c0_i32 = arith.constant 0 : i32
    %c0_i32_0 = arith.constant 0 : i32
    %c0_i32_1 = arith.constant 0 : i32
    %c0_i32_2 = arith.constant 0 : i32
    return %c0_i32, %c0_i32_0, %c0_i32_1 : i32, i32, i32
  }
  func.func @transform_1(%arg0: i32) -> (i32, i32, i32) {
    %c0_i32 = arith.constant 0 : i32
    %c0_i32_0 = arith.constant 0 : i32
    %c0_i32_1 = arith.constant 0 : i32
    %c0_i32_2 = arith.constant 0 : i32
    return %c0_i32, %c0_i32_0, %c0_i32_1 : i32, i32, i32
  }
  func.func @transform_2(%arg0: i32) -> (i32, i32) {
    %c0_i32 = arith.constant 0 : i32
    %c0_i32_0 = arith.constant 0 : i32
    %c0_i32_1 = arith.constant 0 : i32
    return %c0_i32, %c0_i32_0 : i32, i32
  }
  func.func @transform_3(%arg0: i32) -> (i32, i32) {
    %c0_i32 = arith.constant 0 : i32
    %c0_i32_0 = arith.constant 0 : i32
    %c0_i32_1 = arith.constant 0 : i32
    return %c0_i32, %c0_i32_0 : i32, i32
  }
  func.func @transform_4(%arg0: i32) -> (i32, i32) {
    %c0_i32 = arith.constant 0 : i32
    %c0_i32_0 = arith.constant 0 : i32
    %c0_i32_1 = arith.constant 0 : i32
    return %c0_i32, %c0_i32_0 : i32, i32
  }
  func.func @transform_5(%arg0: i32) -> (i32, i32) {
    %c0_i32 = arith.constant 0 : i32
    %c0_i32_0 = arith.constant 0 : i32
    %c0_i32_1 = arith.constant 0 : i32
    return %c0_i32, %c0_i32_0 : i32, i32
  }
  func.func @transform_6(%arg0: i32) -> (i32, i32) {
    %c0_i32 = arith.constant 0 : i32
    %c0_i32_0 = arith.constant 0 : i32
    %c0_i32_1 = arith.constant 0 : i32
    return %c0_i32, %c0_i32_0 : i32, i32
  }
  func.func @transform_7(%arg0: i32) -> (i32, i32) {
    %c0_i32 = arith.constant 0 : i32
    %c0_i32_0 = arith.constant 0 : i32
    %c0_i32_1 = arith.constant 0 : i32
    return %c0_i32, %c0_i32_0 : i32, i32
  }
  func.func @transform_8(%arg0: i32) -> (i32, i32) {
    %c0_i32 = arith.constant 0 : i32
    %c0_i32_0 = arith.constant 0 : i32
    %c0_i32_1 = arith.constant 0 : i32
    return %c0_i32, %c0_i32_0 : i32, i32
  }
  func.func @transform_9(%arg0: i32) -> (i32, i32) {
    %c0_i32 = arith.constant 0 : i32
    %c0_i32_0 = arith.constant 0 : i32
    %c0_i32_1 = arith.constant 0 : i32
    return %c0_i32, %c0_i32_0 : i32, i32
  }
  func.func @transform_10(%arg0: i32) -> (i32, i32) {
    %c0_i32 = arith.constant 0 : i32
    %c0_i32_0 = arith.constant 0 : i32
    %c0_i32_1 = arith.constant 0 : i32
    return %c0_i32, %c0_i32_0 : i32, i32
  }
  func.func @transform_11(%arg0: i32) -> (i32, i32) {
    %c0_i32 = arith.constant 0 : i32
    %c0_i32_0 = arith.constant 0 : i32
    %c0_i32_1 = arith.constant 0 : i32
    return %c0_i32, %c0_i32_0 : i32, i32
  }
  func.func @transform_12(%arg0: i32) -> (i32, i32, i32) {
    %c0_i32 = arith.constant 0 : i32
    %c0_i32_0 = arith.constant 0 : i32
    %c0_i32_1 = arith.constant 0 : i32
    %c0_i32_2 = arith.constant 0 : i32
    return %c0_i32, %c0_i32_0, %c0_i32_1 : i32, i32, i32
  }
}

</mosaic_0001>

<bundles_post_ra>
// kernel: upblock_forward.1
= control target key start
LH: loop header
LB: loop body
LE: loop exit
PB: predicated region body
PF: predicated region fallthrough
CT: control target
= control target key end

     0   :  { %17 = vsyncpa [#allocation7], 0  ;;  %s9046_s0 = inlined_call_operand.vmem [shape: f32[2,8,256], index: 0, kind: input, shape index: {}]   ;;  %s9047_s1 = inlined_call_operand.vmem [shape: f32[2,4,1152], index: 1, kind: input, shape index: {}]   ;;  %s9048_s2 = inlined_call_operand.hbm [shape: f32[4,8], index: 2, kind: input, shape index: {}]   ;;  %s9049_s3 = inlined_call_operand.vmem [shape: f32[4,1], index: 3, kind: input, shape index: {}]   ;;  %s9050_s4 = inlined_call_operand.hbm [shape: f32[256,1152], index: 4, kind: input, shape index: {}]   ;;  %s9051_s5 = inlined_call_operand.vmem [shape: f32[4,72], index: 5, kind: input, shape index: {}]   ;;  %s9052_s6 = inlined_call_operand.vmem [shape: f32[4,36], index: 6, kind: input, shape index: {}]   ;;  %s9053_s7 = inlined_call_operand.vmem [shape: f32[4,1], index: 7, kind: input, shape index: {}]   ;;  %s9054_s8 = inlined_call_operand.vmem [shape: f32[4,1], index: 8, kind: input, shape index: {}]   ;;  %s9055_s9 = inlined_call_operand.vmem [shape: f32[4,1], index: 9, kind: input, shape index: {}]   ;;  %s9056_s10 = inlined_call_operand.vmem [shape: f32[4,1], index: 10, kind: input, shape index: {}]   ;;  %s9057_s11 = inlined_call_operand.hbm [shape: f32[1,2304], index: 11, kind: input, shape index: {}]   ;;  %s9058_s12 = inlined_call_operand.vmem [shape: f32[2,4,1152], index: 12, kind: output, shape index: {}]  }
   0x1   :  { %18 = vsyncpa [#allocation9], 0  ;;  %s6633_s21 = smov [#allocation8]  }
   0x2   :  { %s40_s22 = sshll.u32 %s6633_s21, 4  ;;  %s41_s22 = int_to_ptr.vmem [resolvable:$true] %s40_s22 }
   0x3   :  { %s6577_s23 = scalar_lea.vmem %s41_s22, 36864  ;;  %p6582_p1 = scmp.lt.s32.totalorder %s41_s22, %s41_s22 }
   0x4   :  { %p6578_p0 = scmp.ne.s32.totalorder %s41_s22, %s6577_s23  ;;  %p6583_p2 = scmp.lt.s32.totalorder %s6577_s23, %s6577_s23 }
   0x6   :  { %p6584_p3 = por %p6583_p2, %p6582_p1 }
   0x8   :  { %p6585_p4 = pnand %p6584_p3, %p6578_p0 }
   0xa   :  { %6588 = shalt.err (!%p6585_p4)
}
   0xb   :  { %s6634_s24 = smov 1152   ;;  %s6635_s25 = smov 72  }
   0xc   :  { %46 = dma.hbm_to_vmem [thread:$0]  %s9050_s4, 36864, %s41_s22, [#allocation9], %s6634_s24, %s6634_s24, %s6635_s25  }
   0xd   :  { %s6636_s28 = smov [#allocation6]   ;;  %s6637_s30 = smov [#allocation10]  }
   0xe   :  { %s29_s29 = sshll.u32 %s6636_s28, 4  ;;  %s65_s13 = sshll.u32 %s6637_s30, 4  ;;  %s30_s29 = int_to_ptr.vmem [resolvable:$true] %s29_s29  ;;  %s66_s13 = int_to_ptr.vmem [resolvable:$true] %s65_s13 }
   0xf   :  { %s6597_s14 = scalar_lea.vmem %s30_s29, 64  ;;  %p6602_p6 = scmp.lt.s32.totalorder %s30_s29, %s30_s29 }
  0x10   :  { %p6598_p5 = scmp.ne.s32.totalorder %s30_s29, %s6597_s14  ;;  %p6603_p7 = scmp.lt.s32.totalorder %s6597_s14, %s6597_s14 }
  0x12   :  { %p6604_p8 = por %p6603_p7, %p6602_p6 }
  0x14   :  { %p6605_p9 = pnand %p6604_p8, %p6598_p5 }
  0x16   :  { %6608 = shalt.err (!%p6605_p9)
}
  0x17   :  { %32 = dma.hbm_to_vmem [thread:$0]  %s9048_s2, 64, %s30_s29, [#allocation7]  }
  0x18   :  { %s6617_s17 = scalar_lea.vmem %s66_s13, 288  ;;  %p6622_p11 = scmp.lt.s32.totalorder %s66_s13, %s66_s13 }
  0x19   :  { %p6618_p10 = scmp.ne.s32.totalorder %s66_s13, %s6617_s17  ;;  %p6623_p12 = scmp.lt.s32.totalorder %s6617_s17, %s6617_s17 }
  0x1b   :  { %p6624_p13 = por %p6623_p12, %p6622_p11 }
  0x1d   :  { %p6625_p0 = pnand %p6624_p13, %p6618_p10 }
  0x1f   :  { %6628 = shalt.err (!%p6625_p0)
}
  0x20   :  { %68 = dma.hbm_to_vmem [thread:$0]  %s9057_s11, 288, %s66_s13, [#allocation9]  }
  0x21   :  { %6629 = dma.done.wait [#allocation7], 64  }
  0x22   :  { %6630 = vsyncadd [#allocation7], 4294967232 }
  0x23   :  { %6631 = dma.done.wait [#allocation9], 37152  }
  0x24   :  { %6632 = vsyncadd [#allocation9], 4294930144  ;;  %v6638_v0 = vmov 0.0   ;;  %v6639_v1 = vmov 0   ;;  %v167_v2 = vld [vmem:[%s9046_s0 + $0x8] sm:$0xff]  ;;  %v166_v3 = vld [vmem:[%s9046_s0] sm:$0xff] }
  0x25   :  { %242 = vmatprep.mubr.f32.mxu0 %v6638_v0  ;;  %81 = vst [vmem:[#allocation2] sm:$0xff] %v6638_v0  ;;  %82 = vst [vmem:[#allocation2 + $0x8] sm:$0xff] %v6638_v0  ;;  %6528 = vset.pattern.permute.xlu0 %v6639_v1  ;;  %v165_v4 = vld [vmem:[#allocation6] sm:$0xf]  ;;  %vm174_vm0 = vcmask 64512   ;;  %v385_v6 = vld [vmem:[#allocation8 + $0x440] sm:$0xff] }
  0x26   :  { %83 = vst [vmem:[#allocation2 + $0x10] sm:$0xff] %v6638_v0  ;;  %84 = vst [vmem:[#allocation2 + $0x18] sm:$0xff] %v6638_v0  ;;  %6529 = vset.pattern.permute.xlu1 %v6639_v1  ;;  %208 = vmatprep.subr.mxu0 %v167_v2  ;;  %v168_v5 = vld [vmem:[%s9049_s3] sm:$0xf]  ;;  %v387_v7 = vld [vmem:[#allocation8 + $0x450] sm:$0xff]  ;;  %s6640_s28 = smov 36  }
  0x27   :  { %85 = vst [vmem:[#allocation2 + $0x20] sm:$0xff] %v6638_v0  ;;  %86 = vst [vmem:[#allocation2 + $0x28] sm:$0xff] %v6638_v0  ;;  %209 = vmatpush1.msra.mxu0 %v166_v3  ;;  %171 = vperm.xlu0 %6528, %v168_v5   ;;  %v384_v8 = vld [vmem:[#allocation8 + $0x438] sm:$0xff]  ;;  %v386_v9 = vld [vmem:[#allocation8 + $0x448] sm:$0xff]  ;;  %s6641_s18 = smov 16   ;;  %vm153_vm1 = vcmask 1043744  }
  0x28   :  { %87 = vst [vmem:[#allocation2 + $0x30] sm:$0xff] %v6638_v0  ;;  %88 = vst [vmem:[#allocation2 + $0x38] sm:$0xff] %v6638_v0  ;;  %6380 = vmatmul.mubr.msk.f32.vlgmr.msra.gmra.mxu0 %vm174_vm0, %v165_v4  ;;  %v1025_v10 = vld [vmem:[%s9049_s3] sm:$0xf]  ;;  %537 = vmatprep.subr.mxu1 %v385_v6  ;;  %v378_v12 = vld [vmem:[#allocation8 + $0x408] sm:$0xff]  ;;  %vm9059_vm2 = vcmask 293888  }
  0x29   :  { %89 = vst [vmem:[#allocation2 + $0x40] sm:$0xff] %v6638_v0  ;;  %90 = vst [vmem:[#allocation2 + $0x48] sm:$0xff] %v6638_v0  ;;  %v376_v11 = vld [vmem:[#allocation8 + $0x3f8] sm:$0xff]  ;;  %608 = vmatprep.subr.mxu0 %v387_v7  ;;  %538 = vmatpush1.msra.mxu1 %v384_v8  ;;  %v375_v13 = vld [vmem:[#allocation8 + $0x3f0] sm:$0xff]  ;;  %vm163_vm3 = vcmask 289792   ;;  %vm1009_vm4 = vcmask 1043584  }
  0x2a   :  { %91 = vst [vmem:[#allocation2 + $0x50] sm:$0xff] %v6638_v0  ;;  %92 = vst [vmem:[#allocation2 + $0x58] sm:$0xff] %v6638_v0  ;;  %v377_v14 = vld [vmem:[#allocation8 + $0x400] sm:$0xff]  ;;  %609 = vmatpush1.msra.mxu0 %v386_v9  ;;  %539 = vmatprep.subr.mxu1 %v376_v11  ;;  %v367_v15 = vld [vmem:[#allocation8 + $0x3b0] sm:$0xff]  ;;  %vm990_vm5 = vcmask 130048   ;;  %vm100_vm6 = vcmask 719872  }
  0x2b   :  { %93 = vst [vmem:[#allocation2 + $0x60] sm:$0xff] %v6638_v0  ;;  %94 = vst [vmem:[#allocation2 + $0x68] sm:$0xff] %v6638_v0  ;;  %v369_v16 = vld [vmem:[#allocation8 + $0x3c0] sm:$0xff]  ;;  %1028 = vperm.xlu0 %6528, %v1025_v10   ;;  %610 = vmatprep.subr.mxu0 %v378_v12  ;;  %v366_v17 = vld [vmem:[#allocation8 + $0x3a8] sm:$0xff]  ;;  %vm1019_vm7 = vcmask 125952   ;;  %vm945_vm8 = vcmask 1047844  }
  0x2c   :  { %95 = vst [vmem:[#allocation2 + $0x70] sm:$0xff] %v6638_v0  ;;  %96 = vst [vmem:[#allocation2 + $0x78] sm:$0xff] %v6638_v0  ;;  %v368_v18 = vld [vmem:[#allocation8 + $0x3b8] sm:$0xff]  ;;  %540 = vmatpush1.msra.mxu1 %v375_v13  ;;  %611 = vmatpush1.msra.mxu0 %v377_v14  ;;  %v358_v19 = vld [vmem:[#allocation8 + $0x368] sm:$0xff]  ;;  %s6643_s27 = smov 55   ;;  %s6645_s29 = smov 90  }
  0x2d   :  { %97 = vst [vmem:[#allocation2 + $0x80] sm:$0xff] %v6638_v0  ;;  %98 = vst [vmem:[#allocation2 + $0x88] sm:$0xff] %v6638_v0  ;;  %v360_v20 = vld [vmem:[#allocation8 + $0x378] sm:$0xff]  ;;  %541 = vmatprep.subr.mxu1 %v367_v15  ;;  %612 = vmatprep.subr.mxu0 %v369_v16  ;;  %v357_v21 = vld [vmem:[#allocation8 + $0x360] sm:$0xff]  ;;  %s6646_s30 = smov 91   ;;  %s6647_s13 = smov 92  }
  0x2e   :  { %99 = vst [vmem:[#allocation2 + $0x90] sm:$0xff] %v6638_v0  ;;  %4126 = vst [vmem:[#allocation4] sm:$0xff] %v6638_v0  ;;  %v359_v22 = vld [vmem:[#allocation8 + $0x370] sm:$0xff]  ;;  %542 = vmatpush1.msra.mxu1 %v366_v17  ;;  %613 = vmatpush1.msra.mxu0 %v368_v18  ;;  %v349_v23 = vld [vmem:[#allocation8 + $0x320] sm:$0xff]  ;;  %s6648_s14 = smov 126   ;;  %s6649_s15 = smov 127  }
  0x2f   :  { %4130 = vst [vmem:[#allocation4 + $0x20] sm:$0xff] %v6638_v0  ;;  %4131 = vst [vmem:[#allocation4 + $0x28] sm:$0xff] %v6638_v0  ;;  %v351_v24 = vld [vmem:[#allocation8 + $0x330] sm:$0xff]  ;;  %543 = vmatprep.subr.mxu1 %v358_v19  ;;  %614 = vmatprep.subr.mxu0 %v360_v20  ;;  %v348_v25 = vld [vmem:[#allocation8 + $0x318] sm:$0xff]  ;;  %vm955_vm9 = vcmask 293892   ;;  %vm2347_vm10 = vcmask 441344  }
  0x30   :  { %v350_v26 = vld [vmem:[#allocation8 + $0x328] sm:$0xff]  ;;  %544 = vmatpush1.msra.mxu1 %v357_v21  ;;  %615 = vmatpush1.msra.mxu0 %v359_v22  ;;  %v340_v27 = vld [vmem:[#allocation8 + $0x2d8] sm:$0xff]  ;;  %v339_v29 = vld [vmem:[#allocation8 + $0x2d0] sm:$0xff]  ;;  %vm2279_vm11 = vcmask 449536   ;;  %vm2211_vm12 = vcmask 457728   ;;  %vm9060_vm13 = vcmask 736256  }
  0x31   :  { %v342_v28 = vld [vmem:[#allocation8 + $0x2e8] sm:$0xff]  ;;  %545 = vmatprep.subr.mxu1 %v349_v23  ;;  %616 = vmatprep.subr.mxu0 %v351_v24  ;;  %v341_v30 = vld [vmem:[#allocation8 + $0x2e0] sm:$0xff]  ;;  %v331_v31 = vld [vmem:[#allocation8 + $0x290] sm:$0xff]  ;;  %s6650_s16 = smov 19   ;;  %s6651_s17 = smov 18   ;;  %vm2075_vm14 = vcmask 744448  }
  0x32   :  { %546 = vmatpush1.msra.mxu1 %v348_v25  ;;  %617 = vmatpush1.msra.mxu0 %v350_v26  ;;  %v333_v32 = vld [vmem:[#allocation8 + $0x2a0] sm:$0xff]  ;;  %v330_v33 = vld [vmem:[#allocation8 + $0x288] sm:$0xff]  ;;  %v332_v34 = vld [vmem:[#allocation8 + $0x298] sm:$0xff]  ;;  %vm9061_vm15 = vcmask 752640   ;;  %s6652_s4 = smov 20   ;;  %s6654_s19 = smov 75  }
  0x33   :  { %547 = vmatprep.subr.mxu1 %v340_v27  ;;  %618 = vmatprep.subr.mxu0 %v342_v28  ;;  %v322_v35 = vld [vmem:[#allocation8 + $0x248] sm:$0xff]  ;;  %v324_v36 = vld [vmem:[#allocation8 + $0x258] sm:$0xff]  ;;  %v321_v37 = vld [vmem:[#allocation8 + $0x240] sm:$0xff]  ;;  %s6655_s20 = smov 76   ;;  %s6656_s21 = smov 110  }
  0x34   :  { %548 = vmatpush1.msra.mxu1 %v339_v29  ;;  %619 = vmatpush1.msra.mxu0 %v341_v30  ;;  %v323_v38 = vld [vmem:[#allocation8 + $0x250] sm:$0xff]  ;;  %v313_v39 = vld [vmem:[#allocation8 + $0x200] sm:$0xff]  ;;  %v312_v41 = vld [vmem:[#allocation8 + $0x1f8] sm:$0xff]  ;;  %s6657_s22 = smov 111   ;;  %s6658_s23 = smov 112  }
  0x35   :  { %549 = vmatprep.subr.mxu1 %v331_v31  ;;  %620 = vmatprep.subr.mxu0 %v333_v32  ;;  %v315_v40 = vld [vmem:[#allocation8 + $0x210] sm:$0xff]  ;;  %v314_v42 = vld [vmem:[#allocation8 + $0x208] sm:$0xff]  ;;  %v304_v43 = vld [vmem:[#allocation8 + $0x1b8] sm:$0xff] }
  0x36   :  { %550 = vmatpush1.msra.mxu1 %v330_v33  ;;  %621 = vmatpush1.msra.mxu0 %v332_v34  ;;  %v306_v44 = vld [vmem:[#allocation8 + $0x1c8] sm:$0xff]  ;;  %v303_v45 = vld [vmem:[#allocation8 + $0x1b0] sm:$0xff]  ;;  %v305_v46 = vld [vmem:[#allocation8 + $0x1c0] sm:$0xff] }
  0x37   :  { %551 = vmatprep.subr.mxu1 %v322_v35  ;;  %622 = vmatprep.subr.mxu0 %v324_v36  ;;  %v295_v47 = vld [vmem:[#allocation8 + $0x170] sm:$0xff]  ;;  %v297_v48 = vld [vmem:[#allocation8 + $0x180] sm:$0xff]  ;;  %v294_v49 = vld [vmem:[#allocation8 + $0x168] sm:$0xff] }
  0x38   :  { %552 = vmatpush1.msra.mxu1 %v321_v37  ;;  %623 = vmatpush1.msra.mxu0 %v323_v38  ;;  %v296_v50 = vld [vmem:[#allocation8 + $0x178] sm:$0xff]  ;;  %v286_v51 = vld [vmem:[#allocation8 + $0x128] sm:$0xff]  ;;  %v285_v53 = vld [vmem:[#allocation8 + $0x120] sm:$0xff] }
  0x39   :  { %553 = vmatprep.subr.mxu1 %v313_v39  ;;  %624 = vmatprep.subr.mxu0 %v315_v40  ;;  %v288_v52 = vld [vmem:[#allocation8 + $0x138] sm:$0xff]  ;;  %v287_v54 = vld [vmem:[#allocation8 + $0x130] sm:$0xff]  ;;  %v277_v55 = vld [vmem:[#allocation8 + $0xe0] sm:$0xff] }
  0x3a   :  { %554 = vmatpush1.msra.mxu1 %v312_v41  ;;  %625 = vmatpush1.msra.mxu0 %v314_v42  ;;  %v279_v56 = vld [vmem:[#allocation8 + $0xf0] sm:$0xff]  ;;  %v276_v57 = vld [vmem:[#allocation8 + $0xd8] sm:$0xff]  ;;  %v278_v58 = vld [vmem:[#allocation8 + $0xe8] sm:$0xff] }
  0x3b   :  { %555 = vmatprep.subr.mxu1 %v304_v43  ;;  %626 = vmatprep.subr.mxu0 %v306_v44  ;;  %v268_v59 = vld [vmem:[#allocation8 + $0x98] sm:$0xff]  ;;  %v270_v60 = vld [vmem:[#allocation8 + $0xa8] sm:$0xff]  ;;  %v267_v61 = vld [vmem:[#allocation8 + $0x90] sm:$0xff] }
  0x3c   :  { %556 = vmatpush1.msra.mxu1 %v303_v45  ;;  %627 = vmatpush1.msra.mxu0 %v305_v46  ;;  %v269_v62 = vld [vmem:[#allocation8 + $0xa0] sm:$0xff]  ;;  %v259_v63 = vld [vmem:[#allocation8 + $0x50] sm:$0xff]  ;;  %v258_v1 = vld [vmem:[#allocation8 + $0x48] sm:$0xff] }
  0x3d   :  { %557 = vmatprep.subr.mxu1 %v295_v47  ;;  %628 = vmatprep.subr.mxu0 %v297_v48  ;;  %v261_v0 = vld [vmem:[#allocation8 + $0x60] sm:$0xff]  ;;  %v260_v2 = vld [vmem:[#allocation8 + $0x58] sm:$0xff]  ;;  %v250_v3 = vld [vmem:[#allocation8 + $0x8] sm:$0xff] }
  0x3e   :  { %558 = vmatpush1.msra.mxu1 %v294_v49  ;;  %629 = vmatpush1.msra.mxu0 %v296_v50  ;;  %v252_v4 = vld [vmem:[#allocation8 + $0x18] sm:$0xff]  ;;  %v249_v5 = vld [vmem:[#allocation8] sm:$0xff]  ;;  %v251_v6 = vld [vmem:[#allocation8 + $0x10] sm:$0xff] }
  0x3f   :  { %559 = vmatprep.subr.mxu1 %v286_v51  ;;  %630 = vmatprep.subr.mxu0 %v288_v52  ;;  %v529_v7 = vld [vmem:[#allocation8 + $0x8c0] sm:$0xff]  ;;  %v531_v8 = vld [vmem:[#allocation8 + $0x8d0] sm:$0xff]  ;;  %v528_v9 = vld [vmem:[#allocation8 + $0x8b8] sm:$0xff] }
  0x40   :  { %560 = vmatpush1.msra.mxu1 %v285_v53  ;;  %631 = vmatpush1.msra.mxu0 %v287_v54  ;;  %v530_v10 = vld [vmem:[#allocation8 + $0x8c8] sm:$0xff]  ;;  %v520_v11 = vld [vmem:[#allocation8 + $0x878] sm:$0xff]  ;;  %v519_v13 = vld [vmem:[#allocation8 + $0x870] sm:$0xff] }
  0x41   :  { %561 = vmatprep.subr.mxu1 %v277_v55  ;;  %632 = vmatprep.subr.mxu0 %v279_v56  ;;  %v522_v12 = vld [vmem:[#allocation8 + $0x888] sm:$0xff]  ;;  %v521_v14 = vld [vmem:[#allocation8 + $0x880] sm:$0xff]  ;;  %v511_v15 = vld [vmem:[#allocation8 + $0x830] sm:$0xff] }
  0x42   :  { %562 = vmatpush1.msra.mxu1 %v276_v57  ;;  %633 = vmatpush1.msra.mxu0 %v278_v58  ;;  %v513_v16 = vld [vmem:[#allocation8 + $0x840] sm:$0xff]  ;;  %v510_v17 = vld [vmem:[#allocation8 + $0x828] sm:$0xff]  ;;  %v512_v18 = vld [vmem:[#allocation8 + $0x838] sm:$0xff] }
  0x43   :  { %563 = vmatprep.subr.mxu1 %v268_v59  ;;  %634 = vmatprep.subr.mxu0 %v270_v60  ;;  %v502_v19 = vld [vmem:[#allocation8 + $0x7e8] sm:$0xff]  ;;  %v504_v20 = vld [vmem:[#allocation8 + $0x7f8] sm:$0xff]  ;;  %v501_v21 = vld [vmem:[#allocation8 + $0x7e0] sm:$0xff] }
  0x44   :  { %564 = vmatpush1.msra.mxu1 %v267_v61  ;;  %635 = vmatpush1.msra.mxu0 %v269_v62  ;;  %v503_v22 = vld [vmem:[#allocation8 + $0x7f0] sm:$0xff]  ;;  %v493_v23 = vld [vmem:[#allocation8 + $0x7a0] sm:$0xff]  ;;  %v492_v25 = vld [vmem:[#allocation8 + $0x798] sm:$0xff] }
  0x45   :  { %565 = vmatprep.subr.mxu1 %v259_v63  ;;  %636 = vmatprep.subr.mxu0 %v261_v0  ;;  %v495_v24 = vld [vmem:[#allocation8 + $0x7b0] sm:$0xff]  ;;  %v494_v26 = vld [vmem:[#allocation8 + $0x7a8] sm:$0xff]  ;;  %v484_v27 = vld [vmem:[#allocation8 + $0x758] sm:$0xff] }
  0x46   :  { %566 = vmatpush1.msra.mxu1 %v258_v1  ;;  %637 = vmatpush1.msra.mxu0 %v260_v2  ;;  %v486_v28 = vld [vmem:[#allocation8 + $0x768] sm:$0xff]  ;;  %v483_v29 = vld [vmem:[#allocation8 + $0x750] sm:$0xff]  ;;  %v485_v30 = vld [vmem:[#allocation8 + $0x760] sm:$0xff] }
  0x47   :  { %567 = vmatprep.subr.mxu1 %v250_v3  ;;  %638 = vmatprep.subr.mxu0 %v252_v4  ;;  %v475_v31 = vld [vmem:[#allocation8 + $0x710] sm:$0xff]  ;;  %v477_v32 = vld [vmem:[#allocation8 + $0x720] sm:$0xff]  ;;  %v474_v33 = vld [vmem:[#allocation8 + $0x708] sm:$0xff] }
  0x48   :  { %568 = vmatpush1.msra.mxu1 %v249_v5  ;;  %639 = vmatpush1.msra.mxu0 %v251_v6  ;;  %v476_v34 = vld [vmem:[#allocation8 + $0x718] sm:$0xff]  ;;  %v466_v35 = vld [vmem:[#allocation8 + $0x6c8] sm:$0xff]  ;;  %v465_v37 = vld [vmem:[#allocation8 + $0x6c0] sm:$0xff] }
  0x49   :  { %569 = vmatprep.subr.mxu1 %v529_v7  ;;  %640 = vmatprep.subr.mxu0 %v531_v8  ;;  %v468_v36 = vld [vmem:[#allocation8 + $0x6d8] sm:$0xff]  ;;  %v467_v38 = vld [vmem:[#allocation8 + $0x6d0] sm:$0xff]  ;;  %v457_v39 = vld [vmem:[#allocation8 + $0x680] sm:$0xff] }
  0x4a   :  { %570 = vmatpush2.msra.mxu1 %v528_v9  ;;  %641 = vmatpush2.msra.mxu0 %v530_v10  ;;  %v459_v40 = vld [vmem:[#allocation8 + $0x690] sm:$0xff]  ;;  %v456_v41 = vld [vmem:[#allocation8 + $0x678] sm:$0xff]  ;;  %v458_v42 = vld [vmem:[#allocation8 + $0x688] sm:$0xff] }
  0x4b   :  { %571 = vmatprep.subr.mxu1 %v520_v11  ;;  %642 = vmatprep.subr.mxu0 %v522_v12  ;;  %v448_v43 = vld [vmem:[#allocation8 + $0x638] sm:$0xff]  ;;  %v450_v44 = vld [vmem:[#allocation8 + $0x648] sm:$0xff]  ;;  %v447_v45 = vld [vmem:[#allocation8 + $0x630] sm:$0xff] }
  0x4c   :  { %572 = vmatpush2.msra.mxu1 %v519_v13  ;;  %643 = vmatpush2.msra.mxu0 %v521_v14  ;;  %v449_v46 = vld [vmem:[#allocation8 + $0x640] sm:$0xff]  ;;  %v439_v47 = vld [vmem:[#allocation8 + $0x5f0] sm:$0xff]  ;;  %v438_v49 = vld [vmem:[#allocation8 + $0x5e8] sm:$0xff] }
  0x4d   :  { %573 = vmatprep.subr.mxu1 %v511_v15  ;;  %644 = vmatprep.subr.mxu0 %v513_v16  ;;  %v441_v48 = vld [vmem:[#allocation8 + $0x600] sm:$0xff]  ;;  %v440_v50 = vld [vmem:[#allocation8 + $0x5f8] sm:$0xff]  ;;  %v430_v51 = vld [vmem:[#allocation8 + $0x5a8] sm:$0xff] }
  0x4e   :  { %574 = vmatpush2.msra.mxu1 %v510_v17  ;;  %645 = vmatpush2.msra.mxu0 %v512_v18  ;;  %v432_v52 = vld [vmem:[#allocation8 + $0x5b8] sm:$0xff]  ;;  %v429_v53 = vld [vmem:[#allocation8 + $0x5a0] sm:$0xff]  ;;  %v431_v54 = vld [vmem:[#allocation8 + $0x5b0] sm:$0xff] }
  0x4f   :  { %575 = vmatprep.subr.mxu1 %v502_v19  ;;  %646 = vmatprep.subr.mxu0 %v504_v20  ;;  %v421_v55 = vld [vmem:[#allocation8 + $0x560] sm:$0xff]  ;;  %v423_v56 = vld [vmem:[#allocation8 + $0x570] sm:$0xff]  ;;  %v420_v57 = vld [vmem:[#allocation8 + $0x558] sm:$0xff] }
  0x50   :  { %576 = vmatpush2.msra.mxu1 %v501_v21  ;;  %647 = vmatpush2.msra.mxu0 %v503_v22  ;;  %v422_v58 = vld [vmem:[#allocation8 + $0x568] sm:$0xff]  ;;  %v412_v59 = vld [vmem:[#allocation8 + $0x518] sm:$0xff]  ;;  %v411_v61 = vld [vmem:[#allocation8 + $0x510] sm:$0xff] }
  0x51   :  { %577 = vmatprep.subr.mxu1 %v493_v23  ;;  %648 = vmatprep.subr.mxu0 %v495_v24  ;;  %v414_v60 = vld [vmem:[#allocation8 + $0x528] sm:$0xff]  ;;  %v413_v62 = vld [vmem:[#allocation8 + $0x520] sm:$0xff]  ;;  %v403_v63 = vld [vmem:[#allocation8 + $0x4d0] sm:$0xff] }
  0x52   :  { %578 = vmatpush2.msra.mxu1 %v492_v25  ;;  %649 = vmatpush2.msra.mxu0 %v494_v26  ;;  %v405_v0 = vld [vmem:[#allocation8 + $0x4e0] sm:$0xff]  ;;  %v402_v1 = vld [vmem:[#allocation8 + $0x4c8] sm:$0xff]  ;;  %v404_v2 = vld [vmem:[#allocation8 + $0x4d8] sm:$0xff] }
  0x53   :  { %579 = vmatprep.subr.mxu1 %v484_v27  ;;  %650 = vmatprep.subr.mxu0 %v486_v28  ;;  %v394_v3 = vld [vmem:[#allocation8 + $0x488] sm:$0xff]  ;;  %v396_v4 = vld [vmem:[#allocation8 + $0x498] sm:$0xff]  ;;  %v393_v5 = vld [vmem:[#allocation8 + $0x480] sm:$0xff] }
  0x54   :  { %580 = vmatpush2.msra.mxu1 %v483_v29  ;;  %651 = vmatpush2.msra.mxu0 %v485_v30  ;;  %v395_v6 = vld [vmem:[#allocation8 + $0x490] sm:$0xff]  ;;  %v389_v7 = vld [vmem:[#allocation8 + $0x460] sm:$0xff]  ;;  %v106_v18 = vld [vmem:[%s9047_s1 + $0x20] sm:$0xf] }
  0x55   :  { %581 = vmatprep.subr.mxu1 %v475_v31  ;;  %652 = vmatprep.subr.mxu0 %v477_v32  ;;  %v391_v8 = vld [vmem:[#allocation8 + $0x470] sm:$0xff]  ;;  %v102_v9 = vld [vmem:[%s9047_s1] sm:$0xff]  ;;  %v103_v10 = vld [vmem:[%s9047_s1 + $0x8] sm:$0xff] }
  0x56   :  { %582 = vmatpush2.msra.mxu1 %v474_v33  ;;  %653 = vmatpush2.msra.mxu0 %v476_v34  ;;  %v112_v11 = vcombine.high %v102_v9, %v102_v9  ;;  %v113_v12 = vcombine.high %v103_v10, %v103_v10  ;;  %v104_v13 = vld [vmem:[%s9047_s1 + $0x10] sm:$0xff]  ;;  %v105_v15 = vld [vmem:[%s9047_s1 + $0x18] sm:$0xff]  ;;  %v6381_v17 = vld [vmem:[%s9047_s1 + $0x24] sm:$0xff] }
  0x57   :  { %583 = vmatprep.subr.mxu1 %v466_v35  ;;  %654 = vmatprep.subr.mxu0 %v468_v36  ;;  %v114_v14 = vcombine.high %v104_v13, %v104_v13  ;;  %v115_v16 = vcombine.high %v105_v15, %v105_v15  ;;  %v968_v19 = vcombine.high %v6381_v17, %v6381_v17  ;;  %v6382_v20 = vld [vmem:[%s9047_s1 + $0x2c] sm:$0xff]  ;;  %v6784_v22 = vld [vmem:[%s9047_s1 + $0x34] sm:$0xff]  ;;  %v388_v28 = vld [vmem:[#allocation8 + $0x458] sm:$0xff] }
  0x58   :  { %584 = vmatpush2.msra.mxu1 %v465_v37  ;;  %655 = vmatpush2.msra.mxu0 %v467_v38  ;;  %v969_v21 = vcombine.high %v6382_v20, %v6382_v20  ;;  %v390_v29 = vld [vmem:[#allocation8 + $0x468] sm:$0xff]  ;;  %v380_v30 = vld [vmem:[#allocation8 + $0x418] sm:$0xff]  ;;  %v379_v32 = vld [vmem:[#allocation8 + $0x410] sm:$0xff] }
  0x59   :  { %585 = vmatprep.subr.mxu1 %v457_v39  ;;  %656 = vmatprep.subr.mxu0 %v459_v40  ;;  %v382_v31 = vld [vmem:[#allocation8 + $0x428] sm:$0xff]  ;;  %v381_v33 = vld [vmem:[#allocation8 + $0x420] sm:$0xff]  ;;  %v371_v34 = vld [vmem:[#allocation8 + $0x3d0] sm:$0xff] }
  0x5a   :  { %586 = vmatpush2.msra.mxu1 %v456_v41  ;;  %657 = vmatpush2.msra.mxu0 %v458_v42  ;;  %v373_v35 = vld [vmem:[#allocation8 + $0x3e0] sm:$0xff]  ;;  %v370_v36 = vld [vmem:[#allocation8 + $0x3c8] sm:$0xff]  ;;  %v372_v37 = vld [vmem:[#allocation8 + $0x3d8] sm:$0xff] }
  0x5b   :  { %587 = vmatprep.subr.mxu1 %v448_v43  ;;  %658 = vmatprep.subr.mxu0 %v450_v44  ;;  %v362_v38 = vld [vmem:[#allocation8 + $0x388] sm:$0xff]  ;;  %v364_v39 = vld [vmem:[#allocation8 + $0x398] sm:$0xff]  ;;  %v361_v40 = vld [vmem:[#allocation8 + $0x380] sm:$0xff] }
  0x5c   :  { %588 = vmatpush2.msra.mxu1 %v447_v45  ;;  %659 = vmatpush2.msra.mxu0 %v449_v46  ;;  %v363_v41 = vld [vmem:[#allocation8 + $0x390] sm:$0xff]  ;;  %v353_v42 = vld [vmem:[#allocation8 + $0x340] sm:$0xff]  ;;  %v352_v44 = vld [vmem:[#allocation8 + $0x338] sm:$0xff] }
  0x5d   :  { %589 = vmatprep.subr.mxu1 %v439_v47  ;;  %660 = vmatprep.subr.mxu0 %v441_v48  ;;  %v355_v43 = vld [vmem:[#allocation8 + $0x350] sm:$0xff]  ;;  %v354_v45 = vld [vmem:[#allocation8 + $0x348] sm:$0xff]  ;;  %v344_v46 = vld [vmem:[#allocation8 + $0x2f8] sm:$0xff] }
  0x5e   :  { %590 = vmatpush2.msra.mxu1 %v438_v49  ;;  %661 = vmatpush2.msra.mxu0 %v440_v50  ;;  %v346_v47 = vld [vmem:[#allocation8 + $0x308] sm:$0xff]  ;;  %v343_v48 = vld [vmem:[#allocation8 + $0x2f0] sm:$0xff]  ;;  %v345_v49 = vld [vmem:[#allocation8 + $0x300] sm:$0xff] }
  0x5f   :  { %591 = vmatprep.subr.mxu1 %v430_v51  ;;  %662 = vmatprep.subr.mxu0 %v432_v52  ;;  %v335_v50 = vld [vmem:[#allocation8 + $0x2b0] sm:$0xff]  ;;  %v337_v51 = vld [vmem:[#allocation8 + $0x2c0] sm:$0xff]  ;;  %v334_v52 = vld [vmem:[#allocation8 + $0x2a8] sm:$0xff] }
  0x60   :  { %592 = vmatpush2.msra.mxu1 %v429_v53  ;;  %663 = vmatpush2.msra.mxu0 %v431_v54  ;;  %v336_v53 = vld [vmem:[#allocation8 + $0x2b8] sm:$0xff]  ;;  %v326_v54 = vld [vmem:[#allocation8 + $0x268] sm:$0xff] }
  0x61   :  { %593 = vmatprep.subr.mxu1 %v421_v55  ;;  %664 = vmatprep.subr.mxu0 %v423_v56  ;;  %v328_v55 = vld [vmem:[#allocation8 + $0x278] sm:$0xff]  ;;  %v325_v56 = vld [vmem:[#allocation8 + $0x260] sm:$0xff] }
  0x62   :  { %594 = vmatpush2.msra.mxu1 %v420_v57  ;;  %665 = vmatpush2.msra.mxu0 %v422_v58  ;;  %v327_v57 = vld [vmem:[#allocation8 + $0x270] sm:$0xff]  ;;  %v317_v58 = vld [vmem:[#allocation8 + $0x220] sm:$0xff] }
  0x63   :  { %595 = vmatprep.subr.mxu1 %v412_v59  ;;  %666 = vmatprep.subr.mxu0 %v414_v60  ;;  %v319_v59 = vld [vmem:[#allocation8 + $0x230] sm:$0xff]  ;;  %v316_v60 = vld [vmem:[#allocation8 + $0x218] sm:$0xff] }
  0x64   :  { %596 = vmatpush2.msra.mxu1 %v411_v61  ;;  %667 = vmatpush2.msra.mxu0 %v413_v62  ;;  %v318_v61 = vld [vmem:[#allocation8 + $0x228] sm:$0xff]  ;;  %v308_v62 = vld [vmem:[#allocation8 + $0x1d8] sm:$0xff] }
  0x65   :  { %597 = vmatprep.subr.mxu1 %v403_v63  ;;  %668 = vmatprep.subr.mxu0 %v405_v0  ;;  %v310_v63 = vld [vmem:[#allocation8 + $0x1e8] sm:$0xff]  ;;  %v307_v0 = vld [vmem:[#allocation8 + $0x1d0] sm:$0xff] }
  0x66   :  { %598 = vmatpush2.msra.mxu1 %v402_v1  ;;  %669 = vmatpush2.msra.mxu0 %v404_v2  ;;  %v309_v1 = vld [vmem:[#allocation8 + $0x1e0] sm:$0xff]  ;;  %v299_v2 = vld [vmem:[#allocation8 + $0x190] sm:$0xff] }
  0x67   :  { %599 = vmatprep.subr.mxu1 %v394_v3  ;;  %670 = vmatprep.subr.mxu0 %v396_v4  ;;  %v301_v3 = vld [vmem:[#allocation8 + $0x1a0] sm:$0xff]  ;;  %v298_v4 = vld [vmem:[#allocation8 + $0x188] sm:$0xff] }
  0x68   :  { %600 = vmatpush2.msra.mxu1 %v393_v5  ;;  %671 = vmatpush2.msra.mxu0 %v395_v6  ;;  %v300_v5 = vld [vmem:[#allocation8 + $0x198] sm:$0xff]  ;;  %v290_v6 = vld [vmem:[#allocation8 + $0x148] sm:$0xff] }
  0x69   :  { %679 = vmatprep.subr.mxu1 %v389_v7  ;;  %750 = vmatprep.subr.mxu0 %v391_v8  ;;  %v292_v7 = vld [vmem:[#allocation8 + $0x158] sm:$0xff]  ;;  %v289_v8 = vld [vmem:[#allocation8 + $0x140] sm:$0xff] }
  0x6a   :  { %116 = vrot.lane.b32.xlu1 %v102_v9, %s6640_s28  ;;  %120 = vrot.lane.b32.xlu0 %v103_v10, %s6640_s28  ;;  %v291_v9 = vld [vmem:[#allocation8 + $0x150] sm:$0xff]  ;;  %v281_v10 = vld [vmem:[#allocation8 + $0x100] sm:$0xff] }
  0x6e   :  { %118 = vrot.lane.b32.xlu1 %v112_v11, %s6640_s28  ;;  %122 = vrot.lane.b32.xlu0 %v113_v12, %s6640_s28  ;;  %v283_v11 = vld [vmem:[#allocation8 + $0x110] sm:$0xff]  ;;  %v280_v12 = vld [vmem:[#allocation8 + $0xf8] sm:$0xff] }
  0x72   :  { %126 = vrot.lane.b32.xlu0 %v114_v14, %s6640_s28  ;;  %124 = vrot.lane.b32.xlu1 %v104_v13, %s6640_s28  ;;  %v282_v13 = vld [vmem:[#allocation8 + $0x108] sm:$0xff]  ;;  %v272_v14 = vld [vmem:[#allocation8 + $0xb8] sm:$0xff] }
  0x76   :  { %130 = vrot.lane.b32.xlu0 %v115_v16, %s6640_s28  ;;  %128 = vrot.lane.b32.xlu1 %v105_v15, %s6640_s28  ;;  %v274_v15 = vld [vmem:[#allocation8 + $0xc8] sm:$0xff]  ;;  %v271_v16 = vld [vmem:[#allocation8 + $0xb0] sm:$0xff] }
  0x7a   :  { %972 = vrot.lane.b32.xlu0 %v6381_v17, %s6641_s18  ;;  %132 = vrot.lane.b32.xlu1 %v106_v18, %s6640_s28  ;;  %v273_v17 = vld [vmem:[#allocation8 + $0xc0] sm:$0xff]  ;;  %v263_v18 = vld [vmem:[#allocation8 + $0x70] sm:$0xff] }
  0x7e   :  { %976 = vrot.lane.b32.xlu0 %v6382_v20, %s6641_s18  ;;  %974 = vrot.lane.b32.xlu1 %v968_v19, %s6641_s18  ;;  %v265_v19 = vld [vmem:[#allocation8 + $0x80] sm:$0xff]  ;;  %v262_v20 = vld [vmem:[#allocation8 + $0x68] sm:$0xff] }
  0x82   :  { %980 = vrot.lane.b32.xlu0 %v6784_v22, %s6641_s18  ;;  %978 = vrot.lane.b32.xlu1 %v969_v21, %s6641_s18  ;;  %v264_v21 = vld [vmem:[#allocation8 + $0x78] sm:$0xff] }
  0xa2   :  { %v172_v24 = vpop.permute.xlu0 %171 }
  0xe8   :  { %v244_v23 = vpop.f32.mrf.mxu0 }
  0xe9   :  { %v6791_v27 = vadd.f32 %v244_v23, %v172_v24  ;;  %v254_v23 = vld [vmem:[#allocation8 + $0x28] sm:$0xff] }
  0xea   :  { %v246_v25 = vpop.f32.mrf.mxu0 }
  0xeb   :  { %v6789_v26 = vadd.f32 %v246_v25, %v172_v24  ;;  %v256_v24 = vld [vmem:[#allocation8 + $0x38] sm:$0xff]  ;;  %v253_v25 = vld [vmem:[#allocation8 + $0x20] sm:$0xff] }
  0xed   :  { %601 = vmatprep.mubr.f32.mxu1 %v6789_v26  ;;  %672 = vmatprep.mubr.f32.mxu0 %v6789_v26 }
  0xee   :  { %602 = vmatmul.mubr.f32.vlgmr.msra.gmra.mxu1 %v6791_v27  ;;  %673 = vmatmul.mubr.f32.vlgmr.msra.gmra.mxu0 %v6791_v27 }
  0xef   :  { %680 = vmatpush1.msra.mxu1 %v388_v28  ;;  %751 = vmatpush1.msra.mxu0 %v390_v29  ;;  %v255_v28 = vld [vmem:[#allocation8 + $0x30] sm:$0xff]  ;;  %v533_v29 = vld [vmem:[#allocation8 + $0x8e0] sm:$0xff] }
  0xf0   :  { %681 = vmatprep.subr.mxu1 %v380_v30  ;;  %743 = vmatprep.mubr.f32.mxu1 %v6789_v26  ;;  %v535_v30 = vld [vmem:[#allocation8 + $0x8f0] sm:$0xff] }
  0xf1   :  { %752 = vmatprep.subr.mxu0 %v382_v31  ;;  %814 = vmatprep.mubr.f32.mxu0 %v6789_v26  ;;  %v532_v31 = vld [vmem:[#allocation8 + $0x8d8] sm:$0xff] }
  0xf2   :  { %682 = vmatpush1.msra.mxu1 %v379_v32  ;;  %753 = vmatpush1.msra.mxu0 %v381_v33  ;;  %v534_v32 = vld [vmem:[#allocation8 + $0x8e8] sm:$0xff]  ;;  %v524_v33 = vld [vmem:[#allocation8 + $0x898] sm:$0xff] }
  0xf3   :  { %683 = vmatprep.subr.mxu1 %v371_v34  ;;  %754 = vmatprep.subr.mxu0 %v373_v35  ;;  %v526_v34 = vld [vmem:[#allocation8 + $0x8a8] sm:$0xff]  ;;  %v523_v35 = vld [vmem:[#allocation8 + $0x890] sm:$0xff] }
  0xf4   :  { %684 = vmatpush1.msra.mxu1 %v370_v36  ;;  %755 = vmatpush1.msra.mxu0 %v372_v37  ;;  %v525_v36 = vld [vmem:[#allocation8 + $0x8a0] sm:$0xff]  ;;  %v515_v37 = vld [vmem:[#allocation8 + $0x850] sm:$0xff] }
  0xf5   :  { %685 = vmatprep.subr.mxu1 %v362_v38  ;;  %756 = vmatprep.subr.mxu0 %v364_v39  ;;  %v517_v38 = vld [vmem:[#allocation8 + $0x860] sm:$0xff]  ;;  %v514_v39 = vld [vmem:[#allocation8 + $0x848] sm:$0xff] }
  0xf6   :  { %686 = vmatpush1.msra.mxu1 %v361_v40  ;;  %757 = vmatpush1.msra.mxu0 %v363_v41  ;;  %v516_v40 = vld [vmem:[#allocation8 + $0x858] sm:$0xff]  ;;  %v506_v41 = vld [vmem:[#allocation8 + $0x808] sm:$0xff] }
  0xf7   :  { %687 = vmatprep.subr.mxu1 %v353_v42  ;;  %758 = vmatprep.subr.mxu0 %v355_v43  ;;  %v508_v42 = vld [vmem:[#allocation8 + $0x818] sm:$0xff]  ;;  %v505_v43 = vld [vmem:[#allocation8 + $0x800] sm:$0xff] }
  0xf8   :  { %688 = vmatpush1.msra.mxu1 %v352_v44  ;;  %759 = vmatpush1.msra.mxu0 %v354_v45  ;;  %v507_v44 = vld [vmem:[#allocation8 + $0x810] sm:$0xff]  ;;  %v497_v45 = vld [vmem:[#allocation8 + $0x7c0] sm:$0xff] }
  0xf9   :  { %689 = vmatprep.subr.mxu1 %v344_v46  ;;  %760 = vmatprep.subr.mxu0 %v346_v47  ;;  %v499_v46 = vld [vmem:[#allocation8 + $0x7d0] sm:$0xff]  ;;  %v496_v47 = vld [vmem:[#allocation8 + $0x7b8] sm:$0xff] }
  0xfa   :  { %690 = vmatpush1.msra.mxu1 %v343_v48  ;;  %761 = vmatpush1.msra.mxu0 %v345_v49  ;;  %v498_v48 = vld [vmem:[#allocation8 + $0x7c8] sm:$0xff]  ;;  %v488_v49 = vld [vmem:[#allocation8 + $0x778] sm:$0xff] }
  0xfb   :  { %691 = vmatprep.subr.mxu1 %v335_v50  ;;  %762 = vmatprep.subr.mxu0 %v337_v51  ;;  %v490_v50 = vld [vmem:[#allocation8 + $0x788] sm:$0xff]  ;;  %v487_v51 = vld [vmem:[#allocation8 + $0x770] sm:$0xff] }
  0xfc   :  { %692 = vmatpush1.msra.mxu1 %v334_v52  ;;  %763 = vmatpush1.msra.mxu0 %v336_v53  ;;  %v489_v52 = vld [vmem:[#allocation8 + $0x780] sm:$0xff]  ;;  %v479_v53 = vld [vmem:[#allocation8 + $0x730] sm:$0xff] }
  0xfd   :  { %693 = vmatprep.subr.mxu1 %v326_v54  ;;  %764 = vmatprep.subr.mxu0 %v328_v55  ;;  %v481_v54 = vld [vmem:[#allocation8 + $0x740] sm:$0xff]  ;;  %v478_v55 = vld [vmem:[#allocation8 + $0x728] sm:$0xff] }
  0xfe   :  { %694 = vmatpush1.msra.mxu1 %v325_v56  ;;  %765 = vmatpush1.msra.mxu0 %v327_v57  ;;  %v480_v56 = vld [vmem:[#allocation8 + $0x738] sm:$0xff]  ;;  %v470_v57 = vld [vmem:[#allocation8 + $0x6e8] sm:$0xff] }
  0xff   :  { %695 = vmatprep.subr.mxu1 %v317_v58  ;;  %766 = vmatprep.subr.mxu0 %v319_v59  ;;  %v472_v58 = vld [vmem:[#allocation8 + $0x6f8] sm:$0xff]  ;;  %v469_v59 = vld [vmem:[#allocation8 + $0x6e0] sm:$0xff] }
 0x100   :  { %696 = vmatpush1.msra.mxu1 %v316_v60  ;;  %767 = vmatpush1.msra.mxu0 %v318_v61  ;;  %v471_v60 = vld [vmem:[#allocation8 + $0x6f0] sm:$0xff]  ;;  %v461_v61 = vld [vmem:[#allocation8 + $0x6a0] sm:$0xff] }
 0x101   :  { %697 = vmatprep.subr.mxu1 %v308_v62  ;;  %768 = vmatprep.subr.mxu0 %v310_v63  ;;  %v463_v62 = vld [vmem:[#allocation8 + $0x6b0] sm:$0xff]  ;;  %v460_v63 = vld [vmem:[#allocation8 + $0x698] sm:$0xff] }
 0x102   :  { %698 = vmatpush1.msra.mxu1 %v307_v0  ;;  %769 = vmatpush1.msra.mxu0 %v309_v1  ;;  %v462_v0 = vld [vmem:[#allocation8 + $0x6a8] sm:$0xff]  ;;  %v452_v1 = vld [vmem:[#allocation8 + $0x658] sm:$0xff] }
 0x103   :  { %699 = vmatprep.subr.mxu1 %v299_v2  ;;  %770 = vmatprep.subr.mxu0 %v301_v3  ;;  %v454_v2 = vld [vmem:[#allocation8 + $0x668] sm:$0xff]  ;;  %v451_v3 = vld [vmem:[#allocation8 + $0x650] sm:$0xff] }
 0x104   :  { %700 = vmatpush1.msra.mxu1 %v298_v4  ;;  %771 = vmatpush1.msra.mxu0 %v300_v5  ;;  %v453_v4 = vld [vmem:[#allocation8 + $0x660] sm:$0xff]  ;;  %v443_v5 = vld [vmem:[#allocation8 + $0x610] sm:$0xff] }
 0x105   :  { %701 = vmatprep.subr.mxu1 %v290_v6  ;;  %772 = vmatprep.subr.mxu0 %v292_v7  ;;  %v445_v6 = vld [vmem:[#allocation8 + $0x620] sm:$0xff]  ;;  %v442_v7 = vld [vmem:[#allocation8 + $0x608] sm:$0xff] }
 0x106   :  { %702 = vmatpush1.msra.mxu1 %v289_v8  ;;  %773 = vmatpush1.msra.mxu0 %v291_v9  ;;  %v444_v8 = vld [vmem:[#allocation8 + $0x618] sm:$0xff]  ;;  %v434_v9 = vld [vmem:[#allocation8 + $0x5c8] sm:$0xff] }
 0x107   :  { %703 = vmatprep.subr.mxu1 %v281_v10  ;;  %774 = vmatprep.subr.mxu0 %v283_v11  ;;  %v436_v10 = vld [vmem:[#allocation8 + $0x5d8] sm:$0xff]  ;;  %v433_v11 = vld [vmem:[#allocation8 + $0x5c0] sm:$0xff] }
 0x108   :  { %704 = vmatpush1.msra.mxu1 %v280_v12  ;;  %775 = vmatpush1.msra.mxu0 %v282_v13  ;;  %v435_v12 = vld [vmem:[#allocation8 + $0x5d0] sm:$0xff]  ;;  %v425_v13 = vld [vmem:[#allocation8 + $0x580] sm:$0xff] }
 0x109   :  { %705 = vmatprep.subr.mxu1 %v272_v14  ;;  %776 = vmatprep.subr.mxu0 %v274_v15  ;;  %v427_v14 = vld [vmem:[#allocation8 + $0x590] sm:$0xff]  ;;  %v424_v15 = vld [vmem:[#allocation8 + $0x578] sm:$0xff] }
 0x10a   :  { %706 = vmatpush1.msra.mxu1 %v271_v16  ;;  %777 = vmatpush1.msra.mxu0 %v273_v17  ;;  %v426_v16 = vld [vmem:[#allocation8 + $0x588] sm:$0xff]  ;;  %v416_v17 = vld [vmem:[#allocation8 + $0x538] sm:$0xff] }
 0x10b   :  { %707 = vmatprep.subr.mxu1 %v263_v18  ;;  %778 = vmatprep.subr.mxu0 %v265_v19  ;;  %v418_v18 = vld [vmem:[#allocation8 + $0x548] sm:$0xff]  ;;  %v415_v19 = vld [vmem:[#allocation8 + $0x530] sm:$0xff] }
 0x10c   :  { %708 = vmatpush1.msra.mxu1 %v262_v20  ;;  %779 = vmatpush1.msra.mxu0 %v264_v21  ;;  %v417_v20 = vld [vmem:[#allocation8 + $0x540] sm:$0xff]  ;;  %v407_v21 = vld [vmem:[#allocation8 + $0x4f0] sm:$0xff] }
 0x10d   :  { %709 = vmatprep.subr.mxu1 %v254_v23  ;;  %780 = vmatprep.subr.mxu0 %v256_v24  ;;  %v409_v23 = vld [vmem:[#allocation8 + $0x500] sm:$0xff]  ;;  %v406_v24 = vld [vmem:[#allocation8 + $0x4e8] sm:$0xff] }
 0x10e   :  { %710 = vmatpush1.msra.mxu1 %v253_v25  ;;  %781 = vmatpush1.msra.mxu0 %v255_v28  ;;  %v408_v25 = vld [vmem:[#allocation8 + $0x4f8] sm:$0xff]  ;;  %v398_v28 = vld [vmem:[#allocation8 + $0x4a8] sm:$0xff] }
 0x10f   :  { %711 = vmatprep.subr.mxu1 %v533_v29  ;;  %782 = vmatprep.subr.mxu0 %v535_v30  ;;  %v400_v29 = vld [vmem:[#allocation8 + $0x4b8] sm:$0xff]  ;;  %v397_v30 = vld [vmem:[#allocation8 + $0x4a0] sm:$0xff] }
 0x110   :  { %712 = vmatpush2.msra.mxu1 %v532_v31  ;;  %783 = vmatpush2.msra.mxu0 %v534_v32  ;;  %v399_v31 = vld [vmem:[#allocation8 + $0x4b0] sm:$0xff]  ;;  %v536_v32 = vld [vmem:[#allocation8 + $0x8f8] sm:$0xff] }
 0x111   :  { %713 = vmatprep.subr.mxu1 %v524_v33  ;;  %784 = vmatprep.subr.mxu0 %v526_v34  ;;  %v392_v33 = vld [vmem:[#allocation8 + $0x478] sm:$0xff] }
 0x112   :  { %714 = vmatpush2.msra.mxu1 %v523_v35  ;;  %785 = vmatpush2.msra.mxu0 %v525_v36  ;;  %v6387_v34 = vld [vmem:[%s9046_s0 + $0x18] sm:$0xff]  ;;  %v6386_v36 = vld [vmem:[%s9046_s0 + $0x10] sm:$0xff] }
 0x113   :  { %715 = vmatprep.subr.mxu1 %v515_v37  ;;  %786 = vmatprep.subr.mxu0 %v517_v38  ;;  %v527_v35 = vld [vmem:[#allocation8 + $0x8b0] sm:$0xff]  ;;  %v518_v38 = vld [vmem:[#allocation8 + $0x868] sm:$0xff] }
 0x114   :  { %716 = vmatpush2.msra.mxu1 %v514_v39  ;;  %787 = vmatpush2.msra.mxu0 %v516_v40  ;;  %v383_v37 = vld [vmem:[#allocation8 + $0x430] sm:$0xff]  ;;  %v1021_v39 = vld [vmem:[#allocation6] sm:$0xf]  ;;  %v374_v40 = vld [vmem:[#allocation8 + $0x3e8] sm:$0xff] }
 0x115   :  { %717 = vmatprep.subr.mxu1 %v506_v41  ;;  %788 = vmatprep.subr.mxu0 %v508_v42  ;;  %v970_v41 = vcombine.high %v6784_v22, %v6784_v22  ;;  %v6384_v42 = vld [vmem:[%s9047_s1 + $0x3c] sm:$0xff] }
 0x116   :  { %718 = vmatpush2.msra.mxu1 %v505_v43  ;;  %789 = vmatpush2.msra.mxu0 %v507_v44  ;;  %v6813_v43 = vld [vmem:[#allocation2] sm:$0xff] }
 0x117   :  { %719 = vmatprep.subr.mxu1 %v497_v45  ;;  %790 = vmatprep.subr.mxu0 %v499_v46  ;;  %v365_v44 = vld [vmem:[#allocation8 + $0x3a0] sm:$0xff]  ;;  %v500_v45 = vld [vmem:[#allocation8 + $0x7d8] sm:$0xff]  ;;  %101 = vst.msk [vmem:[#allocation2 + $0x98] sm:$0xff] %vm100_vm6, %v6813_v43  ;;  %vm1811_vm6 = vcmask 130052  }
 0x118   :  { %720 = vmatpush2.msra.mxu1 %v496_v47  ;;  %791 = vmatpush2.msra.mxu0 %v498_v48  ;;  %v1241_v46 = vld [vmem:[#allocation8 + $0x440] sm:$0xff]  ;;  %v1240_v22 = vld [vmem:[#allocation8 + $0x438] sm:$0xff]  ;;  %v971_v48 = vcombine.high %v6384_v42, %v6384_v42 }
 0x119   :  { %721 = vmatprep.subr.mxu1 %v488_v49  ;;  %792 = vmatprep.subr.mxu0 %v490_v50  ;;  %v356_v47 = vld [vmem:[#allocation8 + $0x358] sm:$0xff]  ;;  %v6385_v49 = vld [vmem:[%s9047_s1 + $0x44] sm:$0xf]  ;;  %v491_v50 = vld [vmem:[#allocation8 + $0x790] sm:$0xff]  ;;  %s6642_s1 = smov 54  }
 0x11a   :  { %722 = vmatpush2.msra.mxu1 %v487_v51  ;;  %793 = vmatpush2.msra.mxu0 %v489_v52  ;;  %v347_v51 = vld [vmem:[#allocation8 + $0x310] sm:$0xff]  ;;  %v1232_v52 = vld [vmem:[#allocation8 + $0x3f8] sm:$0xff] }
 0x11b   :  { %723 = vmatprep.subr.mxu1 %v479_v53  ;;  %794 = vmatprep.subr.mxu0 %v481_v54  ;;  %v482_v53 = vld [vmem:[#allocation8 + $0x748] sm:$0xff]  ;;  %v1231_v54 = vld [vmem:[#allocation8 + $0x3f0] sm:$0xff] }
 0x11c   :  { %724 = vmatpush2.msra.mxu1 %v478_v55  ;;  %795 = vmatpush2.msra.mxu0 %v480_v56  ;;  %v338_v55 = vld [vmem:[#allocation8 + $0x2c8] sm:$0xff]  ;;  %v1223_v56 = vld [vmem:[#allocation8 + $0x3b0] sm:$0xff] }
 0x11d   :  { %725 = vmatprep.subr.mxu1 %v470_v57  ;;  %796 = vmatprep.subr.mxu0 %v472_v58  ;;  %v473_v57 = vld [vmem:[#allocation8 + $0x700] sm:$0xff]  ;;  %v1222_v58 = vld [vmem:[#allocation8 + $0x3a8] sm:$0xff] }
 0x11e   :  { %726 = vmatpush2.msra.mxu1 %v469_v59  ;;  %797 = vmatpush2.msra.mxu0 %v471_v60  ;;  %v329_v59 = vld [vmem:[#allocation8 + $0x280] sm:$0xff]  ;;  %v1214_v60 = vld [vmem:[#allocation8 + $0x368] sm:$0xff] }
 0x11f   :  { %727 = vmatprep.subr.mxu1 %v461_v61  ;;  %798 = vmatprep.subr.mxu0 %v463_v62  ;;  %v464_v61 = vld [vmem:[#allocation8 + $0x6b8] sm:$0xff]  ;;  %v1213_v62 = vld [vmem:[#allocation8 + $0x360] sm:$0xff] }
 0x120   :  { %728 = vmatpush2.msra.mxu1 %v460_v63  ;;  %799 = vmatpush2.msra.mxu0 %v462_v0  ;;  %v320_v63 = vld [vmem:[#allocation8 + $0x238] sm:$0xff]  ;;  %v1205_v0 = vld [vmem:[#allocation8 + $0x320] sm:$0xff] }
 0x121   :  { %729 = vmatprep.subr.mxu1 %v452_v1  ;;  %800 = vmatprep.subr.mxu0 %v454_v2  ;;  %v455_v1 = vld [vmem:[#allocation8 + $0x670] sm:$0xff]  ;;  %v1204_v2 = vld [vmem:[#allocation8 + $0x318] sm:$0xff] }
 0x122   :  { %730 = vmatpush2.msra.mxu1 %v451_v3  ;;  %801 = vmatpush2.msra.mxu0 %v453_v4  ;;  %v311_v3 = vld [vmem:[#allocation8 + $0x1f0] sm:$0xff]  ;;  %v1196_v4 = vld [vmem:[#allocation8 + $0x2d8] sm:$0xff] }
 0x123   :  { %731 = vmatprep.subr.mxu1 %v443_v5  ;;  %802 = vmatprep.subr.mxu0 %v445_v6  ;;  %v446_v5 = vld [vmem:[#allocation8 + $0x628] sm:$0xff]  ;;  %v1195_v6 = vld [vmem:[#allocation8 + $0x2d0] sm:$0xff] }
 0x124   :  { %732 = vmatpush2.msra.mxu1 %v442_v7  ;;  %803 = vmatpush2.msra.mxu0 %v444_v8  ;;  %v302_v7 = vld [vmem:[#allocation8 + $0x1a8] sm:$0xff]  ;;  %v1187_v8 = vld [vmem:[#allocation8 + $0x290] sm:$0xff] }
 0x125   :  { %733 = vmatprep.subr.mxu1 %v434_v9  ;;  %804 = vmatprep.subr.mxu0 %v436_v10  ;;  %v437_v9 = vld [vmem:[#allocation8 + $0x5e0] sm:$0xff]  ;;  %v1186_v10 = vld [vmem:[#allocation8 + $0x288] sm:$0xff] }
 0x126   :  { %734 = vmatpush2.msra.mxu1 %v433_v11  ;;  %805 = vmatpush2.msra.mxu0 %v435_v12  ;;  %v293_v11 = vld [vmem:[#allocation8 + $0x160] sm:$0xff]  ;;  %v1178_v12 = vld [vmem:[#allocation8 + $0x248] sm:$0xff] }
 0x127   :  { %735 = vmatprep.subr.mxu1 %v425_v13  ;;  %806 = vmatprep.subr.mxu0 %v427_v14  ;;  %v428_v13 = vld [vmem:[#allocation8 + $0x598] sm:$0xff]  ;;  %v1177_v14 = vld [vmem:[#allocation8 + $0x240] sm:$0xff] }
 0x128   :  { %736 = vmatpush2.msra.mxu1 %v424_v15  ;;  %807 = vmatpush2.msra.mxu0 %v426_v16  ;;  %v284_v15 = vld [vmem:[#allocation8 + $0x118] sm:$0xff]  ;;  %v1169_v16 = vld [vmem:[#allocation8 + $0x200] sm:$0xff] }
 0x129   :  { %737 = vmatprep.subr.mxu1 %v416_v17  ;;  %808 = vmatprep.subr.mxu0 %v418_v18  ;;  %v419_v17 = vld [vmem:[#allocation8 + $0x550] sm:$0xff]  ;;  %v1168_v18 = vld [vmem:[#allocation8 + $0x1f8] sm:$0xff] }
 0x12a   :  { %738 = vmatpush2.msra.mxu1 %v415_v19  ;;  %809 = vmatpush2.msra.mxu0 %v417_v20  ;;  %v275_v19 = vld [vmem:[#allocation8 + $0xd0] sm:$0xff]  ;;  %v1160_v20 = vld [vmem:[#allocation8 + $0x1b8] sm:$0xff] }
 0x12b   :  { %739 = vmatprep.subr.mxu1 %v407_v21  ;;  %810 = vmatprep.subr.mxu0 %v409_v23  ;;  %v410_v21 = vld [vmem:[#allocation8 + $0x508] sm:$0xff]  ;;  %v1159_v23 = vld [vmem:[#allocation8 + $0x1b0] sm:$0xff] }
 0x12c   :  { %740 = vmatpush2.msra.mxu1 %v406_v24  ;;  %811 = vmatpush2.msra.mxu0 %v408_v25  ;;  %v266_v24 = vld [vmem:[#allocation8 + $0x88] sm:$0xff]  ;;  %v1151_v25 = vld [vmem:[#allocation8 + $0x170] sm:$0xff] }
 0x12d   :  { %741 = vmatprep.subr.mxu1 %v398_v28  ;;  %812 = vmatprep.subr.mxu0 %v400_v29  ;;  %v401_v28 = vld [vmem:[#allocation8 + $0x4c0] sm:$0xff]  ;;  %v1150_v29 = vld [vmem:[#allocation8 + $0x168] sm:$0xff] }
 0x12e   :  { %742 = vmatpush2.msra.mxu1 %v397_v30  ;;  %813 = vmatpush2.msra.mxu0 %v399_v31  ;;  %v257_v30 = vld [vmem:[#allocation8 + $0x40] sm:$0xff]  ;;  %v1142_v31 = vld [vmem:[#allocation8 + $0x128] sm:$0xff] }
 0x12f   :  { %744 = vmatmul.mubr.f32.vlgmr.msra.gmra.mxu1 %v6791_v27  ;;  %815 = vmatmul.mubr.f32.vlgmr.msra.gmra.mxu0 %v6791_v27 }
 0x130   :  { %6430 = vmatprep.subr.mxu1 %v536_v32  ;;  %885 = vmatprep.mubr.f32.mxu1 %v6789_v26  ;;  %v509_v26 = vld [vmem:[#allocation8 + $0x820] sm:$0xff]  ;;  %v1243_v32 = vld [vmem:[#allocation8 + $0x450] sm:$0xff] }
 0x131   :  { %6431 = vmatpush3.msra.mxu1 %v392_v33  ;;  %1064 = vmatprep.subr.mxu0 %v6387_v34  ;;  %v1242_v33 = vld [vmem:[#allocation8 + $0x448] sm:$0xff]  ;;  %v1141_v34 = vld [vmem:[#allocation8 + $0x120] sm:$0xff] }
 0x132   :  { %6432 = vmatprep.subr.mxu1 %v527_v35  ;;  %1065 = vmatpush1.msra.mxu0 %v6386_v36  ;;  %v1234_v35 = vld [vmem:[#allocation8 + $0x408] sm:$0xff]  ;;  %v1133_v36 = vld [vmem:[#allocation8 + $0xe0] sm:$0xff] }
 0x133   :  { %6433 = vmatpush3.msra.mxu1 %v383_v37  ;;  %1098 = vmatprep.mubr.f32.mxu0 %v6813_v43  ;;  %v1233_v37 = vld [vmem:[#allocation8 + $0x400] sm:$0xff] }
 0x134   :  { %6434 = vmatprep.subr.mxu1 %v518_v38  ;;  %6388 = vmatmul.mubr.msk.f32.vlgmr.msra.gmra.mxu0 %vm174_vm0, %v1021_v39  ;;  %v1132_v38 = vld [vmem:[#allocation8 + $0xd8] sm:$0xff]  ;;  %v1225_v39 = vld [vmem:[#allocation8 + $0x3c0] sm:$0xff]  ;;  %vm1939_vm0 = vcmask 1031168  }
 0x135   :  { %6435 = vmatpush3.msra.mxu1 %v374_v40  ;;  %984 = vrot.lane.b32.xlu0 %v6384_v42, %s6641_s18  ;;  %v1124_v40 = vld [vmem:[#allocation8 + $0x98] sm:$0xff]  ;;  %v1123_v42 = vld [vmem:[#allocation8 + $0x90] sm:$0xff] }
 0x136   :  { %6436 = vmatprep.subr.mxu1 %v509_v26  ;;  %982 = vrot.lane.b32.xlu1 %v970_v41, %s6641_s18  ;;  %v1224_v41 = vld [vmem:[#allocation8 + $0x3b8] sm:$0xff] }
 0x137   :  { %6437 = vmatpush3.msra.mxu1 %v365_v44  ;;  %1393 = vmatprep.subr.mxu0 %v1241_v46  ;;  %v1216_v26 = vld [vmem:[#allocation8 + $0x378] sm:$0xff]  ;;  %v1115_v44 = vld [vmem:[#allocation8 + $0x50] sm:$0xff]  ;;  %v1114_v46 = vld [vmem:[#allocation8 + $0x48] sm:$0xff] }
 0x138   :  { %6438 = vmatprep.subr.mxu1 %v500_v45  ;;  %1394 = vmatpush1.msra.mxu0 %v1240_v22  ;;  %v1215_v45 = vld [vmem:[#allocation8 + $0x370] sm:$0xff]  ;;  %v1106_v22 = vld [vmem:[#allocation8 + $0x8] sm:$0xff] }
 0x139   :  { %6439 = vmatpush3.msra.mxu1 %v356_v47  ;;  %988 = vrot.lane.b32.xlu0 %v6385_v49, %s6641_s18  ;;  %v1206_v47 = vld [vmem:[#allocation8 + $0x328] sm:$0xff] }
 0x13a   :  { %6440 = vmatprep.subr.mxu1 %v491_v50  ;;  %986 = vrot.lane.b32.xlu1 %v971_v48, %s6641_s18  ;;  %v1105_v48 = vld [vmem:[#allocation8] sm:$0xff]  ;;  %v1198_v49 = vld [vmem:[#allocation8 + $0x2e8] sm:$0xff] }
 0x13b   :  { %6441 = vmatpush3.msra.mxu1 %v347_v51  ;;  %1395 = vmatprep.subr.mxu0 %v1232_v52  ;;  %v1385_v50 = vld [vmem:[#allocation8 + $0x8c0] sm:$0xff]  ;;  %v1384_v52 = vld [vmem:[#allocation8 + $0x8b8] sm:$0xff] }
 0x13c   :  { %6442 = vmatprep.subr.mxu1 %v482_v53  ;;  %1396 = vmatpush1.msra.mxu0 %v1231_v54  ;;  %v1197_v51 = vld [vmem:[#allocation8 + $0x2e0] sm:$0xff]  ;;  %v1376_v54 = vld [vmem:[#allocation8 + $0x878] sm:$0xff] }
 0x13d   :  { %6443 = vmatpush3.msra.mxu1 %v338_v55  ;;  %1397 = vmatprep.subr.mxu0 %v1223_v56  ;;  %v1189_v53 = vld [vmem:[#allocation8 + $0x2a0] sm:$0xff]  ;;  %v1188_v55 = vld [vmem:[#allocation8 + $0x298] sm:$0xff]  ;;  %v1375_v56 = vld [vmem:[#allocation8 + $0x870] sm:$0xff] }
 0x13e   :  { %6444 = vmatprep.subr.mxu1 %v473_v57  ;;  %1398 = vmatpush1.msra.mxu0 %v1222_v58  ;;  %v1180_v57 = vld [vmem:[#allocation8 + $0x258] sm:$0xff]  ;;  %v1367_v58 = vld [vmem:[#allocation8 + $0x830] sm:$0xff] }
 0x13f   :  { %6445 = vmatpush3.msra.mxu1 %v329_v59  ;;  %1399 = vmatprep.subr.mxu0 %v1214_v60  ;;  %v1179_v59 = vld [vmem:[#allocation8 + $0x250] sm:$0xff]  ;;  %v1366_v60 = vld [vmem:[#allocation8 + $0x828] sm:$0xff] }
 0x140   :  { %6446 = vmatprep.subr.mxu1 %v464_v61  ;;  %1400 = vmatpush1.msra.mxu0 %v1213_v62  ;;  %v1171_v61 = vld [vmem:[#allocation8 + $0x210] sm:$0xff]  ;;  %v1358_v62 = vld [vmem:[#allocation8 + $0x7e8] sm:$0xff] }
 0x141   :  { %6447 = vmatpush3.msra.mxu1 %v320_v63  ;;  %1401 = vmatprep.subr.mxu0 %v1205_v0  ;;  %v1170_v63 = vld [vmem:[#allocation8 + $0x208] sm:$0xff]  ;;  %v1357_v0 = vld [vmem:[#allocation8 + $0x7e0] sm:$0xff] }
 0x142   :  { %6448 = vmatprep.subr.mxu1 %v455_v1  ;;  %1402 = vmatpush1.msra.mxu0 %v1204_v2  ;;  %v1162_v1 = vld [vmem:[#allocation8 + $0x1c8] sm:$0xff]  ;;  %v1349_v2 = vld [vmem:[#allocation8 + $0x7a0] sm:$0xff] }
 0x143   :  { %6449 = vmatpush3.msra.mxu1 %v311_v3  ;;  %1403 = vmatprep.subr.mxu0 %v1196_v4  ;;  %v1161_v3 = vld [vmem:[#allocation8 + $0x1c0] sm:$0xff]  ;;  %v1348_v4 = vld [vmem:[#allocation8 + $0x798] sm:$0xff] }
 0x144   :  { %6450 = vmatprep.subr.mxu1 %v446_v5  ;;  %1404 = vmatpush1.msra.mxu0 %v1195_v6  ;;  %v1153_v5 = vld [vmem:[#allocation8 + $0x180] sm:$0xff]  ;;  %v1340_v6 = vld [vmem:[#allocation8 + $0x758] sm:$0xff] }
 0x145   :  { %6451 = vmatpush3.msra.mxu1 %v302_v7  ;;  %1405 = vmatprep.subr.mxu0 %v1187_v8  ;;  %v1152_v7 = vld [vmem:[#allocation8 + $0x178] sm:$0xff]  ;;  %v1339_v8 = vld [vmem:[#allocation8 + $0x750] sm:$0xff] }
 0x146   :  { %6452 = vmatprep.subr.mxu1 %v437_v9  ;;  %1406 = vmatpush1.msra.mxu0 %v1186_v10  ;;  %v1144_v9 = vld [vmem:[#allocation8 + $0x138] sm:$0xff]  ;;  %v1331_v10 = vld [vmem:[#allocation8 + $0x710] sm:$0xff] }
 0x147   :  { %6453 = vmatpush3.msra.mxu1 %v293_v11  ;;  %1407 = vmatprep.subr.mxu0 %v1178_v12  ;;  %v1143_v11 = vld [vmem:[#allocation8 + $0x130] sm:$0xff]  ;;  %v1330_v12 = vld [vmem:[#allocation8 + $0x708] sm:$0xff] }
 0x148   :  { %6454 = vmatprep.subr.mxu1 %v428_v13  ;;  %1408 = vmatpush1.msra.mxu0 %v1177_v14  ;;  %v1135_v13 = vld [vmem:[#allocation8 + $0xf0] sm:$0xff]  ;;  %v1322_v14 = vld [vmem:[#allocation8 + $0x6c8] sm:$0xff] }
 0x149   :  { %6455 = vmatpush3.msra.mxu1 %v284_v15  ;;  %1409 = vmatprep.subr.mxu0 %v1169_v16  ;;  %v1134_v15 = vld [vmem:[#allocation8 + $0xe8] sm:$0xff]  ;;  %v1321_v16 = vld [vmem:[#allocation8 + $0x6c0] sm:$0xff] }
 0x14a   :  { %6456 = vmatprep.subr.mxu1 %v419_v17  ;;  %1410 = vmatpush1.msra.mxu0 %v1168_v18  ;;  %v1126_v17 = vld [vmem:[#allocation8 + $0xa8] sm:$0xff]  ;;  %v1313_v18 = vld [vmem:[#allocation8 + $0x680] sm:$0xff] }
 0x14b   :  { %6457 = vmatpush3.msra.mxu1 %v275_v19  ;;  %1411 = vmatprep.subr.mxu0 %v1160_v20  ;;  %v1125_v19 = vld [vmem:[#allocation8 + $0xa0] sm:$0xff]  ;;  %v1312_v20 = vld [vmem:[#allocation8 + $0x678] sm:$0xff] }
 0x14c   :  { %6458 = vmatprep.subr.mxu1 %v410_v21  ;;  %1412 = vmatpush1.msra.mxu0 %v1159_v23  ;;  %v1117_v21 = vld [vmem:[#allocation8 + $0x60] sm:$0xff]  ;;  %v1304_v23 = vld [vmem:[#allocation8 + $0x638] sm:$0xff] }
 0x14d   :  { %6459 = vmatpush3.msra.mxu1 %v266_v24  ;;  %1413 = vmatprep.subr.mxu0 %v1151_v25  ;;  %v1116_v24 = vld [vmem:[#allocation8 + $0x58] sm:$0xff]  ;;  %v1303_v25 = vld [vmem:[#allocation8 + $0x630] sm:$0xff] }
 0x14e   :  { %6460 = vmatprep.subr.mxu1 %v401_v28  ;;  %1414 = vmatpush1.msra.mxu0 %v1150_v29  ;;  %v1108_v28 = vld [vmem:[#allocation8 + $0x18] sm:$0xff]  ;;  %v1295_v29 = vld [vmem:[#allocation8 + $0x5f0] sm:$0xff] }
 0x14f   :  { %6461 = vmatpush3.msra.mxu1 %v257_v30  ;;  %1415 = vmatprep.subr.mxu0 %v1142_v31  ;;  %v1107_v30 = vld [vmem:[#allocation8 + $0x10] sm:$0xff]  ;;  %v1294_v31 = vld [vmem:[#allocation8 + $0x5e8] sm:$0xff] }
 0x150   :  { %886 = vmatmul.mubr.f32.vlgmr.msra.gmra.mxu1 %v6791_v27  ;;  %1464 = vmatprep.subr.mxu1 %v1243_v32  ;;  %v1207_v27 = vld [vmem:[#allocation8 + $0x330] sm:$0xff] }
 0x151   :  { %1465 = vmatpush1.msra.mxu1 %v1242_v33  ;;  %1416 = vmatpush1.msra.mxu0 %v1141_v34  ;;  %v1387_v32 = vld [vmem:[#allocation8 + $0x8d0] sm:$0xff]  ;;  %v1286_v33 = vld [vmem:[#allocation8 + $0x5a8] sm:$0xff] }
 0x152   :  { %1466 = vmatprep.subr.mxu1 %v1234_v35  ;;  %1417 = vmatprep.subr.mxu0 %v1133_v36  ;;  %v1386_v34 = vld [vmem:[#allocation8 + $0x8c8] sm:$0xff]  ;;  %v1285_v36 = vld [vmem:[#allocation8 + $0x5a0] sm:$0xff] }
 0x153   :  { %1467 = vmatpush1.msra.mxu1 %v1233_v37  ;;  %1418 = vmatpush1.msra.mxu0 %v1132_v38  ;;  %v1378_v35 = vld [vmem:[#allocation8 + $0x888] sm:$0xff]  ;;  %v1377_v37 = vld [vmem:[#allocation8 + $0x880] sm:$0xff] }
 0x154   :  { %1468 = vmatprep.subr.mxu1 %v1225_v39  ;;  %1419 = vmatprep.subr.mxu0 %v1124_v40  ;;  %v1277_v38 = vld [vmem:[#allocation8 + $0x560] sm:$0xff]  ;;  %v1276_v40 = vld [vmem:[#allocation8 + $0x558] sm:$0xff] }
 0x155   :  { %1469 = vmatpush1.msra.mxu1 %v1224_v41  ;;  %1420 = vmatpush1.msra.mxu0 %v1123_v42  ;;  %v1369_v39 = vld [vmem:[#allocation8 + $0x840] sm:$0xff]  ;;  %v1368_v41 = vld [vmem:[#allocation8 + $0x838] sm:$0xff] }
 0x156   :  { %1470 = vmatprep.subr.mxu1 %v1216_v26  ;;  %1421 = vmatprep.subr.mxu0 %v1115_v44  ;;  %v1268_v42 = vld [vmem:[#allocation8 + $0x518] sm:$0xff]  ;;  %v1267_v44 = vld [vmem:[#allocation8 + $0x510] sm:$0xff] }
 0x157   :  { %1471 = vmatpush1.msra.mxu1 %v1215_v45  ;;  %1422 = vmatpush1.msra.mxu0 %v1114_v46  ;;  %v1360_v26 = vld [vmem:[#allocation8 + $0x7f8] sm:$0xff]  ;;  %v1359_v45 = vld [vmem:[#allocation8 + $0x7f0] sm:$0xff] }
 0x158   :  { %1472 = vmatprep.subr.mxu1 %v1207_v27  ;;  %1423 = vmatprep.subr.mxu0 %v1106_v22  ;;  %v1259_v46 = vld [vmem:[#allocation8 + $0x4d0] sm:$0xff]  ;;  %v1258_v22 = vld [vmem:[#allocation8 + $0x4c8] sm:$0xff] }
 0x159   :  { %1473 = vmatpush1.msra.mxu1 %v1206_v47  ;;  %1424 = vmatpush1.msra.mxu0 %v1105_v48  ;;  %v1351_v27 = vld [vmem:[#allocation8 + $0x7b0] sm:$0xff]  ;;  %v1350_v47 = vld [vmem:[#allocation8 + $0x7a8] sm:$0xff] }
 0x15a   :  { %1474 = vmatprep.subr.mxu1 %v1198_v49  ;;  %1425 = vmatprep.subr.mxu0 %v1385_v50  ;;  %v1250_v48 = vld [vmem:[#allocation8 + $0x488] sm:$0xff]  ;;  %v1249_v50 = vld [vmem:[#allocation8 + $0x480] sm:$0xff] }
 0x15b   :  { %1475 = vmatpush1.msra.mxu1 %v1197_v51  ;;  %1426 = vmatpush2.msra.mxu0 %v1384_v52  ;;  %v1342_v49 = vld [vmem:[#allocation8 + $0x768] sm:$0xff]  ;;  %v1341_v51 = vld [vmem:[#allocation8 + $0x760] sm:$0xff] }
 0x15c   :  { %1476 = vmatprep.subr.mxu1 %v1189_v53  ;;  %1427 = vmatprep.subr.mxu0 %v1376_v54  ;;  %v1245_v52 = vld [vmem:[#allocation8 + $0x460] sm:$0xff]  ;;  %v1332_v54 = vld [vmem:[#allocation8 + $0x718] sm:$0xff] }
 0x15d   :  { %1477 = vmatpush1.msra.mxu1 %v1188_v55  ;;  %1428 = vmatpush2.msra.mxu0 %v1375_v56  ;;  %v1333_v53 = vld [vmem:[#allocation8 + $0x720] sm:$0xff]  ;;  %v1324_v55 = vld [vmem:[#allocation8 + $0x6d8] sm:$0xff]  ;;  %v1323_v56 = vld [vmem:[#allocation8 + $0x6d0] sm:$0xff] }
 0x15e   :  { %1478 = vmatprep.subr.mxu1 %v1180_v57  ;;  %1429 = vmatprep.subr.mxu0 %v1367_v58  ;;  %v1315_v57 = vld [vmem:[#allocation8 + $0x690] sm:$0xff]  ;;  %v1314_v58 = vld [vmem:[#allocation8 + $0x688] sm:$0xff] }
 0x15f   :  { %1479 = vmatpush1.msra.mxu1 %v1179_v59  ;;  %1430 = vmatpush2.msra.mxu0 %v1366_v60  ;;  %v1306_v59 = vld [vmem:[#allocation8 + $0x648] sm:$0xff]  ;;  %v6825_v60 = vpop.permute.xlu0 %1028 }
 0x160   :  { %1480 = vmatprep.subr.mxu1 %v1171_v61  ;;  %1431 = vmatprep.subr.mxu0 %v1358_v62  ;;  %v1305_v61 = vld [vmem:[#allocation8 + $0x640] sm:$0xff]  ;;  %v117_v62 = vpop.permute.xlu1 %116 }
 0x161   :  { %1481 = vmatpush1.msra.mxu1 %v1170_v63  ;;  %1432 = vmatpush2.msra.mxu0 %v1357_v0  ;;  %v1297_v63 = vld [vmem:[#allocation8 + $0x600] sm:$0xff]  ;;  %154 = vst.msk [vmem:[#allocation2] sm:$0xf] %vm153_vm1, %v117_v62  ;;  %v1296_v0 = vld [vmem:[#allocation8 + $0x5f8] sm:$0xff]  ;;  %vm1871_vm1 = vcmask 1039360  }
 0x162   :  { %1482 = vmatprep.subr.mxu1 %v1162_v1  ;;  %1433 = vmatprep.subr.mxu0 %v1349_v2  ;;  %v1288_v1 = vld [vmem:[#allocation8 + $0x5b8] sm:$0xff]  ;;  %v1287_v2 = vld [vmem:[#allocation8 + $0x5b0] sm:$0xff] }
 0x163   :  { %1483 = vmatpush1.msra.mxu1 %v1161_v3  ;;  %1434 = vmatpush2.msra.mxu0 %v1348_v4  ;;  %v121_v3 = vpop.permute.xlu0 %120 }
 0x164   :  { %1484 = vmatprep.subr.mxu1 %v1153_v5  ;;  %1435 = vmatprep.subr.mxu0 %v1340_v6  ;;  %v119_v4 = vpop.permute.xlu1 %118  ;;  %v1279_v5 = vld [vmem:[#allocation8 + $0x570] sm:$0xff] }
 0x165   :  { %1485 = vmatpush1.msra.mxu1 %v1152_v7  ;;  %1436 = vmatpush2.msra.mxu0 %v1339_v8  ;;  %v135_v6 = vsel %vm9059_vm2, %v117_v62, %v119_v4  ;;  %v136_v7 = vsel %vm9059_vm2, %v119_v4, %v121_v3  ;;  %v1278_v8 = vld [vmem:[#allocation8 + $0x568] sm:$0xff]  ;;  %v1236_v4 = vld [vmem:[#allocation8 + $0x418] sm:$0xff] }
 0x166   :  { %1486 = vmatprep.subr.mxu1 %v1144_v9  ;;  %1437 = vmatprep.subr.mxu0 %v1331_v10  ;;  %155 = vst [vmem:[#allocation2 + $0x8] sm:$0xf] %v135_v6  ;;  %156 = vst [vmem:[#allocation2 + $0x10] sm:$0xf] %v136_v7  ;;  %v1270_v9 = vld [vmem:[#allocation8 + $0x528] sm:$0xff]  ;;  %v1269_v10 = vld [vmem:[#allocation8 + $0x520] sm:$0xff] }
 0x167   :  { %1487 = vmatpush1.msra.mxu1 %v1143_v11  ;;  %1438 = vmatpush2.msra.mxu0 %v1330_v12  ;;  %v123_v11 = vpop.permute.xlu0 %122  ;;  %v1261_v12 = vld [vmem:[#allocation8 + $0x4e0] sm:$0xff]  ;;  %v1235_v6 = vld [vmem:[#allocation8 + $0x410] sm:$0xff] }
 0x168   :  { %1488 = vmatprep.subr.mxu1 %v1135_v13  ;;  %1439 = vmatprep.subr.mxu0 %v1322_v14  ;;  %v137_v13 = vsel %vm9059_vm2, %v121_v3, %v123_v11  ;;  %v1260_v14 = vld [vmem:[#allocation8 + $0x4d8] sm:$0xff]  ;;  %v1246_v3 = vld [vmem:[#allocation8 + $0x468] sm:$0xff]  ;;  %v1237_v7 = vld [vmem:[#allocation8 + $0x420] sm:$0xff] }
 0x169   :  { %1489 = vmatpush1.msra.mxu1 %v1134_v15  ;;  %1440 = vmatpush2.msra.mxu0 %v1321_v16  ;;  %157 = vst [vmem:[#allocation2 + $0x18] sm:$0xf] %v137_v13  ;;  %v1252_v15 = vld [vmem:[#allocation8 + $0x498] sm:$0xff]  ;;  %v1251_v16 = vld [vmem:[#allocation8 + $0x490] sm:$0xff]  ;;  %v1217_v13 = vld [vmem:[#allocation8 + $0x380] sm:$0xff] }
 0x16a   :  { %1490 = vmatprep.subr.mxu1 %v1126_v17  ;;  %1441 = vmatprep.subr.mxu0 %v1313_v18  ;;  %v125_v18 = vpop.permute.xlu1 %124 }
 0x16b   :  { %1491 = vmatpush1.msra.mxu1 %v1125_v19  ;;  %1442 = vmatpush2.msra.mxu0 %v1312_v20  ;;  %v127_v17 = vpop.permute.xlu0 %126  ;;  %v1247_v19 = vld [vmem:[#allocation8 + $0x470] sm:$0xff]  ;;  %v138_v20 = vsel %vm9059_vm2, %v123_v11, %v125_v18  ;;  %v1218_v11 = vld [vmem:[#allocation8 + $0x388] sm:$0xff] }
 0x16c   :  { %1492 = vmatprep.subr.mxu1 %v1117_v21  ;;  %1443 = vmatprep.subr.mxu0 %v1304_v23  ;;  %v139_v21 = vsel %vm9059_vm2, %v125_v18, %v127_v17  ;;  %158 = vst [vmem:[#allocation2 + $0x20] sm:$0xf] %v138_v20  ;;  %v1210_v18 = vld [vmem:[#allocation8 + $0x348] sm:$0xff] }
 0x16d   :  { %1493 = vmatpush1.msra.mxu1 %v1116_v24  ;;  %1444 = vmatpush2.msra.mxu0 %v1303_v25  ;;  %159 = vst [vmem:[#allocation2 + $0x28] sm:$0xf] %v139_v21  ;;  %v1202_v20 = vld [vmem:[#allocation8 + $0x308] sm:$0xff]  ;;  %v1199_v21 = vld [vmem:[#allocation8 + $0x2f0] sm:$0xff] }
 0x16e   :  { %1494 = vmatprep.subr.mxu1 %v1108_v28  ;;  %1445 = vmatprep.subr.mxu0 %v1295_v29  ;;  %v129_v24 = vpop.permute.xlu1 %128 }
 0x16f   :  { %1495 = vmatpush1.msra.mxu1 %v1107_v30  ;;  %1446 = vmatpush2.msra.mxu0 %v1294_v31  ;;  %v131_v23 = vpop.permute.xlu0 %130  ;;  %v140_v25 = vsel %vm9059_vm2, %v127_v17, %v129_v24  ;;  %v1208_v17 = vld [vmem:[#allocation8 + $0x338] sm:$0xff] }
 0x170   :  { %1496 = vmatprep.subr.mxu1 %v1387_v32  ;;  %1447 = vmatprep.subr.mxu0 %v1286_v33  ;;  %v141_v28 = vsel %vm9059_vm2, %v129_v24, %v131_v23  ;;  %160 = vst [vmem:[#allocation2 + $0x30] sm:$0xf] %v140_v25  ;;  %v1191_v24 = vld [vmem:[#allocation8 + $0x2b0] sm:$0xff]  ;;  %v1193_v25 = vld [vmem:[#allocation8 + $0x2c0] sm:$0xff] }
 0x171   :  { %1497 = vmatpush2.msra.mxu1 %v1386_v34  ;;  %1448 = vmatpush2.msra.mxu0 %v1285_v36  ;;  %161 = vst [vmem:[#allocation2 + $0x38] sm:$0xf] %v141_v28  ;;  %v1190_v28 = vld [vmem:[#allocation8 + $0x2a8] sm:$0xff] }
 0x172   :  { %1498 = vmatprep.subr.mxu1 %v1378_v35  ;;  %1449 = vmatprep.subr.mxu0 %v1277_v38  ;;  %v133_v30 = vpop.permute.xlu1 %132 }
 0x173   :  { %1499 = vmatpush2.msra.mxu1 %v1377_v37  ;;  %1450 = vmatpush2.msra.mxu0 %v1276_v40  ;;  %v973_v29 = vpop.permute.xlu0 %972  ;;  %v142_v31 = vsel %vm9059_vm2, %v131_v23, %v133_v30  ;;  %164 = vst.msk [vmem:[#allocation2 + $0x48] sm:$0xf] %vm163_vm3, %v133_v30  ;;  %v1201_v23 = vld [vmem:[#allocation8 + $0x300] sm:$0xff]  ;;  %v1182_v30 = vld [vmem:[#allocation8 + $0x268] sm:$0xff]  ;;  %vm3150_vm3 = vcmask 588800  }
 0x174   :  { %1500 = vmatprep.subr.mxu1 %v1369_v39  ;;  %1451 = vmatprep.subr.mxu0 %v1268_v42  ;;  %1010 = vst.msk [vmem:[#allocation2 + $0x50] sm:$0xf] %vm1009_vm4, %v973_v29  ;;  %162 = vst [vmem:[#allocation2 + $0x40] sm:$0xf] %v142_v31  ;;  %v1184_v31 = vld [vmem:[#allocation8 + $0x278] sm:$0xff]  ;;  %vm1801_vm4 = vcmask 1047684  }
 0x175   :  { %1501 = vmatpush2.msra.mxu1 %v1368_v41  ;;  %1452 = vmatpush2.msra.mxu0 %v1267_v44 }
 0x176   :  { %1502 = vmatprep.subr.mxu1 %v1360_v26  ;;  %1453 = vmatprep.subr.mxu0 %v1259_v46  ;;  %v975_v33 = vpop.permute.xlu1 %974 }
 0x177   :  { %1503 = vmatpush2.msra.mxu1 %v1359_v45  ;;  %1454 = vmatpush2.msra.mxu0 %v1258_v22  ;;  %v977_v32 = vpop.permute.xlu0 %976  ;;  %v991_v34 = vsel %vm990_vm5, %v973_v29, %v975_v33  ;;  %v1192_v29 = vld [vmem:[#allocation8 + $0x2b8] sm:$0xff] }
 0x178   :  { %1504 = vmatprep.subr.mxu1 %v1351_v27  ;;  %1455 = vmatprep.subr.mxu0 %v1250_v48  ;;  %v992_v35 = vsel %vm990_vm5, %v975_v33, %v977_v32  ;;  %1011 = vst [vmem:[#allocation2 + $0x58] sm:$0xf] %v991_v34  ;;  %v1183_v33 = vld [vmem:[#allocation8 + $0x270] sm:$0xff]  ;;  %v1173_v34 = vld [vmem:[#allocation8 + $0x220] sm:$0xff] }
 0x179   :  { %1505 = vmatpush2.msra.mxu1 %v1350_v47  ;;  %1456 = vmatpush2.msra.mxu0 %v1249_v50  ;;  %1012 = vst [vmem:[#allocation2 + $0x60] sm:$0xf] %v992_v35  ;;  %v1175_v35 = vld [vmem:[#allocation8 + $0x230] sm:$0xff] }
 0x17a   :  { %1506 = vmatprep.subr.mxu1 %v1342_v49  ;;  %1535 = vmatprep.subr.mxu0 %v1245_v52  ;;  %v979_v37 = vpop.permute.xlu1 %978 }
 0x17b   :  { %1507 = vmatpush2.msra.mxu1 %v1341_v51  ;;  %v981_v36 = vpop.permute.xlu0 %980  ;;  %v993_v38 = vsel %vm990_vm5, %v977_v32, %v979_v37  ;;  %v1181_v32 = vld [vmem:[#allocation8 + $0x260] sm:$0xff] }
 0x17c   :  { %1508 = vmatprep.subr.mxu1 %v1333_v53  ;;  %v994_v39 = vsel %vm990_vm5, %v979_v37, %v981_v36  ;;  %1013 = vst [vmem:[#allocation2 + $0x68] sm:$0xf] %v993_v38  ;;  %v1174_v37 = vld [vmem:[#allocation8 + $0x228] sm:$0xff]  ;;  %v1164_v38 = vld [vmem:[#allocation8 + $0x1d8] sm:$0xff] }
 0x17d   :  { %1509 = vmatpush2.msra.mxu1 %v1332_v54  ;;  %1014 = vst [vmem:[#allocation2 + $0x70] sm:$0xf] %v994_v39  ;;  %v1166_v39 = vld [vmem:[#allocation8 + $0x1e8] sm:$0xff] }
 0x17e   :  { %1510 = vmatprep.subr.mxu1 %v1324_v55 }
 0x17f   :  { %1511 = vmatpush2.msra.mxu1 %v1323_v56 }
 0x180   :  { %1512 = vmatprep.subr.mxu1 %v1315_v57 }
 0x181   :  { %1513 = vmatpush2.msra.mxu1 %v1314_v58 }
 0x182   :  { %1514 = vmatprep.subr.mxu1 %v1306_v59 }
 0x183   :  { %1515 = vmatpush2.msra.mxu1 %v1305_v61 }
 0x184   :  { %1516 = vmatprep.subr.mxu1 %v1297_v63 }
 0x185   :  { %1517 = vmatpush2.msra.mxu1 %v1296_v0 }
 0x186   :  { %1518 = vmatprep.subr.mxu1 %v1288_v1 }
 0x187   :  { %1519 = vmatpush2.msra.mxu1 %v1287_v2  ;;  %v1244_v2 = vld [vmem:[#allocation8 + $0x458] sm:$0xff] }
 0x188   :  { %1520 = vmatprep.subr.mxu1 %v1279_v5  ;;  %v1238_v5 = vld [vmem:[#allocation8 + $0x428] sm:$0xff] }
 0x189   :  { %1521 = vmatpush2.msra.mxu1 %v1278_v8  ;;  %v1229_v8 = vld [vmem:[#allocation8 + $0x3e0] sm:$0xff] }
 0x18a   :  { %1522 = vmatprep.subr.mxu1 %v1270_v9  ;;  %v1226_v9 = vld [vmem:[#allocation8 + $0x3c8] sm:$0xff] }
 0x18b   :  { %1523 = vmatpush2.msra.mxu1 %v1269_v10  ;;  %v1228_v10 = vld [vmem:[#allocation8 + $0x3d8] sm:$0xff] }
 0x18c   :  { %1524 = vmatprep.subr.mxu1 %v1261_v12  ;;  %v1220_v12 = vld [vmem:[#allocation8 + $0x398] sm:$0xff] }
 0x18d   :  { %1525 = vmatpush2.msra.mxu1 %v1260_v14  ;;  %v1219_v14 = vld [vmem:[#allocation8 + $0x390] sm:$0xff] }
 0x18e   :  { %1526 = vmatprep.subr.mxu1 %v1252_v15  ;;  %v1209_v15 = vld [vmem:[#allocation8 + $0x340] sm:$0xff] }
 0x18f   :  { %1527 = vmatpush2.msra.mxu1 %v1251_v16  ;;  %v1211_v16 = vld [vmem:[#allocation8 + $0x350] sm:$0xff] }
 0x190   :  { %1606 = vmatprep.subr.mxu1 %v1247_v19  ;;  %v1200_v19 = vld [vmem:[#allocation8 + $0x2f8] sm:$0xff] }
 0x1a7   :  { %v985_v40 = vpop.permute.xlu0 %984 }
 0x1a8   :  { %v983_v41 = vpop.permute.xlu1 %982 }
 0x1a9   :  { %v995_v42 = vsel %vm990_vm5, %v981_v36, %v983_v41  ;;  %v996_v26 = vsel %vm990_vm5, %v983_v41, %v985_v40  ;;  %v1172_v36 = vld [vmem:[#allocation8 + $0x218] sm:$0xff]  ;;  %v1165_v41 = vld [vmem:[#allocation8 + $0x1e0] sm:$0xff] }
 0x1aa   :  { %1015 = vst [vmem:[#allocation2 + $0x78] sm:$0xf] %v995_v42  ;;  %1016 = vst [vmem:[#allocation2 + $0x80] sm:$0xf] %v996_v26  ;;  %v1155_v42 = vld [vmem:[#allocation8 + $0x190] sm:$0xff]  ;;  %v1157_v26 = vld [vmem:[#allocation8 + $0x1a0] sm:$0xff] }
 0x1ab   :  { %v989_v44 = vpop.permute.xlu0 %988 }
 0x1ac   :  { %1020 = vst.msk [vmem:[#allocation2 + $0x98] sm:$0xf] %vm1019_vm7, %v989_v44  ;;  %v987_v45 = vpop.permute.xlu1 %986  ;;  %vm2891_vm7 = vcmask 613376  }
 0x1ad   :  { %v997_v46 = vsel %vm990_vm5, %v985_v40, %v987_v45  ;;  %v998_v27 = vsel %vm990_vm5, %v987_v45, %v989_v44  ;;  %v1163_v40 = vld [vmem:[#allocation8 + $0x1d0] sm:$0xff]  ;;  %v1154_v44 = vld [vmem:[#allocation8 + $0x188] sm:$0xff]  ;;  %v1156_v45 = vld [vmem:[#allocation8 + $0x198] sm:$0xff] }
 0x1ae   :  { %v603_v22 = vpop.f32.mrf.mxu1  ;;  %v674_v47 = vpop.f32.mrf.mxu0  ;;  %1017 = vst [vmem:[#allocation2 + $0x88] sm:$0xf] %v997_v46  ;;  %1018 = vst [vmem:[#allocation2 + $0x90] sm:$0xf] %v998_v27  ;;  %v1146_v46 = vld [vmem:[#allocation8 + $0x148] sm:$0xff]  ;;  %v1148_v27 = vld [vmem:[#allocation8 + $0x158] sm:$0xff] }
 0x1af   :  { %v900_v43 = vrot.slane %v603_v22, 4  ;;  %v902_v51 = vrot.slane %v674_v47, 4  ;;  %v1145_v22 = vld [vmem:[#allocation8 + $0x140] sm:$0xff]  ;;  %v1147_v47 = vld [vmem:[#allocation8 + $0x150] sm:$0xff] }
 0x1b0   :  { %v605_v48 = vpop.f32.mrf.mxu1  ;;  %v676_v50 = vpop.f32.mrf.mxu0 }
 0x1b1   :  { %v901_v49 = vrot.slane %v605_v48, 4  ;;  %909 = vrot.lane.b32.xlu1 %v900_v43, %s6640_s28  ;;  %v903_v52 = vrot.slane %v676_v50, 4  ;;  %v1137_v48 = vld [vmem:[#allocation8 + $0x100] sm:$0xff]  ;;  %v1136_v50 = vld [vmem:[#allocation8 + $0xf8] sm:$0xff] }
 0x1b3   :  { %911 = vrot.lane.b32.xlu0 %v901_v49, %s6640_s28  ;;  %v1139_v49 = vld [vmem:[#allocation8 + $0x110] sm:$0xff] }
 0x1b5   :  { %913 = vrot.lane.b32.xlu1 %v902_v51, %s6640_s28  ;;  %v1138_v51 = vld [vmem:[#allocation8 + $0x108] sm:$0xff] }
 0x1b7   :  { %915 = vrot.lane.b32.xlu0 %v903_v52, %s6640_s28 }
 0x1ef   :  { %v745_v53 = vpop.f32.mrf.mxu1  ;;  %v816_v54 = vpop.f32.mrf.mxu0 }
 0x1f0   :  { %v904_v55 = vrot.slane %v745_v53, 4  ;;  %v906_v59 = vrot.slane %v816_v54, 4  ;;  %v1128_v53 = vld [vmem:[#allocation8 + $0xb8] sm:$0xff]  ;;  %v1130_v54 = vld [vmem:[#allocation8 + $0xc8] sm:$0xff] }
 0x1f1   :  { %v747_v56 = vpop.f32.mrf.mxu1  ;;  %v818_v57 = vpop.f32.mrf.mxu0 }
 0x1f2   :  { %v905_v58 = vrot.slane %v747_v56, 4  ;;  %917 = vrot.lane.b32.xlu1 %v904_v55, %s6640_s28  ;;  %v907_v62 = vrot.slane %v818_v57, 4  ;;  %v1127_v56 = vld [vmem:[#allocation8 + $0xb0] sm:$0xff]  ;;  %v1129_v57 = vld [vmem:[#allocation8 + $0xc0] sm:$0xff] }
 0x1f4   :  { %v1100_v61 = vpop.f32.mrf.mxu0  ;;  %919 = vrot.lane.b32.xlu0 %v905_v58, %s6640_s28  ;;  %v1119_v58 = vld [vmem:[#allocation8 + $0x70] sm:$0xff] }
 0x1f5   :  { %v6855_v1 = vadd.f32 %v1100_v61, %v6825_v60  ;;  %v1118_v61 = vld [vmem:[#allocation8 + $0x68] sm:$0xff] }
 0x1f6   :  { %v1102_v63 = vpop.f32.mrf.mxu0  ;;  %921 = vrot.lane.b32.xlu1 %v906_v59, %s6640_s28  ;;  %v1121_v59 = vld [vmem:[#allocation8 + $0x80] sm:$0xff] }
 0x1f7   :  { %v6852_v0 = vadd.f32 %v1102_v63, %v6825_v60  ;;  %v1227_v60 = vld [vmem:[#allocation8 + $0x3d0] sm:$0xff] }
 0x1f8   :  { %923 = vrot.lane.b32.xlu0 %v907_v62, %s6640_s28  ;;  %v1120_v62 = vld [vmem:[#allocation8 + $0x78] sm:$0xff] }
 0x1f9   :  { %1457 = vmatprep.mubr.f32.mxu0 %v6852_v0  ;;  %1528 = vmatprep.mubr.f32.mxu1 %v6852_v0 }
 0x1fa   :  { %1458 = vmatmul.mubr.f32.vlgmr.msra.gmra.mxu0 %v6855_v1  ;;  %1529 = vmatmul.mubr.f32.vlgmr.msra.gmra.mxu1 %v6855_v1 }
 0x1fb   :  { %1536 = vmatpush1.msra.mxu0 %v1244_v2  ;;  %1607 = vmatpush1.msra.mxu1 %v1246_v3  ;;  %v1110_v2 = vld [vmem:[#allocation8 + $0x28] sm:$0xff]  ;;  %v1112_v3 = vld [vmem:[#allocation8 + $0x38] sm:$0xff] }
 0x1fc   :  { %1537 = vmatprep.subr.mxu0 %v1236_v4  ;;  %1599 = vmatprep.mubr.f32.mxu0 %v6852_v0  ;;  %v1109_v4 = vld [vmem:[#allocation8 + $0x20] sm:$0xff] }
 0x1fd   :  { %1608 = vmatprep.subr.mxu1 %v1238_v5  ;;  %1670 = vmatprep.mubr.f32.mxu1 %v6852_v0  ;;  %v1111_v5 = vld [vmem:[#allocation8 + $0x30] sm:$0xff] }
 0x1fe   :  { %1538 = vmatpush1.msra.mxu0 %v1235_v6  ;;  %1609 = vmatpush1.msra.mxu1 %v1237_v7  ;;  %v1389_v6 = vld [vmem:[#allocation8 + $0x8e0] sm:$0xff]  ;;  %v1391_v7 = vld [vmem:[#allocation8 + $0x8f0] sm:$0xff] }
 0x1ff   :  { %1539 = vmatprep.subr.mxu0 %v1227_v60  ;;  %1610 = vmatprep.subr.mxu1 %v1229_v8  ;;  %v1388_v60 = vld [vmem:[#allocation8 + $0x8d8] sm:$0xff]  ;;  %v1390_v8 = vld [vmem:[#allocation8 + $0x8e8] sm:$0xff] }
 0x200   :  { %1540 = vmatpush1.msra.mxu0 %v1226_v9  ;;  %1611 = vmatpush1.msra.mxu1 %v1228_v10  ;;  %v1380_v9 = vld [vmem:[#allocation8 + $0x898] sm:$0xff]  ;;  %v1382_v10 = vld [vmem:[#allocation8 + $0x8a8] sm:$0xff] }
 0x201   :  { %1541 = vmatprep.subr.mxu0 %v1218_v11  ;;  %1612 = vmatprep.subr.mxu1 %v1220_v12  ;;  %v1379_v11 = vld [vmem:[#allocation8 + $0x890] sm:$0xff]  ;;  %v1381_v12 = vld [vmem:[#allocation8 + $0x8a0] sm:$0xff] }
 0x202   :  { %1542 = vmatpush1.msra.mxu0 %v1217_v13  ;;  %1613 = vmatpush1.msra.mxu1 %v1219_v14  ;;  %v1371_v13 = vld [vmem:[#allocation8 + $0x850] sm:$0xff]  ;;  %v1373_v14 = vld [vmem:[#allocation8 + $0x860] sm:$0xff] }
 0x203   :  { %1543 = vmatprep.subr.mxu0 %v1209_v15  ;;  %1614 = vmatprep.subr.mxu1 %v1211_v16  ;;  %v1370_v15 = vld [vmem:[#allocation8 + $0x848] sm:$0xff]  ;;  %v1372_v16 = vld [vmem:[#allocation8 + $0x858] sm:$0xff] }
 0x204   :  { %1544 = vmatpush1.msra.mxu0 %v1208_v17  ;;  %1615 = vmatpush1.msra.mxu1 %v1210_v18  ;;  %v1362_v17 = vld [vmem:[#allocation8 + $0x808] sm:$0xff]  ;;  %v1364_v18 = vld [vmem:[#allocation8 + $0x818] sm:$0xff] }
 0x205   :  { %1545 = vmatprep.subr.mxu0 %v1200_v19  ;;  %1616 = vmatprep.subr.mxu1 %v1202_v20  ;;  %v1361_v19 = vld [vmem:[#allocation8 + $0x800] sm:$0xff]  ;;  %v1363_v20 = vld [vmem:[#allocation8 + $0x810] sm:$0xff] }
 0x206   :  { %1546 = vmatpush1.msra.mxu0 %v1199_v21  ;;  %1617 = vmatpush1.msra.mxu1 %v1201_v23  ;;  %v1353_v21 = vld [vmem:[#allocation8 + $0x7c0] sm:$0xff]  ;;  %v1355_v23 = vld [vmem:[#allocation8 + $0x7d0] sm:$0xff] }
 0x207   :  { %1547 = vmatprep.subr.mxu0 %v1191_v24  ;;  %1618 = vmatprep.subr.mxu1 %v1193_v25  ;;  %v1352_v24 = vld [vmem:[#allocation8 + $0x7b8] sm:$0xff]  ;;  %v1354_v25 = vld [vmem:[#allocation8 + $0x7c8] sm:$0xff] }
 0x208   :  { %1548 = vmatpush1.msra.mxu0 %v1190_v28  ;;  %1619 = vmatpush1.msra.mxu1 %v1192_v29  ;;  %v1344_v28 = vld [vmem:[#allocation8 + $0x778] sm:$0xff]  ;;  %v1346_v29 = vld [vmem:[#allocation8 + $0x788] sm:$0xff] }
 0x209   :  { %1549 = vmatprep.subr.mxu0 %v1182_v30  ;;  %1620 = vmatprep.subr.mxu1 %v1184_v31  ;;  %v1343_v30 = vld [vmem:[#allocation8 + $0x770] sm:$0xff] }
 0x20a   :  { %1550 = vmatpush1.msra.mxu0 %v1181_v32  ;;  %1621 = vmatpush1.msra.mxu1 %v1183_v33  ;;  %v1345_v32 = vld [vmem:[#allocation8 + $0x780] sm:$0xff]  ;;  %v1335_v33 = vld [vmem:[#allocation8 + $0x730] sm:$0xff] }
 0x20b   :  { %1551 = vmatprep.subr.mxu0 %v1173_v34  ;;  %1622 = vmatprep.subr.mxu1 %v1175_v35  ;;  %v1337_v34 = vld [vmem:[#allocation8 + $0x740] sm:$0xff]  ;;  %v1334_v35 = vld [vmem:[#allocation8 + $0x728] sm:$0xff] }
 0x20c   :  { %1552 = vmatpush1.msra.mxu0 %v1172_v36  ;;  %1623 = vmatpush1.msra.mxu1 %v1174_v37  ;;  %v1336_v37 = vld [vmem:[#allocation8 + $0x738] sm:$0xff] }
 0x20d   :  { %1553 = vmatprep.subr.mxu0 %v1164_v38  ;;  %1624 = vmatprep.subr.mxu1 %v1166_v39  ;;  %v1326_v38 = vld [vmem:[#allocation8 + $0x6e8] sm:$0xff] }
 0x20e   :  { %1554 = vmatpush1.msra.mxu0 %v1163_v40  ;;  %1625 = vmatpush1.msra.mxu1 %v1165_v41  ;;  %v1328_v40 = vld [vmem:[#allocation8 + $0x6f8] sm:$0xff]  ;;  %v1325_v41 = vld [vmem:[#allocation8 + $0x6e0] sm:$0xff] }
 0x20f   :  { %1555 = vmatprep.subr.mxu0 %v1155_v42  ;;  %1626 = vmatprep.subr.mxu1 %v1157_v26  ;;  %v1327_v26 = vld [vmem:[#allocation8 + $0x6f0] sm:$0xff] }
 0x210   :  { %1556 = vmatpush1.msra.mxu0 %v1154_v44  ;;  %1627 = vmatpush1.msra.mxu1 %v1156_v45  ;;  %v6462_v43 = vpop.f32.mrf.mxu1  ;;  %v1317_v44 = vld [vmem:[#allocation8 + $0x6a0] sm:$0xff] }
 0x211   :  { %1557 = vmatprep.subr.mxu0 %v1146_v46  ;;  %1628 = vmatprep.subr.mxu1 %v1148_v27  ;;  %v1319_v46 = vld [vmem:[#allocation8 + $0x6b0] sm:$0xff]  ;;  %v1316_v27 = vld [vmem:[#allocation8 + $0x698] sm:$0xff] }
 0x212   :  { %1558 = vmatpush1.msra.mxu0 %v1145_v22  ;;  %1629 = vmatpush1.msra.mxu1 %v1147_v47  ;;  %v6463_v52 = vpop.f32.mrf.mxu1  ;;  %v1318_v47 = vld [vmem:[#allocation8 + $0x6a8] sm:$0xff] }
 0x213   :  { %1559 = vmatprep.subr.mxu0 %v1137_v48  ;;  %1630 = vmatprep.subr.mxu1 %v1139_v49  ;;  %v6464_v55 = vadd.f32 %v6463_v52, %v6462_v43  ;;  %v1308_v43 = vld [vmem:[#allocation8 + $0x658] sm:$0xff]  ;;  %v1310_v49 = vld [vmem:[#allocation8 + $0x668] sm:$0xff]  ;;  %v1299_v52 = vld [vmem:[#allocation8 + $0x610] sm:$0xff] }
 0x214   :  { %1560 = vmatpush1.msra.mxu0 %v1136_v50  ;;  %1631 = vmatpush1.msra.mxu1 %v1138_v51  ;;  %v1307_v50 = vld [vmem:[#allocation8 + $0x650] sm:$0xff]  ;;  %v1309_v51 = vld [vmem:[#allocation8 + $0x660] sm:$0xff] }
 0x215   :  { %1561 = vmatprep.subr.mxu0 %v1128_v53  ;;  %1632 = vmatprep.subr.mxu1 %v1130_v54  ;;  %v908_v63 = vrot.slane %v6464_v55, 4  ;;  %v1301_v53 = vld [vmem:[#allocation8 + $0x620] sm:$0xff]  ;;  %v1298_v54 = vld [vmem:[#allocation8 + $0x608] sm:$0xff]  ;;  %v1300_v55 = vld [vmem:[#allocation8 + $0x618] sm:$0xff] }
 0x216   :  { %1562 = vmatpush1.msra.mxu0 %v1127_v56  ;;  %1633 = vmatpush1.msra.mxu1 %v1129_v57  ;;  %v1290_v56 = vld [vmem:[#allocation8 + $0x5c8] sm:$0xff]  ;;  %v1292_v57 = vld [vmem:[#allocation8 + $0x5d8] sm:$0xff] }
 0x217   :  { %1563 = vmatprep.subr.mxu0 %v1119_v58  ;;  %1634 = vmatprep.subr.mxu1 %v1121_v59  ;;  %v1289_v59 = vld [vmem:[#allocation8 + $0x5c0] sm:$0xff] }
 0x218   :  { %1564 = vmatpush1.msra.mxu0 %v1118_v61  ;;  %1635 = vmatpush1.msra.mxu1 %v1120_v62  ;;  %v1291_v61 = vld [vmem:[#allocation8 + $0x5d0] sm:$0xff]  ;;  %v1281_v62 = vld [vmem:[#allocation8 + $0x580] sm:$0xff] }
 0x219   :  { %1565 = vmatprep.subr.mxu0 %v1110_v2  ;;  %1636 = vmatprep.subr.mxu1 %v1112_v3  ;;  %v1280_v2 = vld [vmem:[#allocation8 + $0x578] sm:$0xff]  ;;  %v1282_v3 = vld [vmem:[#allocation8 + $0x588] sm:$0xff] }
 0x21a   :  { %925 = vrot.lane.b32.xlu1 %v908_v63, %s6640_s28  ;;  %1566 = vmatpush1.msra.mxu0 %v1109_v4  ;;  %v1283_v63 = vld [vmem:[#allocation8 + $0x590] sm:$0xff]  ;;  %v1272_v4 = vld [vmem:[#allocation8 + $0x538] sm:$0xff]  ;;  %s6644_s28 = smov 56  }
 0x21b   :  { %1637 = vmatpush1.msra.mxu1 %v1111_v5  ;;  %1567 = vmatprep.subr.mxu0 %v1389_v6  ;;  %v1274_v5 = vld [vmem:[#allocation8 + $0x548] sm:$0xff]  ;;  %v1271_v6 = vld [vmem:[#allocation8 + $0x530] sm:$0xff] }
 0x21c   :  { %1638 = vmatprep.subr.mxu1 %v1391_v7  ;;  %1568 = vmatpush2.msra.mxu0 %v1388_v60  ;;  %v1273_v7 = vld [vmem:[#allocation8 + $0x540] sm:$0xff]  ;;  %v1263_v60 = vld [vmem:[#allocation8 + $0x4f0] sm:$0xff] }
 0x21d   :  { %1639 = vmatpush2.msra.mxu1 %v1390_v8  ;;  %1569 = vmatprep.subr.mxu0 %v1380_v9  ;;  %v1265_v8 = vld [vmem:[#allocation8 + $0x500] sm:$0xff]  ;;  %v1262_v9 = vld [vmem:[#allocation8 + $0x4e8] sm:$0xff] }
 0x21e   :  { %1640 = vmatprep.subr.mxu1 %v1382_v10  ;;  %1570 = vmatpush2.msra.mxu0 %v1379_v11  ;;  %v1264_v10 = vld [vmem:[#allocation8 + $0x4f8] sm:$0xff]  ;;  %v1254_v11 = vld [vmem:[#allocation8 + $0x4a8] sm:$0xff] }
 0x21f   :  { %1641 = vmatpush2.msra.mxu1 %v1381_v12  ;;  %1571 = vmatprep.subr.mxu0 %v1371_v13  ;;  %v1256_v12 = vld [vmem:[#allocation8 + $0x4b8] sm:$0xff]  ;;  %v1253_v13 = vld [vmem:[#allocation8 + $0x4a0] sm:$0xff] }
 0x220   :  { %1642 = vmatprep.subr.mxu1 %v1373_v14  ;;  %1572 = vmatpush2.msra.mxu0 %v1370_v15  ;;  %v1255_v14 = vld [vmem:[#allocation8 + $0x4b0] sm:$0xff]  ;;  %v1392_v15 = vld [vmem:[#allocation8 + $0x8f8] sm:$0xff] }
 0x221   :  { %1643 = vmatpush2.msra.mxu1 %v1372_v16  ;;  %1573 = vmatprep.subr.mxu0 %v1362_v17  ;;  %v1248_v16 = vld [vmem:[#allocation8 + $0x478] sm:$0xff]  ;;  %v1383_v17 = vld [vmem:[#allocation8 + $0x8b0] sm:$0xff] }
 0x222   :  { %1644 = vmatprep.subr.mxu1 %v1364_v18  ;;  %1574 = vmatpush2.msra.mxu0 %v1361_v19  ;;  %v1239_v18 = vld [vmem:[#allocation8 + $0x430] sm:$0xff]  ;;  %v1374_v19 = vld [vmem:[#allocation8 + $0x868] sm:$0xff] }
 0x223   :  { %1645 = vmatpush2.msra.mxu1 %v1363_v20  ;;  %1575 = vmatprep.subr.mxu0 %v1353_v21  ;;  %v910_v31 = vpop.permute.xlu1 %909  ;;  %v1230_v20 = vld [vmem:[#allocation8 + $0x3e8] sm:$0xff]  ;;  %v1365_v21 = vld [vmem:[#allocation8 + $0x820] sm:$0xff] }
 0x224   :  { %1646 = vmatprep.subr.mxu1 %v1355_v23  ;;  %1576 = vmatpush2.msra.mxu0 %v1352_v24  ;;  %946 = vst.msk [vmem:[#allocation2] sm:$0xf0] %vm945_vm8, %v910_v31  ;;  %v1221_v23 = vld [vmem:[#allocation8 + $0x3a0] sm:$0xff]  ;;  %vm9068_vm8 = vcmask 621568  }
 0x225   :  { %1647 = vmatpush2.msra.mxu1 %v1354_v25  ;;  %1577 = vmatprep.subr.mxu0 %v1344_v28  ;;  %v912_v36 = vpop.permute.xlu0 %911  ;;  %v6892_v24 = vld [vmem:[#allocation4] sm:$0xff] }
 0x226   :  { %1648 = vmatprep.subr.mxu1 %v1346_v29  ;;  %1578 = vmatpush2.msra.mxu0 %v1343_v30  ;;  %v927_v39 = vsel %vm9059_vm2, %v910_v31, %v912_v36  ;;  %v1356_v25 = vld [vmem:[#allocation8 + $0x7d8] sm:$0xff]  ;;  %v1347_v30 = vld [vmem:[#allocation8 + $0x790] sm:$0xff] }
 0x227   :  { %1649 = vmatpush2.msra.mxu1 %v1345_v32  ;;  %1579 = vmatprep.subr.mxu0 %v1335_v33  ;;  %947 = vst [vmem:[#allocation2 + $0x8] sm:$0xf0] %v927_v39  ;;  %v914_v42 = vpop.permute.xlu1 %913  ;;  %v1212_v29 = vld [vmem:[#allocation8 + $0x358] sm:$0xff]  ;;  %v1203_v31 = vld [vmem:[#allocation8 + $0x310] sm:$0xff]  ;;  %v1338_v32 = vld [vmem:[#allocation8 + $0x748] sm:$0xff] }
 0x228   :  { %1650 = vmatprep.subr.mxu1 %v1337_v34  ;;  %1580 = vmatpush2.msra.mxu0 %v1334_v35  ;;  %v928_v45 = vsel %vm9059_vm2, %v912_v36, %v914_v42  ;;  %v1194_v33 = vld [vmem:[#allocation8 + $0x2c8] sm:$0xff]  ;;  %v1329_v34 = vld [vmem:[#allocation8 + $0x700] sm:$0xff]  ;;  %v1320_v36 = vld [vmem:[#allocation8 + $0x6b8] sm:$0xff] }
 0x229   :  { %1651 = vmatpush2.msra.mxu1 %v1336_v37  ;;  %1581 = vmatprep.subr.mxu0 %v1326_v38  ;;  %948 = vst [vmem:[#allocation2 + $0x10] sm:$0xf0] %v928_v45  ;;  %v6867_v22 = vpop.permute.xlu0 %915  ;;  %v1185_v35 = vld [vmem:[#allocation8 + $0x280] sm:$0xff]  ;;  %v1176_v37 = vld [vmem:[#allocation8 + $0x238] sm:$0xff]  ;;  %v1311_v38 = vld [vmem:[#allocation8 + $0x670] sm:$0xff] }
 0x22a   :  { %1652 = vmatprep.subr.mxu1 %v1328_v40  ;;  %1582 = vmatpush2.msra.mxu0 %v1325_v41  ;;  %v929_v48 = vsel %vm9059_vm2, %v914_v42, %v6867_v22  ;;  %v1167_v39 = vld [vmem:[#allocation8 + $0x1f0] sm:$0xff]  ;;  %v1302_v40 = vld [vmem:[#allocation8 + $0x628] sm:$0xff]  ;;  %v1293_v42 = vld [vmem:[#allocation8 + $0x5e0] sm:$0xff] }
 0x22b   :  { %1653 = vmatpush2.msra.mxu1 %v1327_v26  ;;  %1583 = vmatprep.subr.mxu0 %v1317_v44  ;;  %949 = vst [vmem:[#allocation2 + $0x18] sm:$0xf0] %v929_v48  ;;  %v6871_v58 = vld [vmem:[#allocation2] sm:$0xff]  ;;  %v1158_v41 = vld [vmem:[#allocation8 + $0x1a8] sm:$0xff] }
 0x22c   :  { %1654 = vmatprep.subr.mxu1 %v1319_v46  ;;  %1584 = vmatpush2.msra.mxu0 %v1316_v27  ;;  %v1149_v26 = vld [vmem:[#allocation8 + $0x160] sm:$0xff]  ;;  %v1284_v44 = vld [vmem:[#allocation8 + $0x598] sm:$0xff]  ;;  %v1275_v46 = vld [vmem:[#allocation8 + $0x550] sm:$0xff] }
 0x22d   :  { %1655 = vmatpush2.msra.mxu1 %v1318_v47  ;;  %1585 = vmatprep.subr.mxu0 %v1308_v43  ;;  %v1140_v45 = vld [vmem:[#allocation8 + $0x118] sm:$0xff]  ;;  %v1131_v27 = vld [vmem:[#allocation8 + $0xd0] sm:$0xff]  ;;  %v1266_v47 = vld [vmem:[#allocation8 + $0x508] sm:$0xff] }
 0x22e   :  { %1656 = vmatprep.subr.mxu1 %v1310_v49  ;;  %1586 = vmatpush2.msra.mxu0 %v1307_v50  ;;  %v1122_v43 = vld [vmem:[#allocation8 + $0x88] sm:$0xff]  ;;  %v1257_v48 = vld [vmem:[#allocation8 + $0x4c0] sm:$0xff] }
 0x22f   :  { %1657 = vmatpush2.msra.mxu1 %v1309_v51  ;;  %1587 = vmatprep.subr.mxu0 %v1299_v52  ;;  %v1113_v49 = vld [vmem:[#allocation8 + $0x40] sm:$0xff] }
 0x230   :  { %1658 = vmatprep.subr.mxu1 %v1301_v53  ;;  %1588 = vmatpush2.msra.mxu0 %v1298_v54  ;;  %v6899_v28 = vld [vmem:[#allocation2 + $0x10] sm:$0xff] }
 0x231   :  { %1659 = vmatpush2.msra.mxu1 %v1300_v55  ;;  %1589 = vmatprep.subr.mxu0 %v1290_v56 }
 0x232   :  { %1660 = vmatprep.subr.mxu1 %v1292_v57  ;;  %2327 = vrot.lane.b32.xlu0 %v6871_v58, %s6642_s1  ;;  %v6933_v50 = vld [vmem:[#allocation2 + $0x18] sm:$0xff] }
 0x233   :  { %2259 = vrot.lane.b32.xlu1 %v6871_v58, %s6643_s27  ;;  %1590 = vmatpush2.msra.mxu0 %v1289_v59 }
 0x234   :  { %1661 = vmatpush2.msra.mxu1 %v1291_v61  ;;  %1591 = vmatprep.subr.mxu0 %v1281_v62 }
 0x235   :  { %1662 = vmatprep.subr.mxu1 %v1283_v63  ;;  %1592 = vmatpush2.msra.mxu0 %v1280_v2 }
 0x236   :  { %1663 = vmatpush2.msra.mxu1 %v1282_v3  ;;  %1593 = vmatprep.subr.mxu0 %v1272_v4 }
 0x237   :  { %1664 = vmatprep.subr.mxu1 %v1274_v5  ;;  %2191 = vrot.lane.b32.xlu0 %v6871_v58, %s6644_s28 }
 0x238   :  { %2123 = vrot.lane.b32.xlu1 %v6871_v58, %s6645_s29  ;;  %1594 = vmatpush2.msra.mxu0 %v1271_v6 }
 0x239   :  { %1665 = vmatpush2.msra.mxu1 %v1273_v7  ;;  %1595 = vmatprep.subr.mxu0 %v1263_v60 }
 0x23a   :  { %1666 = vmatprep.subr.mxu1 %v1265_v8  ;;  %1596 = vmatpush2.msra.mxu0 %v1262_v9 }
 0x23b   :  { %1667 = vmatpush2.msra.mxu1 %v1264_v10  ;;  %1597 = vmatprep.subr.mxu0 %v1254_v11 }
 0x23c   :  { %1668 = vmatprep.subr.mxu1 %v1256_v12  ;;  %2055 = vrot.lane.b32.xlu0 %v6871_v58, %s6646_s30 }
 0x23d   :  { %1987 = vrot.lane.b32.xlu1 %v6871_v58, %s6647_s13  ;;  %1598 = vmatpush2.msra.mxu0 %v1253_v13 }
 0x23e   :  { %1669 = vmatpush2.msra.mxu1 %v1255_v14  ;;  %1600 = vmatmul.mubr.f32.vlgmr.msra.gmra.mxu0 %v6855_v1 }
 0x23f   :  { %1671 = vmatmul.mubr.f32.vlgmr.msra.gmra.mxu1 %v6855_v1  ;;  %6465 = vmatprep.subr.mxu0 %v1392_v15 }
 0x240   :  { %6466 = vmatpush3.msra.mxu0 %v1248_v16  ;;  %1741 = vmatprep.mubr.f32.mxu0 %v6852_v0  ;;  %v6895_v0 = vld [vmem:[#allocation2 + $0x8] sm:$0xff] }
 0x241   :  { %6467 = vmatprep.subr.mxu0 %v1383_v17  ;;  %1919 = vrot.lane.b32.xlu0 %v6871_v58, %s6648_s14 }
 0x242   :  { %1851 = vrot.lane.b32.xlu1 %v6871_v58, %s6649_s15  ;;  %6468 = vmatpush3.msra.mxu0 %v1239_v18 }
 0x243   :  { %6469 = vmatprep.subr.mxu0 %v1374_v19  ;;  %3218 = vmatprep.mubr.f32.mxu1 %v6892_v24 }
 0x244   :  { %6470 = vmatpush3.msra.mxu0 %v1230_v20 }
 0x245   :  { %6471 = vmatprep.subr.mxu0 %v1365_v21  ;;  %2329 = vrot.lane.b32.xlu0 %v6895_v0, %s6642_s1 }
 0x246   :  { %2331 = vrot.lane.b32.xlu1 %v6899_v28, %s6642_s1  ;;  %6472 = vmatpush3.msra.mxu0 %v1221_v23 }
 0x247   :  { %6473 = vmatprep.subr.mxu0 %v1356_v25 }
 0x248   :  { %6474 = vmatpush3.msra.mxu0 %v1212_v29 }
 0x249   :  { %6475 = vmatprep.subr.mxu0 %v1347_v30  ;;  %2263 = vrot.lane.b32.xlu0 %v6899_v28, %s6643_s27 }
 0x24a   :  { %2261 = vrot.lane.b32.xlu1 %v6895_v0, %s6643_s27  ;;  %6476 = vmatpush3.msra.mxu0 %v1203_v31 }
 0x24b   :  { %6477 = vmatprep.subr.mxu0 %v1338_v32 }
 0x24c   :  { %6478 = vmatpush3.msra.mxu0 %v1194_v33 }
 0x24d   :  { %6479 = vmatprep.subr.mxu0 %v1329_v34  ;;  %2193 = vrot.lane.b32.xlu0 %v6895_v0, %s6644_s28 }
 0x24e   :  { %2195 = vrot.lane.b32.xlu1 %v6899_v28, %s6644_s28  ;;  %6480 = vmatpush3.msra.mxu0 %v1185_v35 }
 0x24f   :  { %6481 = vmatprep.subr.mxu0 %v1320_v36 }
 0x250   :  { %6482 = vmatpush3.msra.mxu0 %v1176_v37 }
 0x251   :  { %6483 = vmatprep.subr.mxu0 %v1311_v38  ;;  %2127 = vrot.lane.b32.xlu0 %v6899_v28, %s6645_s29 }
 0x252   :  { %2125 = vrot.lane.b32.xlu1 %v6895_v0, %s6645_s29  ;;  %6484 = vmatpush3.msra.mxu0 %v1167_v39 }
 0x253   :  { %6485 = vmatprep.subr.mxu0 %v1302_v40 }
 0x254   :  { %6486 = vmatpush3.msra.mxu0 %v1158_v41 }
 0x255   :  { %6487 = vmatprep.subr.mxu0 %v1293_v42  ;;  %2057 = vrot.lane.b32.xlu0 %v6895_v0, %s6646_s30 }
 0x256   :  { %2059 = vrot.lane.b32.xlu1 %v6899_v28, %s6646_s30  ;;  %6488 = vmatpush3.msra.mxu0 %v1149_v26 }
 0x257   :  { %6489 = vmatprep.subr.mxu0 %v1284_v44 }
 0x258   :  { %6490 = vmatpush3.msra.mxu0 %v1140_v45 }
 0x259   :  { %6491 = vmatprep.subr.mxu0 %v1275_v46  ;;  %1991 = vrot.lane.b32.xlu0 %v6899_v28, %s6647_s13 }
 0x25a   :  { %1989 = vrot.lane.b32.xlu1 %v6895_v0, %s6647_s13  ;;  %6492 = vmatpush3.msra.mxu0 %v1131_v27 }
 0x25b   :  { %6493 = vmatprep.subr.mxu0 %v1266_v47 }
 0x25c   :  { %6494 = vmatpush3.msra.mxu0 %v1122_v43 }
 0x25d   :  { %6495 = vmatprep.subr.mxu0 %v1257_v48  ;;  %1921 = vrot.lane.b32.xlu0 %v6895_v0, %s6648_s14 }
 0x25e   :  { %1923 = vrot.lane.b32.xlu1 %v6899_v28, %s6648_s14  ;;  %6496 = vmatpush3.msra.mxu0 %v1113_v49  ;;  %v7106_v49 = vld [vmem:[%s9051_s5] sm:$0xf] }
 0x25f   :  { %1742 = vmatmul.mubr.f32.vlgmr.msra.gmra.mxu0 %v6855_v1 }
 0x260   :  { %3289 = vmatprep.mubr.f32.mxu0 %v6892_v24 }
 0x261   :  { %1855 = vrot.lane.b32.xlu0 %v6899_v28, %s6649_s15 }
 0x262   :  { %1853 = vrot.lane.b32.xlu1 %v6895_v0, %s6649_s15 }
 0x264   :  { %v918_v51 = vpop.permute.xlu1 %917 }
 0x265   :  { %2265 = vrot.lane.b32.xlu0 %v6933_v50, %s6643_s27  ;;  %v930_v52 = vsel %vm9059_vm2, %v6867_v22, %v918_v51 }
 0x266   :  { %2333 = vrot.lane.b32.xlu1 %v6933_v50, %s6642_s1  ;;  %950 = vst [vmem:[#allocation2 + $0x20] sm:$0xf0] %v930_v52  ;;  %v920_v1 = vpop.permute.xlu0 %919 }
 0x267   :  { %v931_v53 = vsel %vm9059_vm2, %v918_v51, %v920_v1 }
 0x268   :  { %951 = vst [vmem:[#allocation2 + $0x28] sm:$0xf0] %v931_v53  ;;  %v922_v54 = vpop.permute.xlu1 %921 }
 0x269   :  { %2197 = vrot.lane.b32.xlu0 %v6933_v50, %s6644_s28  ;;  %v932_v55 = vsel %vm9059_vm2, %v920_v1, %v922_v54 }
 0x26a   :  { %952 = vst [vmem:[#allocation2 + $0x30] sm:$0xf0] %v932_v55  ;;  %v924_v56 = vpop.permute.xlu0 %923 }
 0x26b   :  { %v933_v57 = vsel %vm9059_vm2, %v922_v54, %v924_v56 }
 0x26c   :  { %953 = vst [vmem:[#allocation2 + $0x38] sm:$0xf0] %v933_v57 }
 0x26d   :  { %2129 = vrot.lane.b32.xlu0 %v6933_v50, %s6645_s29  ;;  %v6948_v22 = vld [vmem:[#allocation2 + $0x20] sm:$0xff] }
 0x26e   :  { %2267 = vrot.lane.b32.xlu1 %v6948_v22, %s6643_s27 }
 0x26f   :  { %v6972_v59 = vld [vmem:[#allocation2 + $0x28] sm:$0xff] }
 0x271   :  { %2061 = vrot.lane.b32.xlu0 %v6933_v50, %s6646_s30  ;;  %v6980_v61 = vld [vmem:[#allocation2 + $0x30] sm:$0xff] }
 0x272   :  { %2199 = vrot.lane.b32.xlu1 %v6948_v22, %s6644_s28 }
 0x273   :  { %v7009_v2 = vld [vmem:[#allocation2 + $0x38] sm:$0xff] }
 0x275   :  { %1993 = vrot.lane.b32.xlu0 %v6933_v50, %s6647_s13 }
 0x276   :  { %2131 = vrot.lane.b32.xlu1 %v6948_v22, %s6645_s29 }
 0x279   :  { %1925 = vrot.lane.b32.xlu0 %v6933_v50, %s6648_s14 }
 0x27a   :  { %2063 = vrot.lane.b32.xlu1 %v6948_v22, %s6646_s30 }
 0x27d   :  { %1857 = vrot.lane.b32.xlu0 %v6933_v50, %s6649_s15 }
 0x27e   :  { %1995 = vrot.lane.b32.xlu1 %v6948_v22, %s6647_s13 }
 0x281   :  { %2335 = vrot.lane.b32.xlu0 %v6948_v22, %s6642_s1 }
 0x282   :  { %1927 = vrot.lane.b32.xlu1 %v6948_v22, %s6648_s14 }
 0x285   :  { %2337 = vrot.lane.b32.xlu0 %v6972_v59, %s6642_s1 }
 0x286   :  { %1859 = vrot.lane.b32.xlu1 %v6948_v22, %s6649_s15 }
 0x289   :  { %2269 = vrot.lane.b32.xlu0 %v6972_v59, %s6643_s27 }
 0x28a   :  { %2339 = vrot.lane.b32.xlu1 %v6980_v61, %s6642_s1 }
 0x28c   :  { %v926_v62 = vpop.permute.xlu1 %925 }
 0x28d   :  { %2201 = vrot.lane.b32.xlu0 %v6972_v59, %s6644_s28  ;;  %v934_v63 = vsel %vm9059_vm2, %v924_v56, %v926_v62  ;;  %956 = vst.msk [vmem:[#allocation2 + $0x48] sm:$0xf0] %vm955_vm9, %v926_v62  ;;  %vm9067_vm9 = vcmask 900096   ;;  %vm9063_vm2 = vcmask 146432  }
 0x28e   :  { %954 = vst [vmem:[#allocation2 + $0x40] sm:$0xf0] %v934_v63  ;;  %2271 = vrot.lane.b32.xlu1 %v6980_v61, %s6643_s27 }
 0x291   :  { %2133 = vrot.lane.b32.xlu0 %v6972_v59, %s6645_s29 }
 0x292   :  { %2203 = vrot.lane.b32.xlu1 %v6980_v61, %s6644_s28 }
 0x294   :  { %v2316_v10 = vld [vmem:[#allocation2 + $0x48] sm:$0xff] }
 0x295   :  { %2065 = vrot.lane.b32.xlu0 %v6972_v59, %s6646_s30  ;;  %v7070_v36 = vld [vmem:[#allocation2 + $0x40] sm:$0xff] }
 0x296   :  { %2135 = vrot.lane.b32.xlu1 %v6980_v61, %s6645_s29 }
 0x299   :  { %1997 = vrot.lane.b32.xlu0 %v6972_v59, %s6647_s13 }
 0x29a   :  { %2067 = vrot.lane.b32.xlu1 %v6980_v61, %s6646_s30 }
 0x29d   :  { %1929 = vrot.lane.b32.xlu0 %v6972_v59, %s6648_s14 }
 0x29e   :  { %1999 = vrot.lane.b32.xlu1 %v6980_v61, %s6647_s13 }
 0x2a1   :  { %1861 = vrot.lane.b32.xlu0 %v6972_v59, %s6649_s15 }
 0x2a2   :  { %1931 = vrot.lane.b32.xlu1 %v6980_v61, %s6648_s14 }
 0x2a4   :  { %v2328_v3 = vpop.permute.xlu0 %2327 }
 0x2a5   :  { %2341 = vrot.lane.b32.xlu0 %v7009_v2, %s6642_s1  ;;  %v2260_v4 = vpop.permute.xlu1 %2259 }
 0x2a6   :  { %1863 = vrot.lane.b32.xlu1 %v6980_v61, %s6649_s15 }
 0x2a9   :  { %2273 = vrot.lane.b32.xlu0 %v7009_v2, %s6643_s27  ;;  %v2192_v5 = vpop.permute.xlu0 %2191 }
 0x2aa   :  { %v2124_v6 = vpop.permute.xlu1 %2123  ;;  %2137 = vrot.lane.b32.xlu1 %v7009_v2, %s6645_s29 }
 0x2ad   :  { %2205 = vrot.lane.b32.xlu0 %v7009_v2, %s6644_s28 }
 0x2ae   :  { %v2056_v7 = vpop.permute.xlu0 %2055  ;;  %2001 = vrot.lane.b32.xlu1 %v7009_v2, %s6647_s13 }
 0x2af   :  { %v7023_v60 = vpop.permute.xlu1 %1987 }
 0x2b1   :  { %2069 = vrot.lane.b32.xlu0 %v7009_v2, %s6646_s30 }
 0x2b2   :  { %1865 = vrot.lane.b32.xlu1 %v7009_v2, %s6649_s15 }
 0x2b3   :  { %v7029_v8 = vpop.permute.xlu0 %1919 }
 0x2b4   :  { %v7031_v9 = vpop.permute.xlu1 %1851 }
 0x2b5   :  { %1933 = vrot.lane.b32.xlu0 %v7009_v2, %s6648_s14 }
 0x2b6   :  { %2277 = vrot.lane.b32.xlu1 %v2316_v10, %s6643_s27 }
 0x2b7   :  { %v2330_v11 = vpop.permute.xlu0 %2329 }
 0x2b8   :  { %v7036_v12 = vpop.permute.xlu1 %2331  ;;  %v2348_v13 = vsel %vm2347_vm10, %v2328_v3, %v2330_v11 }
 0x2b9   :  { %2345 = vrot.lane.b32.xlu0 %v2316_v10, %s6642_s1  ;;  %v2349_v14 = vsel %vm2347_vm10, %v2330_v11, %v7036_v12 }
 0x2ba   :  { %3168 = vmatprep.subr.mxu1 %v2349_v14  ;;  %2141 = vrot.lane.b32.xlu1 %v2316_v10, %s6645_s29  ;;  %v1459_v27 = vpop.f32.mrf.mxu0  ;;  %v1530_v51 = vpop.f32.mrf.mxu1 }
 0x2bb   :  { %3169 = vmatpush1.msra.mxu1 %v2348_v13  ;;  %v7043_v15 = vpop.permute.xlu0 %2263  ;;  %v1756_v1 = vrot.slane %v1459_v27, 4 }
 0x2bc   :  { %v2262_v16 = vpop.permute.xlu1 %2261  ;;  %v1461_v52 = vpop.f32.mrf.mxu0 }
 0x2bd   :  { %2209 = vrot.lane.b32.xlu0 %v2316_v10, %s6644_s28  ;;  %v2281_v17 = vsel %vm2279_vm11, %v2262_v16, %v7043_v15  ;;  %v2280_v18 = vsel %vm2279_vm11, %v2260_v4, %v2262_v16  ;;  %v1757_v54 = vrot.slane %v1461_v52, 4 }
 0x2be   :  { %3170 = vmatprep.subr.mxu1 %v2281_v17  ;;  %2005 = vrot.lane.b32.xlu1 %v2316_v10, %s6647_s13 }
 0x2bf   :  { %3171 = vmatpush1.msra.mxu1 %v2280_v18  ;;  %v2194_v19 = vpop.permute.xlu0 %2193 }
 0x2c0   :  { %v7050_v20 = vpop.permute.xlu1 %2195  ;;  %v2212_v21 = vsel %vm2211_vm12, %v2192_v5, %v2194_v19 }
 0x2c1   :  { %2073 = vrot.lane.b32.xlu0 %v2316_v10, %s6646_s30  ;;  %v2213_v23 = vsel %vm2211_vm12, %v2194_v19, %v7050_v20 }
 0x2c2   :  { %3172 = vmatprep.subr.mxu1 %v2213_v23  ;;  %2463 = vrot.lane.b32.xlu1 %v2316_v10, %s6650_s16 }
 0x2c3   :  { %3173 = vmatpush1.msra.mxu1 %v2212_v21  ;;  %v7057_v25 = vpop.permute.xlu0 %2127 }
 0x2c4   :  { %v2126_v29 = vpop.permute.xlu1 %2125 }
 0x2c5   :  { %2531 = vrot.lane.b32.xlu0 %v2316_v10, %s6651_s17  ;;  %v2145_v30 = vsel %vm9060_vm13, %v2126_v29, %v7057_v25  ;;  %v2144_v31 = vsel %vm9060_vm13, %v2124_v6, %v2126_v29 }
 0x2c6   :  { %3174 = vmatprep.subr.mxu1 %v2145_v30  ;;  %1869 = vrot.lane.b32.xlu1 %v2316_v10, %s6649_s15 }
 0x2c7   :  { %3175 = vmatpush1.msra.mxu1 %v2144_v31  ;;  %v2058_v32 = vpop.permute.xlu0 %2057 }
 0x2c8   :  { %v7064_v33 = vpop.permute.xlu1 %2059  ;;  %v2076_v34 = vsel %vm2075_vm14, %v2056_v7, %v2058_v32 }
 0x2c9   :  { %1937 = vrot.lane.b32.xlu0 %v2316_v10, %s6648_s14  ;;  %v2077_v35 = vsel %vm2075_vm14, %v2058_v32, %v7064_v33 }
 0x2ca   :  { %3176 = vmatprep.subr.mxu1 %v2077_v35  ;;  %2343 = vrot.lane.b32.xlu1 %v7070_v36, %s6642_s1 }
 0x2cb   :  { %3177 = vmatpush1.msra.mxu1 %v2076_v34  ;;  %v7074_v37 = vpop.permute.xlu0 %1991 }
 0x2cc   :  { %v1990_v38 = vpop.permute.xlu1 %1989 }
 0x2cd   :  { %2395 = vrot.lane.b32.xlu0 %v2316_v10, %s6652_s4  ;;  %v2009_v39 = vsel %vm9061_vm15, %v1990_v38, %v7074_v37  ;;  %v2008_v40 = vsel %vm9061_vm15, %v7023_v60, %v1990_v38 }
 0x2ce   :  { %3178 = vmatprep.subr.mxu1 %v2009_v39  ;;  %2275 = vrot.lane.b32.xlu1 %v7070_v36, %s6643_s27 }
 0x2cf   :  { %3179 = vmatpush1.msra.mxu1 %v2008_v40  ;;  %v1922_v41 = vpop.permute.xlu0 %1921 }
 0x2d0   :  { %v7083_v42 = vpop.permute.xlu1 %1923  ;;  %v1940_v26 = vsel %vm1939_vm0, %v7029_v8, %v1922_v41 }
 0x2d1   :  { %2139 = vrot.lane.b32.xlu0 %v7070_v36, %s6645_s29  ;;  %v1941_v44 = vsel %vm1939_vm0, %v1922_v41, %v7083_v42 }
 0x2d2   :  { %3180 = vmatprep.subr.mxu1 %v1941_v44  ;;  %2207 = vrot.lane.b32.xlu1 %v7070_v36, %s6644_s28 }
 0x2d3   :  { %3181 = vmatpush1.msra.mxu1 %v1940_v26  ;;  %v7093_v45 = vpop.permute.xlu0 %1855 }
 0x2d4   :  { %v1854_v46 = vpop.permute.xlu1 %1853 }
 0x2d5   :  { %2003 = vrot.lane.b32.xlu0 %v7070_v36, %s6647_s13  ;;  %v1873_v47 = vsel %vm1871_vm1, %v1854_v46, %v7093_v45  ;;  %v1872_v43 = vsel %vm1871_vm1, %v7031_v9, %v1854_v46 }
 0x2d6   :  { %3182 = vmatprep.subr.mxu1 %v1873_v47  ;;  %2071 = vrot.lane.b32.xlu1 %v7070_v36, %s6646_s30 }
 0x2d7   :  { %3183 = vmatpush1.msra.mxu1 %v1872_v43  ;;  %v2266_v48 = vpop.permute.xlu0 %2265 }
 0x2d8   :  { %3184 = vmatprep.subr.mxu1 %v6895_v0  ;;  %v2334_v55 = vpop.permute.xlu1 %2333  ;;  %v1532_v0 = vpop.f32.mrf.mxu1  ;;  %v2282_v17 = vsel %vm2279_vm11, %v7043_v15, %v2266_v48 }
 0x2d9   :  { %3185 = vmatpush1.msra.mxu1 %v6871_v58  ;;  %1867 = vrot.lane.b32.xlu0 %v7070_v36, %s6649_s15  ;;  %v1758_v58 = vrot.slane %v1530_v51, 4  ;;  %v1759_v57 = vrot.slane %v1532_v0, 4  ;;  %v2350_v13 = vsel %vm2347_vm10, %v7036_v12, %v2334_v55 }
 0x2da   :  { %1935 = vrot.lane.b32.xlu1 %v7070_v36, %s6648_s14  ;;  %6389 = vmatmul.mubr.msk.f32.vlgmr.msra.gmra.mxu1 %vm3150_vm3, %v7106_v49 }
 0x2db   :  { %v2198_v53 = vpop.permute.xlu0 %2197  ;;  %3360 = vmatprep.mubr.f32.mxu1 %v6892_v24 }
 0x2dc   :  { %v2214_v21 = vsel %vm2211_vm12, %v7050_v20, %v2198_v53 }
 0x2dd   :  { %1765 = vrot.lane.b32.xlu0 %v1756_v1, %s6641_s18 }
 0x2de   :  { %1767 = vrot.lane.b32.xlu1 %v1757_v54, %s6641_s18 }
 0x2df   :  { %v2130_v56 = vpop.permute.xlu0 %2129 }
 0x2e0   :  { %v7119_v62 = vpop.permute.xlu1 %2267  ;;  %v2146_v29 = vsel %vm9060_vm13, %v7057_v25, %v2130_v56 }
 0x2e1   :  { %1769 = vrot.lane.b32.xlu0 %v1758_v58, %s6641_s18  ;;  %v2283_v14 = vsel %vm2279_vm11, %v2266_v48, %v7119_v62 }
 0x2e2   :  { %1771 = vrot.lane.b32.xlu1 %v1759_v57, %s6641_s18 }
 0x2e3   :  { %v2062_v63 = vpop.permute.xlu0 %2061 }
 0x2e4   :  { %v7123_v3 = vpop.permute.xlu1 %2199  ;;  %v2078_v31 = vsel %vm2075_vm14, %v7064_v33, %v2062_v63 }
 0x2e5   :  { %v2215_v18 = vsel %vm2211_vm12, %v2198_v53, %v7123_v3 }
 0x2e7   :  { %v1994_v4 = vpop.permute.xlu0 %1993 }
 0x2e8   :  { %v7125_v5 = vpop.permute.xlu1 %2131  ;;  %v2010_v40 = vsel %vm9061_vm15, %v7074_v37, %v1994_v4 }
 0x2e9   :  { %v2147_v12 = vsel %vm9060_vm13, %v2130_v56, %v7125_v5 }
 0x2eb   :  { %v1926_v6 = vpop.permute.xlu0 %1925 }
 0x2ec   :  { %v7127_v7 = vpop.permute.xlu1 %2063  ;;  %v1942_v46 = vsel %vm1939_vm0, %v7083_v42, %v1926_v6 }
 0x2ed   :  { %v2079_v15 = vsel %vm2075_vm14, %v2062_v63, %v7127_v7 }
 0x2ef   :  { %v1858_v60 = vpop.permute.xlu0 %1857 }
 0x2f0   :  { %v7129_v8 = vpop.permute.xlu1 %1995  ;;  %v1874_v51 = vsel %vm1871_vm1, %v7093_v45, %v1858_v60 }
 0x2f1   :  { %v2011_v34 = vsel %vm9061_vm15, %v1994_v4, %v7129_v8 }
 0x2f3   :  { %v2336_v9 = vpop.permute.xlu0 %2335 }
 0x2f4   :  { %v2351_v10 = vsel %vm2347_vm10, %v2334_v55, %v2336_v9  ;;  %v7132_v11 = vpop.permute.xlu1 %1927 }
 0x2f5   :  { %3239 = vmatprep.subr.mxu0 %v2351_v10  ;;  %v1943_v41 = vsel %vm1939_vm0, %v1926_v6, %v7132_v11 }
 0x2f6   :  { %3240 = vmatpush1.msra.mxu0 %v2350_v13 }
 0x2f7   :  { %v2338_v16 = vpop.permute.xlu0 %2337  ;;  %3241 = vmatprep.subr.mxu0 %v2283_v14 }
 0x2f8   :  { %3242 = vmatpush1.msra.mxu0 %v2282_v17  ;;  %v7142_v19 = vpop.permute.xlu1 %1859  ;;  %v2352_v25 = vsel %vm2347_vm10, %v2336_v9, %v2338_v16 }
 0x2f9   :  { %3243 = vmatprep.subr.mxu0 %v2215_v18  ;;  %v1875_v37 = vsel %vm1871_vm1, %v1858_v60, %v7142_v19 }
 0x2fa   :  { %3244 = vmatpush1.msra.mxu0 %v2214_v21 }
 0x2fb   :  { %v2270_v23 = vpop.permute.xlu0 %2269  ;;  %3245 = vmatprep.subr.mxu0 %v2147_v12 }
 0x2fc   :  { %3246 = vmatpush1.msra.mxu0 %v2146_v29  ;;  %v7152_v30 = vpop.permute.xlu1 %2339  ;;  %v2284_v42 = vsel %vm2279_vm11, %v7119_v62, %v2270_v23 }
 0x2fd   :  { %3247 = vmatprep.subr.mxu0 %v2079_v15  ;;  %v2353_v20 = vsel %vm2347_vm10, %v2338_v16, %v7152_v30 }
 0x2fe   :  { %3248 = vmatpush1.msra.mxu0 %v2078_v31  ;;  %v1601_v32 = vpop.f32.mrf.mxu0  ;;  %3310 = vmatprep.subr.mxu1 %v2353_v20 }
 0x2ff   :  { %v1760_v35 = vrot.slane %v1601_v32, 4  ;;  %v1672_v38 = vpop.f32.mrf.mxu1  ;;  %v2202_v39 = vpop.permute.xlu0 %2201  ;;  %3249 = vmatprep.subr.mxu0 %v2011_v34  ;;  %3311 = vmatpush1.msra.mxu1 %v2352_v25 }
 0x300   :  { %3250 = vmatpush1.msra.mxu0 %v2010_v40  ;;  %v1603_v33 = vpop.f32.mrf.mxu0  ;;  %v7165_v26 = vpop.permute.xlu1 %2271  ;;  %v1762_v43 = vrot.slane %v1672_v38, 4  ;;  %v2216_v45 = vsel %vm2211_vm12, %v7123_v3, %v2202_v39 }
 0x301   :  { %v1761_v44 = vrot.slane %v1603_v33, 4  ;;  %3251 = vmatprep.subr.mxu0 %v1943_v41  ;;  %1773 = vrot.lane.b32.xlu0 %v1760_v35, %s6641_s18  ;;  %v2285_v27 = vsel %vm2279_vm11, %v2270_v23, %v7165_v26  ;;  %v1674_v47 = vpop.f32.mrf.mxu1 }
 0x302   :  { %3252 = vmatpush1.msra.mxu0 %v1942_v46  ;;  %3312 = vmatprep.subr.mxu1 %v2285_v27  ;;  %v1763_v1 = vrot.slane %v1674_v47, 4 }
 0x303   :  { %v2134_v48 = vpop.permute.xlu0 %2133  ;;  %3253 = vmatprep.subr.mxu0 %v1875_v37  ;;  %1775 = vrot.lane.b32.xlu1 %v1761_v44, %s6641_s18 }
 0x304   :  { %3254 = vmatpush1.msra.mxu0 %v1874_v51  ;;  %3313 = vmatpush1.msra.mxu1 %v2284_v42  ;;  %v7179_v52 = vpop.permute.xlu1 %2203 }
 0x305   :  { %3255 = vmatprep.subr.mxu0 %v6933_v50  ;;  %1777 = vrot.lane.b32.xlu0 %v1762_v43, %s6641_s18  ;;  %v2217_v53 = vsel %vm2211_vm12, %v2202_v39, %v7179_v52 }
 0x306   :  { %3256 = vmatpush1.msra.mxu0 %v6899_v28  ;;  %3314 = vmatprep.subr.mxu1 %v2217_v53  ;;  %v2148_v28 = vsel %vm9060_vm13, %v7125_v5, %v2134_v48 }
 0x307   :  { %v2066_v54 = vpop.permute.xlu0 %2065  ;;  %1779 = vrot.lane.b32.xlu1 %v1763_v1, %s6641_s18  ;;  %3315 = vmatpush1.msra.mxu1 %v2216_v45 }
 0x308   :  { %v7189_v55 = vpop.permute.xlu1 %2135  ;;  %6390 = vmatmul.mubr.msk.f32.vlgmr.msra.gmra.mxu0 %vm3150_vm3, %v7106_v49  ;;  %v2080_v57 = vsel %vm2075_vm14, %v7127_v7, %v2066_v54 }
 0x309   :  { %v2149_v50 = vsel %vm9060_vm13, %v2134_v48, %v7189_v55  ;;  %3431 = vmatprep.mubr.f32.mxu0 %v6892_v24 }
 0x30a   :  { %3316 = vmatprep.subr.mxu1 %v2149_v50 }
 0x30b   :  { %v1998_v0 = vpop.permute.xlu0 %1997  ;;  %3317 = vmatpush1.msra.mxu1 %v2148_v28 }
 0x30c   :  { %v7198_v58 = vpop.permute.xlu1 %2067  ;;  %v2012_v4 = vsel %vm9061_vm15, %v7129_v8, %v1998_v0 }
 0x30d   :  { %v2081_v56 = vsel %vm2075_vm14, %v2066_v54, %v7198_v58 }
 0x30e   :  { %3318 = vmatprep.subr.mxu1 %v2081_v56 }
 0x30f   :  { %v1930_v62 = vpop.permute.xlu0 %1929  ;;  %3319 = vmatpush1.msra.mxu1 %v2080_v57 }
 0x310   :  { %v7204_v63 = vpop.permute.xlu1 %1999  ;;  %v1944_v7 = vsel %vm1939_vm0, %v7132_v11, %v1930_v62 }
 0x311   :  { %v2013_v3 = vsel %vm9061_vm15, %v1998_v0, %v7204_v63 }
 0x312   :  { %3320 = vmatprep.subr.mxu1 %v2013_v3 }
 0x313   :  { %v1862_v5 = vpop.permute.xlu0 %1861  ;;  %3321 = vmatpush1.msra.mxu1 %v2012_v4 }
 0x314   :  { %v7210_v6 = vpop.permute.xlu1 %1931  ;;  %v1876_v8 = vsel %vm1871_vm1, %v7142_v19, %v1862_v5 }
 0x315   :  { %v1945_v60 = vsel %vm1939_vm0, %v1930_v62, %v7210_v6 }
 0x316   :  { %3322 = vmatprep.subr.mxu1 %v1945_v60 }
 0x317   :  { %v2342_v9 = vpop.permute.xlu0 %2341  ;;  %3323 = vmatpush1.msra.mxu1 %v1944_v7 }
 0x318   :  { %v7216_v10 = vpop.permute.xlu1 %1863  ;;  %v2354_v41 = vsel %vm2347_vm10, %v7152_v30, %v2342_v9 }
 0x319   :  { %v1877_v13 = vsel %vm1871_vm1, %v1862_v5, %v7216_v10 }
 0x31a   :  { %3324 = vmatprep.subr.mxu1 %v1877_v13 }
 0x31b   :  { %v2274_v14 = vpop.permute.xlu0 %2273  ;;  %3325 = vmatpush1.msra.mxu1 %v1876_v8 }
 0x31c   :  { %v2138_v16 = vpop.permute.xlu1 %2137  ;;  %3326 = vmatprep.subr.mxu1 %v6972_v59  ;;  %v2286_v47 = vsel %vm2279_vm11, %v7165_v26, %v2274_v14 }
 0x31d   :  { %3327 = vmatpush1.msra.mxu1 %v6948_v22  ;;  %v2150_v1 = vsel %vm9060_vm13, %v7189_v55, %v2138_v16 }
 0x31e   :  { %6391 = vmatmul.mubr.msk.f32.vlgmr.msra.gmra.mxu1 %vm3150_vm3, %v7106_v49 }
 0x31f   :  { %v6497_v11 = vpop.f32.mrf.mxu0  ;;  %v2206_v17 = vpop.permute.xlu0 %2205  ;;  %3502 = vmatprep.mubr.f32.mxu1 %v6892_v24 }
 0x320   :  { %v2002_v18 = vpop.permute.xlu1 %2001  ;;  %v2218_v48 = vsel %vm2211_vm12, %v7179_v52, %v2206_v17 }
 0x321   :  { %v6498_v21 = vpop.f32.mrf.mxu0  ;;  %v2014_v55 = vsel %vm9061_vm15, %v7204_v63, %v2002_v18 }
 0x322   :  { %v6499_v12 = vadd.f32 %v6498_v21, %v6497_v11 }
 0x323   :  { %v2070_v23 = vpop.permute.xlu0 %2069 }
 0x324   :  { %v1764_v29 = vrot.slane %v6499_v12, 4  ;;  %v1866_v19 = vpop.permute.xlu1 %1865  ;;  %v2082_v52 = vsel %vm2075_vm14, %v7198_v58, %v2070_v23 }
 0x325   :  { %v1878_v62 = vsel %vm1871_vm1, %v7216_v10, %v1866_v19 }
 0x326   :  { %1781 = vrot.lane.b32.xlu1 %v1764_v29, %s6641_s18  ;;  %s6653_s18 = smov 74  }
 0x327   :  { %v1934_v15 = vpop.permute.xlu0 %1933 }
 0x328   :  { %v7228_v31 = vpop.permute.xlu1 %2277  ;;  %v1946_v0 = vsel %vm1939_vm0, %v7210_v6, %v1934_v15 }
 0x32b   :  { %v7230_v59 = vpop.permute.xlu0 %2345 }
 0x32c   :  { %v7232_v22 = vpop.permute.xlu1 %2141 }
 0x32f   :  { %v7234_v20 = vpop.permute.xlu0 %2209 }
 0x330   :  { %v7236_v32 = vpop.permute.xlu1 %2005 }
 0x333   :  { %v7238_v34 = vpop.permute.xlu0 %2073 }
 0x334   :  { %v7240_v25 = vpop.permute.xlu1 %2463 }
 0x337   :  { %v7242_v35 = vpop.permute.xlu0 %2531 }
 0x338   :  { %v7244_v38 = vpop.permute.xlu1 %1869 }
 0x33b   :  { %v7246_v39 = vpop.permute.xlu0 %1937 }
 0x33c   :  { %v7248_v40 = vpop.permute.xlu1 %2343 }
 0x33d   :  { %v2355_v33 = vsel %vm2347_vm10, %v2342_v9, %v7248_v40 }
 0x33e   :  { %3381 = vmatprep.subr.mxu0 %v2355_v33 }
 0x33f   :  { %v7254_v44 = vpop.permute.xlu0 %2395  ;;  %3382 = vmatpush1.msra.mxu0 %v2354_v41 }
 0x340   :  { %v7256_v46 = vpop.permute.xlu1 %2275 }
 0x341   :  { %v2287_v27 = vsel %vm2279_vm11, %v2274_v14, %v7256_v46 }
 0x342   :  { %3383 = vmatprep.subr.mxu0 %v2287_v27 }
 0x343   :  { %v7262_v37 = vpop.permute.xlu0 %2139  ;;  %3384 = vmatpush1.msra.mxu0 %v2286_v47 }
 0x344   :  { %v7264_v43 = vpop.permute.xlu1 %2207  ;;  %v2151_v42 = vsel %vm9060_vm13, %v2138_v16, %v7262_v37 }
 0x345   :  { %v2219_v30 = vsel %vm2211_vm12, %v2206_v17, %v7264_v43 }
 0x346   :  { %3385 = vmatprep.subr.mxu0 %v2219_v30 }
 0x347   :  { %v7270_v51 = vpop.permute.xlu0 %2003  ;;  %3386 = vmatpush1.msra.mxu0 %v2218_v48 }
 0x348   :  { %3387 = vmatprep.subr.mxu0 %v2151_v42  ;;  %v7274_v26 = vpop.permute.xlu1 %2071  ;;  %v2015_v54 = vsel %vm9061_vm15, %v2002_v18, %v7270_v51 }
 0x349   :  { %3388 = vmatpush1.msra.mxu0 %v2150_v1  ;;  %v2083_v53 = vsel %vm2075_vm14, %v2070_v23, %v7274_v26 }
 0x34a   :  { %3389 = vmatprep.subr.mxu0 %v2083_v53 }
 0x34b   :  { %v7282_v45 = vpop.permute.xlu0 %1867  ;;  %3390 = vmatpush1.msra.mxu0 %v2082_v52 }
 0x34c   :  { %3391 = vmatprep.subr.mxu0 %v2015_v54  ;;  %v7286_v50 = vpop.permute.xlu1 %1935  ;;  %v1879_v56 = vsel %vm1871_vm1, %v1866_v19, %v7282_v45 }
 0x34d   :  { %3392 = vmatpush1.msra.mxu0 %v2014_v55  ;;  %v1947_v28 = vsel %vm1939_vm0, %v1934_v15, %v7286_v50  ;;  %v2356_v55 = vsel %vm2347_vm10, %v7248_v40, %v7230_v59 }
 0x34e   :  { %3393 = vmatprep.subr.mxu0 %v1947_v28 }
 0x34f   :  { %v1766_v58 = vpop.permute.xlu0 %1765  ;;  %3394 = vmatpush1.msra.mxu0 %v1946_v0 }
 0x350   :  { %1802 = vst.msk [vmem:[#allocation2 + $0x50] sm:$0xf0] %vm1801_vm4, %v1766_v58  ;;  %3395 = vmatprep.subr.mxu0 %v1879_v56  ;;  %v1768_v57 = vpop.permute.xlu1 %1767  ;;  %v2288_v56 = vsel %vm2279_vm11, %v7256_v46, %v7228_v31  ;;  %vm9066_vm4 = vcmask 908288   ;;  %v2220_v31 = vsel %vm2211_vm12, %v7264_v43, %v7234_v20  ;;  %v2084_v20 = vsel %vm2075_vm14, %v7274_v26, %v7238_v34 }
 0x351   :  { %v1783_v63 = vsel %vm990_vm5, %v1766_v58, %v1768_v57  ;;  %3396 = vmatpush1.msra.mxu0 %v1878_v62 }
 0x352   :  { %1803 = vst [vmem:[#allocation2 + $0x58] sm:$0xf0] %v1783_v63  ;;  %3397 = vmatprep.subr.mxu0 %v7009_v2 }
 0x353   :  { %v1770_v3 = vpop.permute.xlu0 %1769  ;;  %3398 = vmatpush1.msra.mxu0 %v6980_v61 }
 0x354   :  { %v1784_v4 = vsel %vm990_vm5, %v1768_v57, %v1770_v3  ;;  %v1772_v5 = vpop.permute.xlu1 %1771  ;;  %6392 = vmatmul.mubr.msk.f32.vlgmr.msra.gmra.mxu0 %vm3150_vm3, %v7106_v49 }
 0x355   :  { %1804 = vst [vmem:[#allocation2 + $0x60] sm:$0xf0] %v1784_v4  ;;  %v1785_v6 = vsel %vm990_vm5, %v1770_v3, %v1772_v5  ;;  %3573 = vmatprep.mubr.f32.mxu0 %v6892_v24  ;;  %v2152_v3 = vsel %vm9060_vm13, %v7262_v37, %v7232_v22  ;;  %vm9064_vm13 = vcmask 154624  }
 0x356   :  { %1805 = vst [vmem:[#allocation2 + $0x68] sm:$0xf0] %v1785_v6 }
 0x357   :  { %v2919_v60 = vld [vmem:[#allocation2 + $0x50] sm:$0xff] }
 0x358   :  { %2939 = vrot.lane.b32.xlu0 %v2919_v60, %s6653_s18  ;;  %2871 = vrot.lane.b32.xlu1 %v2919_v60, %s6654_s19 }
 0x359   :  { %v2852_v24 = vld [vmem:[#allocation2 + $0x58] sm:$0xff] }
 0x35c   :  { %2803 = vrot.lane.b32.xlu0 %v2919_v60, %s6655_s20  ;;  %2735 = vrot.lane.b32.xlu1 %v2919_v60, %s6656_s21  ;;  %v2921_v8 = vld [vmem:[#allocation2 + $0x60] sm:$0xff] }
 0x35d   :  { %v2922_v2 = vld [vmem:[#allocation2 + $0x68] sm:$0xff] }
 0x360   :  { %2667 = vrot.lane.b32.xlu0 %v2919_v60, %s6657_s22  ;;  %2599 = vrot.lane.b32.xlu1 %v2919_v60, %s6658_s23 }
 0x364   :  { %2465 = vrot.lane.b32.xlu0 %v2919_v60, %s6650_s16  ;;  %2533 = vrot.lane.b32.xlu1 %v2919_v60, %s6651_s17 }
 0x368   :  { %2397 = vrot.lane.b32.xlu1 %v2919_v60, %s6652_s4  ;;  %2873 = vrot.lane.b32.xlu0 %v2852_v24, %s6654_s19 }
 0x36c   :  { %2941 = vrot.lane.b32.xlu1 %v2852_v24, %s6653_s18  ;;  %2737 = vrot.lane.b32.xlu0 %v2852_v24, %s6656_s21 }
 0x370   :  { %2805 = vrot.lane.b32.xlu1 %v2852_v24, %s6655_s20  ;;  %2601 = vrot.lane.b32.xlu0 %v2852_v24, %s6658_s23 }
 0x373   :  { %v1774_v61 = vpop.permute.xlu0 %1773 }
 0x374   :  { %v1786_v7 = vsel %vm990_vm5, %v1772_v5, %v1774_v61  ;;  %2669 = vrot.lane.b32.xlu1 %v2852_v24, %s6657_s22  ;;  %2945 = vrot.lane.b32.xlu0 %v2922_v2, %s6653_s18  ;;  %v2016_v5 = vsel %vm9061_vm15, %v7270_v51, %v7236_v32  ;;  %v1948_v32 = vsel %vm1939_vm0, %v7286_v50, %v7246_v39  ;;  %vm9062_vm15 = vcmask 162816  }
 0x375   :  { %1806 = vst [vmem:[#allocation2 + $0x70] sm:$0xf0] %v1786_v7  ;;  %v1776_v9 = vpop.permute.xlu1 %1775  ;;  %v7496_v7 = vld [vmem:[#allocation4] sm:$0xff] }
 0x376   :  { %v1787_v10 = vsel %vm990_vm5, %v1774_v61, %v1776_v9 }
 0x377   :  { %1807 = vst [vmem:[#allocation2 + $0x78] sm:$0xf0] %v1787_v10  ;;  %v1778_v13 = vpop.permute.xlu0 %1777 }
 0x378   :  { %v1788_v14 = vsel %vm990_vm5, %v1776_v9, %v1778_v13  ;;  %2943 = vrot.lane.b32.xlu1 %v2921_v8, %s6653_s18  ;;  %2875 = vrot.lane.b32.xlu0 %v2921_v8, %s6654_s19 }
 0x379   :  { %1808 = vst [vmem:[#allocation2 + $0x80] sm:$0xf0] %v1788_v14  ;;  %v1780_v16 = vpop.permute.xlu1 %1779 }
 0x37a   :  { %v1789_v11 = vsel %vm990_vm5, %v1778_v13, %v1780_v16 }
 0x37b   :  { %1809 = vst [vmem:[#allocation2 + $0x88] sm:$0xf0] %v1789_v11 }
 0x37c   :  { %2807 = vrot.lane.b32.xlu0 %v2921_v8, %s6655_s20  ;;  %2877 = vrot.lane.b32.xlu1 %v2922_v2, %s6654_s19  ;;  %v2516_v21 = vld [vmem:[#allocation2 + $0x70] sm:$0xff] }
 0x37e   :  { %v2924_v12 = vld [vmem:[#allocation2 + $0x78] sm:$0xff] }
 0x380   :  { %2739 = vrot.lane.b32.xlu0 %v2921_v8, %s6656_s21  ;;  %2809 = vrot.lane.b32.xlu1 %v2922_v2, %s6655_s20  ;;  %v2925_v23 = vld [vmem:[#allocation2 + $0x80] sm:$0xff] }
 0x382   :  { %v7363_v29 = vld [vmem:[#allocation2 + $0x88] sm:$0xff] }
 0x384   :  { %2671 = vrot.lane.b32.xlu0 %v2921_v8, %s6657_s22  ;;  %2741 = vrot.lane.b32.xlu1 %v2922_v2, %s6656_s21 }
 0x388   :  { %2603 = vrot.lane.b32.xlu0 %v2921_v8, %s6658_s23  ;;  %2673 = vrot.lane.b32.xlu1 %v2922_v2, %s6657_s22 }
 0x38c   :  { %2535 = vrot.lane.b32.xlu0 %v2852_v24, %s6651_s17  ;;  %2605 = vrot.lane.b32.xlu1 %v2922_v2, %s6658_s23 }
 0x390   :  { %2467 = vrot.lane.b32.xlu0 %v2852_v24, %s6650_s16  ;;  %2537 = vrot.lane.b32.xlu1 %v2921_v8, %s6651_s17 }
 0x394   :  { %2399 = vrot.lane.b32.xlu0 %v2852_v24, %s6652_s4  ;;  %2469 = vrot.lane.b32.xlu1 %v2921_v8, %s6650_s16  ;;  %v1880_v24 = vsel %vm1871_vm1, %v7282_v45, %v7244_v38 }
 0x398   :  { %2401 = vrot.lane.b32.xlu1 %v2921_v8, %s6652_s4  ;;  %2539 = vrot.lane.b32.xlu0 %v2922_v2, %s6651_s17  ;;  %v1782_v17 = vpop.permute.xlu1 %1781 }
 0x399   :  { %v1790_v18 = vsel %vm990_vm5, %v1780_v16, %v1782_v17  ;;  %1812 = vst.msk [vmem:[#allocation2 + $0x98] sm:$0xf0] %vm1811_vm6, %v1782_v17  ;;  %vm2959_vm5 = vcmask 605184   ;;  %vm9065_vm6 = vcmask 916480  }
 0x39a   :  { %1810 = vst [vmem:[#allocation2 + $0x90] sm:$0xf0] %v1790_v18 }
 0x39c   :  { %2541 = vrot.lane.b32.xlu1 %v2516_v21, %s6651_s17  ;;  %2471 = vrot.lane.b32.xlu0 %v2922_v2, %s6650_s16 }
 0x3a0   :  { %2473 = vrot.lane.b32.xlu1 %v2516_v21, %s6650_s16  ;;  %2403 = vrot.lane.b32.xlu0 %v2922_v2, %s6652_s4  ;;  %v7413_v57 = vld [vmem:[#allocation2 + $0x98] sm:$0xff] }
 0x3a1   :  { %v7419_v59 = vld [vmem:[#allocation2 + $0x90] sm:$0xff] }
 0x3a4   :  { %2405 = vrot.lane.b32.xlu1 %v2516_v21, %s6652_s4  ;;  %2947 = vrot.lane.b32.xlu0 %v2516_v21, %s6653_s18 }
 0x3a8   :  { %2879 = vrot.lane.b32.xlu0 %v2516_v21, %s6654_s19  ;;  %2949 = vrot.lane.b32.xlu1 %v2924_v12, %s6653_s18 }
 0x3ac   :  { %2811 = vrot.lane.b32.xlu0 %v2516_v21, %s6655_s20  ;;  %2881 = vrot.lane.b32.xlu1 %v2924_v12, %s6654_s19 }
 0x3b0   :  { %2743 = vrot.lane.b32.xlu0 %v2516_v21, %s6656_s21  ;;  %2813 = vrot.lane.b32.xlu1 %v2924_v12, %s6655_s20 }
 0x3b4   :  { %2675 = vrot.lane.b32.xlu0 %v2516_v21, %s6657_s22  ;;  %2745 = vrot.lane.b32.xlu1 %v2924_v12, %s6656_s21 }
 0x3b8   :  { %2607 = vrot.lane.b32.xlu0 %v2516_v21, %s6658_s23  ;;  %2677 = vrot.lane.b32.xlu1 %v2924_v12, %s6657_s22 }
 0x3bc   :  { %2951 = vrot.lane.b32.xlu0 %v2925_v23, %s6653_s18  ;;  %2609 = vrot.lane.b32.xlu1 %v2924_v12, %s6658_s23 }
 0x3c0   :  { %2883 = vrot.lane.b32.xlu0 %v2925_v23, %s6654_s19  ;;  %2953 = vrot.lane.b32.xlu1 %v7363_v29, %s6653_s18 }
 0x3c4   :  { %2815 = vrot.lane.b32.xlu0 %v2925_v23, %s6655_s20  ;;  %2885 = vrot.lane.b32.xlu1 %v7363_v29, %s6654_s19 }
 0x3c8   :  { %2747 = vrot.lane.b32.xlu0 %v2925_v23, %s6656_s21  ;;  %2817 = vrot.lane.b32.xlu1 %v7363_v29, %s6655_s20 }
 0x3ca   :  { %v2940_v19 = vpop.permute.xlu0 %2939  ;;  %v2872_v15 = vpop.permute.xlu1 %2871 }
 0x3cc   :  { %2679 = vrot.lane.b32.xlu0 %v2925_v23, %s6657_s22  ;;  %2749 = vrot.lane.b32.xlu1 %v7363_v29, %s6656_s21 }
 0x3ce   :  { %v2804_v33 = vpop.permute.xlu0 %2803  ;;  %v2736_v41 = vpop.permute.xlu1 %2735 }
 0x3d0   :  { %2611 = vrot.lane.b32.xlu0 %v2925_v23, %s6658_s23  ;;  %2681 = vrot.lane.b32.xlu1 %v7363_v29, %s6657_s22 }
 0x3d2   :  { %v2668_v27 = vpop.permute.xlu0 %2667  ;;  %v2600_v47 = vpop.permute.xlu1 %2599 }
 0x3d4   :  { %2543 = vrot.lane.b32.xlu0 %v2924_v12, %s6651_s17  ;;  %2613 = vrot.lane.b32.xlu1 %v7363_v29, %s6658_s23 }
 0x3d6   :  { %v7383_v30 = vpop.permute.xlu0 %2465  ;;  %v7385_v48 = vpop.permute.xlu1 %2533 }
 0x3d7   :  { %v2552_v34 = vsel %vm9063_vm2, %v7242_v35, %v7385_v48  ;;  %v2484_v35 = vsel %vm9064_vm13, %v7240_v25, %v7383_v30 }
 0x3d8   :  { %2475 = vrot.lane.b32.xlu0 %v2924_v12, %s6650_s16  ;;  %2545 = vrot.lane.b32.xlu1 %v2925_v23, %s6651_s17 }
 0x3da   :  { %v7389_v42 = vpop.permute.xlu0 %2873  ;;  %v7391_v1 = vpop.permute.xlu1 %2397 }
 0x3db   :  { %v2892_v58 = vsel %vm2891_vm7, %v2872_v15, %v7389_v42  ;;  %v2416_v39 = vsel %vm9062_vm15, %v7254_v44, %v7391_v1 }
 0x3dc   :  { %2407 = vrot.lane.b32.xlu0 %v2924_v12, %s6652_s4  ;;  %2477 = vrot.lane.b32.xlu1 %v2925_v23, %s6650_s16 }
 0x3de   :  { %v7395_v53 = vpop.permute.xlu0 %2737  ;;  %v2942_v52 = vpop.permute.xlu1 %2941 }
 0x3df   :  { %v2960_v54 = vsel %vm2959_vm5, %v2940_v19, %v2942_v52  ;;  %v2756_v63 = vsel %vm9067_vm9, %v2736_v41, %v7395_v53 }
 0x3e0   :  { %2409 = vrot.lane.b32.xlu1 %v2925_v23, %s6652_s4  ;;  %2547 = vrot.lane.b32.xlu0 %v7363_v29, %s6651_s17 }
 0x3e1   :  { %3452 = vmatprep.subr.mxu1 %v2960_v54 }
 0x3e2   :  { %3453 = vmatpush1.msra.mxu1 %v2356_v55  ;;  %v7404_v28 = vpop.permute.xlu0 %2601  ;;  %v7406_v0 = vpop.permute.xlu1 %2805 }
 0x3e3   :  { %3454 = vmatprep.subr.mxu1 %v2892_v58  ;;  %v2824_v62 = vsel %vm9068_vm8, %v2804_v33, %v7406_v0  ;;  %v2620_v37 = vsel %vm9065_vm6, %v2600_v47, %v7404_v28 }
 0x3e4   :  { %3455 = vmatpush1.msra.mxu1 %v2288_v56  ;;  %2957 = vrot.lane.b32.xlu1 %v7413_v57, %s6653_s18 }
 0x3e5   :  { %2955 = vrot.lane.b32.xlu0 %v7419_v59, %s6653_s18  ;;  %3456 = vmatprep.subr.mxu1 %v2824_v62 }
 0x3e6   :  { %3457 = vmatpush1.msra.mxu1 %v2220_v31  ;;  %v7426_v40 = vpop.permute.xlu0 %2945  ;;  %v7428_v46 = vpop.permute.xlu1 %2669 }
 0x3e7   :  { %3458 = vmatprep.subr.mxu1 %v2756_v63  ;;  %v2688_v4 = vsel %vm9066_vm4, %v2668_v27, %v7428_v46 }
 0x3e8   :  { %3459 = vmatpush1.msra.mxu1 %v2152_v3  ;;  %2889 = vrot.lane.b32.xlu1 %v7413_v57, %s6654_s19 }
 0x3e9   :  { %2887 = vrot.lane.b32.xlu0 %v7419_v59, %s6654_s19  ;;  %3460 = vmatprep.subr.mxu1 %v2688_v4 }
 0x3ea   :  { %3461 = vmatpush1.msra.mxu1 %v2084_v20  ;;  %v2876_v43 = vpop.permute.xlu0 %2875  ;;  %v2944_v22 = vpop.permute.xlu1 %2943 }
 0x3eb   :  { %3462 = vmatprep.subr.mxu1 %v2620_v37  ;;  %v2962_v6 = vsel %vm2959_vm5, %v2944_v22, %v7426_v40  ;;  %v2961_v26 = vsel %vm2959_vm5, %v2942_v52, %v2944_v22  ;;  %v2893_v25 = vsel %vm2891_vm7, %v7389_v42, %v2876_v43 }
 0x3ec   :  { %3463 = vmatpush1.msra.mxu1 %v2016_v5  ;;  %2821 = vrot.lane.b32.xlu1 %v7413_v57, %s6655_s20 }
 0x3ed   :  { %2819 = vrot.lane.b32.xlu0 %v7419_v59, %s6655_s20  ;;  %3464 = vmatprep.subr.mxu1 %v2552_v34 }
 0x3ee   :  { %3523 = vmatprep.subr.mxu0 %v2962_v6  ;;  %3465 = vmatpush1.msra.mxu1 %v1948_v32  ;;  %v2808_v51 = vpop.permute.xlu0 %2807  ;;  %v7462_v60 = vpop.permute.xlu1 %2877 }
 0x3ef   :  { %3524 = vmatpush1.msra.mxu0 %v2961_v26  ;;  %3466 = vmatprep.subr.mxu1 %v2484_v35  ;;  %v2894_v61 = vsel %vm2891_vm7, %v2876_v43, %v7462_v60 }
 0x3f0   :  { %3467 = vmatpush1.msra.mxu1 %v1880_v24  ;;  %2753 = vrot.lane.b32.xlu1 %v7413_v57, %s6656_s21 }
 0x3f1   :  { %2751 = vrot.lane.b32.xlu0 %v7419_v59, %s6656_s21  ;;  %3468 = vmatprep.subr.mxu1 %v2416_v39 }
 0x3f2   :  { %3525 = vmatprep.subr.mxu0 %v2894_v61  ;;  %3469 = vmatpush1.msra.mxu1 %v7070_v36  ;;  %v2740_v38 = vpop.permute.xlu0 %2739  ;;  %v7482_v45 = vpop.permute.xlu1 %2809  ;;  %v2825_v36 = vsel %vm9068_vm8, %v7406_v0, %v2808_v51 }
 0x3f3   :  { %3526 = vmatpush1.msra.mxu0 %v2893_v25  ;;  %v2826_v50 = vsel %vm9068_vm8, %v2808_v51, %v7482_v45  ;;  %6393 = vmatmul.mubr.msk.f32.vlgmr.msra.gmra.mxu1 %vm3150_vm3, %v7106_v49  ;;  %v2757_v10 = vsel %vm9067_vm9, %v7395_v53, %v2740_v38 }
 0x3f4   :  { %2685 = vrot.lane.b32.xlu1 %v7413_v57, %s6657_s22  ;;  %3527 = vmatprep.subr.mxu0 %v2826_v50 }
 0x3f5   :  { %2683 = vrot.lane.b32.xlu0 %v7419_v59, %s6657_s22  ;;  %3528 = vmatpush1.msra.mxu0 %v2825_v36 }
 0x3f6   :  { %v2672_v44 = vpop.permute.xlu0 %2671  ;;  %v7494_v2 = vpop.permute.xlu1 %2741  ;;  %3644 = vmatprep.mubr.f32.mxu1 %v7496_v7 }
 0x3f7   :  { %v2758_v9 = vsel %vm9067_vm9, %v2740_v38, %v7494_v2  ;;  %v2689_v16 = vsel %vm9066_vm4, %v7428_v46, %v2672_v44 }
 0x3f8   :  { %2617 = vrot.lane.b32.xlu1 %v7413_v57, %s6658_s23  ;;  %3529 = vmatprep.subr.mxu0 %v2758_v9 }
 0x3f9   :  { %2615 = vrot.lane.b32.xlu0 %v7419_v59, %s6658_s23  ;;  %3530 = vmatpush1.msra.mxu0 %v2757_v10 }
 0x3fa   :  { %v2604_v13 = vpop.permute.xlu0 %2603  ;;  %v7507_v8 = vpop.permute.xlu1 %2673 }
 0x3fb   :  { %v2690_v14 = vsel %vm9066_vm4, %v2672_v44, %v7507_v8  ;;  %v2621_v21 = vsel %vm9065_vm6, %v7404_v28, %v2604_v13 }
 0x3fc   :  { %2549 = vrot.lane.b32.xlu1 %v7419_v59, %s6651_s17  ;;  %3531 = vmatprep.subr.mxu0 %v2690_v14 }
 0x3fd   :  { %2479 = vrot.lane.b32.xlu0 %v7363_v29, %s6650_s16  ;;  %3532 = vmatpush1.msra.mxu0 %v2689_v16 }
 0x3fe   :  { %v2536_v11 = vpop.permute.xlu0 %2535  ;;  %v7517_v17 = vpop.permute.xlu1 %2605 }
 0x3ff   :  { %v2622_v18 = vsel %vm9065_vm6, %v2604_v13, %v7517_v17  ;;  %v2553_v15 = vsel %vm9063_vm2, %v7385_v48, %v2536_v11 }
 0x400   :  { %2481 = vrot.lane.b32.xlu1 %v7419_v59, %s6650_s16  ;;  %3533 = vmatprep.subr.mxu0 %v2622_v18 }
 0x401   :  { %2411 = vrot.lane.b32.xlu0 %v7363_v29, %s6652_s4  ;;  %3534 = vmatpush1.msra.mxu0 %v2621_v21 }
 0x402   :  { %v2468_v12 = vpop.permute.xlu0 %2467  ;;  %v7527_v23 = vpop.permute.xlu1 %2537 }
 0x403   :  { %v2554_v19 = vsel %vm9063_vm2, %v2536_v11, %v7527_v23  ;;  %v2485_v27 = vsel %vm9064_vm13, %v7383_v30, %v2468_v12 }
 0x404   :  { %2413 = vrot.lane.b32.xlu1 %v7419_v59, %s6652_s4  ;;  %3535 = vmatprep.subr.mxu0 %v2554_v19 }
 0x405   :  { %3536 = vmatpush1.msra.mxu0 %v2553_v15 }
 0x406   :  { %v2400_v33 = vpop.permute.xlu0 %2399  ;;  %v7535_v41 = vpop.permute.xlu1 %2469 }
 0x407   :  { %v2486_v29 = vsel %vm9064_vm13, %v2468_v12, %v7535_v41  ;;  %v2417_v48 = vsel %vm9062_vm15, %v7391_v1, %v2400_v33 }
 0x408   :  { %3537 = vmatprep.subr.mxu0 %v2486_v29 }
 0x409   :  { %3538 = vmatpush1.msra.mxu0 %v2485_v27 }
 0x40a   :  { %v2540_v47 = vpop.permute.xlu0 %2539  ;;  %v7541_v42 = vpop.permute.xlu1 %2401 }
 0x40b   :  { %v2418_v53 = vsel %vm9062_vm15, %v2400_v33, %v7541_v42  ;;  %v2555_v39 = vsel %vm9063_vm2, %v7527_v23, %v2540_v47 }
 0x40c   :  { %3539 = vmatprep.subr.mxu0 %v2418_v53 }
 0x40d   :  { %3540 = vmatpush1.msra.mxu0 %v2417_v48 }
 0x40e   :  { %v2472_v52 = vpop.permute.xlu0 %2471  ;;  %v7547_v54 = vpop.permute.xlu1 %2541  ;;  %6394 = vmatmul.mubr.msk.f32.vlgmr.msra.gmra.mxu0 %vm3150_vm3, %v7106_v49 }
 0x40f   :  { %3715 = vmatprep.mubr.f32.mxu0 %v7496_v7  ;;  %v2556_v35 = vsel %vm9063_vm2, %v2540_v47, %v7547_v54 }
 0x412   :  { %v2404_v30 = vpop.permute.xlu0 %2403  ;;  %v7552_v55 = vpop.permute.xlu1 %2473 }
 0x413   :  { %v2488_v25 = vsel %vm9064_vm13, %v2472_v52, %v7552_v55  ;;  %v2419_v9 = vsel %vm9062_vm15, %v7541_v42, %v2404_v30 }
 0x416   :  { %v2948_v28 = vpop.permute.xlu0 %2947  ;;  %v7554_v0 = vpop.permute.xlu1 %2405 }
 0x417   :  { %v2963_v1 = vsel %vm2959_vm5, %v7426_v40, %v2948_v28  ;;  %v2420_v36 = vsel %vm9062_vm15, %v2404_v30, %v7554_v0 }
 0x41a   :  { %v2880_v58 = vpop.permute.xlu0 %2879  ;;  %v2950_v56 = vpop.permute.xlu1 %2949 }
 0x41b   :  { %v2964_v57 = vsel %vm2959_vm5, %v2948_v28, %v2950_v56  ;;  %v2895_v31 = vsel %vm2891_vm7, %v7462_v60, %v2880_v58 }
 0x41c   :  { %3594 = vmatprep.subr.mxu1 %v2964_v57 }
 0x41d   :  { %3595 = vmatpush1.msra.mxu1 %v2963_v1 }
 0x41e   :  { %v2812_v62 = vpop.permute.xlu0 %2811  ;;  %v2882_v59 = vpop.permute.xlu1 %2881 }
 0x41f   :  { %v2896_v49 = vsel %vm2891_vm7, %v2880_v58, %v2882_v59  ;;  %v2827_v4 = vsel %vm9068_vm8, %v7482_v45, %v2812_v62  ;;  %v2487_v45 = vsel %vm9064_vm13, %v7535_v41, %v2472_v52 }
 0x420   :  { %3596 = vmatprep.subr.mxu1 %v2896_v49 }
 0x421   :  { %3597 = vmatpush1.msra.mxu1 %v2895_v31 }
 0x422   :  { %v2744_v46 = vpop.permute.xlu0 %2743  ;;  %v2814_v63 = vpop.permute.xlu1 %2813 }
 0x423   :  { %v2828_v3 = vsel %vm9068_vm8, %v2812_v62, %v2814_v63  ;;  %v2759_v22 = vsel %vm9067_vm9, %v7494_v2, %v2744_v46 }
 0x424   :  { %3598 = vmatprep.subr.mxu1 %v2828_v3 }
 0x425   :  { %3599 = vmatpush1.msra.mxu1 %v2827_v4 }
 0x426   :  { %v2676_v40 = vpop.permute.xlu0 %2675  ;;  %v2746_v20 = vpop.permute.xlu1 %2745 }
 0x427   :  { %v2760_v43 = vsel %vm9067_vm9, %v2744_v46, %v2746_v20  ;;  %v2691_v34 = vsel %vm9066_vm4, %v7507_v8, %v2676_v40  ;;  %v7599_v8 = vld [vmem:[%s9051_s5] sm:$0xf] }
 0x428   :  { %3600 = vmatprep.subr.mxu1 %v2760_v43 }
 0x429   :  { %3601 = vmatpush1.msra.mxu1 %v2759_v22 }
 0x42a   :  { %v2608_v37 = vpop.permute.xlu0 %2607  ;;  %v2678_v5 = vpop.permute.xlu1 %2677 }
 0x42b   :  { %v2692_v6 = vsel %vm9066_vm4, %v2676_v40, %v2678_v5  ;;  %v2623_v60 = vsel %vm9065_vm6, %v7517_v17, %v2608_v37 }
 0x42c   :  { %3602 = vmatprep.subr.mxu1 %v2692_v6 }
 0x42d   :  { %3603 = vmatpush1.msra.mxu1 %v2691_v34 }
 0x42e   :  { %v2952_v26 = vpop.permute.xlu0 %2951  ;;  %v2610_v32 = vpop.permute.xlu1 %2609 }
 0x42f   :  { %v2624_v51 = vsel %vm9065_vm6, %v2608_v37, %v2610_v32  ;;  %v2965_v50 = vsel %vm2959_vm5, %v2950_v56, %v2952_v26 }
 0x430   :  { %3604 = vmatprep.subr.mxu1 %v2624_v51 }
 0x431   :  { %3605 = vmatpush1.msra.mxu1 %v2623_v60 }
 0x432   :  { %v2884_v24 = vpop.permute.xlu0 %2883  ;;  %v7576_v61 = vpop.permute.xlu1 %2953  ;;  %3606 = vmatprep.subr.mxu1 %v2556_v35 }
 0x433   :  { %3607 = vmatpush1.msra.mxu1 %v2555_v39  ;;  %v2966_v38 = vsel %vm2959_vm5, %v2952_v26, %v7576_v61  ;;  %v2897_v13 = vsel %vm2891_vm7, %v2882_v59, %v2884_v24 }
 0x434   :  { %3608 = vmatprep.subr.mxu1 %v2488_v25  ;;  %3665 = vmatprep.subr.mxu0 %v2966_v38 }
 0x435   :  { %3609 = vmatpush1.msra.mxu1 %v2487_v45  ;;  %3666 = vmatpush1.msra.mxu0 %v2965_v50 }
 0x436   :  { %v2816_v44 = vpop.permute.xlu0 %2815  ;;  %v7589_v2 = vpop.permute.xlu1 %2885  ;;  %3610 = vmatprep.subr.mxu1 %v2420_v36 }
 0x437   :  { %3611 = vmatpush1.msra.mxu1 %v2419_v9  ;;  %v2898_v10 = vsel %vm2891_vm7, %v2884_v24, %v7589_v2  ;;  %v2829_v17 = vsel %vm9068_vm8, %v2814_v63, %v2816_v44 }
 0x438   :  { %3667 = vmatprep.subr.mxu0 %v2898_v10  ;;  %6395 = vmatmul.mubr.msk.f32.vlgmr.msra.gmra.mxu1 %vm3150_vm3, %v7599_v8 }
 0x439   :  { %3668 = vmatpush1.msra.mxu0 %v2897_v13  ;;  %3786 = vmatprep.mubr.f32.mxu1 %v7496_v7 }
 0x43a   :  { %v2748_v14 = vpop.permute.xlu0 %2747  ;;  %v2818_v16 = vpop.permute.xlu1 %2817 }
 0x43b   :  { %v2830_v11 = vsel %vm9068_vm8, %v2816_v44, %v2818_v16  ;;  %v2761_v23 = vsel %vm9067_vm9, %v2746_v20, %v2748_v14 }
 0x43c   :  { %3669 = vmatprep.subr.mxu0 %v2830_v11 }
 0x43d   :  { %3670 = vmatpush1.msra.mxu0 %v2829_v17 }
 0x43e   :  { %v2680_v18 = vpop.permute.xlu0 %2679  ;;  %v2750_v21 = vpop.permute.xlu1 %2749 }
 0x43f   :  { %v2762_v12 = vsel %vm9067_vm9, %v2748_v14, %v2750_v21  ;;  %v2693_v41 = vsel %vm9066_vm4, %v2678_v5, %v2680_v18 }
 0x440   :  { %3671 = vmatprep.subr.mxu0 %v2762_v12  ;;  %v7655_v12 = vpop.f32.mrf.mxu1 }
 0x441   :  { %3672 = vmatpush1.msra.mxu0 %v2761_v23 }
 0x442   :  { %v2612_v19 = vpop.permute.xlu0 %2611  ;;  %v2682_v15 = vpop.permute.xlu1 %2681 }
 0x443   :  { %v2694_v33 = vsel %vm9066_vm4, %v2680_v18, %v2682_v15  ;;  %v2625_v42 = vsel %vm9065_vm6, %v2610_v32, %v2612_v19 }
 0x444   :  { %3673 = vmatprep.subr.mxu0 %v2694_v33 }
 0x445   :  { %3674 = vmatpush1.msra.mxu0 %v2693_v41 }
 0x446   :  { %v2544_v29 = vpop.permute.xlu0 %2543  ;;  %v2614_v27 = vpop.permute.xlu1 %2613 }
 0x447   :  { %v2626_v47 = vsel %vm9065_vm6, %v2612_v19, %v2614_v27  ;;  %v2557_v30 = vsel %vm9063_vm2, %v7547_v54, %v2544_v29 }
 0x448   :  { %3675 = vmatprep.subr.mxu0 %v2626_v47 }
 0x449   :  { %3676 = vmatpush1.msra.mxu0 %v2625_v42 }
 0x44a   :  { %v2476_v53 = vpop.permute.xlu0 %2475  ;;  %v2546_v48 = vpop.permute.xlu1 %2545 }
 0x44b   :  { %v2558_v52 = vsel %vm9063_vm2, %v2544_v29, %v2546_v48  ;;  %v2489_v57 = vsel %vm9064_vm13, %v7552_v55, %v2476_v53 }
 0x44c   :  { %3677 = vmatprep.subr.mxu0 %v2558_v52 }
 0x44d   :  { %3678 = vmatpush1.msra.mxu0 %v2557_v30 }
 0x44e   :  { %v2408_v28 = vpop.permute.xlu0 %2407  ;;  %v2478_v58 = vpop.permute.xlu1 %2477 }
 0x44f   :  { %v2490_v56 = vsel %vm9064_vm13, %v2476_v53, %v2478_v58  ;;  %v2421_v49 = vsel %vm9062_vm15, %v7554_v0, %v2408_v28 }
 0x450   :  { %3679 = vmatprep.subr.mxu0 %v2490_v56 }
 0x451   :  { %3680 = vmatpush1.msra.mxu0 %v2489_v57 }
 0x452   :  { %v2548_v1 = vpop.permute.xlu0 %2547  ;;  %v2410_v62 = vpop.permute.xlu1 %2409 }
 0x453   :  { %v2422_v59 = vsel %vm9062_vm15, %v2408_v28, %v2410_v62  ;;  %v2559_v50 = vsel %vm9063_vm2, %v2546_v48, %v2548_v1 }
 0x454   :  { %3681 = vmatprep.subr.mxu0 %v2422_v59 }
 0x455   :  { %3682 = vmatpush1.msra.mxu0 %v2421_v49 }
 0x456   :  { %6396 = vmatmul.mubr.msk.f32.vlgmr.msra.gmra.mxu0 %vm3150_vm3, %v7599_v8  ;;  %v2958_v54 = vpop.permute.xlu1 %2957 }
 0x457   :  { %v2956_v31 = vpop.permute.xlu0 %2955  ;;  %5535 = vmatprep.mubr.f32.mxu0 %v7496_v7 }
 0x458   :  { %v2968_v46 = vsel %vm2959_vm5, %v2956_v31, %v2958_v54  ;;  %v2967_v55 = vsel %vm2959_vm5, %v7576_v61, %v2956_v31 }
 0x459   :  { %3736 = vmatprep.subr.mxu1 %v2968_v46 }
 0x45a   :  { %3737 = vmatpush1.msra.mxu1 %v2967_v55  ;;  %v2890_v63 = vpop.permute.xlu1 %2889 }
 0x45b   :  { %v2888_v3 = vpop.permute.xlu0 %2887 }
 0x45c   :  { %v2900_v4 = vsel %vm2891_vm7, %v2888_v3, %v2890_v63  ;;  %v2899_v0 = vsel %vm2891_vm7, %v7589_v2, %v2888_v3 }
 0x45d   :  { %3738 = vmatprep.subr.mxu1 %v2900_v4 }
 0x45e   :  { %3739 = vmatpush1.msra.mxu1 %v2899_v0  ;;  %v2822_v40 = vpop.permute.xlu1 %2821 }
 0x45f   :  { %v2820_v20 = vpop.permute.xlu0 %2819 }
 0x460   :  { %v2832_v43 = vsel %vm9068_vm8, %v2820_v20, %v2822_v40  ;;  %v2831_v22 = vsel %vm9068_vm8, %v2818_v16, %v2820_v20  ;;  %v3796_v16 = vlaneseq  ;;  %vm4219_vm8 = vcmask 138240  }
 0x461   :  { %3740 = vmatprep.subr.mxu1 %v2832_v43 }
 0x462   :  { %3741 = vmatpush1.msra.mxu1 %v2831_v22  ;;  %v2754_v37 = vpop.permute.xlu1 %2753  ;;  %v7647_v11 = vshrl.u32 %v3796_v16, 7 }
 0x463   :  { %v2752_v5 = vpop.permute.xlu0 %2751 }
 0x464   :  { %v2764_v6 = vsel %vm9067_vm9, %v2752_v5, %v2754_v37  ;;  %v2763_v34 = vsel %vm9067_vm9, %v2750_v21, %v2752_v5  ;;  %v7650_v17 = vsub.s32 0, %v7647_v11  ;;  %v7653_v18 = vsub.s32 1, %v7647_v11  ;;  %v78_v21 = vld [vmem:[#allocation10] sm:$0xff] }
 0x465   :  { %3742 = vmatprep.subr.mxu1 %v2764_v6  ;;  %v3810_v29 = vsub.s32 3, %v7647_v11  ;;  %v3814_v47 = vsub.s32 4, %v7647_v11  ;;  %v3818_v57 = vsub.s32 5, %v7647_v11  ;;  %v3822_v63 = vsub.s32 6, %v7647_v11 }
 0x466   :  { %3743 = vmatpush1.msra.mxu1 %v2763_v34  ;;  %v2686_v26 = vpop.permute.xlu1 %2685  ;;  %v7658_v23 = vrot.slane %v78_v21, %v7650_v17  ;;  %v7661_v19 = vrot.slane %v78_v21, %v7653_v18  ;;  %v3826_v5 = vsub.s32 7, %v7647_v11 }
 0x467   :  { %v2684_v32 = vpop.permute.xlu0 %2683  ;;  %v7684_v52 = vrot.slane %v78_v21, %v3810_v29  ;;  %v7692_v56 = vrot.slane %v78_v21, %v3814_v47  ;;  %v7710_v40 = vrot.slane %v78_v21, %v3818_v57 }
 0x468   :  { %v2696_v51 = vsel %vm9066_vm4, %v2684_v32, %v2686_v26  ;;  %v2695_v60 = vsel %vm9066_vm4, %v2682_v15, %v2684_v32  ;;  %9117 = vst [vmem:[#allocation13_spill] sm:$0xff] %v7658_v23  ;;  %9118 = vst [vmem:[#allocation14_spill] sm:$0xff] %v7661_v19  ;;  %v3886_v15 = vmul.f32 %v7658_v23, %v7655_v12 }
 0x469   :  { %3744 = vmatprep.subr.mxu1 %v2696_v51  ;;  %9120 = vst [vmem:[#allocation16_spill] sm:$0xff] %v7684_v52  ;;  %9121 = vst [vmem:[#allocation17_spill] sm:$0xff] %v7692_v56  ;;  %v7722_v32 = vrot.slane %v78_v21, %v3822_v63 }
 0x46a   :  { %3745 = vmatpush1.msra.mxu1 %v2695_v60  ;;  %v2618_v35 = vpop.permute.xlu1 %2617  ;;  %v3943_v42 = vmul.f32 %v3886_v15, %v7655_v12  ;;  %9122 = vst [vmem:[#allocation18_spill] sm:$0xff] %v7710_v40 }
 0x46b   :  { %v2616_v24 = vpop.permute.xlu0 %2615  ;;  %9123 = vst [vmem:[#allocation19_spill] sm:$0xff] %v7722_v32 }
 0x46c   :  { %v2628_v61 = vsel %vm9065_vm6, %v2616_v24, %v2618_v35  ;;  %v2627_v39 = vsel %vm9065_vm6, %v2614_v27, %v2616_v24  ;;  %v7675_v27 = vpop.f32.mrf.mxu0 }
 0x46d   :  { %3746 = vmatprep.subr.mxu1 %v2628_v61 }
 0x46e   :  { %3747 = vmatpush1.msra.mxu1 %v2627_v39  ;;  %v2550_v25 = vpop.permute.xlu1 %2549  ;;  %v7686_v30 = vpop.f32.mrf.mxu0 }
 0x46f   :  { %v2480_v38 = vpop.permute.xlu0 %2479  ;;  %v2560_v45 = vsel %vm9063_vm2, %v2548_v1, %v2550_v25  ;;  %v3889_v49 = vmul.f32 %v7684_v52, %v7686_v30 }
 0x470   :  { %3748 = vmatprep.subr.mxu1 %v2560_v45  ;;  %v2491_v2 = vsel %vm9064_vm13, %v2478_v58, %v2480_v38  ;;  %v7724_v60 = vpop.f32.mrf.mxu0 }
 0x471   :  { %3749 = vmatpush1.msra.mxu1 %v2559_v50  ;;  %v3946_v4 = vmul.f32 %v3889_v49, %v7686_v30  ;;  %v3892_v25 = vmul.f32 %v7722_v32, %v7724_v60 }
 0x472   :  { %v2482_v36 = vpop.permute.xlu1 %2481  ;;  %v7735_v50 = vpop.f32.mrf.mxu0 }
 0x473   :  { %v2492_v44 = vsel %vm9064_vm13, %v2480_v38, %v2482_v36  ;;  %v2412_v9 = vpop.permute.xlu0 %2411  ;;  %v7733_v38 = vrot.slane %v78_v21, %v3826_v5  ;;  %v79_v36 = vld [vmem:[#allocation10 + $0x8] sm:$0xff] }
 0x474   :  { %3750 = vmatprep.subr.mxu1 %v2492_v44  ;;  %v2423_v14 = vsel %vm9062_vm15, %v2410_v62, %v2412_v9 }
 0x475   :  { %3751 = vmatpush1.msra.mxu1 %v2491_v2  ;;  %9124 = vst [vmem:[#allocation20_spill] sm:$0xff] %v7733_v38 }
 0x476   :  { %v2414_v10 = vpop.permute.xlu1 %2413 }
 0x477   :  { %v2424_v13 = vsel %vm9062_vm15, %v2412_v9, %v2414_v10  ;;  %v3949_v10 = vmul.f32 %v3892_v25, %v7724_v60 }
 0x478   :  { %3752 = vmatprep.subr.mxu1 %v2424_v13  ;;  %v3893_v13 = vmul.f32 %v7733_v38, %v7735_v50 }
 0x479   :  { %3753 = vmatpush1.msra.mxu1 %v2423_v14  ;;  %v7743_v14 = vrot.slane %v79_v36, %v7650_v17 }
 0x47a   :  { %6397 = vmatmul.mubr.msk.f32.vlgmr.msra.gmra.mxu1 %vm3150_vm3, %v7599_v8  ;;  %v7664_v8 = vpop.f32.mrf.mxu1  ;;  %vm3904_vm3 = vcmask 1043456  }
 0x47b   :  { %5677 = vmatprep.mubr.f32.mxu1 %v7496_v7  ;;  %v3806_v7 = vsub.s32 2, %v7647_v11  ;;  %v3887_v33 = vmul.f32 %v7661_v19, %v7664_v8  ;;  %v3905_v28 = vsel %vm3904_vm3, %v3886_v15, 0.0  ;;  %v3961_v1 = vsel %vm3904_vm3, %v3943_v42, 0.0  ;;  %9125 = vst [vmem:[#allocation21_spill] sm:$0xff] %v7743_v14 }
 0x47c   :  { %v7700_v31 = vpop.f32.mrf.mxu1  ;;  %v3910_v22 = vsel %vm3904_vm3, %v3889_v49, 0.0  ;;  %v3966_v6 = vsel %vm3904_vm3, %v3946_v4, 0.0  ;;  %v3916_v15 = vsel %vm3904_vm3, %v3892_v25, 0.0  ;;  %v3972_v42 = vsel %vm3904_vm3, %v3949_v10, 0.0 }
 0x47d   :  { %v7672_v41 = vrot.slane %v78_v21, %v3806_v7  ;;  %v3944_v53 = vmul.f32 %v3887_v33, %v7664_v8  ;;  %v3906_v58 = vsel %vm3904_vm3, %v3887_v33, 0.0  ;;  %v3890_v0 = vmul.f32 %v7692_v56, %v7700_v31 }
 0x47e   :  { %v3907_v54 = vadd.f32 %v3906_v58, %v3905_v28  ;;  %v7712_v43 = vpop.f32.mrf.mxu1  ;;  %v7753_v28 = vrot.slane %v79_v36, %v7653_v18  ;;  %v7786_v25 = vrot.slane %v79_v36, %v3814_v47 }
 0x47f   :  { %9119 = vst [vmem:[#allocation15_spill] sm:$0xff] %v7672_v41  ;;  %v3888_v48 = vmul.f32 %v7672_v41, %v7675_v27  ;;  %v3962_v62 = vsel %vm3904_vm3, %v3944_v53, 0.0  ;;  %v3947_v34 = vmul.f32 %v3890_v0, %v7700_v31  ;;  %v3891_v26 = vmul.f32 %v7710_v40, %v7712_v43 }
 0x480   :  { %v3963_v55 = vadd.f32 %v3962_v62, %v3961_v1  ;;  %v3912_v35 = vsel %vm3904_vm3, %v3890_v0, 0.0  ;;  %v3950_v53 = vmul.f32 %v3893_v13, %v7735_v50  ;;  %9126 = vst [vmem:[#allocation22_spill] sm:$0xff] %v7753_v28  ;;  %v3918_v62 = vsel %vm3904_vm3, %v3893_v13, 0.0  ;;  %9129 = vst [vmem:[#allocation25_spill] sm:$0xff] %v7786_v25 }
 0x481   :  { %v3945_v59 = vmul.f32 %v3888_v48, %v7675_v27  ;;  %v3908_v46 = vsel %vm3904_vm3, %v3888_v48, 0.0  ;;  %v3968_v61 = vsel %vm3904_vm3, %v3947_v34, 0.0  ;;  %v3948_v39 = vmul.f32 %v3891_v26, %v7712_v43 }
 0x482   :  { %v3909_v20 = vadd.f32 %v3908_v46, %v3907_v54  ;;  %v3914_v44 = vsel %vm3904_vm3, %v3891_v26, 0.0  ;;  %v3974_v49 = vsel %vm3904_vm3, %v3950_v53, 0.0  ;;  %v7775_v34 = vrot.slane %v79_v36, %v3810_v29 }
 0x483   :  { %v3964_v3 = vsel %vm3904_vm3, %v3945_v59, 0.0  ;;  %v3970_v9 = vsel %vm3904_vm3, %v3948_v39, 0.0 }
 0x484   :  { %v3965_v37 = vadd.f32 %v3964_v3, %v3963_v55  ;;  %v3911_v51 = vadd.f32 %v3910_v22, %v3909_v20  ;;  %v7764_v55 = vrot.slane %v79_v36, %v3806_v7  ;;  %9128 = vst [vmem:[#allocation24_spill] sm:$0xff] %v7775_v34 }
 0x486   :  { %v3967_v24 = vadd.f32 %v3966_v6, %v3965_v37  ;;  %v3913_v45 = vadd.f32 %v3912_v35, %v3911_v51  ;;  %9127 = vst [vmem:[#allocation23_spill] sm:$0xff] %v7764_v55 }
 0x488   :  { %v3969_v2 = vadd.f32 %v3968_v61, %v3967_v24  ;;  %v3915_v16 = vadd.f32 %v3914_v44, %v3913_v45 }
 0x48a   :  { %v3971_v33 = vadd.f32 %v3970_v9, %v3969_v2  ;;  %v3917_v58 = vadd.f32 %v3916_v15, %v3915_v16  ;;  %v7797_v16 = vrot.slane %v79_v36, %v3818_v57 }
 0x48c   :  { %v3973_v59 = vadd.f32 %v3972_v42, %v3971_v33  ;;  %v3919_v3 = vadd.f32 %v3918_v62, %v3917_v58  ;;  %9130 = vst [vmem:[#allocation26_spill] sm:$0xff] %v7797_v16  ;;  %v7804_v42 = vrot.slane %v79_v36, %v3822_v63  ;;  %v7817_v63 = vrot.slane %v79_v36, %v3826_v5 }
 0x48e   :  { %v3975_v20 = vadd.f32 %v3974_v49, %v3973_v59  ;;  %9131 = vst [vmem:[#allocation27_spill] sm:$0xff] %v7804_v42  ;;  %9132 = vst [vmem:[#allocation28_spill] sm:$0xff] %v7817_v63 }
 0x4b3   :  { %v7745_v21 = vpop.f32.mrf.mxu1 }
 0x4b4   :  { %v3894_v48 = vmul.f32 %v7743_v14, %v7745_v21 }
 0x4b5   :  { %v7755_v1 = vpop.f32.mrf.mxu1 }
 0x4b6   :  { %v3951_v54 = vmul.f32 %v3894_v48, %v7745_v21  ;;  %v3895_v46 = vmul.f32 %v7753_v28, %v7755_v1  ;;  %v3920_v0 = vsel %vm3904_vm3, %v3894_v48, 0.0 }
 0x4b7   :  { %v3921_v26 = vadd.f32 %v3920_v0, %v3919_v3 }
 0x4b8   :  { %v3976_v22 = vsel %vm3904_vm3, %v3951_v54, 0.0  ;;  %v3952_v37 = vmul.f32 %v3895_v46, %v7755_v1  ;;  %v3922_v51 = vsel %vm3904_vm3, %v3895_v46, 0.0 }
 0x4b9   :  { %v3977_v35 = vadd.f32 %v3976_v22, %v3975_v20  ;;  %v3923_v45 = vadd.f32 %v3922_v51, %v3921_v26 }
 0x4ba   :  { %v3978_v24 = vsel %vm3904_vm3, %v3952_v37, 0.0 }
 0x4bb   :  { %v3979_v2 = vadd.f32 %v3978_v24, %v3977_v35  ;;  %v80_v35 = vld [vmem:[#allocation10 + $0x10] sm:$0x3] }
 0x4ce   :  { %v7766_v4 = vpop.f32.mrf.mxu0 }
 0x4cf   :  { %v3896_v6 = vmul.f32 %v7764_v55, %v7766_v4 }
 0x4d0   :  { %v7777_v7 = vpop.f32.mrf.mxu0 }
 0x4d1   :  { %v3953_v61 = vmul.f32 %v3896_v6, %v7766_v4  ;;  %v3897_v39 = vmul.f32 %v7775_v34, %v7777_v7  ;;  %v3924_v44 = vsel %vm3904_vm3, %v3896_v6, 0.0 }
 0x4d2   :  { %v3925_v15 = vadd.f32 %v3924_v44, %v3923_v45 }
 0x4d3   :  { %v3980_v9 = vsel %vm3904_vm3, %v3953_v61, 0.0  ;;  %v3954_v10 = vmul.f32 %v3897_v39, %v7777_v7  ;;  %v3926_v33 = vsel %vm3904_vm3, %v3897_v39, 0.0  ;;  %v7832_v39 = vrot.slane %v80_v35, %v7650_v17 }
 0x4d4   :  { %v3981_v53 = vadd.f32 %v3980_v9, %v3979_v2  ;;  %v3927_v59 = vadd.f32 %v3926_v33, %v3925_v15  ;;  %v7836_v9 = vrot.slane %v80_v35, %v7653_v18 }
 0x4d5   :  { %v3982_v58 = vsel %vm3904_vm3, %v3954_v10, 0.0  ;;  %9133 = vst [vmem:[#allocation29_spill] sm:$0xff] %v7832_v39 }
 0x4d6   :  { %v3983_v46 = vadd.f32 %v3982_v58, %v3981_v53  ;;  %9134 = vst [vmem:[#allocation30_spill] sm:$0xff] %v7836_v9 }
 0x4f8   :  { %v7788_v29 = vpop.f32.mrf.mxu1 }
 0x4f9   :  { %v3898_v13 = vmul.f32 %v7786_v25, %v7788_v29 }
 0x4fa   :  { %v7799_v47 = vpop.f32.mrf.mxu1 }
 0x4fb   :  { %v3955_v62 = vmul.f32 %v3898_v13, %v7788_v29  ;;  %v3899_v57 = vmul.f32 %v7797_v16, %v7799_v47  ;;  %v3928_v49 = vsel %vm3904_vm3, %v3898_v13, 0.0 }
 0x4fc   :  { %v3929_v22 = vadd.f32 %v3928_v49, %v3927_v59 }
 0x4fd   :  { %v3984_v0 = vsel %vm3904_vm3, %v3955_v62, 0.0  ;;  %v3956_v20 = vmul.f32 %v3899_v57, %v7799_v47  ;;  %v3930_v37 = vsel %vm3904_vm3, %v3899_v57, 0.0 }
 0x4fe   :  { %v3985_v51 = vadd.f32 %v3984_v0, %v3983_v46  ;;  %v3931_v36 = vadd.f32 %v3930_v37, %v3929_v22 }
 0x4ff   :  { %v3986_v11 = vsel %vm3904_vm3, %v3956_v20, 0.0 }
 0x500   :  { %v3987_v45 = vadd.f32 %v3986_v11, %v3985_v51 }
 0x516   :  { %v7806_v48 = vpop.f32.mrf.mxu0 }
 0x517   :  { %v3900_v54 = vmul.f32 %v7804_v42, %v7806_v48 }
 0x518   :  { %v7819_v3 = vpop.f32.mrf.mxu0 }
 0x519   :  { %v3957_v6 = vmul.f32 %v3900_v54, %v7806_v48  ;;  %v3901_v26 = vmul.f32 %v7817_v63, %v7819_v3  ;;  %v3932_v5 = vsel %vm3904_vm3, %v3900_v54, 0.0 }
 0x51a   :  { %v3933_v44 = vadd.f32 %v3932_v5, %v3931_v36 }
 0x51b   :  { %v3988_v24 = vsel %vm3904_vm3, %v3957_v6, 0.0  ;;  %v3958_v61 = vmul.f32 %v3901_v26, %v7819_v3  ;;  %v3934_v2 = vsel %vm3904_vm3, %v3901_v26, 0.0 }
 0x51c   :  { %v3989_v10 = vadd.f32 %v3988_v24, %v3987_v45  ;;  %v3935_v53 = vadd.f32 %v3934_v2, %v3933_v44  ;;  %v4001_v24 = vld [vmem:[%s9053_s7] sm:$0xf]  ;;  %s6659_s7 = smov 17  }
 0x51d   :  { %v3990_v15 = vsel %vm3904_vm3, %v3958_v61, 0.0  ;;  %v4005_v44 = vld [vmem:[%s9054_s8] sm:$0xf]  ;;  %s6660_s8 = smov 37  }
 0x51e   :  { %v3991_v59 = vadd.f32 %v3990_v15, %v3989_v10 }
 0x53a   :  { %v7838_v13 = vpop.f32.mrf.mxu1 }
 0x53b   :  { %v3902_v33 = vmul.f32 %v7832_v39, %v7838_v13 }
 0x53c   :  { %v3790_v58 = vpop.f32.mrf.mxu1 }
 0x53d   :  { %v3936_v17 = vsel %vm3904_vm3, %v3902_v33, 0.0  ;;  %v3959_v62 = vmul.f32 %v3902_v33, %v7838_v13  ;;  %v3903_v57 = vmul.f32 %v7836_v9, %v3790_v58 }
 0x53e   :  { %v3937_v49 = vadd.f32 %v3936_v17, %v3935_v53 }
 0x53f   :  { %v3992_v18 = vsel %vm3904_vm3, %v3959_v62, 0.0  ;;  %v3960_v54 = vmul.f32 %v3903_v57, %v3790_v58  ;;  %v3938_v46 = vsel %vm3904_vm3, %v3903_v57, 0.0 }
 0x540   :  { %v3939_v0 = vadd.f32 %v3938_v46, %v3937_v49  ;;  %v3993_v20 = vadd.f32 %v3992_v18, %v3991_v59 }
 0x541   :  { %v3994_v22 = vsel %vm3904_vm3, %v3960_v54, 0.0 }
 0x542   :  { %3940 = vadd.xlane.f32.xlu0 %v3939_v0  ;;  %v3995_v37 = vadd.f32 %v3994_v22, %v3993_v20 }
 0x544   :  { %3996 = vadd.xlane.f32.xlu1 %v3995_v37 }
 0x5cb   :  { %v3941_v6 = vpop.xlane.xlu0 %3940 }
 0x5cc   :  { %v3942_v26 = vmul.f32 0.00048828125, %v3941_v6 }
 0x5cd   :  { %v3997_v51 = vpop.xlane.xlu1 %3996 }
 0x5ce   :  { %v3999_v35 = vmul.f32 %v3942_v26, %v3942_v26  ;;  %v3998_v11 = vmul.f32 0.00048828125, %v3997_v51 }
 0x5d0   :  { %v4000_v5 = vsub.f32 %v3998_v11, %v3999_v35 }
 0x5d2   :  { %v4002_v36 = vadd.f32 1e-05, %v4000_v5 }
 0x5d4   :  { %6560 = vrsqrt.f32 %v4002_v36 }
 0x5e1   :  { %v6561_v61 = vpop.eup %6560 }
 0x5e2   :  { %v4004_v45 = vmul.f32 %v6561_v61, %v4001_v24 }
 0x5e4   :  { %4010 = vperm.xlu0 %6528, %v4004_v45   ;;  %v4006_v2 = vmul.f32 %v4004_v45, %v3942_v26 }
 0x5e6   :  { %v4007_v10 = vsub.f32 %v4005_v44, %v4006_v2 }
 0x5e8   :  { %4033 = vperm.xlu1 %6529, %v4007_v10  }
 0x65f   :  { %v7855_v15 = vpop.permute.xlu0 %4010 }
 0x660   :  { %v4030_v33 = vmul.f32 %v7855_v15, %v3790_v58  ;;  %v4021_v53 = vmul.f32 %v7855_v15, %v7745_v21  ;;  %v4015_v17 = vmul.f32 %v7855_v15, %v7675_v27  ;;  %v4016_v62 = vmul.f32 %v7855_v15, %v7686_v30 }
 0x661   :  { %v4013_v57 = vmul.f32 %v7855_v15, %v7655_v12  ;;  %v4014_v59 = vmul.f32 %v7855_v15, %v7664_v8  ;;  %v4019_v49 = vmul.f32 %v7855_v15, %v7724_v60  ;;  %v4020_v58 = vmul.f32 %v7855_v15, %v7735_v50 }
 0x662   :  { %v4017_v21 = vmul.f32 %v7855_v15, %v7700_v31  ;;  %v4018_v27 = vmul.f32 %v7855_v15, %v7712_v43  ;;  %v4022_v30 = vmul.f32 %v7855_v15, %v7755_v1  ;;  %v4023_v12 = vmul.f32 %v7855_v15, %v7766_v4 }
 0x663   :  { %v7880_v18 = vpop.permute.xlu1 %4033  ;;  %v4024_v8 = vmul.f32 %v7855_v15, %v7777_v7  ;;  %v7886_v60 = vmul.f32 %v7855_v15, %v7788_v29  ;;  %v7890_v31 = vmul.f32 %v7855_v15, %v7799_v47  ;;  %v7894_v43 = vmul.f32 %v7855_v15, %v7806_v48 }
 0x664   :  { %v4053_v50 = vadd.f32 %v7880_v18, %v4030_v33  ;;  %v4044_v1 = vadd.f32 %v7880_v18, %v4021_v53  ;;  %v4038_v4 = vadd.f32 %v7880_v18, %v4015_v17  ;;  %v4039_v7 = vadd.f32 %v7880_v18, %v4016_v62 }
 0x665   :  { %v4036_v54 = vadd.f32 %v7880_v18, %v4013_v57  ;;  %v4037_v29 = vadd.f32 %v7880_v18, %v4014_v59  ;;  %v4042_v46 = vadd.f32 %v7880_v18, %v4019_v49  ;;  %v4043_v47 = vadd.f32 %v7880_v18, %v4020_v58 }
 0x666   :  { %vm4071_vm15 = vcmp.gt.f32.partialorder %v4053_v50, 0.0  ;;  %v4089_v0 = vmul.f32 0.01, %v4053_v50  ;;  %vm4062_vm2 = vcmp.gt.f32.partialorder %v4044_v1, 0.0  ;;  %v4080_v48 = vmul.f32 0.01, %v4044_v1 }
 0x667   :  { %vm4056_vm13 = vcmp.gt.f32.partialorder %v4038_v4, 0.0  ;;  %vm4057_vm6 = vcmp.gt.f32.partialorder %v4039_v7, 0.0  ;;  %v4074_v20 = vmul.f32 0.01, %v4038_v4  ;;  %v4075_v22 = vmul.f32 0.01, %v4039_v7 }
 0x668   :  { %v4107_v37 = vsel %vm4071_vm15, %v4053_v50, %v4089_v0  ;;  %v4098_v6 = vsel %vm4062_vm2, %v4044_v1, %v4080_v48  ;;  %vm4054_vm4 = vcmp.gt.f32.partialorder %v4036_v54, 0.0  ;;  %vm4055_vm9 = vcmp.gt.f32.partialorder %v4037_v29, 0.0 }
 0x669   :  { %v4125_v26 = vmul.f32 %v4107_v37, %v7836_v9  ;;  %v4116_v51 = vmul.f32 %v4098_v6, %v7743_v14  ;;  %v4092_v35 = vsel %vm4056_vm13, %v4038_v4, %v4074_v20  ;;  %v4093_v11 = vsel %vm4057_vm6, %v4039_v7, %v4075_v22 }
 0x66a   :  { %v4110_v5 = vmul.f32 %v4092_v35, %v7672_v41  ;;  %v4111_v36 = vmul.f32 %v4093_v11, %v7684_v52  ;;  %v4072_v24 = vmul.f32 0.01, %v4036_v54  ;;  %v4073_v61 = vmul.f32 0.01, %v4037_v29 }
 0x66b   :  { %4212 = vrot.lane.b32.xlu1 %v4125_v26, %s6659_s7  ;;  %4159 = vrot.lane.b32.xlu0 %v4116_v51, %s6660_s8  ;;  %vm4060_vm2 = vcmp.gt.f32.partialorder %v4042_v46, 0.0  ;;  %vm4061_vm15 = vcmp.gt.f32.partialorder %v4043_v47, 0.0  ;;  %v4078_v45 = vmul.f32 0.01, %v4042_v46  ;;  %v4079_v44 = vmul.f32 0.01, %v4043_v47 }
 0x66c   :  { %v4148_v2 = vcombine.low %v4110_v5, %v4111_v36  ;;  %v4090_v10 = vsel %vm4054_vm4, %v4036_v54, %v4072_v24  ;;  %v4091_v33 = vsel %vm4055_vm9, %v4037_v29, %v4073_v61  ;;  %v4040_v53 = vadd.f32 %v7880_v18, %v4017_v21 }
 0x66d   :  { %v4108_v17 = vmul.f32 %v4090_v10, %v7658_v23  ;;  %v4109_v62 = vmul.f32 %v4091_v33, %v7661_v19  ;;  %v4096_v57 = vsel %vm4060_vm2, %v4042_v46, %v4078_v45  ;;  %v4097_v59 = vsel %vm4061_vm15, %v4043_v47, %v4079_v44 }
 0x66e   :  { %v4114_v49 = vmul.f32 %v4096_v57, %v7722_v32  ;;  %v4115_v58 = vmul.f32 %v4097_v59, %v7733_v38  ;;  %v4041_v50 = vadd.f32 %v7880_v18, %v4018_v27  ;;  %vm4058_vm13 = vcmp.gt.f32.partialorder %v4040_v53, 0.0 }
 0x66f   :  { %4153 = vrot.lane.b32.xlu1 %v4148_v2, %s6660_s8  ;;  %v4147_v1 = vcombine.low %v4108_v17, %v4109_v62  ;;  %v4076_v4 = vmul.f32 0.01, %v4040_v53  ;;  %v4045_v7 = vadd.f32 %v7880_v18, %v4022_v30  ;;  %v4046_v21 = vadd.f32 %v7880_v18, %v4023_v12 }
 0x670   :  { %v4150_v54 = vcombine.low %v4114_v49, %v4115_v58  ;;  %vm4059_vm9 = vcmp.gt.f32.partialorder %v4041_v50, 0.0  ;;  %v4077_v29 = vmul.f32 0.01, %v4041_v50  ;;  %v4047_v46 = vadd.f32 %v7880_v18, %v4024_v8 }
 0x671   :  { %4151 = vrot.lane.b32.xlu0 %v4147_v1, %s6660_s8  ;;  %v4094_v47 = vsel %vm4058_vm13, %v4040_v53, %v4076_v4  ;;  %vm4063_vm4 = vcmp.gt.f32.partialorder %v4045_v7, 0.0  ;;  %vm4064_vm6 = vcmp.gt.f32.partialorder %v4046_v21, 0.0  ;;  %v4081_v27 = vmul.f32 0.01, %v4045_v7 }
 0x672   :  { %v4095_v0 = vsel %vm4059_vm9, %v4041_v50, %v4077_v29  ;;  %v4112_v48 = vmul.f32 %v4094_v47, %v7692_v56  ;;  %v4082_v20 = vmul.f32 0.01, %v4046_v21  ;;  %v4048_v30 = vadd.f32 %v7880_v18, %v7886_v60 }
 0x673   :  { %4157 = vrot.lane.b32.xlu1 %v4150_v54, %s6660_s8  ;;  %v4113_v12 = vmul.f32 %v4095_v0, %v7710_v40  ;;  %v4099_v22 = vsel %vm4063_vm4, %v4045_v7, %v4081_v27  ;;  %vm4065_vm2 = vcmp.gt.f32.partialorder %v4047_v46, 0.0  ;;  %v4083_v8 = vmul.f32 0.01, %v4047_v46 }
 0x674   :  { %v4100_v37 = vsel %vm4064_vm6, %v4046_v21, %v4082_v20  ;;  %v4117_v6 = vmul.f32 %v4099_v22, %v7753_v28  ;;  %vm4066_vm15 = vcmp.gt.f32.partialorder %v4048_v30, 0.0  ;;  %v4084_v26 = vmul.f32 0.01, %v4048_v30 }
 0x675   :  { %v4149_v51 = vcombine.low %v4112_v48, %v4113_v12  ;;  %v4118_v35 = vmul.f32 %v4100_v37, %v7764_v55  ;;  %v4101_v11 = vsel %vm4065_vm2, %v4047_v46, %v4083_v8  ;;  %v4049_v5 = vadd.f32 %v7880_v18, %v7890_v31 }
 0x676   :  { %v4102_v60 = vsel %vm4066_vm15, %v4048_v30, %v4084_v26  ;;  %v4119_v36 = vmul.f32 %v4101_v11, %v7775_v34  ;;  %v4050_v24 = vadd.f32 %v7880_v18, %v7894_v43  ;;  %v4028_v61 = vmul.f32 %v7855_v15, %v7819_v3 }
 0x677   :  { %4155 = vrot.lane.b32.xlu0 %v4149_v51, %s6660_s8  ;;  %v4200_v45 = vcombine.low %v4117_v6, %v4118_v35  ;;  %v4120_v44 = vmul.f32 %v4102_v60, %v7786_v25  ;;  %vm4067_vm13 = vcmp.gt.f32.partialorder %v4049_v5, 0.0  ;;  %v4085_v2 = vmul.f32 0.01, %v4049_v5 }
 0x678   :  { %vm4068_vm9 = vcmp.gt.f32.partialorder %v4050_v24, 0.0  ;;  %v4086_v10 = vmul.f32 0.01, %v4050_v24  ;;  %v4029_v31 = vmul.f32 %v7855_v15, %v7838_v13  ;;  %v4051_v33 = vadd.f32 %v7880_v18, %v4028_v61 }
 0x679   :  { %4204 = vrot.lane.b32.xlu1 %v4200_v45, %s6659_s7  ;;  %v4201_v43 = vcombine.low %v4119_v36, %v4120_v44  ;;  %v4103_v53 = vsel %vm4067_vm13, %v4049_v5, %v4085_v2  ;;  %vm4135_vm2 = vcmask 719876   ;;  %vm4181_vm13 = vcmask 1043752  }
 0x67a   :  { %v4104_v17 = vsel %vm4068_vm9, %v4050_v24, %v4086_v10  ;;  %v4121_v3 = vmul.f32 %v4103_v53, %v7797_v16  ;;  %v4052_v62 = vadd.f32 %v7880_v18, %v4029_v31  ;;  %vm4069_vm4 = vcmp.gt.f32.partialorder %v4051_v33, 0.0  ;;  %vm4136_vm15 = vmor %vm4135_vm2, %vm3904_vm3  ;;  %v7951_v18 = vld [vmem:[#allocation4] sm:$0xff] }
 0x67b   :  { %4206 = vrot.lane.b32.xlu0 %v4201_v43, %s6659_s7  ;;  %v4122_v57 = vmul.f32 %v4104_v17, %v7804_v42  ;;  %v4087_v59 = vmul.f32 0.01, %v4051_v33  ;;  %4137 = vst.msk [vmem:[#allocation4 + $0x48] sm:$0xff] %vm4136_vm15, %v7951_v18  ;;  %vm4182_vm9 = vcmask 1047556   ;;  %vm4188_vm2 = vcmask 302084  }
 0x67c   :  { %vm4070_vm6 = vcmp.gt.f32.partialorder %v4052_v62, 0.0  ;;  %v4088_v49 = vmul.f32 0.01, %v4052_v62  ;;  %vm4189_vm15 = vmor %vm4188_vm2, %vm3904_vm3  ;;  %vm9173_vm2 = vcmask 752640  }
 0x67d   :  { %v4202_v13 = vcombine.low %v4121_v3, %v4122_v57  ;;  %v4105_v15 = vsel %vm4069_vm4, %v4051_v33, %v4087_v59  ;;  %vm4166_vm4 = vcmask 302080  }
 0x67e   :  { %v4106_v58 = vsel %vm4070_vm6, %v4052_v62, %v4088_v49  ;;  %v4123_v50 = vmul.f32 %v4105_v15, %v7817_v63  ;;  %vm4183_vm6 = vmor %vm4182_vm9, %vm4181_vm13  ;;  %vm4234_vm13 = vcmask 1043592  }
 0x67f   :  { %4208 = vrot.lane.b32.xlu1 %v4202_v13, %s6659_s7  ;;  %v4124_v1 = vmul.f32 %v4106_v58, %v7832_v39 }
 0x681   :  { %v4203_v4 = vcombine.low %v4123_v50, %v4124_v1 }
 0x683   :  { %4210 = vrot.lane.b32.xlu0 %v4203_v4, %s6659_s7 }
 0x6dd   :  { %v7955_v7 = vpop.permute.xlu1 %4212  ;;  %v4160_v21 = vpop.permute.xlu0 %4159 }
 0x6de   :  { %v4165_v0 = vrot.slane %v4160_v21, 4  ;;  %v4218_v15 = vrot.slane %v7955_v7, 4 }
 0x6e1   :  { %v4154_v54 = vpop.permute.xlu1 %4153 }
 0x6e2   :  { %v4162_v29 = vrot.slane %v4154_v54, 4 }
 0x6e3   :  { %v4152_v46 = vpop.permute.xlu0 %4151 }
 0x6e4   :  { %v4161_v47 = vrot.slane %v4152_v46, 4 }
 0x6e5   :  { %v4158_v27 = vpop.permute.xlu1 %4157 }
 0x6e6   :  { %v4167_v48 = vsel %vm4166_vm4, %v4161_v47, %v4152_v46  ;;  %v4168_v20 = vsel %vm3904_vm3, %v4161_v47, %v4162_v29  ;;  %v4164_v30 = vrot.slane %v4158_v27, 4 }
 0x6e7   :  { %v7961_v12 = vsel %vm4166_vm4, %v4168_v20, %v4154_v54  ;;  %4184 = vst.msk [vmem:[#allocation4] sm:$0xff] %vm4183_vm6, %v4167_v48  ;;  %vm4235_vm6 = vmor %vm4182_vm9, %vm4234_vm13  ;;  %vm4240_vm9 = vcmask 138244  }
 0x6e8   :  { %4185 = vst [vmem:[#allocation4 + $0x8] sm:$0xff] %v7961_v12  ;;  %v4174_v22 = vsel %vm3904_vm3, %v4164_v30, %v4165_v0  ;;  %v4590_v23 = vcombine.high %v7961_v12, %v7961_v12 }
 0x6e9   :  { %v4175_v8 = vsel %vm4166_vm4, %v4174_v22, %v4160_v21  ;;  %v4156_v37 = vpop.permute.xlu0 %4155 }
 0x6ea   :  { %4190 = vst.msk [vmem:[#allocation4 + $0x20] sm:$0xff] %vm4189_vm15, %v4175_v8  ;;  %v4163_v6 = vrot.slane %v4156_v37, 4  ;;  %vm9174_vm15 = vcmask 621568  }
 0x6eb   :  { %v4205_v26 = vpop.permute.xlu1 %4204  ;;  %vm9175_vm13 = vmmov %vm9174_vm15 }
 0x6ec   :  { %v4170_v51 = vsel %vm3904_vm3, %v4162_v29, %v4163_v6  ;;  %v4172_v35 = vsel %vm3904_vm3, %v4163_v6, %v4164_v30  ;;  %v4214_v11 = vrot.slane %v4205_v26, 4 }
 0x6ed   :  { %v7971_v5 = vsel %vm4166_vm4, %v4170_v51, %v4156_v37  ;;  %v7974_v60 = vsel %vm4166_vm4, %v4172_v35, %v4158_v27  ;;  %v4207_v36 = vpop.permute.xlu0 %4206  ;;  %vm4241_vm4 = vmor %vm4240_vm9, %vm3904_vm3  ;;  %vm9177_vm9 = vcmask 908288  }
 0x6ee   :  { %4186 = vst [vmem:[#allocation4 + $0x10] sm:$0xff] %v7971_v5  ;;  %4187 = vst [vmem:[#allocation4 + $0x18] sm:$0xff] %v7974_v60  ;;  %v4220_v24 = vsel %vm4219_vm8, %v4214_v11, %v4205_v26  ;;  %v4215_v61 = vrot.slane %v4207_v36, 4  ;;  %v7979_v45 = vld [vmem:[#allocation4] sm:$0xff]  ;;  %v4653_v40 = vcombine.low %v7971_v5, %v7971_v5 }
 0x6ef   :  { %v4243_v44 = vld [vmem:[#allocation4] sm:$0xff]  ;;  %4236 = vst.msk [vmem:[#allocation4 + $0x28] sm:$0xff] %vm4235_vm6, %v4220_v24  ;;  %4718 = vrot.lane.b32.xlu0 %v7979_v45, %s6642_s1  ;;  %4658 = vrot.lane.b32.xlu1 %v7979_v45, %s6643_s27  ;;  %v4244_v2 = vld [vmem:[#allocation4 + $0x8] sm:$0xff]  ;;  %v4651_v9 = vcombine.low %v7979_v45, %v7979_v45  ;;  %vm9176_vm6 = vcmask 900096  }
 0x6f0   :  { %4260 = vst [vmem:[#allocation5 + $0x2b0] sm:$0xf] %v4243_v44  ;;  %v4221_v10 = vsel %vm3904_vm3, %v4214_v11, %v4215_v61  ;;  %v4252_v31 = vcombine.high %v4243_v44, %v4243_v44  ;;  %v4253_v33 = vcombine.high %v4244_v2, %v4244_v2  ;;  %4262 = vst [vmem:[#allocation5 + $0x10] sm:$0xf] %v4244_v2 }
 0x6f1   :  { %v7987_v43 = vsel %vm4219_vm8, %v4221_v10, %v4207_v36  ;;  %v4209_v53 = vpop.permute.xlu1 %4208  ;;  %v4247_v17 = vld [vmem:[#allocation4 + $0x20] sm:$0xf] }
 0x6f2   :  { %4237 = vst [vmem:[#allocation4 + $0x30] sm:$0xff] %v7987_v43  ;;  %v4216_v3 = vrot.slane %v4209_v53, 4  ;;  %4261 = vst [vmem:[#allocation5 + $0x160] sm:$0xf] %v4252_v31 }
 0x6f3   :  { %4263 = vst [vmem:[#allocation5 + $0x90] sm:$0xf] %v4253_v33  ;;  %4268 = vst [vmem:[#allocation5 + $0x248] sm:$0xf] %v4247_v17  ;;  %4594 = vrot.lane.b32.xlu1 %v7979_v45, %s6644_s28 }
 0x6f4   :  { %v4223_v62 = vsel %vm3904_vm3, %v4215_v61, %v4216_v3 }
 0x6f5   :  { %v7994_v57 = vsel %vm4219_vm8, %v4223_v62, %v4209_v53  ;;  %v4211_v59 = vpop.permute.xlu0 %4210  ;;  %v4245_v49 = vld [vmem:[#allocation4 + $0x10] sm:$0xff]  ;;  %v4246_v13 = vld [vmem:[#allocation4 + $0x18] sm:$0xff] }
 0x6f6   :  { %4238 = vst [vmem:[#allocation4 + $0x38] sm:$0xff] %v7994_v57  ;;  %v4217_v58 = vrot.slane %v4211_v59, 4  ;;  %v7998_v50 = vld [vmem:[#allocation4 + $0x28] sm:$0xff]  ;;  %v4254_v1 = vcombine.high %v4245_v49, %v4245_v49  ;;  %4264 = vst [vmem:[#allocation5 + $0x30] sm:$0xf] %v4245_v49  ;;  %v4255_v54 = vcombine.high %v4246_v13, %v4246_v13 }
 0x6f7   :  { %4266 = vst [vmem:[#allocation5 + $0x1d0] sm:$0xf] %v4246_v13  ;;  %5276 = vrot.lane.b32.xlu0 %v7998_v50, %s6653_s18  ;;  %4534 = vrot.lane.b32.xlu1 %v7979_v45, %s6645_s29  ;;  %v8095_v47 = vld [vmem:[#allocation4 + $0x24] sm:$0xff]  ;;  %v5271_v25 = vcombine.high %v7998_v50, %v7998_v50 }
 0x6f8   :  { %v4225_v4 = vsel %vm3904_vm3, %v4216_v3, %v4217_v58  ;;  %v4227_v21 = vsel %vm3904_vm3, %v4217_v58, %v4218_v15  ;;  %4265 = vst [vmem:[#allocation5 + $0x1c8] sm:$0xf] %v4254_v1  ;;  %4267 = vst [vmem:[#allocation5 + $0xc0] sm:$0xf] %v4255_v54  ;;  %v4713_v1 = vcombine.high %v7979_v45, %v7979_v45 }
 0x6f9   :  { %v8008_v29 = vsel %vm4219_vm8, %v4225_v4, %v4211_v59  ;;  %v4228_v46 = vsel %vm4219_vm8, %v4227_v21, %v7955_v7  ;;  %v8073_v7 = vld [vmem:[#allocation4 + $0x20] sm:$0xff]  ;;  %v8113_v27 = vld [vmem:[#allocation4 + $0x2c] sm:$0xff]  ;;  %vm9172_vm8 = vcmask 736256  }
 0x6fa   :  { %4239 = vst [vmem:[#allocation4 + $0x40] sm:$0xff] %v8008_v29  ;;  %4242 = vst.msk [vmem:[#allocation4 + $0x48] sm:$0xff] %vm4241_vm4, %v4228_v46 }
 0x6fb   :  { %5216 = vrot.lane.b32.xlu0 %v7998_v50, %s6654_s19  ;;  %4470 = vrot.lane.b32.xlu1 %v7979_v45, %s6646_s30  ;;  %vm9178_vm4 = vmmov %vm9177_vm9 }
 0x6fd   :  { %v8141_v8 = vld [vmem:[#allocation4 + $0x34] sm:$0xff] }
 0x6ff   :  { %5092 = vrot.lane.b32.xlu0 %v7998_v50, %s6656_s21  ;;  %4410 = vrot.lane.b32.xlu1 %v7979_v45, %s6647_s13 }
 0x701   :  { %v8183_v2 = vld [vmem:[#allocation4 + $0x48] sm:$0xff]  ;;  %v8193_v33 = vld [vmem:[#allocation4 + $0x3c] sm:$0xff] }
 0x702   :  { %v8227_v58 = vld [vmem:[#allocation4 + $0x44] sm:$0xff] }
 0x703   :  { %4968 = vrot.lane.b32.xlu0 %v7998_v50, %s6658_s23  ;;  %4346 = vrot.lane.b32.xlu1 %v7979_v45, %s6648_s14 }
 0x707   :  { %4598 = vrot.lane.b32.xlu0 %v7961_v12, %s6644_s28  ;;  %4286 = vrot.lane.b32.xlu1 %v7979_v45, %s6649_s15 }
 0x70b   :  { %4474 = vrot.lane.b32.xlu0 %v7961_v12, %s6646_s30  ;;  %5152 = vrot.lane.b32.xlu1 %v7998_v50, %s6655_s20 }
 0x70f   :  { %4350 = vrot.lane.b32.xlu0 %v7961_v12, %s6648_s14  ;;  %5028 = vrot.lane.b32.xlu1 %v7998_v50, %s6657_s22 }
 0x713   :  { %4662 = vrot.lane.b32.xlu0 %v7961_v12, %s6643_s27  ;;  %4722 = vrot.lane.b32.xlu1 %v7961_v12, %s6642_s1 }
 0x717   :  { %4538 = vrot.lane.b32.xlu0 %v7961_v12, %s6645_s29  ;;  %4726 = vrot.lane.b32.xlu1 %v7971_v5, %s6642_s1 }
 0x71b   :  { %4414 = vrot.lane.b32.xlu0 %v7961_v12, %s6647_s13  ;;  %4602 = vrot.lane.b32.xlu1 %v7971_v5, %s6644_s28 }
 0x71f   :  { %4666 = vrot.lane.b32.xlu0 %v7971_v5, %s6643_s27  ;;  %4478 = vrot.lane.b32.xlu1 %v7971_v5, %s6646_s30 }
 0x723   :  { %4290 = vrot.lane.b32.xlu0 %v7961_v12, %s6649_s15  ;;  %4730 = vrot.lane.b32.xlu1 %v7974_v60, %s6642_s1 }
 0x727   :  { %4542 = vrot.lane.b32.xlu0 %v7971_v5, %s6645_s29  ;;  %4354 = vrot.lane.b32.xlu1 %v7971_v5, %s6648_s14 }
 0x72b   :  { %4418 = vrot.lane.b32.xlu0 %v7971_v5, %s6647_s13  ;;  %4606 = vrot.lane.b32.xlu1 %v7974_v60, %s6644_s28 }
 0x72f   :  { %4482 = vrot.lane.b32.xlu1 %v7974_v60, %s6646_s30  ;;  %4294 = vrot.lane.b32.xlu0 %v7971_v5, %s6649_s15 }
 0x733   :  { %4358 = vrot.lane.b32.xlu1 %v7974_v60, %s6648_s14  ;;  %4670 = vrot.lane.b32.xlu0 %v7974_v60, %s6643_s27 }
 0x737   :  { %4734 = vrot.lane.b32.xlu1 %v8073_v7, %s6642_s1  ;;  %4546 = vrot.lane.b32.xlu0 %v7974_v60, %s6645_s29 }
 0x73b   :  { %4610 = vrot.lane.b32.xlu1 %v8073_v7, %s6644_s28  ;;  %4362 = vrot.lane.b32.xlu0 %v8073_v7, %s6648_s14 }
 0x73f   :  { %4486 = vrot.lane.b32.xlu1 %v8073_v7, %s6646_s30  ;;  %4674 = vrot.lane.b32.xlu0 %v8073_v7, %s6643_s27 }
 0x743   :  { %4422 = vrot.lane.b32.xlu1 %v7974_v60, %s6647_s13  ;;  %4550 = vrot.lane.b32.xlu0 %v8073_v7, %s6645_s29 }
 0x747   :  { %4298 = vrot.lane.b32.xlu1 %v7974_v60, %s6649_s15  ;;  %4426 = vrot.lane.b32.xlu0 %v8073_v7, %s6647_s13 }
 0x74b   :  { %4904 = vrot.lane.b32.xlu1 %v8095_v47, %s6651_s17  ;;  %4844 = vrot.lane.b32.xlu0 %v8095_v47, %s6650_s16 }
 0x74f   :  { %5280 = vrot.lane.b32.xlu1 %v7987_v43, %s6653_s18  ;;  %5220 = vrot.lane.b32.xlu0 %v7987_v43, %s6654_s19 }
 0x753   :  { %4780 = vrot.lane.b32.xlu1 %v8095_v47, %s6652_s4  ;;  %5032 = vrot.lane.b32.xlu0 %v7987_v43, %s6657_s22 }
 0x757   :  { %5156 = vrot.lane.b32.xlu1 %v7987_v43, %s6655_s20  ;;  %5284 = vrot.lane.b32.xlu0 %v7994_v57, %s6653_s18 }
 0x75b   :  { %4302 = vrot.lane.b32.xlu1 %v8073_v7, %s6649_s15  ;;  %4908 = vrot.lane.b32.xlu0 %v8113_v27, %s6651_s17 }
 0x75f   :  { %5096 = vrot.lane.b32.xlu1 %v7987_v43, %s6656_s21  ;;  %5160 = vrot.lane.b32.xlu0 %v7994_v57, %s6655_s20 }
 0x761   :  { %v8123_v0 = vpop.permute.xlu1 %4658  ;;  %v8129_v48 = vpop.permute.xlu0 %4718 }
 0x763   :  { %4972 = vrot.lane.b32.xlu1 %v7987_v43, %s6658_s23  ;;  %4784 = vrot.lane.b32.xlu0 %v8113_v27, %s6652_s4 }
 0x765   :  { %v8131_v20 = vpop.permute.xlu1 %4594 }
 0x767   :  { %5224 = vrot.lane.b32.xlu1 %v7994_v57, %s6654_s19  ;;  %5036 = vrot.lane.b32.xlu0 %v7994_v57, %s6657_s22 }
 0x769   :  { %v8137_v30 = vpop.permute.xlu1 %4534  ;;  %v8139_v22 = vpop.permute.xlu0 %5276 }
 0x76b   :  { %4848 = vrot.lane.b32.xlu1 %v8113_v27, %s6650_s16  ;;  %4912 = vrot.lane.b32.xlu0 %v8141_v8, %s6651_s17 }
 0x76d   :  { %v8147_v37 = vpop.permute.xlu1 %4470  ;;  %v8149_v6 = vpop.permute.xlu0 %5216 }
 0x76f   :  { %5100 = vrot.lane.b32.xlu1 %v7994_v57, %s6656_s21  ;;  %5288 = vrot.lane.b32.xlu0 %v8008_v29, %s6653_s18 }
 0x771   :  { %v8155_v26 = vpop.permute.xlu1 %4410  ;;  %v8157_v51 = vpop.permute.xlu0 %5092 }
 0x773   :  { %4976 = vrot.lane.b32.xlu1 %v7994_v57, %s6658_s23  ;;  %4788 = vrot.lane.b32.xlu0 %v8141_v8, %s6652_s4 }
 0x775   :  { %v8163_v35 = vpop.permute.xlu1 %4346  ;;  %v8165_v11 = vpop.permute.xlu0 %4968 }
 0x777   :  { %4852 = vrot.lane.b32.xlu1 %v8141_v8, %s6650_s16  ;;  %5164 = vrot.lane.b32.xlu0 %v8008_v29, %s6655_s20 }
 0x779   :  { %v8171_v36 = vpop.permute.xlu1 %4286  ;;  %v8173_v24 = vpop.permute.xlu0 %4598 }
 0x77b   :  { %5228 = vrot.lane.b32.xlu1 %v8008_v29, %s6654_s19  ;;  %5040 = vrot.lane.b32.xlu0 %v8008_v29, %s6657_s22 }
 0x77d   :  { %v8179_v61 = vpop.permute.xlu1 %5152  ;;  %v8181_v44 = vpop.permute.xlu0 %4474 }
 0x77f   :  { %5104 = vrot.lane.b32.xlu1 %v8008_v29, %s6656_s21  ;;  %5292 = vrot.lane.b32.xlu0 %v8183_v2, %s6653_s18 }
 0x781   :  { %v8189_v10 = vpop.permute.xlu1 %5028  ;;  %v8191_v31 = vpop.permute.xlu0 %4350 }
 0x783   :  { %4980 = vrot.lane.b32.xlu1 %v8008_v29, %s6658_s23  ;;  %4916 = vrot.lane.b32.xlu0 %v8193_v33, %s6651_s17 }
 0x785   :  { %v8199_v53 = vpop.permute.xlu1 %4722  ;;  %v8201_v17 = vpop.permute.xlu0 %4662 }
 0x787   :  { %5232 = vrot.lane.b32.xlu1 %v8183_v2, %s6654_s19  ;;  %5168 = vrot.lane.b32.xlu0 %v8183_v2, %s6655_s20 }
 0x789   :  { %v8207_v3 = vpop.permute.xlu1 %4726  ;;  %v8209_v62 = vpop.permute.xlu0 %4538 }
 0x78b   :  { %4856 = vrot.lane.b32.xlu1 %v8193_v33, %s6650_s16  ;;  %4792 = vrot.lane.b32.xlu0 %v8193_v33, %s6652_s4 }
 0x78d   :  { %v8215_v59 = vpop.permute.xlu1 %4602  ;;  %v8217_v49 = vpop.permute.xlu0 %4414 }
 0x78f   :  { %5108 = vrot.lane.b32.xlu1 %v8183_v2, %s6656_s21  ;;  %5044 = vrot.lane.b32.xlu0 %v8183_v2, %s6657_s22 }
 0x791   :  { %v8223_v13 = vpop.permute.xlu1 %4478  ;;  %v8225_v15 = vpop.permute.xlu0 %4666 }
 0x793   :  { %4984 = vrot.lane.b32.xlu1 %v8183_v2, %s6658_s23  ;;  %4920 = vrot.lane.b32.xlu0 %v8227_v58, %s6651_s17 }
 0x795   :  { %v8235_v4 = vpop.permute.xlu1 %4730  ;;  %v8237_v21 = vpop.permute.xlu0 %4290 }
 0x797   :  { %4596 = vrot.lane.b32.xlu1 %v4713_v1, %s6644_s28  ;;  %4796 = vrot.lane.b32.xlu0 %v8227_v58, %s6652_s4 }
 0x799   :  { %v8242_v54 = vpop.permute.xlu1 %4354  ;;  %v8244_v46 = vpop.permute.xlu0 %4542 }
 0x79b   :  { %4472 = vrot.lane.b32.xlu1 %v4713_v1, %s6646_s30  ;;  %4720 = vrot.lane.b32.xlu0 %v4713_v1, %s6642_s1 }
 0x79d   :  { %v8250_v39 = vpop.permute.xlu1 %4606  ;;  %v8252_v63 = vpop.permute.xlu0 %4418 }
 0x79f   :  { %4348 = vrot.lane.b32.xlu1 %v4713_v1, %s6648_s14  ;;  %4656 = vrot.lane.b32.xlu0 %v4651_v9, %s6643_s27  ;;  %v5209_v1 = vcombine.low %v7998_v50, %v7998_v50 }
 0x7a1   :  { %v8256_v42 = vpop.permute.xlu1 %4482  ;;  %v8258_v16 = vpop.permute.xlu0 %4294 }
 0x7a3   :  { %4284 = vrot.lane.b32.xlu1 %v4651_v9, %s6649_s15  ;;  %4532 = vrot.lane.b32.xlu0 %v4651_v9, %s6645_s29 }
 0x7a5   :  { %v8264_v45 = vpop.permute.xlu1 %4358  ;;  %v8266_v34 = vpop.permute.xlu0 %4670 }
 0x7a7   :  { %5278 = vrot.lane.b32.xlu1 %v5271_v25, %s6653_s18  ;;  %4408 = vrot.lane.b32.xlu0 %v4651_v9, %s6647_s13  ;;  %v4652_v9 = vcombine.low %v7961_v12, %v7961_v12 }
 0x7a9   :  { %v8272_v55 = vpop.permute.xlu1 %4734  ;;  %v8274_v28 = vpop.permute.xlu0 %4546 }
 0x7aa   :  { %9135 = vst [vmem:[#allocation31_spill] sm:$0xff] %v8272_v55 }
 0x7ab   :  { %5214 = vrot.lane.b32.xlu1 %v5209_v1, %s6654_s19  ;;  %5154 = vrot.lane.b32.xlu0 %v5271_v25, %s6655_s20 }
 0x7ad   :  { %v8278_v14 = vpop.permute.xlu1 %4610  ;;  %v8280_v38 = vpop.permute.xlu0 %4362 }
 0x7ae   :  { %9136 = vst [vmem:[#allocation32_spill] sm:$0xff] %v8278_v14  ;;  %9137 = vst [vmem:[#allocation33_spill] sm:$0xff] %v8280_v38 }
 0x7af   :  { %5090 = vrot.lane.b32.xlu1 %v5209_v1, %s6656_s21  ;;  %5030 = vrot.lane.b32.xlu0 %v5271_v25, %s6657_s22 }
 0x7b1   :  { %v8286_v50 = vpop.permute.xlu1 %4486  ;;  %v8288_v32 = vpop.permute.xlu0 %4674 }
 0x7b2   :  { %9138 = vst [vmem:[#allocation34_spill] sm:$0xff] %v8286_v50  ;;  %v4654_v50 = vcombine.low %v7974_v60, %v7974_v60 }
 0x7b3   :  { %4966 = vrot.lane.b32.xlu1 %v5209_v1, %s6658_s23  ;;  %4660 = vrot.lane.b32.xlu0 %v4652_v9, %s6643_s27 }
 0x7b5   :  { %v8294_v56 = vpop.permute.xlu1 %4422  ;;  %v8296_v52 = vpop.permute.xlu0 %4550 }
 0x7b7   :  { %4664 = vrot.lane.b32.xlu1 %v4653_v40, %s6643_s27  ;;  %4536 = vrot.lane.b32.xlu0 %v4652_v9, %s6645_s29 }
 0x7b9   :  { %v8300_v25 = vpop.permute.xlu1 %4298  ;;  %v8302_v41 = vpop.permute.xlu0 %4426 }
 0x7ba   :  { %9139 = vst [vmem:[#allocation35_spill] sm:$0xff] %v8302_v41 }
 0x7bb   :  { %4540 = vrot.lane.b32.xlu1 %v4653_v40, %s6645_s29  ;;  %4412 = vrot.lane.b32.xlu0 %v4652_v9, %s6647_s13 }
 0x7bd   :  { %v8306_v1 = vpop.permute.xlu1 %4904  ;;  %v8308_v19 = vpop.permute.xlu0 %4844 }
 0x7be   :  { %9140 = vst [vmem:[#allocation36_spill] sm:$0xff] %v8306_v1  ;;  %9141 = vst [vmem:[#allocation37_spill] sm:$0xff] %v8308_v19 }
 0x7bf   :  { %4416 = vrot.lane.b32.xlu1 %v4653_v40, %s6647_s13  ;;  %4288 = vrot.lane.b32.xlu0 %v4652_v9, %s6649_s15 }
 0x7c1   :  { %v8316_v55 = vpop.permute.xlu1 %5280  ;;  %v8318_v41 = vpop.permute.xlu0 %5220 }
 0x7c2   :  { %9142 = vst [vmem:[#allocation38_spill] sm:$0xff] %v8318_v41  ;;  %v4715_v41 = vcombine.high %v7971_v5, %v7971_v5 }
 0x7c3   :  { %4668 = vrot.lane.b32.xlu1 %v4654_v50, %s6643_s27  ;;  %4724 = vrot.lane.b32.xlu0 %v4590_v23, %s6642_s1 }
 0x7c5   :  { %v8322_v1 = vpop.permute.xlu1 %4780  ;;  %v8324_v19 = vpop.permute.xlu0 %5032 }
 0x7c6   :  { %9143 = vst [vmem:[#allocation39_spill] sm:$0xff] %v8322_v1 }
 0x7c7   :  { %4292 = vrot.lane.b32.xlu1 %v4653_v40, %s6649_s15  ;;  %4600 = vrot.lane.b32.xlu0 %v4590_v23, %s6644_s28 }
 0x7c9   :  { %v8328_v12 = vpop.permute.xlu1 %5156  ;;  %v8330_v9 = vpop.permute.xlu0 %5284 }
 0x7ca   :  { %9144 = vst [vmem:[#allocation40_spill] sm:$0xff] %v8330_v9  ;;  %v4655_v9 = vcombine.low %v8073_v7, %v8073_v7 }
 0x7cb   :  { %4544 = vrot.lane.b32.xlu1 %v4654_v50, %s6645_s29  ;;  %4476 = vrot.lane.b32.xlu0 %v4590_v23, %s6646_s30 }
 0x7cd   :  { %v8336_v14 = vpop.permute.xlu1 %4302  ;;  %v8338_v1 = vpop.permute.xlu0 %4908 }
 0x7ce   :  { %9145 = vst [vmem:[#allocation41_spill] sm:$0xff] %v8336_v14  ;;  %9146 = vst [vmem:[#allocation42_spill] sm:$0xff] %v8338_v1 }
 0x7cf   :  { %4420 = vrot.lane.b32.xlu1 %v4654_v50, %s6647_s13  ;;  %4728 = vrot.lane.b32.xlu0 %v4715_v41, %s6642_s1 }
 0x7d1   :  { %v8342_v40 = vpop.permute.xlu1 %5096  ;;  %v8344_v38 = vpop.permute.xlu0 %5160 }
 0x7d2   :  { %9147 = vst [vmem:[#allocation43_spill] sm:$0xff] %v8342_v40  ;;  %9148 = vst [vmem:[#allocation44_spill] sm:$0xff] %v8344_v38 }
 0x7d3   :  { %4296 = vrot.lane.b32.xlu1 %v4654_v50, %s6649_s15  ;;  %4352 = vrot.lane.b32.xlu0 %v4590_v23, %s6648_s14  ;;  %v4716_v23 = vcombine.high %v7974_v60, %v7974_v60 }
 0x7d5   :  { %v8350_v5 = vpop.permute.xlu1 %4972  ;;  %v8352_v14 = vpop.permute.xlu0 %4784 }
 0x7d6   :  { %9149 = vst [vmem:[#allocation45_spill] sm:$0xff] %v8350_v5  ;;  %9150 = vst [vmem:[#allocation46_spill] sm:$0xff] %v8352_v14 }
 0x7d7   :  { %4672 = vrot.lane.b32.xlu1 %v4655_v9, %s6643_s27  ;;  %4604 = vrot.lane.b32.xlu0 %v4715_v41, %s6644_s28 }
 0x7d9   :  { %v8356_v1 = vpop.permute.xlu1 %5224  ;;  %v8358_v40 = vpop.permute.xlu0 %5036 }
 0x7da   :  { %9151 = vst [vmem:[#allocation47_spill] sm:$0xff] %v8356_v1  ;;  %v4717_v1 = vcombine.high %v8073_v7, %v8073_v7  ;;  %v4837_v7 = vcombine.low %v8095_v47, %v8095_v47 }
 0x7db   :  { %4548 = vrot.lane.b32.xlu1 %v4655_v9, %s6645_s29  ;;  %4480 = vrot.lane.b32.xlu0 %v4715_v41, %s6646_s30 }
 0x7dd   :  { %v8364_v50 = vpop.permute.xlu1 %4848  ;;  %v8366_v5 = vpop.permute.xlu0 %4912 }
 0x7de   :  { %9152 = vst [vmem:[#allocation48_spill] sm:$0xff] %v8364_v50  ;;  %9153 = vst [vmem:[#allocation49_spill] sm:$0xff] %v8366_v5 }
 0x7df   :  { %4360 = vrot.lane.b32.xlu1 %v4716_v23, %s6648_s14  ;;  %4356 = vrot.lane.b32.xlu0 %v4715_v41, %s6648_s14 }
 0x7e1   :  { %v8372_v14 = vpop.permute.xlu1 %5100  ;;  %v8374_v38 = vpop.permute.xlu0 %5288 }
 0x7e2   :  { %9154 = vst [vmem:[#allocation50_spill] sm:$0xff] %v8372_v14 }
 0x7e3   :  { %4612 = vrot.lane.b32.xlu1 %v4717_v1, %s6644_s28  ;;  %4732 = vrot.lane.b32.xlu0 %v4716_v23, %s6642_s1 }
 0x7e5   :  { %v8378_v60 = vpop.permute.xlu1 %4976  ;;  %v8380_v50 = vpop.permute.xlu0 %4788 }
 0x7e6   :  { %9155 = vst [vmem:[#allocation51_spill] sm:$0xff] %v8378_v60  ;;  %9156 = vst [vmem:[#allocation52_spill] sm:$0xff] %v8380_v50 }
 0x7e7   :  { %4488 = vrot.lane.b32.xlu1 %v4717_v1, %s6646_s30  ;;  %4608 = vrot.lane.b32.xlu0 %v4716_v23, %s6644_s28 }
 0x7e9   :  { %v8384_v41 = vpop.permute.xlu1 %4852  ;;  %v8386_v5 = vpop.permute.xlu0 %5164 }
 0x7ea   :  { %9157 = vst [vmem:[#allocation53_spill] sm:$0xff] %v8384_v41  ;;  %9158 = vst [vmem:[#allocation54_spill] sm:$0xff] %v8386_v5  ;;  %v5210_v41 = vcombine.low %v7987_v43, %v7987_v43 }
 0x7eb   :  { %4364 = vrot.lane.b32.xlu1 %v4717_v1, %s6648_s14  ;;  %4484 = vrot.lane.b32.xlu0 %v4716_v23, %s6646_s30  ;;  %v5272_v23 = vcombine.high %v7987_v43, %v7987_v43  ;;  %v4900_v43 = vcombine.high %v8113_v27, %v8113_v27 }
 0x7ed   :  { %v8392_v14 = vpop.permute.xlu1 %5228  ;;  %v8394_v60 = vpop.permute.xlu0 %5040 }
 0x7ee   :  { %9159 = vst [vmem:[#allocation55_spill] sm:$0xff] %v8392_v14  ;;  %9160 = vst [vmem:[#allocation56_spill] sm:$0xff] %v8394_v60 }
 0x7ef   :  { %4842 = vrot.lane.b32.xlu1 %v4837_v7, %s6650_s16  ;;  %4736 = vrot.lane.b32.xlu0 %v4717_v1, %s6642_s1  ;;  %v4899_v1 = vcombine.high %v8095_v47, %v8095_v47  ;;  %v5273_v7 = vcombine.high %v7994_v57, %v7994_v57 }
 0x7f1   :  { %v8400_v50 = vpop.permute.xlu1 %5104  ;;  %v8402_v5 = vpop.permute.xlu0 %5292 }
 0x7f2   :  { %9161 = vst [vmem:[#allocation57_spill] sm:$0xff] %v8400_v50  ;;  %9162 = vst [vmem:[#allocation58_spill] sm:$0xff] %v8402_v5 }
 0x7f3   :  { %5218 = vrot.lane.b32.xlu1 %v5210_v41, %s6654_s19  ;;  %4424 = vrot.lane.b32.xlu0 %v4655_v9, %s6647_s13 }
 0x7f5   :  { %v8408_v14 = vpop.permute.xlu1 %4980  ;;  %v8410_v60 = vpop.permute.xlu0 %4916 }
 0x7f6   :  { %9163 = vst [vmem:[#allocation59_spill] sm:$0xff] %v8408_v14  ;;  %9164 = vst [vmem:[#allocation60_spill] sm:$0xff] %v8410_v60 }
 0x7f7   :  { %5034 = vrot.lane.b32.xlu1 %v5272_v23, %s6657_s22  ;;  %4300 = vrot.lane.b32.xlu0 %v4655_v9, %s6649_s15 }
 0x7f9   :  { %v8418_v50 = vpop.permute.xlu1 %5232  ;;  %v8420_v5 = vpop.permute.xlu0 %5168 }
 0x7fa   :  { %9165 = vst [vmem:[#allocation61_spill] sm:$0xff] %v8418_v50  ;;  %9166 = vst [vmem:[#allocation62_spill] sm:$0xff] %v8420_v5 }
 0x7fb   :  { %5286 = vrot.lane.b32.xlu1 %v5273_v7, %s6653_s18  ;;  %4906 = vrot.lane.b32.xlu0 %v4899_v1, %s6651_s17 }
 0x7fd   :  { %v8426_v14 = vpop.permute.xlu1 %4856  ;;  %v8428_v9 = vpop.permute.xlu0 %4792 }
 0x7fe   :  { %9167 = vst [vmem:[#allocation63_spill] sm:$0xff] %v8426_v14  ;;  %9168 = vst [vmem:[#allocation64_spill] sm:$0xff] %v8428_v9 }
 0x7ff   :  { %4910 = vrot.lane.b32.xlu1 %v4900_v43, %s6651_s17  ;;  %5282 = vrot.lane.b32.xlu0 %v5272_v23, %s6653_s18 }
 0x801   :  { %v8432_v47 = vpop.permute.xlu1 %5108  ;;  %v8434_v50 = vpop.permute.xlu0 %5044 }
 0x802   :  { %9169 = vst [vmem:[#allocation65_spill] sm:$0xff] %v8432_v47  ;;  %9170 = vst [vmem:[#allocation66_spill] sm:$0xff] %v8434_v50 }
 0x803   :  { %5162 = vrot.lane.b32.xlu1 %v5273_v7, %s6655_s20  ;;  %4782 = vrot.lane.b32.xlu0 %v4899_v1, %s6652_s4  ;;  %v4901_v1 = vcombine.high %v8141_v8, %v8141_v8 }
 0x805   :  { %v8438_v5 = vpop.permute.xlu1 %4984  ;;  %v8440_v60 = vpop.permute.xlu0 %4920 }
 0x806   :  { %9171 = vst [vmem:[#allocation67_spill] sm:$0xff] %v8438_v5 }
 0x807   :  { %4786 = vrot.lane.b32.xlu1 %v4900_v43, %s6652_s4  ;;  %5158 = vrot.lane.b32.xlu0 %v5272_v23, %s6655_s20 }
 0x809   :  { %v4597_v14 = vpop.permute.xlu1 %4596  ;;  %v8444_v9 = vpop.permute.xlu0 %4796 }
 0x80a   :  { %v4614_v47 = vsel %vm2211_vm12, %v8131_v20, %v4597_v14  ;;  %v4615_v50 = vsel %vm2211_vm12, %v4597_v14, %v8173_v24 }
 0x80b   :  { %4632 = vst [vmem:[#allocation5 + $0x270] sm:$0xf] %v4614_v47  ;;  %4633 = vst [vmem:[#allocation5 + $0x120] sm:$0xf] %v4615_v50  ;;  %5038 = vrot.lane.b32.xlu1 %v5273_v7, %s6657_s22  ;;  %5094 = vrot.lane.b32.xlu0 %v5210_v41, %s6656_s21  ;;  %v5274_v7 = vcombine.high %v8008_v29, %v8008_v29 }
 0x80d   :  { %v4473_v43 = vpop.permute.xlu1 %4472  ;;  %v4721_v23 = vpop.permute.xlu0 %4720 }
 0x80e   :  { %v4490_v5 = vsel %vm2075_vm14, %v8147_v37, %v4473_v43  ;;  %v4491_v20 = vsel %vm2075_vm14, %v4473_v43, %v8181_v44  ;;  %v4738_v14 = vsel %vm2347_vm10, %v8129_v48, %v4721_v23  ;;  %v4739_v50 = vsel %vm2347_vm10, %v4721_v23, %v8199_v53 }
 0x80f   :  { %4508 = vst [vmem:[#allocation5 + $0xa8] sm:$0xf] %v4490_v5  ;;  %4509 = vst [vmem:[#allocation5 + $0x190] sm:$0xf] %v4491_v20  ;;  %4914 = vrot.lane.b32.xlu1 %v4901_v1, %s6651_s17  ;;  %4970 = vrot.lane.b32.xlu0 %v5210_v41, %s6658_s23  ;;  %v5211_v37 = vcombine.low %v7994_v57, %v7994_v57  ;;  %v4838_v57 = vcombine.low %v8113_v27, %v8113_v27 }
 0x810   :  { %4756 = vst [vmem:[#allocation5 + $0x68] sm:$0xf] %v4738_v14  ;;  %4757 = vst [vmem:[#allocation5 + $0x180] sm:$0xf] %v4739_v50 }
 0x811   :  { %v4349_v47 = vpop.permute.xlu1 %4348  ;;  %v4657_v43 = vpop.permute.xlu0 %4656 }
 0x812   :  { %v4366_v48 = vsel %vm1939_vm0, %v8163_v35, %v4349_v47  ;;  %v4367_v5 = vsel %vm1939_vm0, %v4349_v47, %v8191_v31  ;;  %v4676_v23 = vsel %vm2279_vm11, %v4657_v43, %v8123_v0 }
 0x813   :  { %4384 = vst [vmem:[#allocation5 + $0x1b8] sm:$0xf] %v4366_v48  ;;  %4385 = vst [vmem:[#allocation5] sm:$0xf] %v4367_v5  ;;  %5290 = vrot.lane.b32.xlu1 %v5274_v7, %s6653_s18  ;;  %5222 = vrot.lane.b32.xlu0 %v5211_v37, %s6654_s19 }
 0x814   :  { %4694 = vst [vmem:[#allocation5 + $0x270] sm:$0xf0] %v4676_v23 }
 0x815   :  { %v4285_v41 = vpop.permute.xlu1 %4284  ;;  %v4533_v20 = vpop.permute.xlu0 %4532 }
 0x816   :  { %v4304_v35 = vsel %vm1871_vm1, %v4285_v41, %v8171_v36  ;;  %v4552_v14 = vsel %vm9172_vm8, %v4533_v20, %v8137_v30  ;;  %vm9179_vm8 = vcmask 916480  }
 0x817   :  { %v5397_v50 = vld [vmem:[#allocation5 + $0x180] sm:$0xf]  ;;  %v5396_v47 = vld [vmem:[#allocation5 + $0x68] sm:$0xf]  ;;  %4322 = vst [vmem:[#allocation5 + $0x2b0] sm:$0xf0] %v4304_v35  ;;  %4790 = vrot.lane.b32.xlu1 %v4901_v1, %s6652_s4  ;;  %4846 = vrot.lane.b32.xlu0 %v4838_v57, %s6650_s16  ;;  %v4839_v35 = vcombine.low %v8141_v8, %v8141_v8  ;;  %v5212_v8 = vcombine.low %v8008_v29, %v8008_v29 }
 0x818   :  { %4570 = vst [vmem:[#allocation5 + $0xa8] sm:$0xf0] %v4552_v14  ;;  %6398 = vmatprep.subr.msk.mxu0 %vm3904_vm3, %v5397_v50  ;;  %v5275_v14 = vcombine.high %v8183_v2, %v8183_v2 }
 0x819   :  { %6399 = vmatpush1.msk.msra.mxu0 %vm3904_vm3, %v5396_v47  ;;  %v5279_v27 = vpop.permute.xlu1 %5278  ;;  %v4409_v43 = vpop.permute.xlu0 %4408 }
 0x81a   :  { %v5296_v48 = vsel %vm2959_vm5, %v8139_v22, %v5279_v27  ;;  %v5297_v5 = vsel %vm2959_vm5, %v5279_v27, %v8316_v55  ;;  %v4428_v23 = vsel %vm9173_vm2, %v4409_v43, %v8155_v26  ;;  %vm9180_vm2 = vcmask 736256  }
 0x81b   :  { %5314 = vst [vmem:[#allocation5 + $0x198] sm:$0xf] %v5296_v48  ;;  %5315 = vst [vmem:[#allocation5 + $0x48] sm:$0xf] %v5297_v5  ;;  %5166 = vrot.lane.b32.xlu1 %v5274_v7, %s6655_s20  ;;  %5098 = vrot.lane.b32.xlu0 %v5211_v37, %s6656_s21 }
 0x81c   :  { %4446 = vst [vmem:[#allocation5 + $0x1b8] sm:$0xf0] %v4428_v23 }
 0x81d   :  { %v5215_v1 = vpop.permute.xlu1 %5214  ;;  %v5155_v57 = vpop.permute.xlu0 %5154 }
 0x81e   :  { %v5234_v41 = vsel %vm2891_vm7, %v5215_v1, %v8149_v6  ;;  %v5172_v22 = vsel %vm9174_vm15, %v8179_v61, %v5155_v57  ;;  %v5173_v20 = vsel %vm9175_vm13, %v5155_v57, %v8328_v12  ;;  %vm9181_vm15 = vmmov %vm9180_vm2 }
 0x81f   :  { %5252 = vst [vmem:[#allocation5 + $0x2b8] sm:$0xf0] %v5234_v41  ;;  %5190 = vst [vmem:[#allocation5 + $0x2b8] sm:$0xf] %v5172_v22  ;;  %5042 = vrot.lane.b32.xlu1 %v5274_v7, %s6657_s22  ;;  %4974 = vrot.lane.b32.xlu0 %v5211_v37, %s6658_s23  ;;  %v4902_v37 = vcombine.high %v8193_v33, %v8193_v33 }
 0x820   :  { %5191 = vst [vmem:[#allocation5 + $0x250] sm:$0xf] %v5173_v20  ;;  %vm9182_vm13 = vmmov %vm9180_vm2 }
 0x821   :  { %v5091_v50 = vpop.permute.xlu1 %5090  ;;  %v5031_v47 = vpop.permute.xlu0 %5030 }
 0x822   :  { %v5110_v61 = vsel %vm9176_vm6, %v5091_v50, %v8157_v51  ;;  %v5048_v27 = vsel %vm9177_vm9, %v8189_v10, %v5031_v47  ;;  %v5049_v43 = vsel %vm9178_vm4, %v5031_v47, %v8324_v19  ;;  %vm9183_vm6 = vmmov %vm9180_vm2  ;;  %vm9184_vm9 = vcmask 752640  }
 0x823   :  { %5128 = vst [vmem:[#allocation5 + $0x148] sm:$0xf0] %v5110_v61  ;;  %5066 = vst [vmem:[#allocation5 + $0x148] sm:$0xf] %v5048_v27  ;;  %5294 = vrot.lane.b32.xlu1 %v5275_v14, %s6653_s18  ;;  %4850 = vrot.lane.b32.xlu0 %v4839_v35, %s6650_s16  ;;  %v8548_v27 = vcombine.low %v8183_v2, %v8183_v2  ;;  %v5360_v2 = vld [vmem:[#allocation5 + $0xa8] sm:$0xff] }
 0x824   :  { %5067 = vst [vmem:[#allocation5 + $0x1f0] sm:$0xf] %v5049_v43  ;;  %vm9185_vm4 = vmmov %vm9184_vm9 }
 0x825   :  { %v4967_v7 = vpop.permute.xlu1 %4966  ;;  %v4661_v48 = vpop.permute.xlu0 %4660 }
 0x826   :  { %v4986_v10 = vsel %vm9179_vm8, %v4967_v7, %v8165_v11  ;;  %v4677_v5 = vsel %vm2279_vm11, %v8123_v0, %v4661_v48  ;;  %v4678_v23 = vsel %vm2279_vm11, %v4661_v48, %v8201_v17  ;;  %vm9186_vm8 = vmmov %vm9185_vm4 }
 0x827   :  { %5004 = vst [vmem:[#allocation5 + $0xd0] sm:$0xf0] %v4986_v10  ;;  %4695 = vst [vmem:[#allocation5 + $0x120] sm:$0xf0] %v4677_v5  ;;  %4918 = vrot.lane.b32.xlu1 %v4902_v37, %s6651_s17  ;;  %5226 = vrot.lane.b32.xlu0 %v5212_v8, %s6654_s19 }
 0x828   :  { %4696 = vst [vmem:[#allocation5 + $0x238] sm:$0xf0] %v4678_v23 }
 0x829   :  { %v4665_v29 = vpop.permute.xlu1 %4664  ;;  %v4537_v1 = vpop.permute.xlu0 %4536 }
 0x82a   :  { %v4679_v57 = vsel %vm2279_vm11, %v8201_v17, %v4665_v29  ;;  %v4680_v41 = vsel %vm2279_vm11, %v4665_v29, %v8225_v15  ;;  %v4553_v0 = vsel %vm9180_vm2, %v8137_v30, %v4537_v1  ;;  %v4554_v22 = vsel %vm9181_vm15, %v4537_v1, %v8209_v62  ;;  %vm9187_vm2 = vmmov %vm9185_vm4 }
 0x82b   :  { %4697 = vst [vmem:[#allocation5 + $0x80] sm:$0xf0] %v4679_v57  ;;  %4698 = vst [vmem:[#allocation5 + $0xd8] sm:$0xf0] %v4680_v41  ;;  %5170 = vrot.lane.b32.xlu1 %v5275_v14, %s6655_s20  ;;  %5102 = vrot.lane.b32.xlu0 %v5212_v8, %s6656_s21 }
 0x82c   :  { %4571 = vst [vmem:[#allocation5 + $0x190] sm:$0xf0] %v4553_v0  ;;  %4572 = vst [vmem:[#allocation5 + $0x130] sm:$0xf0] %v4554_v22 }
 0x82d   :  { %v4541_v20 = vpop.permute.xlu1 %4540  ;;  %v4413_v35 = vpop.permute.xlu0 %4412  ;;  %vm9188_vm15 = vmmov %vm9183_vm6 }
 0x82e   :  { %v4555_v17 = vsel %vm9182_vm13, %v8209_v62, %v4541_v20  ;;  %v4556_v50 = vsel %vm9183_vm6, %v4541_v20, %v8244_v46  ;;  %v4429_v30 = vsel %vm9184_vm9, %v8155_v26, %v4413_v35  ;;  %v4430_v47 = vsel %vm9185_vm4, %v4413_v35, %v8217_v49  ;;  %v5379_v61 = vld [vmem:[#allocation5 + $0x120] sm:$0xff]  ;;  %v5378_v62 = vld [vmem:[#allocation5 + $0x270] sm:$0xff]  ;;  %vm9189_vm13 = vmmov %vm9183_vm6 }
 0x82f   :  { %4573 = vst [vmem:[#allocation5 + $0x28] sm:$0xf0] %v4555_v17  ;;  %4574 = vst [vmem:[#allocation5 + $0x88] sm:$0xf0] %v4556_v50  ;;  %4794 = vrot.lane.b32.xlu1 %v4902_v37, %s6652_s4  ;;  %4978 = vrot.lane.b32.xlu0 %v5212_v8, %s6658_s23  ;;  %vm9190_vm6 = vcmask 293888  }
 0x830   :  { %4447 = vst [vmem:[#allocation5] sm:$0xf0] %v4429_v30  ;;  %4448 = vst [vmem:[#allocation5 + $0x298] sm:$0xf0] %v4430_v47  ;;  %5495 = vmatprep.subr.mxu0 %v5379_v61 }
 0x831   :  { %5496 = vmatpush1.msra.mxu0 %v5378_v62  ;;  %v4417_v26 = vpop.permute.xlu1 %4416  ;;  %v4289_v43 = vpop.permute.xlu0 %4288  ;;  %vm9191_vm9 = vmmov %vm9187_vm2 }
 0x832   :  { %v4431_v7 = vsel %vm9186_vm8, %v8217_v49, %v4417_v26  ;;  %v4432_v48 = vsel %vm9187_vm2, %v4417_v26, %v8252_v63  ;;  %v4305_v37 = vsel %vm1871_vm1, %v8171_v36, %v4289_v43  ;;  %v4306_v8 = vsel %vm1871_vm1, %v4289_v43, %v8237_v21  ;;  %vm9192_vm4 = vmmov %vm9187_vm2 }
 0x833   :  { %v5361_v10 = vld [vmem:[#allocation5 + $0x190] sm:$0xff]  ;;  %4449 = vst [vmem:[#allocation5 + $0x280] sm:$0xf0] %v4431_v7  ;;  %4450 = vst [vmem:[#allocation5 + $0x50] sm:$0xf0] %v4432_v48  ;;  %5046 = vrot.lane.b32.xlu1 %v5275_v14, %s6657_s22  ;;  %5230 = vrot.lane.b32.xlu0 %v8548_v27, %s6654_s19  ;;  %v4840_v49 = vcombine.low %v8193_v33, %v8193_v33  ;;  %v4903_v36 = vcombine.high %v8227_v58, %v8227_v58  ;;  %v5342_v33 = vld [vmem:[#allocation5 + $0x1b8] sm:$0xff] }
 0x834   :  { %4323 = vst [vmem:[#allocation5 + $0x160] sm:$0xf0] %v4305_v37  ;;  %4324 = vst [vmem:[#allocation5 + $0x10] sm:$0xf0] %v4306_v8  ;;  %5497 = vmatprep.subr.mxu0 %v5361_v10 }
 0x835   :  { %5498 = vmatpush1.msra.mxu0 %v5360_v2  ;;  %v4669_v5 = vpop.permute.xlu1 %4668  ;;  %v4725_v23 = vpop.permute.xlu0 %4724  ;;  %vm9196_vm2 = vmmov %vm9190_vm6 }
 0x836   :  { %v4681_v29 = vsel %vm2279_vm11, %v8225_v15, %v4669_v5  ;;  %v4682_v14 = vsel %vm2279_vm11, %v4669_v5, %v8266_v34  ;;  %v4740_v1 = vsel %vm2347_vm10, %v8199_v53, %v4725_v23  ;;  %v4741_v57 = vsel %vm2347_vm10, %v4725_v23, %v8207_v3 }
 0x837   :  { %v5343_v41 = vld [vmem:[#allocation5] sm:$0xff]  ;;  %4699 = vst [vmem:[#allocation5 + $0x38] sm:$0xf0] %v4681_v29  ;;  %4700 = vst [vmem:[#allocation5 + $0x60] sm:$0xf0] %v4682_v14  ;;  %4922 = vrot.lane.b32.xlu1 %v4903_v36, %s6651_s17  ;;  %4854 = vrot.lane.b32.xlu0 %v4840_v49, %s6650_s16 }
 0x838   :  { %4758 = vst [vmem:[#allocation5 + $0x200] sm:$0xf] %v4740_v1  ;;  %4759 = vst [vmem:[#allocation5 + $0xe8] sm:$0xf] %v4741_v57  ;;  %5499 = vmatprep.subr.mxu0 %v5343_v41 }
 0x839   :  { %5500 = vmatpush1.msra.mxu0 %v5342_v33  ;;  %v4293_v15 = vpop.permute.xlu1 %4292  ;;  %v4601_v0 = vpop.permute.xlu0 %4600 }
 0x83a   :  { %v4307_v53 = vsel %vm1871_vm1, %v8237_v21, %v4293_v15  ;;  %v4308_v22 = vsel %vm1871_vm1, %v4293_v15, %v8258_v16  ;;  %v4616_v20 = vsel %vm2211_vm12, %v8173_v24, %v4601_v0  ;;  %v4617_v35 = vsel %vm2211_vm12, %v4601_v0, %v8215_v59  ;;  %v8589_v21 = vld [vmem:[%s9052_s6] sm:$0xf] }
 0x83b   :  { %v5325_v17 = vld [vmem:[#allocation5 + $0x160] sm:$0xff]  ;;  %4325 = vst [vmem:[#allocation5 + $0x90] sm:$0xf0] %v4307_v53  ;;  %4326 = vst [vmem:[#allocation5 + $0x30] sm:$0xf0] %v4308_v22  ;;  %4798 = vrot.lane.b32.xlu1 %v4903_v36, %s6652_s4  ;;  %5106 = vrot.lane.b32.xlu0 %v8548_v27, %s6656_s21  ;;  %v5324_v24 = vld [vmem:[#allocation5 + $0x2b0] sm:$0xff] }
 0x83c   :  { %4634 = vst [vmem:[#allocation5 + $0x238] sm:$0xf] %v4616_v20  ;;  %4635 = vst [vmem:[#allocation5 + $0x80] sm:$0xf] %v4617_v35  ;;  %5501 = vmatprep.subr.mxu0 %v5325_v17 }
 0x83d   :  { %5502 = vmatpush1.msra.mxu0 %v5324_v24  ;;  %v4545_v50 = vpop.permute.xlu1 %4544  ;;  %v4477_v30 = vpop.permute.xlu0 %4476 }
 0x83e   :  { %v4557_v47 = vsel %vm9188_vm15, %v8244_v46, %v4545_v50  ;;  %v4558_v61 = vsel %vm9189_vm13, %v4545_v50, %v8274_v28  ;;  %v4492_v62 = vsel %vm2075_vm14, %v8181_v44, %v4477_v30  ;;  %v4493_v26 = vsel %vm2075_vm14, %v4477_v30, %v8223_v13  ;;  %6400 = vmatmul.mubr.msk.f32.vlgmr.msra.gmra.mxu0 %vm9190_vm6, %v8589_v21  ;;  %v5326_v30 = vld [vmem:[#allocation5 + $0x10] sm:$0xff] }
 0x83f   :  { %v5399_v43 = vld [vmem:[#allocation5 + $0xe8] sm:$0xf]  ;;  %v5398_v7 = vld [vmem:[#allocation5 + $0x200] sm:$0xf]  ;;  %4575 = vst [vmem:[#allocation5 + $0x188] sm:$0xf0] %v4557_v47  ;;  %4860 = vrot.lane.b32.xlu1 %v8227_v58, %s6650_s16  ;;  %4982 = vrot.lane.b32.xlu0 %v8548_v27, %s6658_s23  ;;  %v4841_v44 = vcombine.low %v8227_v58, %v8227_v58 }
 0x840   :  { %4576 = vst [vmem:[#allocation5 + $0x208] sm:$0xf0] %v4558_v61  ;;  %4510 = vst [vmem:[#allocation5 + $0x130] sm:$0xf] %v4492_v62  ;;  %6401 = vmatprep.subr.msk.mxu0 %vm3904_vm3, %v5399_v43  ;;  %5606 = vmatprep.mubr.f32.mxu0 %v7951_v18 }
 0x841   :  { %4511 = vst [vmem:[#allocation5 + $0x28] sm:$0xf] %v4493_v26  ;;  %6402 = vmatpush1.msk.msra.mxu0 %vm3904_vm3, %v5398_v7  ;;  %v4421_v46 = vpop.permute.xlu1 %4420  ;;  %v4729_v48 = vpop.permute.xlu0 %4728 }
 0x842   :  { %v4433_v37 = vsel %vm9191_vm9, %v8252_v63, %v4421_v46  ;;  %v4434_v8 = vsel %vm9192_vm4, %v4421_v46, %v8294_v56  ;;  %v4742_v27 = vsel %vm2347_vm10, %v8207_v3, %v4729_v48  ;;  %v4743_v10 = vsel %vm2347_vm10, %v4729_v48, %v8235_v4  ;;  %v5327_v24 = vld [vmem:[#allocation5 + $0x90] sm:$0xff] }
 0x843   :  { %v5381_v2 = vld [vmem:[#allocation5 + $0x80] sm:$0xff]  ;;  %v5380_v49 = vld [vmem:[#allocation5 + $0x238] sm:$0xff]  ;;  %4451 = vst [vmem:[#allocation5 + $0x240] sm:$0xf0] %v4433_v37  ;;  %4452 = vst [vmem:[#allocation5 + $0x2a8] sm:$0xf0] %v4434_v8  ;;  %4858 = vrot.lane.b32.xlu0 %v4841_v44, %s6650_s16 }
 0x844   :  { %4760 = vst [vmem:[#allocation5 + $0x230] sm:$0xf] %v4742_v27  ;;  %4761 = vst [vmem:[#allocation5 + $0x20] sm:$0xf] %v4743_v10  ;;  %5566 = vmatprep.subr.mxu0 %v5381_v2  ;;  %v9198_v48 = vld [vmem:[#allocation31_spill] sm:$0xff] }
 0x845   :  { %5567 = vmatpush1.msra.mxu0 %v5380_v49  ;;  %v4297_v63 = vpop.permute.xlu1 %4296  ;;  %v4353_v58 = vpop.permute.xlu0 %4352  ;;  %v9199_v49 = vld [vmem:[#allocation34_spill] sm:$0xff] }
 0x846   :  { %v4309_v36 = vsel %vm1871_vm1, %v8258_v16, %v4297_v63  ;;  %v4310_v3 = vsel %vm1871_vm1, %v4297_v63, %v8300_v25  ;;  %v4368_v5 = vsel %vm1939_vm0, %v8191_v31, %v4353_v58  ;;  %v4369_v23 = vsel %vm1939_vm0, %v4353_v58, %v8242_v54 }
 0x847   :  { %v5362_v14 = vld [vmem:[#allocation5 + $0x130] sm:$0xff]  ;;  %4327 = vst [vmem:[#allocation5 + $0x1c8] sm:$0xf0] %v4309_v36  ;;  %4328 = vst [vmem:[#allocation5 + $0x1d0] sm:$0xf0] %v4310_v3 }
 0x848   :  { %v5363_v29 = vld [vmem:[#allocation5 + $0x28] sm:$0xff]  ;;  %4386 = vst [vmem:[#allocation5 + $0x298] sm:$0xf] %v4368_v5  ;;  %4387 = vst [vmem:[#allocation5 + $0x280] sm:$0xf] %v4369_v23 }
 0x849   :  { %5568 = vmatprep.subr.mxu0 %v5363_v29  ;;  %v4673_v1 = vpop.permute.xlu1 %4672  ;;  %v4605_v57 = vpop.permute.xlu0 %4604 }
 0x84a   :  { %5569 = vmatpush1.msra.mxu0 %v5362_v14  ;;  %v4683_v16 = vsel %vm2279_vm11, %v8266_v34, %v4673_v1  ;;  %v4684_v41 = vsel %vm2279_vm11, %v4673_v1, %v8288_v32  ;;  %v4618_v31 = vsel %vm2211_vm12, %v8215_v59, %v4605_v57  ;;  %v4619_v33 = vsel %vm2211_vm12, %v4605_v57, %v8250_v39  ;;  %vm9193_vm11 = vmmov %vm9189_vm13  ;;  %v5328_v14 = vld [vmem:[#allocation5 + $0x30] sm:$0xff] }
 0x84b   :  { %v5401_v15 = vld [vmem:[#allocation5 + $0x20] sm:$0xf]  ;;  %v5400_v0 = vld [vmem:[#allocation5 + $0x230] sm:$0xf]  ;;  %4701 = vst [vmem:[#allocation5 + $0x170] sm:$0xf0] %v4683_v16  ;;  %vm9194_vm8 = vmmov %vm9193_vm11 }
 0x84c   :  { %4702 = vst [vmem:[#allocation5 + $0xb8] sm:$0xf0] %v4684_v41  ;;  %4636 = vst [vmem:[#allocation5 + $0xd8] sm:$0xf] %v4618_v31  ;;  %6404 = vmatprep.subr.msk.mxu1 %vm3904_vm3, %v5401_v15  ;;  %v5405_v41 = vld [vmem:[#allocation5 + $0x198] sm:$0xf] }
 0x84d   :  { %4637 = vst [vmem:[#allocation5 + $0x38] sm:$0xf] %v4619_v33  ;;  %6405 = vmatpush1.msk.msra.mxu1 %vm3904_vm3, %v5400_v0  ;;  %v4549_v34 = vpop.permute.xlu1 %4548  ;;  %v4481_v53 = vpop.permute.xlu0 %4480  ;;  %v9201_v15 = vld [vmem:[#allocation37_spill] sm:$0xff] }
 0x84e   :  { %v4559_v32 = vsel %vm9193_vm11, %v8274_v28, %v4549_v34  ;;  %v4560_v59 = vsel %vm9194_vm8, %v4549_v34, %v8296_v52  ;;  %v4494_v22 = vsel %vm2075_vm14, %v8223_v13, %v4481_v53  ;;  %v4495_v20 = vsel %vm2075_vm14, %v4481_v53, %v8256_v42  ;;  %v9195_v13 = vld [vmem:[#allocation33_spill] sm:$0xff]  ;;  %vm9218_vm11 = vmmov %vm9196_vm2 }
 0x84f   :  { %v5345_v35 = vld [vmem:[#allocation5 + $0x280] sm:$0xff]  ;;  %v5344_v17 = vld [vmem:[#allocation5 + $0x298] sm:$0xff]  ;;  %4577 = vst [vmem:[#allocation5 + $0x1a0] sm:$0xf0] %v4559_v32  ;;  %4578 = vst [vmem:[#allocation5 + $0x40] sm:$0xf0] %v4560_v59 }
 0x850   :  { %4512 = vst [vmem:[#allocation5 + $0x88] sm:$0xf] %v4494_v22  ;;  %4513 = vst [vmem:[#allocation5 + $0x188] sm:$0xf] %v4495_v20  ;;  %5570 = vmatprep.subr.mxu0 %v5345_v35  ;;  %v5329_v5 = vld [vmem:[#allocation5 + $0x1c8] sm:$0xff]  ;;  %vm9220_vm8 = vcmask 621568  }
 0x851   :  { %5571 = vmatpush1.msra.mxu0 %v5344_v17  ;;  %v4361_v50 = vpop.permute.xlu1 %4360  ;;  %v4357_v28 = vpop.permute.xlu0 %4356  ;;  %v9203_v35 = vld [vmem:[#allocation38_spill] sm:$0xff] }
 0x852   :  { %5572 = vmatprep.subr.mxu0 %v5327_v24  ;;  %v4372_v52 = vsel %vm1939_vm0, %v8264_v45, %v4361_v50  ;;  %v4373_v47 = vsel %vm1939_vm0, %v4361_v50, %v9195_v13  ;;  %v4370_v61 = vsel %vm1939_vm0, %v8242_v54, %v4357_v28  ;;  %v4371_v62 = vsel %vm1939_vm0, %v4357_v28, %v8264_v45  ;;  %v9197_v54 = vld [vmem:[#allocation32_spill] sm:$0xff]  ;;  %v9205_v50 = vld [vmem:[#allocation35_spill] sm:$0xff] }
 0x853   :  { %5573 = vmatpush1.msra.mxu0 %v5326_v30  ;;  %v5382_v43 = vld [vmem:[#allocation5 + $0xd8] sm:$0xff]  ;;  %4390 = vst [vmem:[#allocation5 + $0x2a8] sm:$0xf] %v4372_v52  ;;  %4391 = vst [vmem:[#allocation5 + $0x1f8] sm:$0xf] %v4373_v47 }
 0x854   :  { %v5383_v26 = vld [vmem:[#allocation5 + $0x38] sm:$0xff]  ;;  %4388 = vst [vmem:[#allocation5 + $0x50] sm:$0xf] %v4370_v61  ;;  %4389 = vst [vmem:[#allocation5 + $0x240] sm:$0xf] %v4371_v62  ;;  %6403 = vmatmul.mubr.msk.f32.vlgmr.msra.gmra.mxu0 %vm9196_vm2, %v8589_v21  ;;  %v9209_v62 = vld [vmem:[#allocation41_spill] sm:$0xff] }
 0x855   :  { %5637 = vmatprep.subr.mxu1 %v5383_v26  ;;  %5748 = vmatprep.mubr.f32.mxu0 %v7951_v18  ;;  %v4613_v7 = vpop.permute.xlu1 %4612  ;;  %v4733_v44 = vpop.permute.xlu0 %4732 }
 0x856   :  { %5638 = vmatpush1.msra.mxu1 %v5382_v43  ;;  %v4622_v46 = vsel %vm2211_vm12, %v9197_v54, %v4613_v7  ;;  %v4744_v45 = vsel %vm2347_vm10, %v8235_v4, %v4733_v44  ;;  %v4745_v37 = vsel %vm2347_vm10, %v4733_v44, %v9198_v48  ;;  %v5387_v7 = vld [vmem:[#allocation5 + $0x2b8] sm:$0xff] }
 0x857   :  { %v5365_v8 = vld [vmem:[#allocation5 + $0x188] sm:$0xff]  ;;  %4640 = vst [vmem:[#allocation5 + $0xb8] sm:$0xf] %v4622_v46  ;;  %4762 = vst [vmem:[#allocation5 + $0x140] sm:$0xf] %v4744_v45  ;;  %v9210_v45 = vld [vmem:[#allocation40_spill] sm:$0xff] }
 0x858   :  { %v5364_v27 = vld [vmem:[#allocation5 + $0x88] sm:$0xff]  ;;  %4763 = vst [vmem:[#allocation5 + $0x1c0] sm:$0xf] %v4745_v37  ;;  %5639 = vmatprep.subr.mxu1 %v5365_v8  ;;  %v9211_v37 = vld [vmem:[#allocation36_spill] sm:$0xff] }
 0x859   :  { %5640 = vmatpush1.msra.mxu1 %v5364_v27  ;;  %v4489_v10 = vpop.permute.xlu1 %4488  ;;  %v4609_v2 = vpop.permute.xlu0 %4608  ;;  %v5369_v46 = vld [vmem:[#allocation5 + $0x148] sm:$0xff] }
 0x85a   :  { %v4498_v63 = vsel %vm2075_vm14, %v9199_v49, %v4489_v10  ;;  %v4620_v58 = vsel %vm2211_vm12, %v8250_v39, %v4609_v2  ;;  %v4621_v4 = vsel %vm2211_vm12, %v4609_v2, %v9197_v54  ;;  %vm9200_vm12 = vmmov %vm9196_vm2  ;;  %v9213_v27 = vld [vmem:[#allocation42_spill] sm:$0xff] }
 0x85b   :  { %v5347_v36 = vld [vmem:[#allocation5 + $0x240] sm:$0xff]  ;;  %v5346_v3 = vld [vmem:[#allocation5 + $0x50] sm:$0xff]  ;;  %4516 = vst [vmem:[#allocation5 + $0x40] sm:$0xf] %v4498_v63  ;;  %4638 = vst [vmem:[#allocation5 + $0x60] sm:$0xf] %v4620_v58 }
 0x85c   :  { %4639 = vst [vmem:[#allocation5 + $0x170] sm:$0xf] %v4621_v4  ;;  %5641 = vmatprep.subr.mxu1 %v5347_v36  ;;  %v5348_v63 = vld [vmem:[#allocation5 + $0x2a8] sm:$0xff]  ;;  %vm9222_vm2 = vmmov %vm9220_vm8 }
 0x85d   :  { %5642 = vmatpush1.msra.mxu1 %v5346_v3  ;;  %v4365_v23 = vpop.permute.xlu1 %4364  ;;  %v4485_v29 = vpop.permute.xlu0 %4484  ;;  %v9216_v3 = vld [vmem:[#allocation49_spill] sm:$0xff] }
 0x85e   :  { %5643 = vmatprep.subr.mxu1 %v5329_v5  ;;  %v4374_v1 = vsel %vm1939_vm0, %v9195_v13, %v4365_v23  ;;  %v4496_v39 = vsel %vm2075_vm14, %v8256_v42, %v4485_v29  ;;  %v4497_v57 = vsel %vm2075_vm14, %v4485_v29, %v9199_v49  ;;  %v5402_v31 = vld [vmem:[#allocation5 + $0x140] sm:$0xf]  ;;  %vm9202_vm14 = vcmask 154624   ;;  %vm9204_vm0 = vmmov %vm9192_vm4  ;;  %v5386_v44 = vld [vmem:[#allocation5 + $0xb8] sm:$0xff] }
 0x85f   :  { %5644 = vmatpush1.msra.mxu1 %v5328_v14  ;;  %v5403_v16 = vld [vmem:[#allocation5 + $0x1c0] sm:$0xf]  ;;  %4392 = vst [vmem:[#allocation5 + $0x18] sm:$0xf] %v4374_v1  ;;  %4514 = vst [vmem:[#allocation5 + $0x208] sm:$0xf] %v4496_v39 }
 0x860   :  { %4515 = vst [vmem:[#allocation5 + $0x1a0] sm:$0xf] %v4497_v57  ;;  %6407 = vmatprep.subr.msk.mxu0 %vm3904_vm3, %v5403_v16  ;;  %6410 = vmatprep.subr.msk.mxu1 %vm3904_vm3, %v5405_v41  ;;  %vm9206_vm15 = vmmov %vm9204_vm0  ;;  %v5330_v1 = vld [vmem:[#allocation5 + $0x1d0] sm:$0xff]  ;;  %v9219_v16 = vld [vmem:[#allocation44_spill] sm:$0xff] }
 0x861   :  { %6408 = vmatpush1.msk.msra.mxu0 %vm3904_vm3, %v5402_v31  ;;  %6406 = vmatmul.mubr.msk.f32.vlgmr.msra.gmra.mxu1 %vm9200_vm12, %v8589_v21  ;;  %v4843_v42 = vpop.permute.xlu1 %4842  ;;  %v4737_v33 = vpop.permute.xlu0 %4736  ;;  %vm9224_vm12 = vcmask 162816  }
 0x862   :  { %5819 = vmatprep.mubr.f32.mxu1 %v7951_v18  ;;  %v4862_v0 = vsel %vm9202_vm14, %v4843_v42, %v9201_v15  ;;  %v4746_v34 = vsel %vm2347_vm10, %v9198_v48, %v4737_v33  ;;  %v5384_v32 = vld [vmem:[#allocation5 + $0x60] sm:$0xff]  ;;  %vm9207_vm10 = vcmask 908288   ;;  %v9223_v42 = vld [vmem:[#allocation39_spill] sm:$0xff]  ;;  %vm9226_vm14 = vmmov %vm9224_vm12 }
 0x863   :  { %v5385_v53 = vld [vmem:[#allocation5 + $0x170] sm:$0xff]  ;;  %4880 = vst [vmem:[#allocation5 + $0x178] sm:$0xf0] %v4862_v0  ;;  %4764 = vst [vmem:[#allocation5 + $0xa0] sm:$0xf] %v4746_v34  ;;  %v5368_v49 = vld [vmem:[#allocation5 + $0x40] sm:$0xff] }
 0x864   :  { %5708 = vmatprep.subr.mxu0 %v5385_v53  ;;  %vm9208_vm13 = vmmov %vm9207_vm10  ;;  %v9225_v0 = vld [vmem:[#allocation46_spill] sm:$0xff] }
 0x865   :  { %5709 = vmatpush1.msra.mxu0 %v5384_v32  ;;  %v5219_v59 = vpop.permute.xlu1 %5218  ;;  %v4425_v22 = vpop.permute.xlu0 %4424 }
 0x866   :  { %v5235_v20 = vsel %vm2891_vm7, %v8149_v6, %v5219_v59  ;;  %v5236_v17 = vsel %vm2891_vm7, %v5219_v59, %v9203_v35  ;;  %v4435_v24 = vsel %vm9204_vm0, %v8294_v56, %v4425_v22  ;;  %v4436_v28 = vsel %vm9206_vm15, %v4425_v22, %v9205_v50  ;;  %v5366_v52 = vld [vmem:[#allocation5 + $0x208] sm:$0xff]  ;;  %vm9227_vm0 = vmmov %vm9224_vm12 }
 0x867   :  { %v5367_v30 = vld [vmem:[#allocation5 + $0x1a0] sm:$0xff]  ;;  %5253 = vst [vmem:[#allocation5 + $0x250] sm:$0xf0] %v5235_v20  ;;  %5254 = vst [vmem:[#allocation5 + $0x1e8] sm:$0xf0] %v5236_v17 }
 0x868   :  { %4453 = vst [vmem:[#allocation5 + $0x1f8] sm:$0xf0] %v4435_v24  ;;  %4454 = vst [vmem:[#allocation5 + $0x18] sm:$0xf0] %v4436_v28  ;;  %5710 = vmatprep.subr.mxu0 %v5367_v30  ;;  %v9228_v17 = vld [vmem:[#allocation52_spill] sm:$0xff] }
 0x869   :  { %5711 = vmatpush1.msra.mxu0 %v5366_v52  ;;  %v5035_v13 = vpop.permute.xlu1 %5034  ;;  %v4301_v47 = vpop.permute.xlu0 %4300  ;;  %vm9229_vm15 = vmmov %vm9227_vm0  ;;  %v5406_v52 = vld [vmem:[#allocation5 + $0x48] sm:$0xf] }
 0x86a   :  { %v5050_v6 = vsel %vm9207_vm10, %v8324_v19, %v5035_v13  ;;  %v5051_v61 = vsel %vm9208_vm13, %v5035_v13, %v8358_v40  ;;  %v4311_v56 = vsel %vm1871_vm1, %v8300_v25, %v4301_v47  ;;  %v4312_v26 = vsel %vm1871_vm1, %v4301_v47, %v9209_v62  ;;  %v5404_v43 = vld [vmem:[#allocation5 + $0xa0] sm:$0xf]  ;;  %vm9230_vm10 = vmmov %vm9222_vm2  ;;  %v9236_v62 = vld [vmem:[#allocation43_spill] sm:$0xff] }
 0x86b   :  { %5068 = vst [vmem:[#allocation5 + $0xb0] sm:$0xf] %v5050_v6  ;;  %5069 = vst [vmem:[#allocation5 + $0x220] sm:$0xf] %v5051_v61  ;;  %6411 = vmatpush1.msk.msra.mxu1 %vm3904_vm3, %v5404_v43  ;;  %vm9212_vm1 = vcmask 146432   ;;  %v9233_v61 = vld [vmem:[#allocation56_spill] sm:$0xff] }
 0x86c   :  { %4329 = vst [vmem:[#allocation5 + $0xc0] sm:$0xf0] %v4311_v56  ;;  %4330 = vst [vmem:[#allocation5 + $0x248] sm:$0xf0] %v4312_v26  ;;  %5779 = vmatprep.subr.mxu1 %v5387_v7 }
 0x86d   :  { %v5287_v19 = vpop.permute.xlu1 %5286  ;;  %5780 = vmatpush1.msra.mxu1 %v5386_v44  ;;  %v4907_v54 = vpop.permute.xlu0 %4906  ;;  %vm9214_vm6 = vmmov %vm9212_vm1 }
 0x86e   :  { %v5300_v25 = vsel %vm2959_vm5, %v9210_v45, %v5287_v19  ;;  %v5301_v48 = vsel %vm2959_vm5, %v5287_v19, %v8374_v38  ;;  %v4924_v8 = vsel %vm9212_vm1, %v9211_v37, %v4907_v54  ;;  %v4925_v10 = vsel %vm9214_vm6, %v4907_v54, %v9213_v27  ;;  %5781 = vmatprep.subr.mxu1 %v5369_v46  ;;  %vm9215_vm9 = vmmov %vm9212_vm1  ;;  %v9239_v46 = vld [vmem:[#allocation60_spill] sm:$0xff] }
 0x86f   :  { %v5349_v2 = vld [vmem:[#allocation5 + $0x1f8] sm:$0xff]  ;;  %5318 = vst [vmem:[#allocation5 + $0x218] sm:$0xf] %v5300_v25  ;;  %5319 = vst [vmem:[#allocation5 + $0x258] sm:$0xf] %v5301_v48  ;;  %5782 = vmatpush1.msra.mxu1 %v5368_v49  ;;  %v9242_v48 = vld [vmem:[#allocation45_spill] sm:$0xff] }
 0x870   :  { %4942 = vst [vmem:[#allocation5 + $0xd0] sm:$0xf] %v4924_v8  ;;  %4943 = vst [vmem:[#allocation5 + $0xf8] sm:$0xf] %v4925_v10  ;;  %5712 = vmatprep.subr.mxu0 %v5349_v2  ;;  %v5350_v32 = vld [vmem:[#allocation5 + $0x18] sm:$0xff]  ;;  %v9244_v49 = vld [vmem:[#allocation58_spill] sm:$0xff] }
 0x871   :  { %5713 = vmatpush1.msra.mxu0 %v5348_v63  ;;  %v4911_v58 = vpop.permute.xlu1 %4910  ;;  %v5283_v4 = vpop.permute.xlu0 %5282  ;;  %vm9217_vm4 = vmmov %vm9212_vm1  ;;  %vm9232_vm1 = vcmask 908288  }
 0x872   :  { %v4926_v36 = vsel %vm9215_vm9, %v9213_v27, %v4911_v58  ;;  %v4927_v5 = vsel %vm9217_vm4, %v4911_v58, %v9216_v3  ;;  %v5298_v23 = vsel %vm2959_vm5, %v8316_v55, %v5283_v4  ;;  %v5299_v29 = vsel %vm2959_vm5, %v5283_v4, %v9210_v45  ;;  %v9221_v55 = vld [vmem:[#allocation54_spill] sm:$0xff]  ;;  %vm9231_vm13 = vmmov %vm9222_vm2  ;;  %v9245_v4 = vld [vmem:[#allocation47_spill] sm:$0xff] }
 0x873   :  { %v5331_v14 = vld [vmem:[#allocation5 + $0xc0] sm:$0xff]  ;;  %4944 = vst [vmem:[#allocation5 + $0x128] sm:$0xf] %v4926_v36  ;;  %4945 = vst [vmem:[#allocation5 + $0xf0] sm:$0xf] %v4927_v5  ;;  %vm9235_vm9 = vcmask 900096  }
 0x874   :  { %5316 = vst [vmem:[#allocation5 + $0x288] sm:$0xf] %v5298_v23  ;;  %5317 = vst [vmem:[#allocation5 + $0x8] sm:$0xf] %v5299_v29  ;;  %5714 = vmatprep.subr.mxu0 %v5331_v14  ;;  %v5332_v7 = vld [vmem:[#allocation5 + $0x248] sm:$0xff]  ;;  %v5388_v27 = vld [vmem:[#allocation5 + $0x250] sm:$0xff] }
 0x875   :  { %5715 = vmatpush1.msra.mxu0 %v5330_v1  ;;  %v5163_v39 = vpop.permute.xlu1 %5162  ;;  %v4783_v57 = vpop.permute.xlu0 %4782  ;;  %vm9234_vm6 = vmmov %vm9232_vm1  ;;  %v9246_v14 = vld [vmem:[#allocation64_spill] sm:$0xff] }
 0x876   :  { %6409 = vmatmul.mubr.msk.f32.vlgmr.msra.gmra.mxu0 %vm9218_vm11, %v8589_v21  ;;  %v5176_v41 = vsel %vm9220_vm8, %v9219_v16, %v5163_v39  ;;  %v5177_v31 = vsel %vm9222_vm2, %v5163_v39, %v9221_v55  ;;  %v4800_v33 = vsel %vm9224_vm12, %v9223_v42, %v4783_v57  ;;  %v4801_v34 = vsel %vm9226_vm14, %v4783_v57, %v9225_v0  ;;  %vm9237_vm4 = vmmov %vm9235_vm9  ;;  %v5409_v44 = vld [vmem:[#allocation5 + $0x218] sm:$0xf]  ;;  %v9249_v39 = vld [vmem:[#allocation48_spill] sm:$0xff] }
 0x877   :  { %v5351_v53 = vld [vmem:[#allocation5 + $0xd0] sm:$0xff]  ;;  %5890 = vmatprep.mubr.f32.mxu0 %v7951_v18  ;;  %5194 = vst [vmem:[#allocation5 + $0xe0] sm:$0xf] %v5176_v41  ;;  %5195 = vst [vmem:[#allocation5 + $0x158] sm:$0xf] %v5177_v31  ;;  %vm9238_vm8 = vcmask 146432  }
 0x878   :  { %4818 = vst [vmem:[#allocation5 + $0x178] sm:$0xf] %v4800_v33  ;;  %4819 = vst [vmem:[#allocation5 + $0x100] sm:$0xf] %v4801_v34  ;;  %5783 = vmatprep.subr.mxu1 %v5351_v53  ;;  %vm9241_vm12 = vcmask 916480   ;;  %v9255_v53 = vld [vmem:[#allocation50_spill] sm:$0xff] }
 0x879   :  { %5784 = vmatpush1.msra.mxu1 %v5350_v32  ;;  %v4787_v59 = vpop.permute.xlu1 %4786  ;;  %v5159_v22 = vpop.permute.xlu0 %5158  ;;  %vm9240_vm2 = vmmov %vm9238_vm8 }
 0x87a   :  { %v4802_v20 = vsel %vm9227_vm0, %v9225_v0, %v4787_v59  ;;  %v4803_v24 = vsel %vm9229_vm15, %v4787_v59, %v9228_v17  ;;  %v5174_v50 = vsel %vm9230_vm10, %v8328_v12, %v5159_v22  ;;  %v5175_v28 = vsel %vm9231_vm13, %v5159_v22, %v9219_v16  ;;  %vm9243_vm14 = vmmov %vm9241_vm12  ;;  %v9252_v0 = vld [vmem:[#allocation62_spill] sm:$0xff] }
 0x87b   :  { %v5407_v30 = vld [vmem:[#allocation5 + $0x288] sm:$0xf]  ;;  %4820 = vst [vmem:[#allocation5 + $0x2c0] sm:$0xf] %v4802_v20  ;;  %4821 = vst [vmem:[#allocation5 + $0x108] sm:$0xf] %v4803_v24 }
 0x87c   :  { %5192 = vst [vmem:[#allocation5 + $0x1e8] sm:$0xf] %v5174_v50  ;;  %5193 = vst [vmem:[#allocation5 + $0x118] sm:$0xf] %v5175_v28  ;;  %6413 = vmatprep.subr.msk.mxu0 %vm3904_vm3, %v5407_v30  ;;  %vm9248_vm10 = vcmask 154624   ;;  %v9257_v24 = vld [vmem:[#allocation66_spill] sm:$0xff] }
 0x87d   :  { %6414 = vmatpush1.msk.msra.mxu0 %vm3904_vm3, %v5406_v52  ;;  %v5039_v13 = vpop.permute.xlu1 %5038  ;;  %v5095_v47 = vpop.permute.xlu0 %5094  ;;  %vm9247_vm15 = vmmov %vm9227_vm0  ;;  %v9260_v30 = vld [vmem:[#allocation51_spill] sm:$0xff] }
 0x87e   :  { %v5052_v6 = vsel %vm9232_vm1, %v8358_v40, %v5039_v13  ;;  %v5053_v12 = vsel %vm9234_vm6, %v5039_v13, %v9233_v61  ;;  %v5111_v56 = vsel %vm9235_vm9, %v8157_v51, %v5095_v47  ;;  %v5112_v26 = vsel %vm9237_vm4, %v5095_v47, %v9236_v62  ;;  %v5408_v51 = vld [vmem:[#allocation5 + $0x8] sm:$0xf]  ;;  %vm9250_vm13 = vmmov %vm9248_vm10 }
 0x87f   :  { %v5333_v43 = vld [vmem:[#allocation5 + $0x178] sm:$0xff]  ;;  %5070 = vst [vmem:[#allocation5 + $0x70] sm:$0xf] %v5052_v6  ;;  %5071 = vst [vmem:[#allocation5 + $0x290] sm:$0xf] %v5053_v12  ;;  %vm9251_vm1 = vcmask 621568  }
 0x880   :  { %5129 = vst [vmem:[#allocation5 + $0x1f0] sm:$0xf0] %v5111_v56  ;;  %5130 = vst [vmem:[#allocation5 + $0xb0] sm:$0xf0] %v5112_v26  ;;  %5785 = vmatprep.subr.mxu1 %v5333_v43  ;;  %v5410_v56 = vld [vmem:[#allocation5 + $0x258] sm:$0xf] }
 0x881   :  { %5786 = vmatpush1.msra.mxu1 %v5332_v7  ;;  %v4915_v19 = vpop.permute.xlu1 %4914  ;;  %v4971_v40 = vpop.permute.xlu0 %4970  ;;  %vm9253_vm6 = vmmov %vm9251_vm1  ;;  %v9264_v43 = vld [vmem:[#allocation53_spill] sm:$0xff] }
 0x882   :  { %6416 = vmatprep.subr.msk.mxu1 %vm3904_vm3, %v5409_v44  ;;  %6412 = vmatmul.mubr.msk.f32.vlgmr.msra.gmra.mxu1 %vm9218_vm11, %v8589_v21  ;;  %v4928_v54 = vsel %vm9238_vm8, %v9216_v3, %v4915_v19  ;;  %v4929_v45 = vsel %vm9240_vm2, %v4915_v19, %v9239_v46  ;;  %v4987_v25 = vsel %vm9241_vm12, %v8165_v11, %v4971_v40  ;;  %vm9254_vm9 = vmmov %vm9237_vm4  ;;  %vm9256_vm11 = vcmask 908288  }
 0x883   :  { %v4988_v37 = vsel %vm9243_vm14, %v4971_v40, %v9242_v48  ;;  %6417 = vmatpush1.msk.msra.mxu1 %vm3904_vm3, %v5408_v51  ;;  %v5389_v8 = vld [vmem:[#allocation5 + $0x1e8] sm:$0xff]  ;;  %4946 = vst [vmem:[#allocation5 + $0x110] sm:$0xf] %v4928_v54  ;;  %4947 = vst [vmem:[#allocation5 + $0x228] sm:$0xf] %v4929_v45  ;;  %5961 = vmatprep.mubr.f32.mxu1 %v7951_v18  ;;  %vm9262_vm14 = vcmask 293888  }
 0x884   :  { %5005 = vst [vmem:[#allocation5 + $0xf8] sm:$0xf0] %v4987_v25  ;;  %5006 = vst [vmem:[#allocation5 + $0x128] sm:$0xf0] %v4988_v37  ;;  %5850 = vmatprep.subr.mxu0 %v5389_v8 }
 0x885   :  { %5851 = vmatpush1.msra.mxu0 %v5388_v27  ;;  %v5291_v10 = vpop.permute.xlu1 %5290  ;;  %v5223_v2 = vpop.permute.xlu0 %5222  ;;  %vm9258_vm8 = vmmov %vm9256_vm11 }
 0x886   :  { %v5302_v11 = vsel %vm2959_vm5, %v8374_v38, %v5291_v10  ;;  %v5303_v63 = vsel %vm2959_vm5, %v5291_v10, %v9244_v49  ;;  %v5237_v58 = vsel %vm2891_vm7, %v9203_v35, %v5223_v2  ;;  %v5238_v36 = vsel %vm2891_vm7, %v5223_v2, %v9245_v4  ;;  %vm9259_vm2 = vmmov %vm9241_vm12 }
 0x887   :  { %v5371_v3 = vld [vmem:[#allocation5 + $0xb0] sm:$0xff]  ;;  %5320 = vst [vmem:[#allocation5 + $0x260] sm:$0xf] %v5302_v11  ;;  %5321 = vst [vmem:[#allocation5 + $0x268] sm:$0xf] %v5303_v63 }
 0x888   :  { %v5370_v5 = vld [vmem:[#allocation5 + $0x1f0] sm:$0xff]  ;;  %5255 = vst [vmem:[#allocation5 + $0x118] sm:$0xf0] %v5237_v58  ;;  %5256 = vst [vmem:[#allocation5 + $0xe0] sm:$0xf0] %v5238_v36  ;;  %5852 = vmatprep.subr.mxu0 %v5371_v3 }
 0x889   :  { %5853 = vmatpush1.msra.mxu0 %v5370_v5  ;;  %v4791_v23 = vpop.permute.xlu1 %4790  ;;  %v4847_v29 = vpop.permute.xlu0 %4846  ;;  %vm9261_vm12 = vmmov %vm9259_vm2 }
 0x88a   :  { %v4804_v38 = vsel %vm9227_vm0, %v9228_v17, %v4791_v23  ;;  %v4805_v1 = vsel %vm9247_vm15, %v4791_v23, %v9246_v14  ;;  %v4863_v35 = vsel %vm9248_vm10, %v9201_v15, %v4847_v29  ;;  %v4864_v57 = vsel %vm9250_vm13, %v4847_v29, %v9249_v39  ;;  %vm9263_vm0 = vmmov %vm9248_vm10 }
 0x88b   :  { %v5353_v16 = vld [vmem:[#allocation5 + $0x128] sm:$0xff]  ;;  %v5352_v41 = vld [vmem:[#allocation5 + $0xf8] sm:$0xff]  ;;  %4822 = vst [vmem:[#allocation5 + $0x1a8] sm:$0xf] %v4804_v38  ;;  %4823 = vst [vmem:[#allocation5 + $0xc8] sm:$0xf] %v4805_v1 }
 0x88c   :  { %4881 = vst [vmem:[#allocation5 + $0x100] sm:$0xf0] %v4863_v35  ;;  %4882 = vst [vmem:[#allocation5 + $0x2c0] sm:$0xf0] %v4864_v57  ;;  %5854 = vmatprep.subr.mxu0 %v5353_v16  ;;  %v9277_v35 = vld [vmem:[#allocation59_spill] sm:$0xff] }
 0x88d   :  { %5855 = vmatpush1.msra.mxu0 %v5352_v41  ;;  %v5167_v31 = vpop.permute.xlu1 %5166  ;;  %v5099_v42 = vpop.permute.xlu0 %5098  ;;  %vm9265_vm15 = vmmov %vm9263_vm0 }
 0x88e   :  { %v5178_v33 = vsel %vm9251_vm1, %v9221_v55, %v5167_v31  ;;  %v5179_v34 = vsel %vm9253_vm6, %v5167_v31, %v9252_v0  ;;  %v5113_v15 = vsel %vm9254_vm9, %v9236_v62, %v5099_v42  ;;  %v5114_v32 = vsel %vm9237_vm4, %v5099_v42, %v9255_v53  ;;  %v5411_v6 = vld [vmem:[#allocation5 + $0x260] sm:$0xf]  ;;  %vm9269_vm13 = vmmov %vm9251_vm1  ;;  %v5412_v23 = vld [vmem:[#allocation5 + $0x268] sm:$0xf] }
 0x88f   :  { %v5391_v59 = vld [vmem:[#allocation5 + $0xe0] sm:$0xff]  ;;  %v5390_v22 = vld [vmem:[#allocation5 + $0x118] sm:$0xff]  ;;  %5196 = vst [vmem:[#allocation5 + $0x98] sm:$0xf] %v5178_v33  ;;  %5197 = vst [vmem:[#allocation5 + $0x1d8] sm:$0xf] %v5179_v34 }
 0x890   :  { %5131 = vst [vmem:[#allocation5 + $0x220] sm:$0xf0] %v5113_v15  ;;  %5132 = vst [vmem:[#allocation5 + $0x70] sm:$0xf0] %v5114_v32  ;;  %5921 = vmatprep.subr.mxu1 %v5391_v59  ;;  %v9279_v33 = vld [vmem:[#allocation61_spill] sm:$0xff] }
 0x891   :  { %5922 = vmatpush1.msra.mxu1 %v5390_v22  ;;  %v5043_v20 = vpop.permute.xlu1 %5042  ;;  %v4975_v17 = vpop.permute.xlu0 %4974  ;;  %vm9270_vm1 = vmmov %vm9237_vm4  ;;  %vm9274_vm4 = vcmask 162816   ;;  %v9281_v22 = vld [vmem:[#allocation63_spill] sm:$0xff] }
 0x892   :  { %v5054_v55 = vsel %vm9256_vm11, %v9233_v61, %v5043_v20  ;;  %v5055_v50 = vsel %vm9258_vm8, %v5043_v20, %v9257_v24  ;;  %v4989_v28 = vsel %vm9259_vm2, %v9242_v48, %v4975_v17  ;;  %v4990_v52 = vsel %vm9261_vm12, %v4975_v17, %v9260_v30  ;;  %v9268_v48 = vld [vmem:[#allocation55_spill] sm:$0xff]  ;;  %vm9272_vm6 = vmmov %vm9270_vm1 }
 0x893   :  { %v5335_v13 = vld [vmem:[#allocation5 + $0x2c0] sm:$0xff]  ;;  %5072 = vst [vmem:[#allocation5 + $0x1e0] sm:$0xf] %v5054_v55  ;;  %5073 = vst [vmem:[#allocation5 + $0x138] sm:$0xf] %v5055_v50  ;;  %vm9278_vm12 = vcmask 908288  }
 0x894   :  { %v5334_v47 = vld [vmem:[#allocation5 + $0x100] sm:$0xff]  ;;  %5007 = vst [vmem:[#allocation5 + $0xf0] sm:$0xf0] %v4989_v28  ;;  %5008 = vst [vmem:[#allocation5 + $0x110] sm:$0xf0] %v4990_v52  ;;  %5856 = vmatprep.subr.mxu0 %v5335_v13 }
 0x895   :  { %5857 = vmatpush1.msra.mxu0 %v5334_v47  ;;  %v5295_v12 = vpop.permute.xlu1 %5294  ;;  %v4851_v61 = vpop.permute.xlu0 %4850  ;;  %vm9273_vm9 = vmmov %vm9262_vm14 }
 0x896   :  { %6419 = vmatprep.subr.msk.mxu0 %vm3904_vm3, %v5411_v6  ;;  %6415 = vmatmul.mubr.msk.f32.vlgmr.msra.gmra.mxu0 %vm9262_vm14, %v8589_v21  ;;  %v5304_v62 = vsel %vm2959_vm5, %v9244_v49, %v5295_v12  ;;  %v4865_v26 = vsel %vm9263_vm0, %v9249_v39, %v4851_v61  ;;  %v4866_v7 = vsel %vm9265_vm15, %v4851_v61, %v9264_v43  ;;  %vm9266_vm5 = vcmask 146432   ;;  %v9271_v49 = vld [vmem:[#allocation57_spill] sm:$0xff]  ;;  %vm9275_vm11 = vmmov %vm9274_vm4  ;;  %v9288_v61 = vld [vmem:[#allocation67_spill] sm:$0xff] }
 0x897   :  { %6420 = vmatpush1.msk.msra.mxu0 %vm3904_vm3, %v5410_v56  ;;  %v5373_v44 = vld [vmem:[#allocation5 + $0x70] sm:$0xff]  ;;  %v5372_v19 = vld [vmem:[#allocation5 + $0x220] sm:$0xff]  ;;  %6032 = vmatprep.mubr.f32.mxu0 %v7951_v18  ;;  %5322 = vst [vmem:[#allocation5 + $0x58] sm:$0xf] %v5304_v62  ;;  %4883 = vst [vmem:[#allocation5 + $0x108] sm:$0xf0] %v4865_v26 }
 0x898   :  { %4884 = vst [vmem:[#allocation5 + $0x1a8] sm:$0xf0] %v4866_v7  ;;  %5923 = vmatprep.subr.mxu1 %v5373_v44  ;;  %vm9267_vm10 = vmmov %vm9266_vm5 }
 0x899   :  { %5924 = vmatpush1.msra.mxu1 %v5372_v19  ;;  %v4919_v40 = vpop.permute.xlu1 %4918  ;;  %v5227_v51 = vpop.permute.xlu0 %5226  ;;  %vm9276_vm8 = vmmov %vm9259_vm2 }
 0x89a   :  { %v4930_v54 = vsel %vm9266_vm5, %v9239_v46, %v4919_v40  ;;  %v4931_v45 = vsel %vm9267_vm10, %v4919_v40, %v8440_v60  ;;  %v5239_v25 = vsel %vm2891_vm7, %v9245_v4, %v5227_v51  ;;  %v5240_v37 = vsel %vm2891_vm7, %v5227_v51, %v9268_v48  ;;  %vm9280_vm14 = vmmov %vm9266_vm5 }
 0x89b   :  { %v5355_v8 = vld [vmem:[#allocation5 + $0x110] sm:$0xff]  ;;  %4948 = vst [vmem:[#allocation5 + $0x150] sm:$0xf] %v4930_v54  ;;  %4949 = vst [vmem:[#allocation5 + $0x210] sm:$0xf] %v4931_v45 }
 0x89c   :  { %v5354_v27 = vld [vmem:[#allocation5 + $0xf0] sm:$0xff]  ;;  %5257 = vst [vmem:[#allocation5 + $0x158] sm:$0xf0] %v5239_v25  ;;  %5258 = vst [vmem:[#allocation5 + $0x98] sm:$0xf0] %v5240_v37  ;;  %5925 = vmatprep.subr.mxu1 %v5355_v8  ;;  %v9294_v8 = vld [vmem:[#allocation13_spill] sm:$0xff] }
 0x89d   :  { %5926 = vmatpush1.msra.mxu1 %v5354_v27  ;;  %v5171_v10 = vpop.permute.xlu1 %5170  ;;  %v5103_v2 = vpop.permute.xlu0 %5102  ;;  %vm9282_vm15 = vmmov %vm9263_vm0 }
 0x89e   :  { %v5180_v46 = vsel %vm9269_vm13, %v9252_v0, %v5171_v10  ;;  %v5115_v11 = vsel %vm9270_vm1, %v9255_v53, %v5103_v2  ;;  %v5116_v63 = vsel %vm9272_vm6, %v5103_v2, %v9271_v49  ;;  %v5336_v4 = vld [vmem:[#allocation5 + $0x108] sm:$0xff]  ;;  %v5413_v36 = vld [vmem:[#allocation5 + $0x58] sm:$0xf]  ;;  %vm9284_vm5 = vmmov %vm9270_vm1 }
 0x89f   :  { %v5337_v58 = vld [vmem:[#allocation5 + $0x1a8] sm:$0xff]  ;;  %5198 = vst [vmem:[#allocation5 + $0x2c8] sm:$0xf] %v5180_v46  ;;  %5133 = vst [vmem:[#allocation5 + $0x290] sm:$0xf0] %v5115_v11 }
 0x8a0   :  { %5134 = vst [vmem:[#allocation5 + $0x1e0] sm:$0xf0] %v5116_v63  ;;  %5927 = vmatprep.subr.mxu1 %v5337_v58  ;;  %vm9286_vm10 = vmmov %vm9270_vm1  ;;  %v9295_v10 = vld [vmem:[#allocation14_spill] sm:$0xff]  ;;  %v9296_v63 = vld [vmem:[#allocation15_spill] sm:$0xff] }
 0x8a1   :  { %5928 = vmatpush1.msra.mxu1 %v5336_v4  ;;  %v4795_v3 = vpop.permute.xlu1 %4794  ;;  %v4979_v5 = vpop.permute.xlu0 %4978  ;;  %vm9287_vm13 = vmmov %vm9259_vm2 }
 0x8a2   :  { %6422 = vmatprep.subr.msk.mxu1 %vm3904_vm3, %v5413_v36  ;;  %6418 = vmatmul.mubr.msk.f32.vlgmr.msra.gmra.mxu1 %vm9273_vm9, %v8589_v21  ;;  %v4806_v29 = vsel %vm9274_vm4, %v9246_v14, %v4795_v3  ;;  %v4807_v38 = vsel %vm9275_vm11, %v4795_v3, %v8444_v9  ;;  %v4991_v1 = vsel %vm9276_vm8, %v9260_v30, %v4979_v5  ;;  %v9285_v30 = vld [vmem:[#allocation65_spill] sm:$0xff]  ;;  %vm9289_vm1 = vmmov %vm9259_vm2 }
 0x8a3   :  { %v4992_v39 = vsel %vm9259_vm2, %v4979_v5, %v9277_v35  ;;  %6423 = vmatpush1.msk.msra.mxu1 %vm3904_vm3, %v5412_v23  ;;  %v5393_v57 = vld [vmem:[#allocation5 + $0x98] sm:$0xff]  ;;  %4824 = vst [vmem:[#allocation5 + $0x2a0] sm:$0xf] %v4806_v29  ;;  %4825 = vst [vmem:[#allocation5 + $0x1b0] sm:$0xf] %v4807_v38  ;;  %6103 = vmatprep.mubr.f32.mxu1 %v7951_v18 }
 0x8a4   :  { %v5392_v16 = vld [vmem:[#allocation5 + $0x158] sm:$0xff]  ;;  %5009 = vst [vmem:[#allocation5 + $0x228] sm:$0xf0] %v4991_v1  ;;  %5010 = vst [vmem:[#allocation5 + $0x150] sm:$0xf0] %v4992_v39  ;;  %5992 = vmatprep.subr.mxu0 %v5393_v57 }
 0x8a5   :  { %5993 = vmatpush1.msra.mxu0 %v5392_v16  ;;  %v5047_v14 = vpop.permute.xlu1 %5046  ;;  %v5231_v41 = vpop.permute.xlu0 %5230  ;;  %vm9290_vm6 = vmmov %vm9273_vm9  ;;  %v9297_v29 = vld [vmem:[#allocation16_spill] sm:$0xff] }
 0x8a6   :  { %v5056_v31 = vsel %vm9278_vm12, %v9257_v24, %v5047_v14  ;;  %v5241_v42 = vsel %vm2891_vm7, %v9268_v48, %v5231_v41  ;;  %v5242_v0 = vsel %vm2891_vm7, %v5231_v41, %v9279_v33  ;;  %v5374_v15 = vld [vmem:[#allocation5 + $0x290] sm:$0xff]  ;;  %vm9283_vm7 = vmmov %vm9274_vm4  ;;  %v9298_v41 = vld [vmem:[#allocation17_spill] sm:$0xff] }
 0x8a7   :  { %v5375_v34 = vld [vmem:[#allocation5 + $0x1e0] sm:$0xff]  ;;  %5074 = vst [vmem:[#allocation5 + $0x78] sm:$0xf] %v5056_v31  ;;  %5259 = vst [vmem:[#allocation5 + $0x1d8] sm:$0xf0] %v5241_v42 }
 0x8a8   :  { %5260 = vst [vmem:[#allocation5 + $0x2c8] sm:$0xf0] %v5242_v0  ;;  %5994 = vmatprep.subr.mxu0 %v5375_v34  ;;  %vm9291_vm9 = vmmov %vm9263_vm0 }
 0x8a9   :  { %5995 = vmatpush1.msra.mxu0 %v5374_v15  ;;  %v4923_v18 = vpop.permute.xlu1 %4922  ;;  %v4855_v53 = vpop.permute.xlu0 %4854  ;;  %vm9292_vm4 = vmmov %vm9263_vm0 }
 0x8aa   :  { %v4932_v32 = vsel %vm9280_vm14, %v8440_v60, %v4923_v18  ;;  %v4867_v59 = vsel %vm9263_vm0, %v9264_v43, %v4855_v53  ;;  %v4868_v20 = vsel %vm9282_vm15, %v4855_v53, %v9281_v22  ;;  %vm9293_vm11 = vmmov %vm9290_vm6  ;;  %v9299_v53 = vld [vmem:[#allocation18_spill] sm:$0xff] }
 0x8ab   :  { %v5357_v17 = vld [vmem:[#allocation5 + $0x150] sm:$0xff]  ;;  %v5356_v55 = vld [vmem:[#allocation5 + $0x228] sm:$0xff]  ;;  %4950 = vst [vmem:[#allocation5 + $0x168] sm:$0xf] %v4932_v32  ;;  %4885 = vst [vmem:[#allocation5 + $0xc8] sm:$0xf0] %v4867_v59 }
 0x8ac   :  { %4886 = vst [vmem:[#allocation5 + $0x2a0] sm:$0xf0] %v4868_v20  ;;  %5996 = vmatprep.subr.mxu0 %v5357_v17 }
 0x8ad   :  { %5997 = vmatpush1.msra.mxu0 %v5356_v55  ;;  %v4799_v24 = vpop.permute.xlu1 %4798  ;;  %v5107_v50 = vpop.permute.xlu0 %5106 }
 0x8ae   :  { %v4808_v28 = vsel %vm9283_vm7, %v8444_v9, %v4799_v24  ;;  %v5117_v60 = vsel %vm9284_vm5, %v9271_v49, %v5107_v50  ;;  %v5118_v52 = vsel %vm9286_vm10, %v5107_v50, %v9285_v30  ;;  %v5394_v47 = vld [vmem:[#allocation5 + $0x1d8] sm:$0xff] }
 0x8af   :  { %v5395_v13 = vld [vmem:[#allocation5 + $0x2c8] sm:$0xff]  ;;  %4826 = vst [vmem:[#allocation5 + $0x278] sm:$0xf] %v4808_v28  ;;  %5135 = vst [vmem:[#allocation5 + $0x138] sm:$0xf0] %v5117_v60  ;;  %v9300_v50 = vld [vmem:[#allocation19_spill] sm:$0xff] }
 0x8b0   :  { %5136 = vst [vmem:[#allocation5 + $0x78] sm:$0xf0] %v5118_v52  ;;  %6063 = vmatprep.subr.mxu1 %v5395_v13 }
 0x8b1   :  { %6064 = vmatpush1.msra.mxu1 %v5394_v47  ;;  %v4983_v6 = vpop.permute.xlu0 %4982  ;;  %v4861_v26 = vpop.permute.xlu1 %4860 }
 0x8b2   :  { %v4993_v12 = vsel %vm9287_vm13, %v9277_v35, %v4983_v6  ;;  %v4994_v9 = vsel %vm9289_vm1, %v4983_v6, %v9288_v61  ;;  %v5338_v62 = vld [vmem:[#allocation5 + $0xc8] sm:$0xff] }
 0x8b3   :  { %v5339_v56 = vld [vmem:[#allocation5 + $0x2a0] sm:$0xff]  ;;  %5011 = vst [vmem:[#allocation5 + $0x210] sm:$0xf0] %v4993_v12  ;;  %5012 = vst [vmem:[#allocation5 + $0x168] sm:$0xf0] %v4994_v9 }
 0x8b4   :  { %5998 = vmatprep.subr.mxu0 %v5339_v56  ;;  %v9301_v12 = vld [vmem:[#allocation20_spill] sm:$0xff] }
 0x8b5   :  { %5999 = vmatpush1.msra.mxu0 %v5338_v62  ;;  %v4859_v43 = vpop.permute.xlu0 %4858 }
 0x8b6   :  { %6421 = vmatmul.mubr.msk.f32.vlgmr.msra.gmra.mxu0 %vm9290_vm6, %v8589_v21  ;;  %v4869_v7 = vsel %vm9291_vm9, %v9281_v22, %v4859_v43  ;;  %v4870_v44 = vsel %vm9292_vm4, %v4859_v43, %v4861_v26  ;;  %v5376_v40 = vld [vmem:[#allocation5 + $0x138] sm:$0xff] }
 0x8b7   :  { %v5377_v19 = vld [vmem:[#allocation5 + $0x78] sm:$0xff]  ;;  %4887 = vst [vmem:[#allocation5 + $0x1b0] sm:$0xf0] %v4869_v7  ;;  %4888 = vst [vmem:[#allocation5 + $0x278] sm:$0xf0] %v4870_v44  ;;  %v9302_v44 = vld [vmem:[#allocation21_spill] sm:$0xff] }
 0x8b8   :  { %6065 = vmatprep.subr.mxu1 %v5377_v19 }
 0x8b9   :  { %6066 = vmatpush1.msra.mxu1 %v5376_v40 }
 0x8ba   :  { %v5359_v51 = vld [vmem:[#allocation5 + $0x168] sm:$0xff]  ;;  %v5358_v54 = vld [vmem:[#allocation5 + $0x210] sm:$0xff] }
 0x8bb   :  { %6067 = vmatprep.subr.mxu1 %v5359_v51 }
 0x8bc   :  { %6068 = vmatpush1.msra.mxu1 %v5358_v54 }
 0x8be   :  { %v5341_v45 = vld [vmem:[#allocation5 + $0x278] sm:$0xff]  ;;  %v5340_v25 = vld [vmem:[#allocation5 + $0x1b0] sm:$0xff] }
 0x8bf   :  { %6069 = vmatprep.subr.mxu1 %v5341_v45 }
 0x8c0   :  { %6070 = vmatpush1.msra.mxu1 %v5340_v25 }
 0x8c1   :  { %6424 = vmatmul.mubr.msk.f32.vlgmr.msra.gmra.mxu1 %vm9293_vm11, %v8589_v21 }
 0x8fe   :  { %v8858_v48 = vpop.f32.mrf.mxu0 }
 0x8ff   :  { %v6110_v27 = vmul.f32 %v8858_v48, %v9294_v8 }
 0x900   :  { %v8860_v37 = vpop.f32.mrf.mxu0 }
 0x901   :  { %v6111_v2 = vmul.f32 %v8860_v37, %v9295_v10  ;;  %v6166_v11 = vmul.f32 %v6110_v27, %v8858_v48  ;;  %v6128_v4 = vsel %vm3904_vm3, %v6110_v27, 0.0  ;;  %v9303_v27 = vld [vmem:[#allocation22_spill] sm:$0xff] }
 0x903   :  { %v6167_v49 = vmul.f32 %v6111_v2, %v8860_v37  ;;  %v6129_v36 = vsel %vm3904_vm3, %v6111_v2, 0.0  ;;  %v6184_v3 = vsel %vm3904_vm3, %v6166_v11, 0.0 }
 0x904   :  { %v6130_v1 = vadd.f32 %v6129_v36, %v6128_v4  ;;  %v9304_v36 = vld [vmem:[#allocation23_spill] sm:$0xff] }
 0x905   :  { %v6185_v5 = vsel %vm3904_vm3, %v6167_v49, 0.0 }
 0x906   :  { %v6186_v57 = vadd.f32 %v6185_v5, %v6184_v3 }
 0x914   :  { %v8866_v46 = vpop.f32.mrf.mxu0 }
 0x915   :  { %v6112_v58 = vmul.f32 %v8866_v46, %v9296_v63 }
 0x916   :  { %v8872_v21 = vpop.f32.mrf.mxu0 }
 0x917   :  { %v6168_v23 = vmul.f32 %v6112_v58, %v8866_v46  ;;  %v6113_v38 = vmul.f32 %v8872_v21, %v9297_v29  ;;  %v6131_v39 = vsel %vm3904_vm3, %v6112_v58, 0.0 }
 0x918   :  { %v6132_v42 = vadd.f32 %v6131_v39, %v6130_v1 }
 0x919   :  { %v6187_v16 = vsel %vm3904_vm3, %v6168_v23, 0.0  ;;  %v6169_v14 = vmul.f32 %v6113_v38, %v8872_v21  ;;  %v6133_v0 = vsel %vm3904_vm3, %v6113_v38, 0.0 }
 0x91a   :  { %v6188_v34 = vadd.f32 %v6187_v16, %v6186_v57  ;;  %v6134_v59 = vadd.f32 %v6133_v0, %v6132_v42  ;;  %v9305_v57 = vld [vmem:[#allocation24_spill] sm:$0xff] }
 0x91b   :  { %v6189_v15 = vsel %vm3904_vm3, %v6169_v14, 0.0 }
 0x91c   :  { %v6190_v17 = vadd.f32 %v6189_v15, %v6188_v34  ;;  %v9306_v15 = vld [vmem:[#allocation25_spill] sm:$0xff] }
 0x921   :  { %v8881_v35 = vpop.f32.mrf.mxu1 }
 0x922   :  { %v6114_v31 = vmul.f32 %v8881_v35, %v9298_v41 }
 0x923   :  { %v8888_v33 = vpop.f32.mrf.mxu1 }
 0x924   :  { %v6170_v18 = vmul.f32 %v6114_v31, %v8881_v35  ;;  %v6115_v32 = vmul.f32 %v8888_v33, %v9299_v53  ;;  %v6135_v20 = vsel %vm3904_vm3, %v6114_v31, 0.0 }
 0x925   :  { %v6136_v60 = vadd.f32 %v6135_v20, %v6134_v59 }
 0x926   :  { %v6191_v55 = vsel %vm3904_vm3, %v6170_v18, 0.0  ;;  %v6171_v24 = vmul.f32 %v6115_v32, %v8888_v33  ;;  %v6137_v52 = vsel %vm3904_vm3, %v6115_v32, 0.0 }
 0x927   :  { %v6192_v13 = vadd.f32 %v6191_v55, %v6190_v17  ;;  %v6138_v9 = vadd.f32 %v6137_v52, %v6136_v60 }
 0x928   :  { %v6193_v47 = vsel %vm3904_vm3, %v6171_v24, 0.0  ;;  %v9307_v24 = vld [vmem:[#allocation26_spill] sm:$0xff] }
 0x929   :  { %v6194_v26 = vadd.f32 %v6193_v47, %v6192_v13  ;;  %v9308_v13 = vld [vmem:[#allocation27_spill] sm:$0xff] }
 0x936   :  { %v8895_v22 = vpop.f32.mrf.mxu0 }
 0x937   :  { %v6116_v28 = vmul.f32 %v8895_v22, %v9300_v50 }
 0x938   :  { %v8902_v30 = vpop.f32.mrf.mxu0 }
 0x939   :  { %v6172_v6 = vmul.f32 %v6116_v28, %v8895_v22  ;;  %v6117_v61 = vmul.f32 %v8902_v30, %v9301_v12  ;;  %v6139_v62 = vsel %vm3904_vm3, %v6116_v28, 0.0 }
 0x93a   :  { %v6140_v40 = vadd.f32 %v6139_v62, %v6138_v9 }
 0x93b   :  { %v6195_v43 = vsel %vm3904_vm3, %v6172_v6, 0.0  ;;  %v6173_v7 = vmul.f32 %v6117_v61, %v8902_v30  ;;  %v6141_v54 = vsel %vm3904_vm3, %v6117_v61, 0.0 }
 0x93c   :  { %v6196_v45 = vadd.f32 %v6195_v43, %v6194_v26  ;;  %v6142_v2 = vadd.f32 %v6141_v54, %v6140_v40 }
 0x93d   :  { %v6197_v25 = vsel %vm3904_vm3, %v6173_v7, 0.0  ;;  %v9309_v7 = vld [vmem:[#allocation28_spill] sm:$0xff] }
 0x93e   :  { %v6198_v63 = vadd.f32 %v6197_v25, %v6196_v45 }
 0x942   :  { %v8909_v56 = vpop.f32.mrf.mxu1 }
 0x943   :  { %v6118_v19 = vmul.f32 %v8909_v56, %v9302_v44 }
 0x944   :  { %v8916_v51 = vpop.f32.mrf.mxu1 }
 0x945   :  { %v6174_v8 = vmul.f32 %v6118_v19, %v8909_v56  ;;  %v6119_v10 = vmul.f32 %v8916_v51, %v9303_v27  ;;  %v6143_v49 = vsel %vm3904_vm3, %v6118_v19, 0.0 }
 0x946   :  { %v6144_v5 = vadd.f32 %v6143_v49, %v6142_v2 }
 0x947   :  { %v6199_v58 = vsel %vm3904_vm3, %v6174_v8, 0.0  ;;  %v6175_v4 = vmul.f32 %v6119_v10, %v8916_v51  ;;  %v6145_v29 = vsel %vm3904_vm3, %v6119_v10, 0.0 }
 0x948   :  { %v6200_v38 = vadd.f32 %v6199_v58, %v6198_v63  ;;  %v6146_v14 = vadd.f32 %v6145_v29, %v6144_v5 }
 0x949   :  { %v6201_v1 = vsel %vm3904_vm3, %v6175_v4, 0.0  ;;  %v9310_v4 = vld [vmem:[#allocation29_spill] sm:$0xff] }
 0x94a   :  { %v6202_v42 = vadd.f32 %v6201_v1, %v6200_v38  ;;  %v9311_v1 = vld [vmem:[#allocation30_spill] sm:$0xff] }
 0x956   :  { %v8923_v11 = vpop.f32.mrf.mxu0 }
 0x957   :  { %v6120_v3 = vmul.f32 %v8923_v11, %v9304_v36 }
 0x958   :  { %v8930_v23 = vpop.f32.mrf.mxu0 }
 0x959   :  { %v6176_v39 = vmul.f32 %v6120_v3, %v8923_v11  ;;  %v6121_v16 = vmul.f32 %v8930_v23, %v9305_v57  ;;  %v6147_v31 = vsel %vm3904_vm3, %v6120_v3, 0.0 }
 0x95a   :  { %v6148_v53 = vadd.f32 %v6147_v31, %v6146_v14 }
 0x95b   :  { %v6203_v0 = vsel %vm3904_vm3, %v6176_v39, 0.0  ;;  %v6177_v34 = vmul.f32 %v6121_v16, %v8930_v23  ;;  %v6149_v59 = vsel %vm3904_vm3, %v6121_v16, 0.0 }
 0x95c   :  { %v6204_v20 = vadd.f32 %v6203_v0, %v6202_v42  ;;  %v6150_v28 = vadd.f32 %v6149_v59, %v6148_v53 }
 0x95d   :  { %v6205_v17 = vsel %vm3904_vm3, %v6177_v34, 0.0 }
 0x95e   :  { %v6206_v6 = vadd.f32 %v6205_v17, %v6204_v20 }
 0x962   :  { %v8937_v41 = vpop.f32.mrf.mxu1 }
 0x963   :  { %v6122_v18 = vmul.f32 %v8937_v41, %v9306_v15 }
 0x964   :  { %v8944_v32 = vpop.f32.mrf.mxu1 }
 0x965   :  { %v6178_v55 = vmul.f32 %v6122_v18, %v8937_v41  ;;  %v6123_v50 = vmul.f32 %v8944_v32, %v9307_v24  ;;  %v6151_v52 = vsel %vm3904_vm3, %v6122_v18, 0.0 }
 0x966   :  { %v6152_v62 = vadd.f32 %v6151_v52, %v6150_v28  ;;  %v6224_v28 = vld [vmem:[%s9055_s9] sm:$0xf] }
 0x967   :  { %v6207_v61 = vsel %vm3904_vm3, %v6178_v55, 0.0  ;;  %v6179_v9 = vmul.f32 %v6123_v50, %v8944_v32  ;;  %v6153_v26 = vsel %vm3904_vm3, %v6123_v50, 0.0 }
 0x968   :  { %v6208_v19 = vadd.f32 %v6207_v61, %v6206_v6  ;;  %v6154_v45 = vadd.f32 %v6153_v26, %v6152_v62 }
 0x969   :  { %v6209_v40 = vsel %vm3904_vm3, %v6179_v9, 0.0 }
 0x96a   :  { %v6210_v27 = vadd.f32 %v6209_v40, %v6208_v19 }
 0x976   :  { %v8951_v60 = vpop.f32.mrf.mxu0 }
 0x977   :  { %v6124_v47 = vmul.f32 %v8951_v60, %v9308_v13 }
 0x978   :  { %v8956_v12 = vpop.f32.mrf.mxu0 }
 0x979   :  { %v6180_v43 = vmul.f32 %v6124_v47, %v8951_v60  ;;  %v6125_v44 = vmul.f32 %v8956_v12, %v9309_v7  ;;  %v6155_v54 = vsel %vm3904_vm3, %v6124_v47, 0.0  ;;  %v6228_v47 = vld [vmem:[%s9056_s10] sm:$0xf] }
 0x97a   :  { %v6156_v10 = vadd.f32 %v6155_v54, %v6154_v45 }
 0x97b   :  { %v6211_v25 = vsel %vm3904_vm3, %v6180_v43, 0.0  ;;  %v6181_v8 = vmul.f32 %v6125_v44, %v8956_v12  ;;  %v6157_v2 = vsel %vm3904_vm3, %v6125_v44, 0.0 }
 0x97c   :  { %v6212_v49 = vadd.f32 %v6211_v25, %v6210_v27  ;;  %v6158_v3 = vadd.f32 %v6157_v2, %v6156_v10 }
 0x97d   :  { %v6213_v58 = vsel %vm3904_vm3, %v6181_v8, 0.0 }
 0x97e   :  { %v6214_v57 = vadd.f32 %v6213_v58, %v6212_v49 }
 0x981   :  { %v6105_v63 = vpop.f32.mrf.mxu1 }
 0x982   :  { %v6126_v36 = vmul.f32 %v6105_v63, %v9310_v4 }
 0x983   :  { %v6107_v5 = vpop.f32.mrf.mxu1 }
 0x984   :  { %v6159_v29 = vsel %vm3904_vm3, %v6126_v36, 0.0  ;;  %v6182_v38 = vmul.f32 %v6126_v36, %v6105_v63  ;;  %v6127_v39 = vmul.f32 %v6107_v5, %v9311_v1 }
 0x985   :  { %v6160_v16 = vadd.f32 %v6159_v29, %v6158_v3 }
 0x986   :  { %v6215_v14 = vsel %vm3904_vm3, %v6182_v38, 0.0  ;;  %v6161_v31 = vsel %vm3904_vm3, %v6127_v39, 0.0  ;;  %v6183_v42 = vmul.f32 %v6127_v39, %v6107_v5 }
 0x987   :  { %v6162_v0 = vadd.f32 %v6161_v31, %v6160_v16  ;;  %v6216_v34 = vadd.f32 %v6215_v14, %v6214_v57 }
 0x988   :  { %v6217_v15 = vsel %vm3904_vm3, %v6183_v42, 0.0 }
 0x989   :  { %6163 = vadd.xlane.f32.xlu0 %v6162_v0  ;;  %v6218_v18 = vadd.f32 %v6217_v15, %v6216_v34 }
 0x98b   :  { %6219 = vadd.xlane.f32.xlu1 %v6218_v18 }
 0xa12   :  { %v6164_v53 = vpop.xlane.xlu0 %6163 }
 0xa13   :  { %v6165_v59 = vmul.f32 0.00048828125, %v6164_v53 }
 0xa14   :  { %v6220_v20 = vpop.xlane.xlu1 %6219 }
 0xa15   :  { %v6222_v17 = vmul.f32 %v6165_v59, %v6165_v59  ;;  %v6221_v55 = vmul.f32 0.00048828125, %v6220_v20 }
 0xa17   :  { %v6223_v24 = vsub.f32 %v6221_v55, %v6222_v17 }
 0xa19   :  { %v6225_v50 = vadd.f32 1e-05, %v6223_v24 }
 0xa1b   :  { %6562 = vrsqrt.f32 %v6225_v50 }
 0xa28   :  { %v6563_v52 = vpop.eup %6562 }
 0xa29   :  { %v6227_v13 = vmul.f32 %v6563_v52, %v6224_v28 }
 0xa2b   :  { %6233 = vperm.xlu0 %6528, %v6227_v13   ;;  %v6229_v6 = vmul.f32 %v6227_v13, %v6165_v59 }
 0xa2d   :  { %v6230_v61 = vsub.f32 %v6228_v47, %v6229_v6 }
 0xa2f   :  { %6256 = vperm.xlu1 %6529, %v6230_v61  }
 0xaa6   :  { %v6234_v9 = vpop.permute.xlu0 %6233 }
 0xaa7   :  { %v6236_v62 = vmul.f32 %v6234_v9, %v8858_v48  ;;  %v6237_v26 = vmul.f32 %v6234_v9, %v8860_v37  ;;  %v6238_v43 = vmul.f32 %v6234_v9, %v8866_v46  ;;  %v6239_v7 = vmul.f32 %v6234_v9, %v8872_v21 }
 0xaa8   :  { %v6240_v44 = vmul.f32 %v6234_v9, %v8881_v35  ;;  %v6241_v19 = vmul.f32 %v6234_v9, %v8888_v33  ;;  %v6242_v40 = vmul.f32 %v6234_v9, %v8895_v22  ;;  %v6243_v54 = vmul.f32 %v6234_v9, %v8902_v30 }
 0xaa9   :  { %v6244_v45 = vmul.f32 %v6234_v9, %v8909_v56  ;;  %v6245_v25 = vmul.f32 %v6234_v9, %v8916_v51  ;;  %v6246_v48 = vmul.f32 %v6234_v9, %v8923_v11  ;;  %v6247_v37 = vmul.f32 %v6234_v9, %v8930_v23 }
 0xaaa   :  { %v6248_v46 = vmul.f32 %v6234_v9, %v8937_v41  ;;  %v6249_v21 = vmul.f32 %v6234_v9, %v8944_v32  ;;  %v6250_v35 = vmul.f32 %v6234_v9, %v8951_v60  ;;  %v6251_v33 = vmul.f32 %v6234_v9, %v8956_v12  ;;  %v6257_v8 = vpop.permute.xlu1 %6256 }
 0xaab   :  { %v6252_v22 = vmul.f32 %v6234_v9, %v6105_v63  ;;  %v6253_v27 = vmul.f32 %v6234_v9, %v6107_v5  ;;  %v6259_v30 = vadd.f32 %v6257_v8, %v6236_v62  ;;  %v6260_v10 = vadd.f32 %v6257_v8, %v6237_v26 }
 0xaac   :  { %v6261_v56 = vadd.f32 %v6257_v8, %v6238_v43  ;;  %v6262_v2 = vadd.f32 %v6257_v8, %v6239_v7  ;;  %v6263_v51 = vadd.f32 %v6257_v8, %v6240_v44  ;;  %v6264_v49 = vadd.f32 %v6257_v8, %v6241_v19 }
 0xaad   :  { %v6265_v11 = vadd.f32 %v6257_v8, %v6242_v40  ;;  %v6266_v58 = vadd.f32 %v6257_v8, %v6243_v54  ;;  %v6267_v23 = vadd.f32 %v6257_v8, %v6244_v45  ;;  %v6268_v4 = vadd.f32 %v6257_v8, %v6245_v25 }
 0xaae   :  { %v6269_v41 = vadd.f32 %v6257_v8, %v6246_v48  ;;  %v6270_v36 = vadd.f32 %v6257_v8, %v6247_v37  ;;  %v6271_v32 = vadd.f32 %v6257_v8, %v6248_v46  ;;  %v6272_v3 = vadd.f32 %v6257_v8, %v6249_v21 }
 0xaaf   :  { %v6273_v60 = vadd.f32 %v6257_v8, %v6250_v35  ;;  %v6274_v29 = vadd.f32 %v6257_v8, %v6251_v33  ;;  %v6275_v12 = vadd.f32 %v6257_v8, %v6252_v22  ;;  %v6276_v38 = vadd.f32 %v6257_v8, %v6253_v27 }
 0xab0   :  { %vm6279_vm2 = vcmp.gt.f32.partialorder %v6261_v56, 0.0  ;;  %vm6280_vm12 = vcmp.gt.f32.partialorder %v6262_v2, 0.0  ;;  %vm6281_vm14 = vcmp.gt.f32.partialorder %v6263_v51, 0.0  ;;  %vm6282_vm0 = vcmp.gt.f32.partialorder %v6264_v49, 0.0 }
 0xab1   :  { %vm6284_vm7 = vcmp.gt.f32.partialorder %v6266_v58, 0.0  ;;  %vm6285_vm5 = vcmp.gt.f32.partialorder %v6267_v23, 0.0  ;;  %vm6286_vm10 = vcmp.gt.f32.partialorder %v6268_v4, 0.0  ;;  %vm6287_vm13 = vcmp.gt.f32.partialorder %v6269_v41, 0.0 }
 0xab2   :  { %vm6289_vm6 = vcmp.gt.f32.partialorder %v6271_v32, 0.0  ;;  %vm6290_vm9 = vcmp.gt.f32.partialorder %v6272_v3, 0.0  ;;  %vm6291_vm4 = vcmp.gt.f32.partialorder %v6273_v60, 0.0  ;;  %vm6292_vm11 = vcmp.gt.f32.partialorder %v6274_v29, 0.0 }
 0xab3   :  { %vm6293_vm3 = vcmp.gt.f32.partialorder %v6275_v12, 0.0  ;;  %vm6294_vm8 = vcmp.gt.f32.partialorder %v6276_v38, 0.0  ;;  %v6295_v63 = vmul.f32 0.01, %v6259_v30  ;;  %v6296_v5 = vmul.f32 0.01, %v6260_v10 }
 0xab4   :  { %v6297_v1 = vmul.f32 0.01, %v6261_v56  ;;  %v6298_v39 = vmul.f32 0.01, %v6262_v2  ;;  %v6299_v57 = vmul.f32 0.01, %v6263_v51 }
 0xab5   :  { %v6300_v16 = vmul.f32 0.01, %v6264_v49  ;;  %v6301_v14 = vmul.f32 0.01, %v6265_v11  ;;  %v6302_v31 = vmul.f32 0.01, %v6266_v58 }
 0xab6   :  { %vm9312_vm15 = vcmp.gt.f32.partialorder %v6259_v30, 0.0  ;;  %v6303_v0 = vmul.f32 0.01, %v6267_v23  ;;  %v6304_v34 = vmul.f32 0.01, %v6268_v4  ;;  %vm9313_vm1 = vcmp.gt.f32.partialorder %v6260_v10, 0.0 }
 0xab7   :  { %v6313_v42 = vsel %vm9312_vm15, %v6259_v30, %v6295_v63  ;;  %v6305_v15 = vmul.f32 0.01, %v6269_v41  ;;  %v6314_v18 = vsel %vm9313_vm1, %v6260_v10, %v6296_v5  ;;  %v6306_v53 = vmul.f32 0.01, %v6270_v36 }
 0xab8   :  { %v6307_v59 = vmul.f32 0.01, %v6271_v32  ;;  %v6308_v20 = vmul.f32 0.01, %v6272_v3  ;;  %v6315_v17 = vsel %vm6279_vm2, %v6261_v56, %v6297_v1  ;;  %v6309_v55 = vmul.f32 0.01, %v6273_v60 }
 0xab9   :  { %v6310_v24 = vmul.f32 0.01, %v6274_v29  ;;  %v6311_v50 = vmul.f32 0.01, %v6275_v12  ;;  %v6316_v28 = vsel %vm6280_vm12, %v6262_v2, %v6298_v39  ;;  %v6312_v52 = vmul.f32 0.01, %v6276_v38 }
 0xaba   :  { %v6317_v13 = vsel %vm6281_vm14, %v6263_v51, %v6299_v57  ;;  %v6318_v47 = vsel %vm6282_vm0, %v6264_v49, %v6300_v16  ;;  %vm9314_vm15 = vcmp.gt.f32.partialorder %v6265_v11, 0.0  ;;  %v6320_v61 = vsel %vm6284_vm7, %v6266_v58, %v6302_v31 }
 0xabb   :  { %v6319_v6 = vsel %vm9314_vm15, %v6265_v11, %v6301_v14  ;;  %v6321_v9 = vsel %vm6285_vm5, %v6267_v23, %v6303_v0  ;;  %v6322_v62 = vsel %vm6286_vm10, %v6268_v4, %v6304_v34  ;;  %v6323_v26 = vsel %vm6287_vm13, %v6269_v41, %v6305_v15 }
 0xabc   :  { %vm9315_vm2 = vcmp.gt.f32.partialorder %v6270_v36, 0.0  ;;  %v6325_v7 = vsel %vm6289_vm6, %v6271_v32, %v6307_v59  ;;  %v6326_v44 = vsel %vm6290_vm9, %v6272_v3, %v6308_v20  ;;  %v6327_v19 = vsel %vm6291_vm4, %v6273_v60, %v6309_v55  ;;  %6351 = vst [vmem:[%s9058_s12 + $0x20] sm:$0xf] %v6321_v9 }
 0xabd   :  { %v6324_v43 = vsel %vm9315_vm2, %v6270_v36, %v6306_v53  ;;  %v6328_v40 = vsel %vm6292_vm11, %v6274_v29, %v6310_v24  ;;  %v6329_v54 = vsel %vm6293_vm3, %v6275_v12, %v6311_v50  ;;  %v6330_v45 = vsel %vm6294_vm8, %v6276_v38, %v6312_v52 }
 0xabe   :  { %v6339_v25 = vcombine.low %v6313_v42, %v6314_v18  ;;  %v6340_v48 = vcombine.low %v6315_v17, %v6316_v28  ;;  %v6341_v37 = vcombine.low %v6317_v13, %v6318_v47  ;;  %v6342_v46 = vcombine.low %v6319_v6, %v6320_v61  ;;  %6429 = vst [vmem:[%s9058_s12 + $0x44] sm:$0xf] %v6330_v45 }
 0xabf   :  { %v6360_v21 = vcombine.low %v6322_v62, %v6323_v26  ;;  %v6361_v35 = vcombine.low %v6324_v43, %v6325_v7  ;;  %v6362_v33 = vcombine.low %v6326_v44, %v6327_v19  ;;  %v6363_v8 = vcombine.low %v6328_v40, %v6329_v54 }
 0xac0   :  { %6347 = vst [vmem:[%s9058_s12] sm:$0xff] %v6339_v25  ;;  %6348 = vst [vmem:[%s9058_s12 + $0x8] sm:$0xff] %v6340_v48 }
 0xac1   :  { %6349 = vst [vmem:[%s9058_s12 + $0x10] sm:$0xff] %v6341_v37  ;;  %6350 = vst [vmem:[%s9058_s12 + $0x18] sm:$0xff] %v6342_v46 }
 0xac2   :  { %6425 = vst [vmem:[%s9058_s12 + $0x24] sm:$0xff] %v6360_v21  ;;  %6426 = vst [vmem:[%s9058_s12 + $0x2c] sm:$0xff] %v6361_v35 }
 0xac3   :  { %6427 = vst [vmem:[%s9058_s12 + $0x34] sm:$0xff] %v6362_v33  ;;  %6428 = vst [vmem:[%s9058_s12 + $0x3c] sm:$0xff] %v6363_v8 }
 0xac4   :  { %6378 = vsyncpa [#allocation7], 1 }
 0xac5   :  { %6379 = vsyncpa [#allocation9], 1 }

</bundles_post_ra>
